<compile_context>
chip_gen: v7x
topology: tpu7x:2x2x1
jax: 0.10.0
libtpu: 0.0.40
codegen_flags: <defaults>
</compile_context>

<pallas_src>
import functools

import jax
import jax.numpy as jnp
from jax.experimental import pallas as pl
from jax.experimental.pallas import tpu as pltpu

_VMEM_SPEC = pl.BlockSpec(memory_space=pltpu.MemorySpace.VMEM)
# 32 MiB scoped VMEM: below v7x's 64 MiB physical and well below v5e/v6e's
# 128 MiB; far larger than the double-buffered tile working set (~5 MiB max).
_VMEM_LIMIT = 32 * 1024 * 1024
_BN_EPS = 1e-5
_ACT_DTYPE = jnp.bfloat16
_RESNET18_CHANNELS = [64, 64, 128, 256, 512]


def _round_up(x, m):
    return (x + m - 1) // m * m


def _pick_div(padded, unit, max_units):
    """Largest multiple of `unit` that is <= unit*max_units and divides `padded`."""
    q = padded // unit
    for d in range(min(max_units, q), 0, -1):
        if q % d == 0:
            return unit * d
    return unit


# ----------------------------------------------------------------------------
# Pallas kernels
# ----------------------------------------------------------------------------
def _mm_bn_kernel(a_ref, b_ref, s_ref, c_ref, o_ref, acc_ref, *, relu):
    @pl.when(pl.program_id(2) == 0)
    def _():
        acc_ref[...] = jnp.zeros_like(acc_ref)

    acc_ref[...] += jnp.dot(a_ref[...], b_ref[...],
                            preferred_element_type=jnp.float32)

    @pl.when(pl.program_id(2) == pl.num_programs(2) - 1)
    def _():
        out = acc_ref[...] * s_ref[...] + c_ref[...]
        if relu:
            out = jnp.maximum(out, 0.0)
        o_ref[...] = out.astype(o_ref.dtype)


def _mm_bn_res_kernel(a_ref, b_ref, s_ref, c_ref, r_ref, o_ref, acc_ref, *, relu):
    @pl.when(pl.program_id(2) == 0)
    def _():
        acc_ref[...] = jnp.zeros_like(acc_ref)

    acc_ref[...] += jnp.dot(a_ref[...], b_ref[...],
                            preferred_element_type=jnp.float32)

    @pl.when(pl.program_id(2) == pl.num_programs(2) - 1)
    def _():
        out = (acc_ref[...] * s_ref[...] + c_ref[...]
               + r_ref[...].astype(jnp.float32))
        if relu:
            out = jnp.maximum(out, 0.0)
        o_ref[...] = out.astype(o_ref.dtype)


def _maxpool9_kernel(x_ref, o_ref, *, oh, ow):
    # x_ref: (2, 2, 1, HH, WW, C) even/odd parity-split padded activation for one
    # image, so the stride-2 3x3 window becomes 9 unit-stride in-VMEM taps.
    pars = [[x_ref[0, 0], x_ref[0, 1]],
            [x_ref[1, 0], x_ref[1, 1]]]
    out = None
    for di in range(3):
        qi, pi = di // 2, di % 2          # input row = 2*(oh_i + qi) + pi
        for dj in range(3):
            qj, pj = dj // 2, dj % 2
            tap = pars[pi][pj][:, qi:qi + oh, qj:qj + ow, :]
            out = tap if out is None else jnp.maximum(out, tap)
    # TODO(synk): the store is only C=64 lanes wide (masked vst); a collapsed
    # (ow*c) lane-dense output layout would roughly double effective store width.
    o_ref[...] = out


def _avgpool_fc_kernel(x_ref, w_ref, b_ref, o_ref, *, inv_hw):
    # x: (N, H*W, C) bf16 -> f32 mean over spatial, then bf16 fc matmul + f32 bias.
    pooled = jnp.sum(x_ref[...].astype(jnp.float32), axis=1) * inv_hw       # (N, C)
    o_ref[...] = jnp.dot(pooled.astype(jnp.bfloat16), w_ref[...],
                         preferred_element_type=jnp.float32) + b_ref[...]


# ----------------------------------------------------------------------------
# Fused matmul + BN / residual / ReLU (gridded, pipelined, bf16 MXU, bf16 I/O)
# ----------------------------------------------------------------------------
def matmul_bn(a, b_p, s_p, c_p, residual=None, relu=False, out_dtype=_ACT_DTYPE):
    """out = maybe_relu((a @ b_p) * s_p + c_p [+ residual]).

    `b_p` (K-major weight), `s_p`, `c_p` are pre-packed/padded at init
    (bf16 weight, f32 folded-BN scale/bias).  M is padded to a 16 multiple
    (bf16 sublane pack); tiles go up to 512 per dim; the reduction axis is last
    and marked "arbitrary".  Returns (m, Np) with padded rows sliced off
    (padded columns are exact zeros and are sliced by the caller).
    """
    m, k = a.shape
    kp, np_ = b_p.shape
    assert k <= kp

    mp = _round_up(m, 16)
    tm = _pick_div(mp, 16, 32)            # tm <= 512, multiple of 16
    tk = _pick_div(kp, 128, 4)            # tk <= 512
    tn = _pick_div(np_, 128, 4)           # tn <= 512 (fills 256-wide MXU)
    # v7x megacore: ensure >=2 tiles on the 'parallel' axes so both TCs get work.
    for _ in range(2):
        if (mp // tm) * (np_ // tn) >= 2:
            break
        if tn % 256 == 0:
            tn //= 2
        elif tm % 32 == 0:
            tm //= 2
        else:
            break

    a = a.astype(jnp.bfloat16)
    if (mp, kp) != (m, k):
        a = jnp.zeros((mp, kp), jnp.bfloat16).at[:m, :k].set(a)

    in_specs = [
        pl.BlockSpec((tm, tk), lambda i, j, kk: (i, kk)),
        # TODO(synk): add pipeline_mode=pl.Buffered(3) here if weight DMA is
        # still exposed after the bf16 bandwidth fixes.
        pl.BlockSpec((tk, tn), lambda i, j, kk: (kk, j)),
        pl.BlockSpec((1, tn), lambda i, j, kk: (0, j)),
        pl.BlockSpec((1, tn), lambda i, j, kk: (0, j)),
    ]
    args = [a, b_p, s_p, c_p]
    if residual is None:
        kernel = functools.partial(_mm_bn_kernel, relu=relu)
    else:
        # TODO(synk): alias the residual buffer to the output via
        # input_output_aliases to drop one HBM allocation.
        rm, rn = residual.shape
        r = residual.astype(jnp.bfloat16)
        if (mp, np_) != (rm, rn):
            r = jnp.zeros((mp, np_), jnp.bfloat16).at[:rm, :rn].set(r)
        in_specs.append(pl.BlockSpec((tm, tn), lambda i, j, kk: (i, j)))
        args.append(r)
        kernel = functools.partial(_mm_bn_res_kernel, relu=relu)

    out = pl.pallas_call(
        kernel,
        out_shape=jax.ShapeDtypeStruct((mp, np_), out_dtype),
        grid_spec=pltpu.PrefetchScalarGridSpec(
            num_scalar_prefetch=0,
            grid=(mp // tm, np_ // tn, kp // tk),
            in_specs=in_specs,
            out_specs=pl.BlockSpec((tm, tn), lambda i, j, kk: (i, j)),
            scratch_shapes=[pltpu.VMEM((tm, tn), jnp.float32)]),
        compiler_params=pltpu.CompilerParams(
            dimension_semantics=("parallel", "parallel", "arbitrary"),
            vmem_limit_bytes=_VMEM_LIMIT),
    )(*args)
    return out[:m] if mp != m else out


# ----------------------------------------------------------------------------
# MaxPool 3x3 / stride 2 / pad 1 (single read of the activation, gridded over N)
# ----------------------------------------------------------------------------
def maxpool_3x3_s2_p1(x):
    """PyTorch MaxPool2d(kernel=3, stride=2, padding=1) on NHWC input."""
    n, h, w, c = x.shape
    oh = (h + 2 - 3) // 2 + 1
    ow = (w + 2 - 3) // 2 + 1
    hp = _round_up(h + 2, 2)
    wp = _round_up(w + 2, 2)
    xp = jnp.pad(x, ((0, 0), (1, hp - h - 1), (1, wp - w - 1), (0, 0)),
                 constant_values=-jnp.inf)
    hh, ww = hp // 2, wp // 2
    # Even/odd parity split (single 1x-size transpose, no 9x window stack):
    # xpar[pi, pj, n, a, b, c] = xp[n, 2a+pi, 2b+pj, c]
    xpar = xp.reshape(n, hh, 2, ww, 2, c).transpose(2, 4, 0, 1, 3, 5)
    return pl.pallas_call(
        functools.partial(_maxpool9_kernel, oh=oh, ow=ow),
        out_shape=jax.ShapeDtypeStruct((n, oh, ow, c), x.dtype),
        grid_spec=pltpu.PrefetchScalarGridSpec(
            num_scalar_prefetch=0,
            grid=(n,),
            in_specs=[pl.BlockSpec((2, 2, 1, hh, ww, c),
                                   lambda b: (0, 0, b, 0, 0, 0))],
            out_specs=pl.BlockSpec((1, oh, ow, c), lambda b: (b, 0, 0, 0))),
        compiler_params=pltpu.CompilerParams(
            dimension_semantics=("parallel",),
            vmem_limit_bytes=_VMEM_LIMIT),
    )(xpar)


# ----------------------------------------------------------------------------
# Global average pool + final Linear, fused into one kernel
# ----------------------------------------------------------------------------
def avgpool_fc(x, fc_p, *, n_out):
    """AdaptiveAvgPool2d((1,1)) + flatten + Linear(512 -> n_out)."""
    # TODO(synk): grid over batch rows if N grows large; the pooled working set
    # here is tiny so whole-array VMEM is fine.
    n, h, w, c = x.shape
    out = pl.pallas_call(
        functools.partial(_avgpool_fc_kernel, inv_hw=1.0 / float(h * w)),
        out_shape=jax.ShapeDtypeStruct((n, fc_p['w'].shape[1]), jnp.float32),
        in_specs=[_VMEM_SPEC] * 3,
        out_specs=_VMEM_SPEC,
        compiler_params=pltpu.CompilerParams(vmem_limit_bytes=_VMEM_LIMIT),
    )(x.reshape(n, h * w, c), fc_p['w'], fc_p['b'])
    return out[:, :n_out]


# ----------------------------------------------------------------------------
# Conv (bf16 im2col glue) + fused BN / residual / ReLU matmul
# ----------------------------------------------------------------------------
def conv_bn(x, conv_p, *, kh, kw, oc, stride, pad, relu, residual=None):
    # TODO(synk): stream the kh*kw taps inside the matmul kernel (fold the tap
    # index into the K grid axis / manual DMA over the padded NHWC activation)
    # instead of materializing bf16 im2col patches in XLA; that would cut the
    # activation read bytes ~kh*kw x for 3x3 convs.
    n, h, w, c = x.shape
    oh = (h + 2 * pad - kh) // stride + 1
    ow = (w + 2 * pad - kw) // stride + 1
    xp = jnp.pad(x, ((0, 0), (pad, pad), (pad, pad), (0, 0))) if pad > 0 else x
    if kh == 1 and kw == 1 and stride == 1:
        a = x.reshape(n * oh * ow, c)
    else:
        patches = [
            xp[:, di:di + stride * (oh - 1) + 1:stride,
               dj:dj + stride * (ow - 1) + 1:stride, :]
            for di in range(kh) for dj in range(kw)
        ]
        a = jnp.concatenate(patches, axis=-1).reshape(n * oh * ow, kh * kw * c)
    res = None if residual is None else residual.reshape(n * oh * ow,
                                                         residual.shape[-1])
    out = matmul_bn(a, conv_p['w'], conv_p['scale'], conv_p['bias'],
                    residual=res, relu=relu)
    out = out.reshape(n, oh, ow, out.shape[-1])
    return out[..., :oc] if out.shape[-1] != oc else out


def basic_block(x, blk, cout, stride):
    # TODO(synk): the whole BasicBlock could be fused into a single pallas_call
    # keeping the activation in VMEM; currently each conv is one fused kernel.
    out = conv_bn(x, blk['conv1'], kh=3, kw=3, oc=cout, stride=stride, pad=1,
                  relu=True)
    if 'downsample' in blk:
        identity = conv_bn(x, blk['downsample'], kh=1, kw=1, oc=cout,
                           stride=stride, pad=0, relu=False)
    else:
        identity = x
    # out = relu(bn2(conv2(out)) + identity)
    return conv_bn(out, blk['conv2'], kh=3, kw=3, oc=cout, stride=1, pad=1,
                   relu=True, residual=identity)


def resnet18_forward(packed, x_nchw):
    x = jnp.transpose(x_nchw, (0, 2, 3, 1)).astype(_ACT_DTYPE)  # NCHW -> NHWC bf16
    x = conv_bn(x, packed['conv1'], kh=7, kw=7, oc=64, stride=2, pad=3, relu=True)
    x = maxpool_3x3_s2_p1(x)
    for li, layer in enumerate(packed['layers']):
        cout = _RESNET18_CHANNELS[li + 1]
        for bi, blk in enumerate(layer):
            stride = 2 if (li > 0 and bi == 0) else 1
            x = basic_block(x, blk, cout, stride)
    return avgpool_fc(x, packed['fc'], n_out=3)                 # (N, 3) f32


# ----------------------------------------------------------------------------
# One-time parameter packing: OIHW -> (K, OC) bf16 (tile padded), BN folded.
# ----------------------------------------------------------------------------
def _fold_bn(bn):
    scale = bn['gamma'] / jnp.sqrt(bn['var'] + _BN_EPS)
    bias = bn['beta'] - bn['mean'] * scale
    return scale, bias


def _pack_conv(w_oihw, bn):
    oc, ic, kh, kw = w_oihw.shape
    k = kh * kw * ic
    kp = _round_up(k, 128)
    np_ = _round_up(oc, 128)
    # PyTorch OIHW -> (KH, KW, IC, OC) -> (KH*KW*IC, OC), matching im2col order.
    b = jnp.transpose(w_oihw, (2, 3, 1, 0)).reshape(k, oc)
    b_p = jnp.zeros((kp, np_), jnp.bfloat16).at[:k, :oc].set(b.astype(jnp.bfloat16))
    scale, bias = _fold_bn(bn)
    s_p = jnp.ones((1, np_), jnp.float32).at[0, :oc].set(scale.astype(jnp.float32))
    c_p = jnp.zeros((1, np_), jnp.float32).at[0, :oc].set(bias.astype(jnp.float32))
    return {'w': b_p, 'scale': s_p, 'bias': c_p}


def _pack_fc(fc_w, fc_b):
    n_out, c = fc_w.shape
    np_ = _round_up(n_out, 128)
    w_p = jnp.zeros((c, np_), jnp.bfloat16).at[:, :n_out].set(
        fc_w.T.astype(jnp.bfloat16))
    b_p = jnp.zeros((1, np_), jnp.float32).at[0, :n_out].set(
        fc_b.astype(jnp.float32))
    return {'w': w_p, 'b': b_p}


def prepare_resnet18_params(params):
    packed = {'conv1': _pack_conv(params['conv1'], params['bn1']),
              'layers': [],
              'fc': _pack_fc(params['fc_w'], params['fc_b'])}
    for layer in params['layers']:
        blocks = []
        for blk in layer:
            pb = {'conv1': _pack_conv(blk['conv1'], blk['bn1']),
                  'conv2': _pack_conv(blk['conv2'], blk['bn2'])}
            if 'ds_conv' in blk:
                pb['downsample'] = _pack_conv(blk['ds_conv'], blk['ds_bn'])
            blocks.append(pb)
        packed['layers'].append(blocks)
    return packed


# ----------------------------------------------------------------------------
# Deterministic parameter initialization (resnet18 topology, fc -> 3)
# ----------------------------------------------------------------------------
def _init_conv(key, oc, ic, kh, kw):
    return 0.05 * jax.random.normal(key, (oc, ic, kh, kw), jnp.float32)


def _init_bn(key, c):
    k1, k2, k3, k4 = jax.random.split(key, 4)
    return dict(
        gamma=1.0 + 0.1 * jax.random.normal(k1, (c,), jnp.float32),
        beta=0.1 * jax.random.normal(k2, (c,), jnp.float32),
        mean=0.1 * jax.random.normal(k3, (c,), jnp.float32),
        var=1.0 + 0.1 * jnp.abs(jax.random.normal(k4, (c,), jnp.float32)),
    )


def init_resnet18_params(key):
    keys = iter(jax.random.split(key, 256))
    p = {}
    p['conv1'] = _init_conv(next(keys), 64, 3, 7, 7)
    p['bn1'] = _init_bn(next(keys), 64)
    layers = []
    for li in range(4):
        cin, cout = _RESNET18_CHANNELS[li], _RESNET18_CHANNELS[li + 1]
        layer_stride = 1 if li == 0 else 2
        blocks = []
        for bi in range(2):
            s = layer_stride if bi == 0 else 1
            bic = cin if bi == 0 else cout
            blk = {
                'conv1': _init_conv(next(keys), cout, bic, 3, 3),
                'bn1': _init_bn(next(keys), cout),
                'conv2': _init_conv(next(keys), cout, cout, 3, 3),
                'bn2': _init_bn(next(keys), cout),
            }
            if s != 1 or bic != cout:
                blk['ds_conv'] = _init_conv(next(keys), cout, bic, 1, 1)
                blk['ds_bn'] = _init_bn(next(keys), cout)
            blocks.append(blk)
        layers.append(blocks)
    p['layers'] = layers
    p['fc_w'] = 0.05 * jax.random.normal(next(keys), (3, 512), jnp.float32)
    p['fc_b'] = 0.05 * jax.random.normal(next(keys), (3,), jnp.float32)
    return p


if __name__ == "__main__":
    key = jax.random.PRNGKey(0)
    pkey, xkey = jax.random.split(key)
    params = init_resnet18_params(pkey)
    packed = prepare_resnet18_params(params)   # one-time pack/pad/BN-fold (not per-forward)
    x = jax.random.normal(xkey, (2, 3, 32, 32), jnp.float32)  # NCHW like PyTorch
    fwd = jax.jit(resnet18_forward)
    out = jax.block_until_ready(fwd(packed, x))
    assert out.shape == (2, 3) and out.dtype == jnp.float32
    print("KERNEL_OK")
</pallas_src>

<mosaic_0001>
module attributes {stable_mosaic.version = 11 : i64} {
  func.func @_mm_bn_kernel(%arg0: i32, %arg1: i32, %arg2: i32, %arg3: memref<256x256xbf16, #tpu.memory_space<vmem>>, %arg4: memref<256x128xbf16, #tpu.memory_space<vmem>>, %arg5: memref<1x128xf32, #tpu.memory_space<vmem>>, %arg6: memref<1x128xf32, #tpu.memory_space<vmem>>, %arg7: memref<256x128xbf16, #tpu.memory_space<vmem>>, %arg8: memref<256x128xf32, #tpu.memory_space<vmem>>) attributes {dimension_semantics = [#tpu.dimension_semantics<parallel>, #tpu.dimension_semantics<parallel>, #tpu.dimension_semantics<arbitrary>], iteration_bounds = array<i64: 2, 1, 1>, scalar_prefetch = 0 : i64, scratch_operands = 1 : i64, tpu.core_type = #tpu.core_type<tc>, window_params = [{transform_indices = @transform_0, window_bounds = array<i64: 256, 256>}, {transform_indices = @transform_1, window_bounds = array<i64: 256, 128>}, {transform_indices = @transform_2, window_bounds = array<i64: 1, 128>}, {transform_indices = @transform_3, window_bounds = array<i64: 1, 128>}, {transform_indices = @transform_4, window_bounds = array<i64: 256, 128>}]} {
    %c0_i32 = arith.constant 0 : i32
    %0 = arith.cmpi eq, %arg2, %c0_i32 : i32
    %1 = arith.extui %0 : i1 to i32
    %c0_i32_0 = arith.constant 0 : i32
    %2 = arith.cmpi ne, %1, %c0_i32_0 : i32
    scf.if %2 {
      %cst_10 = arith.constant 0.000000e+00 : f32
      %12 = vector.broadcast %cst_10 : f32 to vector<256x128xf32>
      %c0_11 = arith.constant 0 : index
      %c0_12 = arith.constant 0 : index
      %13 = vector.load %arg8[%c0_11, %c0_12] : memref<256x128xf32, #tpu.memory_space<vmem>>, vector<256x128xf32>
      tpu.vector_store %arg8[%c0_11, %c0_12], %12 {strides = array<i32>} : memref<256x128xf32, #tpu.memory_space<vmem>>, vector<256x128xf32>,
    } else {
    }
    %c0 = arith.constant 0 : index
    %c0_1 = arith.constant 0 : index
    %3 = vector.load %arg8[%c0, %c0_1] : memref<256x128xf32, #tpu.memory_space<vmem>>, vector<256x128xf32>
    %c0_2 = arith.constant 0 : index
    %c0_3 = arith.constant 0 : index
    %4 = vector.load %arg3[%c0_2, %c0_3] : memref<256x256xbf16, #tpu.memory_space<vmem>>, vector<256x256xbf16>
    %c0_4 = arith.constant 0 : index
    %c0_5 = arith.constant 0 : index
    %5 = vector.load %arg4[%c0_4, %c0_5] : memref<256x128xbf16, #tpu.memory_space<vmem>>, vector<256x128xbf16>
    %cst = arith.constant dense<0.000000e+00> : vector<256x128xf32>
    %6 = tpu.matmul %4, %5, %cst {dimension_numbers = #tpu.dot_dimension_numbers<[1], [0], [0], [1], [0, 0, 1, 1], [], []>} : vector<256x256xbf16>, vector<256x128xbf16>, vector<256x128xf32> -> vector<256x128xf32>
    %7 = arith.addf %3, %6 : vector<256x128xf32>
    %c0_6 = arith.constant 0 : index
    %c0_7 = arith.constant 0 : index
    %8 = vector.load %arg8[%c0_6, %c0_7] : memref<256x128xf32, #tpu.memory_space<vmem>>, vector<256x128xf32>
    tpu.vector_store %arg8[%c0_6, %c0_7], %7 {strides = array<i32>} : memref<256x128xf32, #tpu.memory_space<vmem>>, vector<256x128xf32>,
    %c0_i32_8 = arith.constant 0 : i32
    %9 = arith.cmpi eq, %arg2, %c0_i32_8 : i32
    %10 = arith.extui %9 : i1 to i32
    %c0_i32_9 = arith.constant 0 : i32
    %11 = arith.cmpi ne, %10, %c0_i32_9 : i32
    scf.if %11 {
      %c0_10 = arith.constant 0 : index
      %c0_11 = arith.constant 0 : index
      %12 = vector.load %arg8[%c0_10, %c0_11] : memref<256x128xf32, #tpu.memory_space<vmem>>, vector<256x128xf32>
      %c0_12 = arith.constant 0 : index
      %c0_13 = arith.constant 0 : index
      %13 = vector.load %arg5[%c0_12, %c0_13] : memref<1x128xf32, #tpu.memory_space<vmem>>, vector<1x128xf32>
      %14 = vector.broadcast %13 : vector<1x128xf32> to vector<256x128xf32>
      %15 = arith.mulf %12, %14 : vector<256x128xf32>
      %c0_14 = arith.constant 0 : index
      %c0_15 = arith.constant 0 : index
      %16 = vector.load %arg6[%c0_14, %c0_15] : memref<1x128xf32, #tpu.memory_space<vmem>>, vector<1x128xf32>
      %17 = vector.broadcast %16 : vector<1x128xf32> to vector<256x128xf32>
      %18 = arith.addf %15, %17 : vector<256x128xf32>
      %cst_16 = arith.constant 0.000000e+00 : f32
      %19 = vector.broadcast %cst_16 : f32 to vector<256x128xf32>
      %20 = arith.maximumf %18, %19 : vector<256x128xf32>
      %21 = arith.truncf %20 : vector<256x128xf32> to vector<256x128xbf16>
      %c0_17 = arith.constant 0 : index
      %c0_18 = arith.constant 0 : index
      %22 = vector.load %arg7[%c0_17, %c0_18] : memref<256x128xbf16, #tpu.memory_space<vmem>>, vector<256x128xbf16>
      tpu.vector_store %arg7[%c0_17, %c0_18], %21 {strides = array<i32>} : memref<256x128xbf16, #tpu.memory_space<vmem>>, vector<256x128xbf16>,
    } else {
    }
    return
  }
  func.func @transform_0(%arg0: i32, %arg1: i32, %arg2: i32) -> (i32, i32) {
    %c0_i32 = arith.constant 0 : i32
    return %arg0, %arg2 : i32, i32
  }
  func.func @transform_1(%arg0: i32, %arg1: i32, %arg2: i32) -> (i32, i32) {
    %c0_i32 = arith.constant 0 : i32
    return %arg2, %arg1 : i32, i32
  }
  func.func @transform_2(%arg0: i32, %arg1: i32, %arg2: i32) -> (i32, i32) {
    %c0_i32 = arith.constant 0 : i32
    %c0_i32_0 = arith.constant 0 : i32
    return %c0_i32, %arg1 : i32, i32
  }
  func.func @transform_3(%arg0: i32, %arg1: i32, %arg2: i32) -> (i32, i32) {
    %c0_i32 = arith.constant 0 : i32
    %c0_i32_0 = arith.constant 0 : i32
    return %c0_i32, %arg1 : i32, i32
  }
  func.func @transform_4(%arg0: i32, %arg1: i32, %arg2: i32) -> (i32, i32) {
    %c0_i32 = arith.constant 0 : i32
    return %arg0, %arg1 : i32, i32
  }
}

module attributes {stable_mosaic.version = 11 : i64} {
  func.func @_maxpool9_kernel(%arg0: i32, %arg1: memref<2x2x1x9x9x64xbf16, #tpu.memory_space<vmem>>, %arg2: memref<1x8x8x64xbf16, #tpu.memory_space<vmem>>) attributes {dimension_semantics = [#tpu.dimension_semantics<parallel>], iteration_bounds = array<i64: 2>, scalar_prefetch = 0 : i64, scratch_operands = 0 : i64, tpu.core_type = #tpu.core_type<tc>, window_params = [{transform_indices = @transform_0, window_bounds = array<i64: 2, 2, 1, 9, 9, 64>}, {transform_indices = @transform_1, window_bounds = array<i64: 1, 8, 8, 64>}]} {
    %c0 = arith.constant 0 : index
    %c0_0 = arith.constant 0 : index
    %c0_1 = arith.constant 0 : index
    %c0_2 = arith.constant 0 : index
    %c0_3 = arith.constant 0 : index
    %c0_4 = arith.constant 0 : index
    %0 = vector.load %arg1[%c0, %c0_0, %c0_1, %c0_2, %c0_3, %c0_4] : memref<2x2x1x9x9x64xbf16, #tpu.memory_space<vmem>>, vector<1x1x1x9x9x64xbf16>
    %1 = vector.shape_cast %0 : vector<1x1x1x9x9x64xbf16> to vector<1x9x9x64xbf16>
    %c0_5 = arith.constant 0 : index
    %c1 = arith.constant 1 : index
    %c0_6 = arith.constant 0 : index
    %c0_7 = arith.constant 0 : index
    %c0_8 = arith.constant 0 : index
    %c0_9 = arith.constant 0 : index
    %2 = vector.load %arg1[%c0_5, %c1, %c0_6, %c0_7, %c0_8, %c0_9] : memref<2x2x1x9x9x64xbf16, #tpu.memory_space<vmem>>, vector<1x1x1x9x9x64xbf16>
    %3 = vector.shape_cast %2 : vector<1x1x1x9x9x64xbf16> to vector<1x9x9x64xbf16>
    %c1_10 = arith.constant 1 : index
    %c0_11 = arith.constant 0 : index
    %c0_12 = arith.constant 0 : index
    %c0_13 = arith.constant 0 : index
    %c0_14 = arith.constant 0 : index
    %c0_15 = arith.constant 0 : index
    %4 = vector.load %arg1[%c1_10, %c0_11, %c0_12, %c0_13, %c0_14, %c0_15] : memref<2x2x1x9x9x64xbf16, #tpu.memory_space<vmem>>, vector<1x1x1x9x9x64xbf16>
    %5 = vector.shape_cast %4 : vector<1x1x1x9x9x64xbf16> to vector<1x9x9x64xbf16>
    %c1_16 = arith.constant 1 : index
    %c1_17 = arith.constant 1 : index
    %c0_18 = arith.constant 0 : index
    %c0_19 = arith.constant 0 : index
    %c0_20 = arith.constant 0 : index
    %c0_21 = arith.constant 0 : index
    %6 = vector.load %arg1[%c1_16, %c1_17, %c0_18, %c0_19, %c0_20, %c0_21] : memref<2x2x1x9x9x64xbf16, #tpu.memory_space<vmem>>, vector<1x1x1x9x9x64xbf16>
    %7 = vector.shape_cast %6 : vector<1x1x1x9x9x64xbf16> to vector<1x9x9x64xbf16>
    %8 = vector.extract_strided_slice %1 {offsets = [0, 0, 0, 0], sizes = [1, 8, 8, 64], strides = [1, 1, 1, 1]} : vector<1x9x9x64xbf16> to vector<1x8x8x64xbf16>
    %9 = vector.extract_strided_slice %3 {offsets = [0, 0, 0, 0], sizes = [1, 8, 8, 64], strides = [1, 1, 1, 1]} : vector<1x9x9x64xbf16> to vector<1x8x8x64xbf16>
    %10 = arith.maximumf %8, %9 : vector<1x8x8x64xbf16>
    %11 = vector.extract_strided_slice %1 {offsets = [0, 0, 1, 0], sizes = [1, 8, 8, 64], strides = [1, 1, 1, 1]} : vector<1x9x9x64xbf16> to vector<1x8x8x64xbf16>
    %12 = arith.maximumf %10, %11 : vector<1x8x8x64xbf16>
    %13 = vector.extract_strided_slice %5 {offsets = [0, 0, 0, 0], sizes = [1, 8, 8, 64], strides = [1, 1, 1, 1]} : vector<1x9x9x64xbf16> to vector<1x8x8x64xbf16>
    %14 = arith.maximumf %12, %13 : vector<1x8x8x64xbf16>
    %15 = vector.extract_strided_slice %7 {offsets = [0, 0, 0, 0], sizes = [1, 8, 8, 64], strides = [1, 1, 1, 1]} : vector<1x9x9x64xbf16> to vector<1x8x8x64xbf16>
    %16 = arith.maximumf %14, %15 : vector<1x8x8x64xbf16>
    %17 = vector.extract_strided_slice %5 {offsets = [0, 0, 1, 0], sizes = [1, 8, 8, 64], strides = [1, 1, 1, 1]} : vector<1x9x9x64xbf16> to vector<1x8x8x64xbf16>
    %18 = arith.maximumf %16, %17 : vector<1x8x8x64xbf16>
    %19 = vector.extract_strided_slice %1 {offsets = [0, 1, 0, 0], sizes = [1, 8, 8, 64], strides = [1, 1, 1, 1]} : vector<1x9x9x64xbf16> to vector<1x8x8x64xbf16>
    %20 = arith.maximumf %18, %19 : vector<1x8x8x64xbf16>
    %21 = vector.extract_strided_slice %3 {offsets = [0, 1, 0, 0], sizes = [1, 8, 8, 64], strides = [1, 1, 1, 1]} : vector<1x9x9x64xbf16> to vector<1x8x8x64xbf16>
    %22 = arith.maximumf %20, %21 : vector<1x8x8x64xbf16>
    %23 = vector.extract_strided_slice %1 {offsets = [0, 1, 1, 0], sizes = [1, 8, 8, 64], strides = [1, 1, 1, 1]} : vector<1x9x9x64xbf16> to vector<1x8x8x64xbf16>
    %24 = arith.maximumf %22, %23 : vector<1x8x8x64xbf16>
    %c0_22 = arith.constant 0 : index
    %c0_23 = arith.constant 0 : index
    %c0_24 = arith.constant 0 : index
    %c0_25 = arith.constant 0 : index
    %25 = vector.load %arg2[%c0_22, %c0_23, %c0_24, %c0_25] : memref<1x8x8x64xbf16, #tpu.memory_space<vmem>>, vector<1x8x8x64xbf16>
    tpu.vector_store %arg2[%c0_22, %c0_23, %c0_24, %c0_25], %24 {strides = array<i32>} : memref<1x8x8x64xbf16, #tpu.memory_space<vmem>>, vector<1x8x8x64xbf16>,
    return
  }
  func.func @transform_0(%arg0: i32) -> (i32, i32, i32, i32, i32, i32) {
    %c0_i32 = arith.constant 0 : i32
    %c0_i32_0 = arith.constant 0 : i32
    %c0_i32_1 = arith.constant 0 : i32
    %c0_i32_2 = arith.constant 0 : i32
    %c0_i32_3 = arith.constant 0 : i32
    %c0_i32_4 = arith.constant 0 : i32
    return %c0_i32, %c0_i32_0, %arg0, %c0_i32_1, %c0_i32_2, %c0_i32_3 : i32, i32, i32, i32, i32, i32
  }
  func.func @transform_1(%arg0: i32) -> (i32, i32, i32, i32) {
    %c0_i32 = arith.constant 0 : i32
    %c0_i32_0 = arith.constant 0 : i32
    %c0_i32_1 = arith.constant 0 : i32
    %c0_i32_2 = arith.constant 0 : i32
    return %arg0, %c0_i32, %c0_i32_0, %c0_i32_1 : i32, i32, i32, i32
  }
}

module attributes {stable_mosaic.version = 11 : i64} {
  func.func @_mm_bn_kernel(%arg0: i32, %arg1: i32, %arg2: i32, %arg3: memref<64x128xbf16, #tpu.memory_space<vmem>>, %arg4: memref<128x128xbf16, #tpu.memory_space<vmem>>, %arg5: memref<1x128xf32, #tpu.memory_space<vmem>>, %arg6: memref<1x128xf32, #tpu.memory_space<vmem>>, %arg7: memref<64x128xbf16, #tpu.memory_space<vmem>>, %arg8: memref<64x128xf32, #tpu.memory_space<vmem>>) attributes {dimension_semantics = [#tpu.dimension_semantics<parallel>, #tpu.dimension_semantics<parallel>, #tpu.dimension_semantics<arbitrary>], iteration_bounds = array<i64: 2, 1, 5>, scalar_prefetch = 0 : i64, scratch_operands = 1 : i64, tpu.core_type = #tpu.core_type<tc>, window_params = [{transform_indices = @transform_0, window_bounds = array<i64: 64, 128>}, {transform_indices = @transform_1, window_bounds = array<i64: 128, 128>}, {transform_indices = @transform_2, window_bounds = array<i64: 1, 128>}, {transform_indices = @transform_3, window_bounds = array<i64: 1, 128>}, {transform_indices = @transform_4, window_bounds = array<i64: 64, 128>}]} {
    %c0_i32 = arith.constant 0 : i32
    %0 = arith.cmpi eq, %arg2, %c0_i32 : i32
    %1 = arith.extui %0 : i1 to i32
    %c0_i32_0 = arith.constant 0 : i32
    %2 = arith.cmpi ne, %1, %c0_i32_0 : i32
    scf.if %2 {
      %cst_9 = arith.constant 0.000000e+00 : f32
      %12 = vector.broadcast %cst_9 : f32 to vector<64x128xf32>
      %c0_10 = arith.constant 0 : index
      %c0_11 = arith.constant 0 : index
      %13 = vector.load %arg8[%c0_10, %c0_11] : memref<64x128xf32, #tpu.memory_space<vmem>>, vector<64x128xf32>
      tpu.vector_store %arg8[%c0_10, %c0_11], %12 {strides = array<i32>} : memref<64x128xf32, #tpu.memory_space<vmem>>, vector<64x128xf32>,
    } else {
    }
    %c0 = arith.constant 0 : index
    %c0_1 = arith.constant 0 : index
    %3 = vector.load %arg8[%c0, %c0_1] : memref<64x128xf32, #tpu.memory_space<vmem>>, vector<64x128xf32>
    %c0_2 = arith.constant 0 : index
    %c0_3 = arith.constant 0 : index
    %4 = vector.load %arg3[%c0_2, %c0_3] : memref<64x128xbf16, #tpu.memory_space<vmem>>, vector<64x128xbf16>
    %c0_4 = arith.constant 0 : index
    %c0_5 = arith.constant 0 : index
    %5 = vector.load %arg4[%c0_4, %c0_5] : memref<128x128xbf16, #tpu.memory_space<vmem>>, vector<128x128xbf16>
    %cst = arith.constant dense<0.000000e+00> : vector<64x128xf32>
    %6 = tpu.matmul %4, %5, %cst {dimension_numbers = #tpu.dot_dimension_numbers<[1], [0], [0], [1], [0, 0, 1, 1], [], []>} : vector<64x128xbf16>, vector<128x128xbf16>, vector<64x128xf32> -> vector<64x128xf32>
    %7 = arith.addf %3, %6 : vector<64x128xf32>
    %c0_6 = arith.constant 0 : index
    %c0_7 = arith.constant 0 : index
    %8 = vector.load %arg8[%c0_6, %c0_7] : memref<64x128xf32, #tpu.memory_space<vmem>>, vector<64x128xf32>
    tpu.vector_store %arg8[%c0_6, %c0_7], %7 {strides = array<i32>} : memref<64x128xf32, #tpu.memory_space<vmem>>, vector<64x128xf32>,
    %c4_i32 = arith.constant 4 : i32
    %9 = arith.cmpi eq, %arg2, %c4_i32 : i32
    %10 = arith.extui %9 : i1 to i32
    %c0_i32_8 = arith.constant 0 : i32
    %11 = arith.cmpi ne, %10, %c0_i32_8 : i32
    scf.if %11 {
      %c0_9 = arith.constant 0 : index
      %c0_10 = arith.constant 0 : index
      %12 = vector.load %arg8[%c0_9, %c0_10] : memref<64x128xf32, #tpu.memory_space<vmem>>, vector<64x128xf32>
      %c0_11 = arith.constant 0 : index
      %c0_12 = arith.constant 0 : index
      %13 = vector.load %arg5[%c0_11, %c0_12] : memref<1x128xf32, #tpu.memory_space<vmem>>, vector<1x128xf32>
      %14 = vector.broadcast %13 : vector<1x128xf32> to vector<64x128xf32>
      %15 = arith.mulf %12, %14 : vector<64x128xf32>
      %c0_13 = arith.constant 0 : index
      %c0_14 = arith.constant 0 : index
      %16 = vector.load %arg6[%c0_13, %c0_14] : memref<1x128xf32, #tpu.memory_space<vmem>>, vector<1x128xf32>
      %17 = vector.broadcast %16 : vector<1x128xf32> to vector<64x128xf32>
      %18 = arith.addf %15, %17 : vector<64x128xf32>
      %cst_15 = arith.constant 0.000000e+00 : f32
      %19 = vector.broadcast %cst_15 : f32 to vector<64x128xf32>
      %20 = arith.maximumf %18, %19 : vector<64x128xf32>
      %21 = arith.truncf %20 : vector<64x128xf32> to vector<64x128xbf16>
      %c0_16 = arith.constant 0 : index
      %c0_17 = arith.constant 0 : index
      %22 = vector.load %arg7[%c0_16, %c0_17] : memref<64x128xbf16, #tpu.memory_space<vmem>>, vector<64x128xbf16>
      tpu.vector_store %arg7[%c0_16, %c0_17], %21 {strides = array<i32>} : memref<64x128xbf16, #tpu.memory_space<vmem>>, vector<64x128xbf16>,
    } else {
    }
    return
  }
  func.func @transform_0(%arg0: i32, %arg1: i32, %arg2: i32) -> (i32, i32) {
    %c0_i32 = arith.constant 0 : i32
    return %arg0, %arg2 : i32, i32
  }
  func.func @transform_1(%arg0: i32, %arg1: i32, %arg2: i32) -> (i32, i32) {
    %c0_i32 = arith.constant 0 : i32
    return %arg2, %arg1 : i32, i32
  }
  func.func @transform_2(%arg0: i32, %arg1: i32, %arg2: i32) -> (i32, i32) {
    %c0_i32 = arith.constant 0 : i32
    %c0_i32_0 = arith.constant 0 : i32
    return %c0_i32, %arg1 : i32, i32
  }
  func.func @transform_3(%arg0: i32, %arg1: i32, %arg2: i32) -> (i32, i32) {
    %c0_i32 = arith.constant 0 : i32
    %c0_i32_0 = arith.constant 0 : i32
    return %c0_i32, %arg1 : i32, i32
  }
  func.func @transform_4(%arg0: i32, %arg1: i32, %arg2: i32) -> (i32, i32) {
    %c0_i32 = arith.constant 0 : i32
    return %arg0, %arg1 : i32, i32
  }
}

module attributes {stable_mosaic.version = 11 : i64} {
  func.func @_mm_bn_res_kernel(%arg0: i32, %arg1: i32, %arg2: i32, %arg3: memref<64x128xbf16, #tpu.memory_space<vmem>>, %arg4: memref<128x128xbf16, #tpu.memory_space<vmem>>, %arg5: memref<1x128xf32, #tpu.memory_space<vmem>>, %arg6: memref<1x128xf32, #tpu.memory_space<vmem>>, %arg7: memref<64x128xbf16, #tpu.memory_space<vmem>>, %arg8: memref<64x128xbf16, #tpu.memory_space<vmem>>, %arg9: memref<64x128xf32, #tpu.memory_space<vmem>>) attributes {dimension_semantics = [#tpu.dimension_semantics<parallel>, #tpu.dimension_semantics<parallel>, #tpu.dimension_semantics<arbitrary>], iteration_bounds = array<i64: 2, 1, 5>, scalar_prefetch = 0 : i64, scratch_operands = 1 : i64, tpu.core_type = #tpu.core_type<tc>, window_params = [{transform_indices = @transform_0, window_bounds = array<i64: 64, 128>}, {transform_indices = @transform_1, window_bounds = array<i64: 128, 128>}, {transform_indices = @transform_2, window_bounds = array<i64: 1, 128>}, {transform_indices = @transform_3, window_bounds = array<i64: 1, 128>}, {transform_indices = @transform_4, window_bounds = array<i64: 64, 128>}, {transform_indices = @transform_5, window_bounds = array<i64: 64, 128>}]} {
    %c0_i32 = arith.constant 0 : i32
    %0 = arith.cmpi eq, %arg2, %c0_i32 : i32
    %1 = arith.extui %0 : i1 to i32
    %c0_i32_0 = arith.constant 0 : i32
    %2 = arith.cmpi ne, %1, %c0_i32_0 : i32
    scf.if %2 {
      %cst_9 = arith.constant 0.000000e+00 : f32
      %12 = vector.broadcast %cst_9 : f32 to vector<64x128xf32>
      %c0_10 = arith.constant 0 : index
      %c0_11 = arith.constant 0 : index
      %13 = vector.load %arg9[%c0_10, %c0_11] : memref<64x128xf32, #tpu.memory_space<vmem>>, vector<64x128xf32>
      tpu.vector_store %arg9[%c0_10, %c0_11], %12 {strides = array<i32>} : memref<64x128xf32, #tpu.memory_space<vmem>>, vector<64x128xf32>,
    } else {
    }
    %c0 = arith.constant 0 : index
    %c0_1 = arith.constant 0 : index
    %3 = vector.load %arg9[%c0, %c0_1] : memref<64x128xf32, #tpu.memory_space<vmem>>, vector<64x128xf32>
    %c0_2 = arith.constant 0 : index
    %c0_3 = arith.constant 0 : index
    %4 = vector.load %arg3[%c0_2, %c0_3] : memref<64x128xbf16, #tpu.memory_space<vmem>>, vector<64x128xbf16>
    %c0_4 = arith.constant 0 : index
    %c0_5 = arith.constant 0 : index
    %5 = vector.load %arg4[%c0_4, %c0_5] : memref<128x128xbf16, #tpu.memory_space<vmem>>, vector<128x128xbf16>
    %cst = arith.constant dense<0.000000e+00> : vector<64x128xf32>
    %6 = tpu.matmul %4, %5, %cst {dimension_numbers = #tpu.dot_dimension_numbers<[1], [0], [0], [1], [0, 0, 1, 1], [], []>} : vector<64x128xbf16>, vector<128x128xbf16>, vector<64x128xf32> -> vector<64x128xf32>
    %7 = arith.addf %3, %6 : vector<64x128xf32>
    %c0_6 = arith.constant 0 : index
    %c0_7 = arith.constant 0 : index
    %8 = vector.load %arg9[%c0_6, %c0_7] : memref<64x128xf32, #tpu.memory_space<vmem>>, vector<64x128xf32>
    tpu.vector_store %arg9[%c0_6, %c0_7], %7 {strides = array<i32>} : memref<64x128xf32, #tpu.memory_space<vmem>>, vector<64x128xf32>,
    %c4_i32 = arith.constant 4 : i32
    %9 = arith.cmpi eq, %arg2, %c4_i32 : i32
    %10 = arith.extui %9 : i1 to i32
    %c0_i32_8 = arith.constant 0 : i32
    %11 = arith.cmpi ne, %10, %c0_i32_8 : i32
    scf.if %11 {
      %c0_9 = arith.constant 0 : index
      %c0_10 = arith.constant 0 : index
      %12 = vector.load %arg9[%c0_9, %c0_10] : memref<64x128xf32, #tpu.memory_space<vmem>>, vector<64x128xf32>
      %c0_11 = arith.constant 0 : index
      %c0_12 = arith.constant 0 : index
      %13 = vector.load %arg5[%c0_11, %c0_12] : memref<1x128xf32, #tpu.memory_space<vmem>>, vector<1x128xf32>
      %14 = vector.broadcast %13 : vector<1x128xf32> to vector<64x128xf32>
      %15 = arith.mulf %12, %14 : vector<64x128xf32>
      %c0_13 = arith.constant 0 : index
      %c0_14 = arith.constant 0 : index
      %16 = vector.load %arg6[%c0_13, %c0_14] : memref<1x128xf32, #tpu.memory_space<vmem>>, vector<1x128xf32>
      %17 = vector.broadcast %16 : vector<1x128xf32> to vector<64x128xf32>
      %18 = arith.addf %15, %17 : vector<64x128xf32>
      %c0_15 = arith.constant 0 : index
      %c0_16 = arith.constant 0 : index
      %19 = vector.load %arg7[%c0_15, %c0_16] : memref<64x128xbf16, #tpu.memory_space<vmem>>, vector<64x128xbf16>
      %20 = arith.extf %19 : vector<64x128xbf16> to vector<64x128xf32>
      %21 = arith.addf %18, %20 : vector<64x128xf32>
      %cst_17 = arith.constant 0.000000e+00 : f32
      %22 = vector.broadcast %cst_17 : f32 to vector<64x128xf32>
      %23 = arith.maximumf %21, %22 : vector<64x128xf32>
      %24 = arith.truncf %23 : vector<64x128xf32> to vector<64x128xbf16>
      %c0_18 = arith.constant 0 : index
      %c0_19 = arith.constant 0 : index
      %25 = vector.load %arg8[%c0_18, %c0_19] : memref<64x128xbf16, #tpu.memory_space<vmem>>, vector<64x128xbf16>
      tpu.vector_store %arg8[%c0_18, %c0_19], %24 {strides = array<i32>} : memref<64x128xbf16, #tpu.memory_space<vmem>>, vector<64x128xbf16>,
    } else {
    }
    return
  }
  func.func @transform_0(%arg0: i32, %arg1: i32, %arg2: i32) -> (i32, i32) {
    %c0_i32 = arith.constant 0 : i32
    return %arg0, %arg2 : i32, i32
  }
  func.func @transform_1(%arg0: i32, %arg1: i32, %arg2: i32) -> (i32, i32) {
    %c0_i32 = arith.constant 0 : i32
    return %arg2, %arg1 : i32, i32
  }
  func.func @transform_2(%arg0: i32, %arg1: i32, %arg2: i32) -> (i32, i32) {
    %c0_i32 = arith.constant 0 : i32
    %c0_i32_0 = arith.constant 0 : i32
    return %c0_i32, %arg1 : i32, i32
  }
  func.func @transform_3(%arg0: i32, %arg1: i32, %arg2: i32) -> (i32, i32) {
    %c0_i32 = arith.constant 0 : i32
    %c0_i32_0 = arith.constant 0 : i32
    return %c0_i32, %arg1 : i32, i32
  }
  func.func @transform_4(%arg0: i32, %arg1: i32, %arg2: i32) -> (i32, i32) {
    %c0_i32 = arith.constant 0 : i32
    return %arg0, %arg1 : i32, i32
  }
  func.func @transform_5(%arg0: i32, %arg1: i32, %arg2: i32) -> (i32, i32) {
    %c0_i32 = arith.constant 0 : i32
    return %arg0, %arg1 : i32, i32
  }
}

module attributes {stable_mosaic.version = 11 : i64} {
  func.func @_mm_bn_kernel(%arg0: i32, %arg1: i32, %arg2: i32, %arg3: memref<16x128xbf16, #tpu.memory_space<vmem>>, %arg4: memref<128x128xbf16, #tpu.memory_space<vmem>>, %arg5: memref<1x128xf32, #tpu.memory_space<vmem>>, %arg6: memref<1x128xf32, #tpu.memory_space<vmem>>, %arg7: memref<16x128xbf16, #tpu.memory_space<vmem>>, %arg8: memref<16x128xf32, #tpu.memory_space<vmem>>) attributes {dimension_semantics = [#tpu.dimension_semantics<parallel>, #tpu.dimension_semantics<parallel>, #tpu.dimension_semantics<arbitrary>], iteration_bounds = array<i64: 2, 1, 5>, scalar_prefetch = 0 : i64, scratch_operands = 1 : i64, tpu.core_type = #tpu.core_type<tc>, window_params = [{transform_indices = @transform_0, window_bounds = array<i64: 16, 128>}, {transform_indices = @transform_1, window_bounds = array<i64: 128, 128>}, {transform_indices = @transform_2, window_bounds = array<i64: 1, 128>}, {transform_indices = @transform_3, window_bounds = array<i64: 1, 128>}, {transform_indices = @transform_4, window_bounds = array<i64: 16, 128>}]} {
    %c0_i32 = arith.constant 0 : i32
    %0 = arith.cmpi eq, %arg2, %c0_i32 : i32
    %1 = arith.extui %0 : i1 to i32
    %c0_i32_0 = arith.constant 0 : i32
    %2 = arith.cmpi ne, %1, %c0_i32_0 : i32
    scf.if %2 {
      %cst_9 = arith.constant 0.000000e+00 : f32
      %12 = vector.broadcast %cst_9 : f32 to vector<16x128xf32>
      %c0_10 = arith.constant 0 : index
      %c0_11 = arith.constant 0 : index
      %13 = vector.load %arg8[%c0_10, %c0_11] : memref<16x128xf32, #tpu.memory_space<vmem>>, vector<16x128xf32>
      tpu.vector_store %arg8[%c0_10, %c0_11], %12 {strides = array<i32>} : memref<16x128xf32, #tpu.memory_space<vmem>>, vector<16x128xf32>,
    } else {
    }
    %c0 = arith.constant 0 : index
    %c0_1 = arith.constant 0 : index
    %3 = vector.load %arg8[%c0, %c0_1] : memref<16x128xf32, #tpu.memory_space<vmem>>, vector<16x128xf32>
    %c0_2 = arith.constant 0 : index
    %c0_3 = arith.constant 0 : index
    %4 = vector.load %arg3[%c0_2, %c0_3] : memref<16x128xbf16, #tpu.memory_space<vmem>>, vector<16x128xbf16>
    %c0_4 = arith.constant 0 : index
    %c0_5 = arith.constant 0 : index
    %5 = vector.load %arg4[%c0_4, %c0_5] : memref<128x128xbf16, #tpu.memory_space<vmem>>, vector<128x128xbf16>
    %cst = arith.constant dense<0.000000e+00> : vector<16x128xf32>
    %6 = tpu.matmul %4, %5, %cst {dimension_numbers = #tpu.dot_dimension_numbers<[1], [0], [0], [1], [0, 0, 1, 1], [], []>} : vector<16x128xbf16>, vector<128x128xbf16>, vector<16x128xf32> -> vector<16x128xf32>
    %7 = arith.addf %3, %6 : vector<16x128xf32>
    %c0_6 = arith.constant 0 : index
    %c0_7 = arith.constant 0 : index
    %8 = vector.load %arg8[%c0_6, %c0_7] : memref<16x128xf32, #tpu.memory_space<vmem>>, vector<16x128xf32>
    tpu.vector_store %arg8[%c0_6, %c0_7], %7 {strides = array<i32>} : memref<16x128xf32, #tpu.memory_space<vmem>>, vector<16x128xf32>,
    %c4_i32 = arith.constant 4 : i32
    %9 = arith.cmpi eq, %arg2, %c4_i32 : i32
    %10 = arith.extui %9 : i1 to i32
    %c0_i32_8 = arith.constant 0 : i32
    %11 = arith.cmpi ne, %10, %c0_i32_8 : i32
    scf.if %11 {
      %c0_9 = arith.constant 0 : index
      %c0_10 = arith.constant 0 : index
      %12 = vector.load %arg8[%c0_9, %c0_10] : memref<16x128xf32, #tpu.memory_space<vmem>>, vector<16x128xf32>
      %c0_11 = arith.constant 0 : index
      %c0_12 = arith.constant 0 : index
      %13 = vector.load %arg5[%c0_11, %c0_12] : memref<1x128xf32, #tpu.memory_space<vmem>>, vector<1x128xf32>
      %14 = vector.broadcast %13 : vector<1x128xf32> to vector<16x128xf32>
      %15 = arith.mulf %12, %14 : vector<16x128xf32>
      %c0_13 = arith.constant 0 : index
      %c0_14 = arith.constant 0 : index
      %16 = vector.load %arg6[%c0_13, %c0_14] : memref<1x128xf32, #tpu.memory_space<vmem>>, vector<1x128xf32>
      %17 = vector.broadcast %16 : vector<1x128xf32> to vector<16x128xf32>
      %18 = arith.addf %15, %17 : vector<16x128xf32>
      %cst_15 = arith.constant 0.000000e+00 : f32
      %19 = vector.broadcast %cst_15 : f32 to vector<16x128xf32>
      %20 = arith.maximumf %18, %19 : vector<16x128xf32>
      %21 = arith.truncf %20 : vector<16x128xf32> to vector<16x128xbf16>
      %c0_16 = arith.constant 0 : index
      %c0_17 = arith.constant 0 : index
      %22 = vector.load %arg7[%c0_16, %c0_17] : memref<16x128xbf16, #tpu.memory_space<vmem>>, vector<16x128xbf16>
      tpu.vector_store %arg7[%c0_16, %c0_17], %21 {strides = array<i32>} : memref<16x128xbf16, #tpu.memory_space<vmem>>, vector<16x128xbf16>,
    } else {
    }
    return
  }
  func.func @transform_0(%arg0: i32, %arg1: i32, %arg2: i32) -> (i32, i32) {
    %c0_i32 = arith.constant 0 : i32
    return %arg0, %arg2 : i32, i32
  }
  func.func @transform_1(%arg0: i32, %arg1: i32, %arg2: i32) -> (i32, i32) {
    %c0_i32 = arith.constant 0 : i32
    return %arg2, %arg1 : i32, i32
  }
  func.func @transform_2(%arg0: i32, %arg1: i32, %arg2: i32) -> (i32, i32) {
    %c0_i32 = arith.constant 0 : i32
    %c0_i32_0 = arith.constant 0 : i32
    return %c0_i32, %arg1 : i32, i32
  }
  func.func @transform_3(%arg0: i32, %arg1: i32, %arg2: i32) -> (i32, i32) {
    %c0_i32 = arith.constant 0 : i32
    %c0_i32_0 = arith.constant 0 : i32
    return %c0_i32, %arg1 : i32, i32
  }
  func.func @transform_4(%arg0: i32, %arg1: i32, %arg2: i32) -> (i32, i32) {
    %c0_i32 = arith.constant 0 : i32
    return %arg0, %arg1 : i32, i32
  }
}

module attributes {stable_mosaic.version = 11 : i64} {
  func.func @_mm_bn_kernel(%arg0: i32, %arg1: i32, %arg2: i32, %arg3: memref<16x128xbf16, #tpu.memory_space<vmem>>, %arg4: memref<128x128xbf16, #tpu.memory_space<vmem>>, %arg5: memref<1x128xf32, #tpu.memory_space<vmem>>, %arg6: memref<1x128xf32, #tpu.memory_space<vmem>>, %arg7: memref<16x128xbf16, #tpu.memory_space<vmem>>, %arg8: memref<16x128xf32, #tpu.memory_space<vmem>>) attributes {dimension_semantics = [#tpu.dimension_semantics<parallel>, #tpu.dimension_semantics<parallel>, #tpu.dimension_semantics<arbitrary>], iteration_bounds = array<i64: 2, 1, 1>, scalar_prefetch = 0 : i64, scratch_operands = 1 : i64, tpu.core_type = #tpu.core_type<tc>, window_params = [{transform_indices = @transform_0, window_bounds = array<i64: 16, 128>}, {transform_indices = @transform_1, window_bounds = array<i64: 128, 128>}, {transform_indices = @transform_2, window_bounds = array<i64: 1, 128>}, {transform_indices = @transform_3, window_bounds = array<i64: 1, 128>}, {transform_indices = @transform_4, window_bounds = array<i64: 16, 128>}]} {
    %c0_i32 = arith.constant 0 : i32
    %0 = arith.cmpi eq, %arg2, %c0_i32 : i32
    %1 = arith.extui %0 : i1 to i32
    %c0_i32_0 = arith.constant 0 : i32
    %2 = arith.cmpi ne, %1, %c0_i32_0 : i32
    scf.if %2 {
      %cst_10 = arith.constant 0.000000e+00 : f32
      %12 = vector.broadcast %cst_10 : f32 to vector<16x128xf32>
      %c0_11 = arith.constant 0 : index
      %c0_12 = arith.constant 0 : index
      %13 = vector.load %arg8[%c0_11, %c0_12] : memref<16x128xf32, #tpu.memory_space<vmem>>, vector<16x128xf32>
      tpu.vector_store %arg8[%c0_11, %c0_12], %12 {strides = array<i32>} : memref<16x128xf32, #tpu.memory_space<vmem>>, vector<16x128xf32>,
    } else {
    }
    %c0 = arith.constant 0 : index
    %c0_1 = arith.constant 0 : index
    %3 = vector.load %arg8[%c0, %c0_1] : memref<16x128xf32, #tpu.memory_space<vmem>>, vector<16x128xf32>
    %c0_2 = arith.constant 0 : index
    %c0_3 = arith.constant 0 : index
    %4 = vector.load %arg3[%c0_2, %c0_3] : memref<16x128xbf16, #tpu.memory_space<vmem>>, vector<16x128xbf16>
    %c0_4 = arith.constant 0 : index
    %c0_5 = arith.constant 0 : index
    %5 = vector.load %arg4[%c0_4, %c0_5] : memref<128x128xbf16, #tpu.memory_space<vmem>>, vector<128x128xbf16>
    %cst = arith.constant dense<0.000000e+00> : vector<16x128xf32>
    %6 = tpu.matmul %4, %5, %cst {dimension_numbers = #tpu.dot_dimension_numbers<[1], [0], [0], [1], [0, 0, 1, 1], [], []>} : vector<16x128xbf16>, vector<128x128xbf16>, vector<16x128xf32> -> vector<16x128xf32>
    %7 = arith.addf %3, %6 : vector<16x128xf32>
    %c0_6 = arith.constant 0 : index
    %c0_7 = arith.constant 0 : index
    %8 = vector.load %arg8[%c0_6, %c0_7] : memref<16x128xf32, #tpu.memory_space<vmem>>, vector<16x128xf32>
    tpu.vector_store %arg8[%c0_6, %c0_7], %7 {strides = array<i32>} : memref<16x128xf32, #tpu.memory_space<vmem>>, vector<16x128xf32>,
    %c0_i32_8 = arith.constant 0 : i32
    %9 = arith.cmpi eq, %arg2, %c0_i32_8 : i32
    %10 = arith.extui %9 : i1 to i32
    %c0_i32_9 = arith.constant 0 : i32
    %11 = arith.cmpi ne, %10, %c0_i32_9 : i32
    scf.if %11 {
      %c0_10 = arith.constant 0 : index
      %c0_11 = arith.constant 0 : index
      %12 = vector.load %arg8[%c0_10, %c0_11] : memref<16x128xf32, #tpu.memory_space<vmem>>, vector<16x128xf32>
      %c0_12 = arith.constant 0 : index
      %c0_13 = arith.constant 0 : index
      %13 = vector.load %arg5[%c0_12, %c0_13] : memref<1x128xf32, #tpu.memory_space<vmem>>, vector<1x128xf32>
      %14 = vector.broadcast %13 : vector<1x128xf32> to vector<16x128xf32>
      %15 = arith.mulf %12, %14 : vector<16x128xf32>
      %c0_14 = arith.constant 0 : index
      %c0_15 = arith.constant 0 : index
      %16 = vector.load %arg6[%c0_14, %c0_15] : memref<1x128xf32, #tpu.memory_space<vmem>>, vector<1x128xf32>
      %17 = vector.broadcast %16 : vector<1x128xf32> to vector<16x128xf32>
      %18 = arith.addf %15, %17 : vector<16x128xf32>
      %19 = arith.truncf %18 : vector<16x128xf32> to vector<16x128xbf16>
      %c0_16 = arith.constant 0 : index
      %c0_17 = arith.constant 0 : index
      %20 = vector.load %arg7[%c0_16, %c0_17] : memref<16x128xbf16, #tpu.memory_space<vmem>>, vector<16x128xbf16>
      tpu.vector_store %arg7[%c0_16, %c0_17], %19 {strides = array<i32>} : memref<16x128xbf16, #tpu.memory_space<vmem>>, vector<16x128xbf16>,
    } else {
    }
    return
  }
  func.func @transform_0(%arg0: i32, %arg1: i32, %arg2: i32) -> (i32, i32) {
    %c0_i32 = arith.constant 0 : i32
    return %arg0, %arg2 : i32, i32
  }
  func.func @transform_1(%arg0: i32, %arg1: i32, %arg2: i32) -> (i32, i32) {
    %c0_i32 = arith.constant 0 : i32
    return %arg2, %arg1 : i32, i32
  }
  func.func @transform_2(%arg0: i32, %arg1: i32, %arg2: i32) -> (i32, i32) {
    %c0_i32 = arith.constant 0 : i32
    %c0_i32_0 = arith.constant 0 : i32
    return %c0_i32, %arg1 : i32, i32
  }
  func.func @transform_3(%arg0: i32, %arg1: i32, %arg2: i32) -> (i32, i32) {
    %c0_i32 = arith.constant 0 : i32
    %c0_i32_0 = arith.constant 0 : i32
    return %c0_i32, %arg1 : i32, i32
  }
  func.func @transform_4(%arg0: i32, %arg1: i32, %arg2: i32) -> (i32, i32) {
    %c0_i32 = arith.constant 0 : i32
    return %arg0, %arg1 : i32, i32
  }
}

module attributes {stable_mosaic.version = 11 : i64} {
  func.func @_mm_bn_res_kernel(%arg0: i32, %arg1: i32, %arg2: i32, %arg3: memref<16x384xbf16, #tpu.memory_space<vmem>>, %arg4: memref<384x128xbf16, #tpu.memory_space<vmem>>, %arg5: memref<1x128xf32, #tpu.memory_space<vmem>>, %arg6: memref<1x128xf32, #tpu.memory_space<vmem>>, %arg7: memref<16x128xbf16, #tpu.memory_space<vmem>>, %arg8: memref<16x128xbf16, #tpu.memory_space<vmem>>, %arg9: memref<16x128xf32, #tpu.memory_space<vmem>>) attributes {dimension_semantics = [#tpu.dimension_semantics<parallel>, #tpu.dimension_semantics<parallel>, #tpu.dimension_semantics<arbitrary>], iteration_bounds = array<i64: 2, 1, 3>, scalar_prefetch = 0 : i64, scratch_operands = 1 : i64, tpu.core_type = #tpu.core_type<tc>, window_params = [{transform_indices = @transform_0, window_bounds = array<i64: 16, 384>}, {transform_indices = @transform_1, window_bounds = array<i64: 384, 128>}, {transform_indices = @transform_2, window_bounds = array<i64: 1, 128>}, {transform_indices = @transform_3, window_bounds = array<i64: 1, 128>}, {transform_indices = @transform_4, window_bounds = array<i64: 16, 128>}, {transform_indices = @transform_5, window_bounds = array<i64: 16, 128>}]} {
    %c0_i32 = arith.constant 0 : i32
    %0 = arith.cmpi eq, %arg2, %c0_i32 : i32
    %1 = arith.extui %0 : i1 to i32
    %c0_i32_0 = arith.constant 0 : i32
    %2 = arith.cmpi ne, %1, %c0_i32_0 : i32
    scf.if %2 {
      %cst_9 = arith.constant 0.000000e+00 : f32
      %12 = vector.broadcast %cst_9 : f32 to vector<16x128xf32>
      %c0_10 = arith.constant 0 : index
      %c0_11 = arith.constant 0 : index
      %13 = vector.load %arg9[%c0_10, %c0_11] : memref<16x128xf32, #tpu.memory_space<vmem>>, vector<16x128xf32>
      tpu.vector_store %arg9[%c0_10, %c0_11], %12 {strides = array<i32>} : memref<16x128xf32, #tpu.memory_space<vmem>>, vector<16x128xf32>,
    } else {
    }
    %c0 = arith.constant 0 : index
    %c0_1 = arith.constant 0 : index
    %3 = vector.load %arg9[%c0, %c0_1] : memref<16x128xf32, #tpu.memory_space<vmem>>, vector<16x128xf32>
    %c0_2 = arith.constant 0 : index
    %c0_3 = arith.constant 0 : index
    %4 = vector.load %arg3[%c0_2, %c0_3] : memref<16x384xbf16, #tpu.memory_space<vmem>>, vector<16x384xbf16>
    %c0_4 = arith.constant 0 : index
    %c0_5 = arith.constant 0 : index
    %5 = vector.load %arg4[%c0_4, %c0_5] : memref<384x128xbf16, #tpu.memory_space<vmem>>, vector<384x128xbf16>
    %cst = arith.constant dense<0.000000e+00> : vector<16x128xf32>
    %6 = tpu.matmul %4, %5, %cst {dimension_numbers = #tpu.dot_dimension_numbers<[1], [0], [0], [1], [0, 0, 1, 1], [], []>} : vector<16x384xbf16>, vector<384x128xbf16>, vector<16x128xf32> -> vector<16x128xf32>
    %7 = arith.addf %3, %6 : vector<16x128xf32>
    %c0_6 = arith.constant 0 : index
    %c0_7 = arith.constant 0 : index
    %8 = vector.load %arg9[%c0_6, %c0_7] : memref<16x128xf32, #tpu.memory_space<vmem>>, vector<16x128xf32>
    tpu.vector_store %arg9[%c0_6, %c0_7], %7 {strides = array<i32>} : memref<16x128xf32, #tpu.memory_space<vmem>>, vector<16x128xf32>,
    %c2_i32 = arith.constant 2 : i32
    %9 = arith.cmpi eq, %arg2, %c2_i32 : i32
    %10 = arith.extui %9 : i1 to i32
    %c0_i32_8 = arith.constant 0 : i32
    %11 = arith.cmpi ne, %10, %c0_i32_8 : i32
    scf.if %11 {
      %c0_9 = arith.constant 0 : index
      %c0_10 = arith.constant 0 : index
      %12 = vector.load %arg9[%c0_9, %c0_10] : memref<16x128xf32, #tpu.memory_space<vmem>>, vector<16x128xf32>
      %c0_11 = arith.constant 0 : index
      %c0_12 = arith.constant 0 : index
      %13 = vector.load %arg5[%c0_11, %c0_12] : memref<1x128xf32, #tpu.memory_space<vmem>>, vector<1x128xf32>
      %14 = vector.broadcast %13 : vector<1x128xf32> to vector<16x128xf32>
      %15 = arith.mulf %12, %14 : vector<16x128xf32>
      %c0_13 = arith.constant 0 : index
      %c0_14 = arith.constant 0 : index
      %16 = vector.load %arg6[%c0_13, %c0_14] : memref<1x128xf32, #tpu.memory_space<vmem>>, vector<1x128xf32>
      %17 = vector.broadcast %16 : vector<1x128xf32> to vector<16x128xf32>
      %18 = arith.addf %15, %17 : vector<16x128xf32>
      %c0_15 = arith.constant 0 : index
      %c0_16 = arith.constant 0 : index
      %19 = vector.load %arg7[%c0_15, %c0_16] : memref<16x128xbf16, #tpu.memory_space<vmem>>, vector<16x128xbf16>
      %20 = arith.extf %19 : vector<16x128xbf16> to vector<16x128xf32>
      %21 = arith.addf %18, %20 : vector<16x128xf32>
      %cst_17 = arith.constant 0.000000e+00 : f32
      %22 = vector.broadcast %cst_17 : f32 to vector<16x128xf32>
      %23 = arith.maximumf %21, %22 : vector<16x128xf32>
      %24 = arith.truncf %23 : vector<16x128xf32> to vector<16x128xbf16>
      %c0_18 = arith.constant 0 : index
      %c0_19 = arith.constant 0 : index
      %25 = vector.load %arg8[%c0_18, %c0_19] : memref<16x128xbf16, #tpu.memory_space<vmem>>, vector<16x128xbf16>
      tpu.vector_store %arg8[%c0_18, %c0_19], %24 {strides = array<i32>} : memref<16x128xbf16, #tpu.memory_space<vmem>>, vector<16x128xbf16>,
    } else {
    }
    return
  }
  func.func @transform_0(%arg0: i32, %arg1: i32, %arg2: i32) -> (i32, i32) {
    %c0_i32 = arith.constant 0 : i32
    return %arg0, %arg2 : i32, i32
  }
  func.func @transform_1(%arg0: i32, %arg1: i32, %arg2: i32) -> (i32, i32) {
    %c0_i32 = arith.constant 0 : i32
    return %arg2, %arg1 : i32, i32
  }
  func.func @transform_2(%arg0: i32, %arg1: i32, %arg2: i32) -> (i32, i32) {
    %c0_i32 = arith.constant 0 : i32
    %c0_i32_0 = arith.constant 0 : i32
    return %c0_i32, %arg1 : i32, i32
  }
  func.func @transform_3(%arg0: i32, %arg1: i32, %arg2: i32) -> (i32, i32) {
    %c0_i32 = arith.constant 0 : i32
    %c0_i32_0 = arith.constant 0 : i32
    return %c0_i32, %arg1 : i32, i32
  }
  func.func @transform_4(%arg0: i32, %arg1: i32, %arg2: i32) -> (i32, i32) {
    %c0_i32 = arith.constant 0 : i32
    return %arg0, %arg1 : i32, i32
  }
  func.func @transform_5(%arg0: i32, %arg1: i32, %arg2: i32) -> (i32, i32) {
    %c0_i32 = arith.constant 0 : i32
    return %arg0, %arg1 : i32, i32
  }
}

module attributes {stable_mosaic.version = 11 : i64} {
  func.func @_mm_bn_kernel(%arg0: i32, %arg1: i32, %arg2: i32, %arg3: memref<16x384xbf16, #tpu.memory_space<vmem>>, %arg4: memref<384x128xbf16, #tpu.memory_space<vmem>>, %arg5: memref<1x128xf32, #tpu.memory_space<vmem>>, %arg6: memref<1x128xf32, #tpu.memory_space<vmem>>, %arg7: memref<16x128xbf16, #tpu.memory_space<vmem>>, %arg8: memref<16x128xf32, #tpu.memory_space<vmem>>) attributes {dimension_semantics = [#tpu.dimension_semantics<parallel>, #tpu.dimension_semantics<parallel>, #tpu.dimension_semantics<arbitrary>], iteration_bounds = array<i64: 2, 1, 3>, scalar_prefetch = 0 : i64, scratch_operands = 1 : i64, tpu.core_type = #tpu.core_type<tc>, window_params = [{transform_indices = @transform_0, window_bounds = array<i64: 16, 384>}, {transform_indices = @transform_1, window_bounds = array<i64: 384, 128>}, {transform_indices = @transform_2, window_bounds = array<i64: 1, 128>}, {transform_indices = @transform_3, window_bounds = array<i64: 1, 128>}, {transform_indices = @transform_4, window_bounds = array<i64: 16, 128>}]} {
    %c0_i32 = arith.constant 0 : i32
    %0 = arith.cmpi eq, %arg2, %c0_i32 : i32
    %1 = arith.extui %0 : i1 to i32
    %c0_i32_0 = arith.constant 0 : i32
    %2 = arith.cmpi ne, %1, %c0_i32_0 : i32
    scf.if %2 {
      %cst_9 = arith.constant 0.000000e+00 : f32
      %12 = vector.broadcast %cst_9 : f32 to vector<16x128xf32>
      %c0_10 = arith.constant 0 : index
      %c0_11 = arith.constant 0 : index
      %13 = vector.load %arg8[%c0_10, %c0_11] : memref<16x128xf32, #tpu.memory_space<vmem>>, vector<16x128xf32>
      tpu.vector_store %arg8[%c0_10, %c0_11], %12 {strides = array<i32>} : memref<16x128xf32, #tpu.memory_space<vmem>>, vector<16x128xf32>,
    } else {
    }
    %c0 = arith.constant 0 : index
    %c0_1 = arith.constant 0 : index
    %3 = vector.load %arg8[%c0, %c0_1] : memref<16x128xf32, #tpu.memory_space<vmem>>, vector<16x128xf32>
    %c0_2 = arith.constant 0 : index
    %c0_3 = arith.constant 0 : index
    %4 = vector.load %arg3[%c0_2, %c0_3] : memref<16x384xbf16, #tpu.memory_space<vmem>>, vector<16x384xbf16>
    %c0_4 = arith.constant 0 : index
    %c0_5 = arith.constant 0 : index
    %5 = vector.load %arg4[%c0_4, %c0_5] : memref<384x128xbf16, #tpu.memory_space<vmem>>, vector<384x128xbf16>
    %cst = arith.constant dense<0.000000e+00> : vector<16x128xf32>
    %6 = tpu.matmul %4, %5, %cst {dimension_numbers = #tpu.dot_dimension_numbers<[1], [0], [0], [1], [0, 0, 1, 1], [], []>} : vector<16x384xbf16>, vector<384x128xbf16>, vector<16x128xf32> -> vector<16x128xf32>
    %7 = arith.addf %3, %6 : vector<16x128xf32>
    %c0_6 = arith.constant 0 : index
    %c0_7 = arith.constant 0 : index
    %8 = vector.load %arg8[%c0_6, %c0_7] : memref<16x128xf32, #tpu.memory_space<vmem>>, vector<16x128xf32>
    tpu.vector_store %arg8[%c0_6, %c0_7], %7 {strides = array<i32>} : memref<16x128xf32, #tpu.memory_space<vmem>>, vector<16x128xf32>,
    %c2_i32 = arith.constant 2 : i32
    %9 = arith.cmpi eq, %arg2, %c2_i32 : i32
    %10 = arith.extui %9 : i1 to i32
    %c0_i32_8 = arith.constant 0 : i32
    %11 = arith.cmpi ne, %10, %c0_i32_8 : i32
    scf.if %11 {
      %c0_9 = arith.constant 0 : index
      %c0_10 = arith.constant 0 : index
      %12 = vector.load %arg8[%c0_9, %c0_10] : memref<16x128xf32, #tpu.memory_space<vmem>>, vector<16x128xf32>
      %c0_11 = arith.constant 0 : index
      %c0_12 = arith.constant 0 : index
      %13 = vector.load %arg5[%c0_11, %c0_12] : memref<1x128xf32, #tpu.memory_space<vmem>>, vector<1x128xf32>
      %14 = vector.broadcast %13 : vector<1x128xf32> to vector<16x128xf32>
      %15 = arith.mulf %12, %14 : vector<16x128xf32>
      %c0_13 = arith.constant 0 : index
      %c0_14 = arith.constant 0 : index
      %16 = vector.load %arg6[%c0_13, %c0_14] : memref<1x128xf32, #tpu.memory_space<vmem>>, vector<1x128xf32>
      %17 = vector.broadcast %16 : vector<1x128xf32> to vector<16x128xf32>
      %18 = arith.addf %15, %17 : vector<16x128xf32>
      %cst_15 = arith.constant 0.000000e+00 : f32
      %19 = vector.broadcast %cst_15 : f32 to vector<16x128xf32>
      %20 = arith.maximumf %18, %19 : vector<16x128xf32>
      %21 = arith.truncf %20 : vector<16x128xf32> to vector<16x128xbf16>
      %c0_16 = arith.constant 0 : index
      %c0_17 = arith.constant 0 : index
      %22 = vector.load %arg7[%c0_16, %c0_17] : memref<16x128xbf16, #tpu.memory_space<vmem>>, vector<16x128xbf16>
      tpu.vector_store %arg7[%c0_16, %c0_17], %21 {strides = array<i32>} : memref<16x128xbf16, #tpu.memory_space<vmem>>, vector<16x128xbf16>,
    } else {
    }
    return
  }
  func.func @transform_0(%arg0: i32, %arg1: i32, %arg2: i32) -> (i32, i32) {
    %c0_i32 = arith.constant 0 : i32
    return %arg0, %arg2 : i32, i32
  }
  func.func @transform_1(%arg0: i32, %arg1: i32, %arg2: i32) -> (i32, i32) {
    %c0_i32 = arith.constant 0 : i32
    return %arg2, %arg1 : i32, i32
  }
  func.func @transform_2(%arg0: i32, %arg1: i32, %arg2: i32) -> (i32, i32) {
    %c0_i32 = arith.constant 0 : i32
    %c0_i32_0 = arith.constant 0 : i32
    return %c0_i32, %arg1 : i32, i32
  }
  func.func @transform_3(%arg0: i32, %arg1: i32, %arg2: i32) -> (i32, i32) {
    %c0_i32 = arith.constant 0 : i32
    %c0_i32_0 = arith.constant 0 : i32
    return %c0_i32, %arg1 : i32, i32
  }
  func.func @transform_4(%arg0: i32, %arg1: i32, %arg2: i32) -> (i32, i32) {
    %c0_i32 = arith.constant 0 : i32
    return %arg0, %arg1 : i32, i32
  }
}

module attributes {stable_mosaic.version = 11 : i64} {
  func.func @_mm_bn_kernel(%arg0: i32, %arg1: i32, %arg2: i32, %arg3: memref<16x384xbf16, #tpu.memory_space<vmem>>, %arg4: memref<384x128xbf16, #tpu.memory_space<vmem>>, %arg5: memref<1x128xf32, #tpu.memory_space<vmem>>, %arg6: memref<1x128xf32, #tpu.memory_space<vmem>>, %arg7: memref<16x128xbf16, #tpu.memory_space<vmem>>, %arg8: memref<16x128xf32, #tpu.memory_space<vmem>>) attributes {dimension_semantics = [#tpu.dimension_semantics<parallel>, #tpu.dimension_semantics<parallel>, #tpu.dimension_semantics<arbitrary>], iteration_bounds = array<i64: 1, 2, 3>, scalar_prefetch = 0 : i64, scratch_operands = 1 : i64, tpu.core_type = #tpu.core_type<tc>, window_params = [{transform_indices = @transform_0, window_bounds = array<i64: 16, 384>}, {transform_indices = @transform_1, window_bounds = array<i64: 384, 128>}, {transform_indices = @transform_2, window_bounds = array<i64: 1, 128>}, {transform_indices = @transform_3, window_bounds = array<i64: 1, 128>}, {transform_indices = @transform_4, window_bounds = array<i64: 16, 128>}]} {
    %c0_i32 = arith.constant 0 : i32
    %0 = arith.cmpi eq, %arg2, %c0_i32 : i32
    %1 = arith.extui %0 : i1 to i32
    %c0_i32_0 = arith.constant 0 : i32
    %2 = arith.cmpi ne, %1, %c0_i32_0 : i32
    scf.if %2 {
      %cst_9 = arith.constant 0.000000e+00 : f32
      %12 = vector.broadcast %cst_9 : f32 to vector<16x128xf32>
      %c0_10 = arith.constant 0 : index
      %c0_11 = arith.constant 0 : index
      %13 = vector.load %arg8[%c0_10, %c0_11] : memref<16x128xf32, #tpu.memory_space<vmem>>, vector<16x128xf32>
      tpu.vector_store %arg8[%c0_10, %c0_11], %12 {strides = array<i32>} : memref<16x128xf32, #tpu.memory_space<vmem>>, vector<16x128xf32>,
    } else {
    }
    %c0 = arith.constant 0 : index
    %c0_1 = arith.constant 0 : index
    %3 = vector.load %arg8[%c0, %c0_1] : memref<16x128xf32, #tpu.memory_space<vmem>>, vector<16x128xf32>
    %c0_2 = arith.constant 0 : index
    %c0_3 = arith.constant 0 : index
    %4 = vector.load %arg3[%c0_2, %c0_3] : memref<16x384xbf16, #tpu.memory_space<vmem>>, vector<16x384xbf16>
    %c0_4 = arith.constant 0 : index
    %c0_5 = arith.constant 0 : index
    %5 = vector.load %arg4[%c0_4, %c0_5] : memref<384x128xbf16, #tpu.memory_space<vmem>>, vector<384x128xbf16>
    %cst = arith.constant dense<0.000000e+00> : vector<16x128xf32>
    %6 = tpu.matmul %4, %5, %cst {dimension_numbers = #tpu.dot_dimension_numbers<[1], [0], [0], [1], [0, 0, 1, 1], [], []>} : vector<16x384xbf16>, vector<384x128xbf16>, vector<16x128xf32> -> vector<16x128xf32>
    %7 = arith.addf %3, %6 : vector<16x128xf32>
    %c0_6 = arith.constant 0 : index
    %c0_7 = arith.constant 0 : index
    %8 = vector.load %arg8[%c0_6, %c0_7] : memref<16x128xf32, #tpu.memory_space<vmem>>, vector<16x128xf32>
    tpu.vector_store %arg8[%c0_6, %c0_7], %7 {strides = array<i32>} : memref<16x128xf32, #tpu.memory_space<vmem>>, vector<16x128xf32>,
    %c2_i32 = arith.constant 2 : i32
    %9 = arith.cmpi eq, %arg2, %c2_i32 : i32
    %10 = arith.extui %9 : i1 to i32
    %c0_i32_8 = arith.constant 0 : i32
    %11 = arith.cmpi ne, %10, %c0_i32_8 : i32
    scf.if %11 {
      %c0_9 = arith.constant 0 : index
      %c0_10 = arith.constant 0 : index
      %12 = vector.load %arg8[%c0_9, %c0_10] : memref<16x128xf32, #tpu.memory_space<vmem>>, vector<16x128xf32>
      %c0_11 = arith.constant 0 : index
      %c0_12 = arith.constant 0 : index
      %13 = vector.load %arg5[%c0_11, %c0_12] : memref<1x128xf32, #tpu.memory_space<vmem>>, vector<1x128xf32>
      %14 = vector.broadcast %13 : vector<1x128xf32> to vector<16x128xf32>
      %15 = arith.mulf %12, %14 : vector<16x128xf32>
      %c0_13 = arith.constant 0 : index
      %c0_14 = arith.constant 0 : index
      %16 = vector.load %arg6[%c0_13, %c0_14] : memref<1x128xf32, #tpu.memory_space<vmem>>, vector<1x128xf32>
      %17 = vector.broadcast %16 : vector<1x128xf32> to vector<16x128xf32>
      %18 = arith.addf %15, %17 : vector<16x128xf32>
      %cst_15 = arith.constant 0.000000e+00 : f32
      %19 = vector.broadcast %cst_15 : f32 to vector<16x128xf32>
      %20 = arith.maximumf %18, %19 : vector<16x128xf32>
      %21 = arith.truncf %20 : vector<16x128xf32> to vector<16x128xbf16>
      %c0_16 = arith.constant 0 : index
      %c0_17 = arith.constant 0 : index
      %22 = vector.load %arg7[%c0_16, %c0_17] : memref<16x128xbf16, #tpu.memory_space<vmem>>, vector<16x128xbf16>
      tpu.vector_store %arg7[%c0_16, %c0_17], %21 {strides = array<i32>} : memref<16x128xbf16, #tpu.memory_space<vmem>>, vector<16x128xbf16>,
    } else {
    }
    return
  }
  func.func @transform_0(%arg0: i32, %arg1: i32, %arg2: i32) -> (i32, i32) {
    %c0_i32 = arith.constant 0 : i32
    return %arg0, %arg2 : i32, i32
  }
  func.func @transform_1(%arg0: i32, %arg1: i32, %arg2: i32) -> (i32, i32) {
    %c0_i32 = arith.constant 0 : i32
    return %arg2, %arg1 : i32, i32
  }
  func.func @transform_2(%arg0: i32, %arg1: i32, %arg2: i32) -> (i32, i32) {
    %c0_i32 = arith.constant 0 : i32
    %c0_i32_0 = arith.constant 0 : i32
    return %c0_i32, %arg1 : i32, i32
  }
  func.func @transform_3(%arg0: i32, %arg1: i32, %arg2: i32) -> (i32, i32) {
    %c0_i32 = arith.constant 0 : i32
    %c0_i32_0 = arith.constant 0 : i32
    return %c0_i32, %arg1 : i32, i32
  }
  func.func @transform_4(%arg0: i32, %arg1: i32, %arg2: i32) -> (i32, i32) {
    %c0_i32 = arith.constant 0 : i32
    return %arg0, %arg1 : i32, i32
  }
}

module attributes {stable_mosaic.version = 11 : i64} {
  func.func @_mm_bn_kernel(%arg0: i32, %arg1: i32, %arg2: i32, %arg3: memref<16x128xbf16, #tpu.memory_space<vmem>>, %arg4: memref<128x128xbf16, #tpu.memory_space<vmem>>, %arg5: memref<1x128xf32, #tpu.memory_space<vmem>>, %arg6: memref<1x128xf32, #tpu.memory_space<vmem>>, %arg7: memref<16x128xbf16, #tpu.memory_space<vmem>>, %arg8: memref<16x128xf32, #tpu.memory_space<vmem>>) attributes {dimension_semantics = [#tpu.dimension_semantics<parallel>, #tpu.dimension_semantics<parallel>, #tpu.dimension_semantics<arbitrary>], iteration_bounds = array<i64: 1, 2, 1>, scalar_prefetch = 0 : i64, scratch_operands = 1 : i64, tpu.core_type = #tpu.core_type<tc>, window_params = [{transform_indices = @transform_0, window_bounds = array<i64: 16, 128>}, {transform_indices = @transform_1, window_bounds = array<i64: 128, 128>}, {transform_indices = @transform_2, window_bounds = array<i64: 1, 128>}, {transform_indices = @transform_3, window_bounds = array<i64: 1, 128>}, {transform_indices = @transform_4, window_bounds = array<i64: 16, 128>}]} {
    %c0_i32 = arith.constant 0 : i32
    %0 = arith.cmpi eq, %arg2, %c0_i32 : i32
    %1 = arith.extui %0 : i1 to i32
    %c0_i32_0 = arith.constant 0 : i32
    %2 = arith.cmpi ne, %1, %c0_i32_0 : i32
    scf.if %2 {
      %cst_10 = arith.constant 0.000000e+00 : f32
      %12 = vector.broadcast %cst_10 : f32 to vector<16x128xf32>
      %c0_11 = arith.constant 0 : index
      %c0_12 = arith.constant 0 : index
      %13 = vector.load %arg8[%c0_11, %c0_12] : memref<16x128xf32, #tpu.memory_space<vmem>>, vector<16x128xf32>
      tpu.vector_store %arg8[%c0_11, %c0_12], %12 {strides = array<i32>} : memref<16x128xf32, #tpu.memory_space<vmem>>, vector<16x128xf32>,
    } else {
    }
    %c0 = arith.constant 0 : index
    %c0_1 = arith.constant 0 : index
    %3 = vector.load %arg8[%c0, %c0_1] : memref<16x128xf32, #tpu.memory_space<vmem>>, vector<16x128xf32>
    %c0_2 = arith.constant 0 : index
    %c0_3 = arith.constant 0 : index
    %4 = vector.load %arg3[%c0_2, %c0_3] : memref<16x128xbf16, #tpu.memory_space<vmem>>, vector<16x128xbf16>
    %c0_4 = arith.constant 0 : index
    %c0_5 = arith.constant 0 : index
    %5 = vector.load %arg4[%c0_4, %c0_5] : memref<128x128xbf16, #tpu.memory_space<vmem>>, vector<128x128xbf16>
    %cst = arith.constant dense<0.000000e+00> : vector<16x128xf32>
    %6 = tpu.matmul %4, %5, %cst {dimension_numbers = #tpu.dot_dimension_numbers<[1], [0], [0], [1], [0, 0, 1, 1], [], []>} : vector<16x128xbf16>, vector<128x128xbf16>, vector<16x128xf32> -> vector<16x128xf32>
    %7 = arith.addf %3, %6 : vector<16x128xf32>
    %c0_6 = arith.constant 0 : index
    %c0_7 = arith.constant 0 : index
    %8 = vector.load %arg8[%c0_6, %c0_7] : memref<16x128xf32, #tpu.memory_space<vmem>>, vector<16x128xf32>
    tpu.vector_store %arg8[%c0_6, %c0_7], %7 {strides = array<i32>} : memref<16x128xf32, #tpu.memory_space<vmem>>, vector<16x128xf32>,
    %c0_i32_8 = arith.constant 0 : i32
    %9 = arith.cmpi eq, %arg2, %c0_i32_8 : i32
    %10 = arith.extui %9 : i1 to i32
    %c0_i32_9 = arith.constant 0 : i32
    %11 = arith.cmpi ne, %10, %c0_i32_9 : i32
    scf.if %11 {
      %c0_10 = arith.constant 0 : index
      %c0_11 = arith.constant 0 : index
      %12 = vector.load %arg8[%c0_10, %c0_11] : memref<16x128xf32, #tpu.memory_space<vmem>>, vector<16x128xf32>
      %c0_12 = arith.constant 0 : index
      %c0_13 = arith.constant 0 : index
      %13 = vector.load %arg5[%c0_12, %c0_13] : memref<1x128xf32, #tpu.memory_space<vmem>>, vector<1x128xf32>
      %14 = vector.broadcast %13 : vector<1x128xf32> to vector<16x128xf32>
      %15 = arith.mulf %12, %14 : vector<16x128xf32>
      %c0_14 = arith.constant 0 : index
      %c0_15 = arith.constant 0 : index
      %16 = vector.load %arg6[%c0_14, %c0_15] : memref<1x128xf32, #tpu.memory_space<vmem>>, vector<1x128xf32>
      %17 = vector.broadcast %16 : vector<1x128xf32> to vector<16x128xf32>
      %18 = arith.addf %15, %17 : vector<16x128xf32>
      %19 = arith.truncf %18 : vector<16x128xf32> to vector<16x128xbf16>
      %c0_16 = arith.constant 0 : index
      %c0_17 = arith.constant 0 : index
      %20 = vector.load %arg7[%c0_16, %c0_17] : memref<16x128xbf16, #tpu.memory_space<vmem>>, vector<16x128xbf16>
      tpu.vector_store %arg7[%c0_16, %c0_17], %19 {strides = array<i32>} : memref<16x128xbf16, #tpu.memory_space<vmem>>, vector<16x128xbf16>,
    } else {
    }
    return
  }
  func.func @transform_0(%arg0: i32, %arg1: i32, %arg2: i32) -> (i32, i32) {
    %c0_i32 = arith.constant 0 : i32
    return %arg0, %arg2 : i32, i32
  }
  func.func @transform_1(%arg0: i32, %arg1: i32, %arg2: i32) -> (i32, i32) {
    %c0_i32 = arith.constant 0 : i32
    return %arg2, %arg1 : i32, i32
  }
  func.func @transform_2(%arg0: i32, %arg1: i32, %arg2: i32) -> (i32, i32) {
    %c0_i32 = arith.constant 0 : i32
    %c0_i32_0 = arith.constant 0 : i32
    return %c0_i32, %arg1 : i32, i32
  }
  func.func @transform_3(%arg0: i32, %arg1: i32, %arg2: i32) -> (i32, i32) {
    %c0_i32 = arith.constant 0 : i32
    %c0_i32_0 = arith.constant 0 : i32
    return %c0_i32, %arg1 : i32, i32
  }
  func.func @transform_4(%arg0: i32, %arg1: i32, %arg2: i32) -> (i32, i32) {
    %c0_i32 = arith.constant 0 : i32
    return %arg0, %arg1 : i32, i32
  }
}

module attributes {stable_mosaic.version = 11 : i64} {
  func.func @_mm_bn_kernel(%arg0: i32, %arg1: i32, %arg2: i32, %arg3: memref<16x384xbf16, #tpu.memory_space<vmem>>, %arg4: memref<384x128xbf16, #tpu.memory_space<vmem>>, %arg5: memref<1x128xf32, #tpu.memory_space<vmem>>, %arg6: memref<1x128xf32, #tpu.memory_space<vmem>>, %arg7: memref<16x128xbf16, #tpu.memory_space<vmem>>, %arg8: memref<16x128xf32, #tpu.memory_space<vmem>>) attributes {dimension_semantics = [#tpu.dimension_semantics<parallel>, #tpu.dimension_semantics<parallel>, #tpu.dimension_semantics<arbitrary>], iteration_bounds = array<i64: 1, 2, 6>, scalar_prefetch = 0 : i64, scratch_operands = 1 : i64, tpu.core_type = #tpu.core_type<tc>, window_params = [{transform_indices = @transform_0, window_bounds = array<i64: 16, 384>}, {transform_indices = @transform_1, window_bounds = array<i64: 384, 128>}, {transform_indices = @transform_2, window_bounds = array<i64: 1, 128>}, {transform_indices = @transform_3, window_bounds = array<i64: 1, 128>}, {transform_indices = @transform_4, window_bounds = array<i64: 16, 128>}]} {
    %c0_i32 = arith.constant 0 : i32
    %0 = arith.cmpi eq, %arg2, %c0_i32 : i32
    %1 = arith.extui %0 : i1 to i32
    %c0_i32_0 = arith.constant 0 : i32
    %2 = arith.cmpi ne, %1, %c0_i32_0 : i32
    scf.if %2 {
      %cst_9 = arith.constant 0.000000e+00 : f32
      %12 = vector.broadcast %cst_9 : f32 to vector<16x128xf32>
      %c0_10 = arith.constant 0 : index
      %c0_11 = arith.constant 0 : index
      %13 = vector.load %arg8[%c0_10, %c0_11] : memref<16x128xf32, #tpu.memory_space<vmem>>, vector<16x128xf32>
      tpu.vector_store %arg8[%c0_10, %c0_11], %12 {strides = array<i32>} : memref<16x128xf32, #tpu.memory_space<vmem>>, vector<16x128xf32>,
    } else {
    }
    %c0 = arith.constant 0 : index
    %c0_1 = arith.constant 0 : index
    %3 = vector.load %arg8[%c0, %c0_1] : memref<16x128xf32, #tpu.memory_space<vmem>>, vector<16x128xf32>
    %c0_2 = arith.constant 0 : index
    %c0_3 = arith.constant 0 : index
    %4 = vector.load %arg3[%c0_2, %c0_3] : memref<16x384xbf16, #tpu.memory_space<vmem>>, vector<16x384xbf16>
    %c0_4 = arith.constant 0 : index
    %c0_5 = arith.constant 0 : index
    %5 = vector.load %arg4[%c0_4, %c0_5] : memref<384x128xbf16, #tpu.memory_space<vmem>>, vector<384x128xbf16>
    %cst = arith.constant dense<0.000000e+00> : vector<16x128xf32>
    %6 = tpu.matmul %4, %5, %cst {dimension_numbers = #tpu.dot_dimension_numbers<[1], [0], [0], [1], [0, 0, 1, 1], [], []>} : vector<16x384xbf16>, vector<384x128xbf16>, vector<16x128xf32> -> vector<16x128xf32>
    %7 = arith.addf %3, %6 : vector<16x128xf32>
    %c0_6 = arith.constant 0 : index
    %c0_7 = arith.constant 0 : index
    %8 = vector.load %arg8[%c0_6, %c0_7] : memref<16x128xf32, #tpu.memory_space<vmem>>, vector<16x128xf32>
    tpu.vector_store %arg8[%c0_6, %c0_7], %7 {strides = array<i32>} : memref<16x128xf32, #tpu.memory_space<vmem>>, vector<16x128xf32>,
    %c5_i32 = arith.constant 5 : i32
    %9 = arith.cmpi eq, %arg2, %c5_i32 : i32
    %10 = arith.extui %9 : i1 to i32
    %c0_i32_8 = arith.constant 0 : i32
    %11 = arith.cmpi ne, %10, %c0_i32_8 : i32
    scf.if %11 {
      %c0_9 = arith.constant 0 : index
      %c0_10 = arith.constant 0 : index
      %12 = vector.load %arg8[%c0_9, %c0_10] : memref<16x128xf32, #tpu.memory_space<vmem>>, vector<16x128xf32>
      %c0_11 = arith.constant 0 : index
      %c0_12 = arith.constant 0 : index
      %13 = vector.load %arg5[%c0_11, %c0_12] : memref<1x128xf32, #tpu.memory_space<vmem>>, vector<1x128xf32>
      %14 = vector.broadcast %13 : vector<1x128xf32> to vector<16x128xf32>
      %15 = arith.mulf %12, %14 : vector<16x128xf32>
      %c0_13 = arith.constant 0 : index
      %c0_14 = arith.constant 0 : index
      %16 = vector.load %arg6[%c0_13, %c0_14] : memref<1x128xf32, #tpu.memory_space<vmem>>, vector<1x128xf32>
      %17 = vector.broadcast %16 : vector<1x128xf32> to vector<16x128xf32>
      %18 = arith.addf %15, %17 : vector<16x128xf32>
      %cst_15 = arith.constant 0.000000e+00 : f32
      %19 = vector.broadcast %cst_15 : f32 to vector<16x128xf32>
      %20 = arith.maximumf %18, %19 : vector<16x128xf32>
      %21 = arith.truncf %20 : vector<16x128xf32> to vector<16x128xbf16>
      %c0_16 = arith.constant 0 : index
      %c0_17 = arith.constant 0 : index
      %22 = vector.load %arg7[%c0_16, %c0_17] : memref<16x128xbf16, #tpu.memory_space<vmem>>, vector<16x128xbf16>
      tpu.vector_store %arg7[%c0_16, %c0_17], %21 {strides = array<i32>} : memref<16x128xbf16, #tpu.memory_space<vmem>>, vector<16x128xbf16>,
    } else {
    }
    return
  }
  func.func @transform_0(%arg0: i32, %arg1: i32, %arg2: i32) -> (i32, i32) {
    %c0_i32 = arith.constant 0 : i32
    return %arg0, %arg2 : i32, i32
  }
  func.func @transform_1(%arg0: i32, %arg1: i32, %arg2: i32) -> (i32, i32) {
    %c0_i32 = arith.constant 0 : i32
    return %arg2, %arg1 : i32, i32
  }
  func.func @transform_2(%arg0: i32, %arg1: i32, %arg2: i32) -> (i32, i32) {
    %c0_i32 = arith.constant 0 : i32
    %c0_i32_0 = arith.constant 0 : i32
    return %c0_i32, %arg1 : i32, i32
  }
  func.func @transform_3(%arg0: i32, %arg1: i32, %arg2: i32) -> (i32, i32) {
    %c0_i32 = arith.constant 0 : i32
    %c0_i32_0 = arith.constant 0 : i32
    return %c0_i32, %arg1 : i32, i32
  }
  func.func @transform_4(%arg0: i32, %arg1: i32, %arg2: i32) -> (i32, i32) {
    %c0_i32 = arith.constant 0 : i32
    return %arg0, %arg1 : i32, i32
  }
}

module attributes {stable_mosaic.version = 11 : i64} {
  func.func @_mm_bn_res_kernel(%arg0: i32, %arg1: i32, %arg2: i32, %arg3: memref<16x384xbf16, #tpu.memory_space<vmem>>, %arg4: memref<384x128xbf16, #tpu.memory_space<vmem>>, %arg5: memref<1x128xf32, #tpu.memory_space<vmem>>, %arg6: memref<1x128xf32, #tpu.memory_space<vmem>>, %arg7: memref<16x128xbf16, #tpu.memory_space<vmem>>, %arg8: memref<16x128xbf16, #tpu.memory_space<vmem>>, %arg9: memref<16x128xf32, #tpu.memory_space<vmem>>) attributes {dimension_semantics = [#tpu.dimension_semantics<parallel>, #tpu.dimension_semantics<parallel>, #tpu.dimension_semantics<arbitrary>], iteration_bounds = array<i64: 1, 2, 6>, scalar_prefetch = 0 : i64, scratch_operands = 1 : i64, tpu.core_type = #tpu.core_type<tc>, window_params = [{transform_indices = @transform_0, window_bounds = array<i64: 16, 384>}, {transform_indices = @transform_1, window_bounds = array<i64: 384, 128>}, {transform_indices = @transform_2, window_bounds = array<i64: 1, 128>}, {transform_indices = @transform_3, window_bounds = array<i64: 1, 128>}, {transform_indices = @transform_4, window_bounds = array<i64: 16, 128>}, {transform_indices = @transform_5, window_bounds = array<i64: 16, 128>}]} {
    %c0_i32 = arith.constant 0 : i32
    %0 = arith.cmpi eq, %arg2, %c0_i32 : i32
    %1 = arith.extui %0 : i1 to i32
    %c0_i32_0 = arith.constant 0 : i32
    %2 = arith.cmpi ne, %1, %c0_i32_0 : i32
    scf.if %2 {
      %cst_9 = arith.constant 0.000000e+00 : f32
      %12 = vector.broadcast %cst_9 : f32 to vector<16x128xf32>
      %c0_10 = arith.constant 0 : index
      %c0_11 = arith.constant 0 : index
      %13 = vector.load %arg9[%c0_10, %c0_11] : memref<16x128xf32, #tpu.memory_space<vmem>>, vector<16x128xf32>
      tpu.vector_store %arg9[%c0_10, %c0_11], %12 {strides = array<i32>} : memref<16x128xf32, #tpu.memory_space<vmem>>, vector<16x128xf32>,
    } else {
    }
    %c0 = arith.constant 0 : index
    %c0_1 = arith.constant 0 : index
    %3 = vector.load %arg9[%c0, %c0_1] : memref<16x128xf32, #tpu.memory_space<vmem>>, vector<16x128xf32>
    %c0_2 = arith.constant 0 : index
    %c0_3 = arith.constant 0 : index
    %4 = vector.load %arg3[%c0_2, %c0_3] : memref<16x384xbf16, #tpu.memory_space<vmem>>, vector<16x384xbf16>
    %c0_4 = arith.constant 0 : index
    %c0_5 = arith.constant 0 : index
    %5 = vector.load %arg4[%c0_4, %c0_5] : memref<384x128xbf16, #tpu.memory_space<vmem>>, vector<384x128xbf16>
    %cst = arith.constant dense<0.000000e+00> : vector<16x128xf32>
    %6 = tpu.matmul %4, %5, %cst {dimension_numbers = #tpu.dot_dimension_numbers<[1], [0], [0], [1], [0, 0, 1, 1], [], []>} : vector<16x384xbf16>, vector<384x128xbf16>, vector<16x128xf32> -> vector<16x128xf32>
    %7 = arith.addf %3, %6 : vector<16x128xf32>
    %c0_6 = arith.constant 0 : index
    %c0_7 = arith.constant 0 : index
    %8 = vector.load %arg9[%c0_6, %c0_7] : memref<16x128xf32, #tpu.memory_space<vmem>>, vector<16x128xf32>
    tpu.vector_store %arg9[%c0_6, %c0_7], %7 {strides = array<i32>} : memref<16x128xf32, #tpu.memory_space<vmem>>, vector<16x128xf32>,
    %c5_i32 = arith.constant 5 : i32
    %9 = arith.cmpi eq, %arg2, %c5_i32 : i32
    %10 = arith.extui %9 : i1 to i32
    %c0_i32_8 = arith.constant 0 : i32
    %11 = arith.cmpi ne, %10, %c0_i32_8 : i32
    scf.if %11 {
      %c0_9 = arith.constant 0 : index
      %c0_10 = arith.constant 0 : index
      %12 = vector.load %arg9[%c0_9, %c0_10] : memref<16x128xf32, #tpu.memory_space<vmem>>, vector<16x128xf32>
      %c0_11 = arith.constant 0 : index
      %c0_12 = arith.constant 0 : index
      %13 = vector.load %arg5[%c0_11, %c0_12] : memref<1x128xf32, #tpu.memory_space<vmem>>, vector<1x128xf32>
      %14 = vector.broadcast %13 : vector<1x128xf32> to vector<16x128xf32>
      %15 = arith.mulf %12, %14 : vector<16x128xf32>
      %c0_13 = arith.constant 0 : index
      %c0_14 = arith.constant 0 : index
      %16 = vector.load %arg6[%c0_13, %c0_14] : memref<1x128xf32, #tpu.memory_space<vmem>>, vector<1x128xf32>
      %17 = vector.broadcast %16 : vector<1x128xf32> to vector<16x128xf32>
      %18 = arith.addf %15, %17 : vector<16x128xf32>
      %c0_15 = arith.constant 0 : index
      %c0_16 = arith.constant 0 : index
      %19 = vector.load %arg7[%c0_15, %c0_16] : memref<16x128xbf16, #tpu.memory_space<vmem>>, vector<16x128xbf16>
      %20 = arith.extf %19 : vector<16x128xbf16> to vector<16x128xf32>
      %21 = arith.addf %18, %20 : vector<16x128xf32>
      %cst_17 = arith.constant 0.000000e+00 : f32
      %22 = vector.broadcast %cst_17 : f32 to vector<16x128xf32>
      %23 = arith.maximumf %21, %22 : vector<16x128xf32>
      %24 = arith.truncf %23 : vector<16x128xf32> to vector<16x128xbf16>
      %c0_18 = arith.constant 0 : index
      %c0_19 = arith.constant 0 : index
      %25 = vector.load %arg8[%c0_18, %c0_19] : memref<16x128xbf16, #tpu.memory_space<vmem>>, vector<16x128xbf16>
      tpu.vector_store %arg8[%c0_18, %c0_19], %24 {strides = array<i32>} : memref<16x128xbf16, #tpu.memory_space<vmem>>, vector<16x128xbf16>,
    } else {
    }
    return
  }
  func.func @transform_0(%arg0: i32, %arg1: i32, %arg2: i32) -> (i32, i32) {
    %c0_i32 = arith.constant 0 : i32
    return %arg0, %arg2 : i32, i32
  }
  func.func @transform_1(%arg0: i32, %arg1: i32, %arg2: i32) -> (i32, i32) {
    %c0_i32 = arith.constant 0 : i32
    return %arg2, %arg1 : i32, i32
  }
  func.func @transform_2(%arg0: i32, %arg1: i32, %arg2: i32) -> (i32, i32) {
    %c0_i32 = arith.constant 0 : i32
    %c0_i32_0 = arith.constant 0 : i32
    return %c0_i32, %arg1 : i32, i32
  }
  func.func @transform_3(%arg0: i32, %arg1: i32, %arg2: i32) -> (i32, i32) {
    %c0_i32 = arith.constant 0 : i32
    %c0_i32_0 = arith.constant 0 : i32
    return %c0_i32, %arg1 : i32, i32
  }
  func.func @transform_4(%arg0: i32, %arg1: i32, %arg2: i32) -> (i32, i32) {
    %c0_i32 = arith.constant 0 : i32
    return %arg0, %arg1 : i32, i32
  }
  func.func @transform_5(%arg0: i32, %arg1: i32, %arg2: i32) -> (i32, i32) {
    %c0_i32 = arith.constant 0 : i32
    return %arg0, %arg1 : i32, i32
  }
}

module attributes {stable_mosaic.version = 11 : i64} {
  func.func @_mm_bn_kernel(%arg0: i32, %arg1: i32, %arg2: i32, %arg3: memref<16x384xbf16, #tpu.memory_space<vmem>>, %arg4: memref<384x256xbf16, #tpu.memory_space<vmem>>, %arg5: memref<1x256xf32, #tpu.memory_space<vmem>>, %arg6: memref<1x256xf32, #tpu.memory_space<vmem>>, %arg7: memref<16x256xbf16, #tpu.memory_space<vmem>>, %arg8: memref<16x256xf32, #tpu.memory_space<vmem>>) attributes {dimension_semantics = [#tpu.dimension_semantics<parallel>, #tpu.dimension_semantics<parallel>, #tpu.dimension_semantics<arbitrary>], iteration_bounds = array<i64: 1, 2, 6>, scalar_prefetch = 0 : i64, scratch_operands = 1 : i64, tpu.core_type = #tpu.core_type<tc>, window_params = [{transform_indices = @transform_0, window_bounds = array<i64: 16, 384>}, {transform_indices = @transform_1, window_bounds = array<i64: 384, 256>}, {transform_indices = @transform_2, window_bounds = array<i64: 1, 256>}, {transform_indices = @transform_3, window_bounds = array<i64: 1, 256>}, {transform_indices = @transform_4, window_bounds = array<i64: 16, 256>}]} {
    %c0_i32 = arith.constant 0 : i32
    %0 = arith.cmpi eq, %arg2, %c0_i32 : i32
    %1 = arith.extui %0 : i1 to i32
    %c0_i32_0 = arith.constant 0 : i32
    %2 = arith.cmpi ne, %1, %c0_i32_0 : i32
    scf.if %2 {
      %cst_9 = arith.constant 0.000000e+00 : f32
      %12 = vector.broadcast %cst_9 : f32 to vector<16x256xf32>
      %c0_10 = arith.constant 0 : index
      %c0_11 = arith.constant 0 : index
      %13 = vector.load %arg8[%c0_10, %c0_11] : memref<16x256xf32, #tpu.memory_space<vmem>>, vector<16x256xf32>
      tpu.vector_store %arg8[%c0_10, %c0_11], %12 {strides = array<i32>} : memref<16x256xf32, #tpu.memory_space<vmem>>, vector<16x256xf32>,
    } else {
    }
    %c0 = arith.constant 0 : index
    %c0_1 = arith.constant 0 : index
    %3 = vector.load %arg8[%c0, %c0_1] : memref<16x256xf32, #tpu.memory_space<vmem>>, vector<16x256xf32>
    %c0_2 = arith.constant 0 : index
    %c0_3 = arith.constant 0 : index
    %4 = vector.load %arg3[%c0_2, %c0_3] : memref<16x384xbf16, #tpu.memory_space<vmem>>, vector<16x384xbf16>
    %c0_4 = arith.constant 0 : index
    %c0_5 = arith.constant 0 : index
    %5 = vector.load %arg4[%c0_4, %c0_5] : memref<384x256xbf16, #tpu.memory_space<vmem>>, vector<384x256xbf16>
    %cst = arith.constant dense<0.000000e+00> : vector<16x256xf32>
    %6 = tpu.matmul %4, %5, %cst {dimension_numbers = #tpu.dot_dimension_numbers<[1], [0], [0], [1], [0, 0, 1, 1], [], []>} : vector<16x384xbf16>, vector<384x256xbf16>, vector<16x256xf32> -> vector<16x256xf32>
    %7 = arith.addf %3, %6 : vector<16x256xf32>
    %c0_6 = arith.constant 0 : index
    %c0_7 = arith.constant 0 : index
    %8 = vector.load %arg8[%c0_6, %c0_7] : memref<16x256xf32, #tpu.memory_space<vmem>>, vector<16x256xf32>
    tpu.vector_store %arg8[%c0_6, %c0_7], %7 {strides = array<i32>} : memref<16x256xf32, #tpu.memory_space<vmem>>, vector<16x256xf32>,
    %c5_i32 = arith.constant 5 : i32
    %9 = arith.cmpi eq, %arg2, %c5_i32 : i32
    %10 = arith.extui %9 : i1 to i32
    %c0_i32_8 = arith.constant 0 : i32
    %11 = arith.cmpi ne, %10, %c0_i32_8 : i32
    scf.if %11 {
      %c0_9 = arith.constant 0 : index
      %c0_10 = arith.constant 0 : index
      %12 = vector.load %arg8[%c0_9, %c0_10] : memref<16x256xf32, #tpu.memory_space<vmem>>, vector<16x256xf32>
      %c0_11 = arith.constant 0 : index
      %c0_12 = arith.constant 0 : index
      %13 = vector.load %arg5[%c0_11, %c0_12] : memref<1x256xf32, #tpu.memory_space<vmem>>, vector<1x256xf32>
      %14 = vector.broadcast %13 : vector<1x256xf32> to vector<16x256xf32>
      %15 = arith.mulf %12, %14 : vector<16x256xf32>
      %c0_13 = arith.constant 0 : index
      %c0_14 = arith.constant 0 : index
      %16 = vector.load %arg6[%c0_13, %c0_14] : memref<1x256xf32, #tpu.memory_space<vmem>>, vector<1x256xf32>
      %17 = vector.broadcast %16 : vector<1x256xf32> to vector<16x256xf32>
      %18 = arith.addf %15, %17 : vector<16x256xf32>
      %cst_15 = arith.constant 0.000000e+00 : f32
      %19 = vector.broadcast %cst_15 : f32 to vector<16x256xf32>
      %20 = arith.maximumf %18, %19 : vector<16x256xf32>
      %21 = arith.truncf %20 : vector<16x256xf32> to vector<16x256xbf16>
      %c0_16 = arith.constant 0 : index
      %c0_17 = arith.constant 0 : index
      %22 = vector.load %arg7[%c0_16, %c0_17] : memref<16x256xbf16, #tpu.memory_space<vmem>>, vector<16x256xbf16>
      tpu.vector_store %arg7[%c0_16, %c0_17], %21 {strides = array<i32>} : memref<16x256xbf16, #tpu.memory_space<vmem>>, vector<16x256xbf16>,
    } else {
    }
    return
  }
  func.func @transform_0(%arg0: i32, %arg1: i32, %arg2: i32) -> (i32, i32) {
    %c0_i32 = arith.constant 0 : i32
    return %arg0, %arg2 : i32, i32
  }
  func.func @transform_1(%arg0: i32, %arg1: i32, %arg2: i32) -> (i32, i32) {
    %c0_i32 = arith.constant 0 : i32
    return %arg2, %arg1 : i32, i32
  }
  func.func @transform_2(%arg0: i32, %arg1: i32, %arg2: i32) -> (i32, i32) {
    %c0_i32 = arith.constant 0 : i32
    %c0_i32_0 = arith.constant 0 : i32
    return %c0_i32, %arg1 : i32, i32
  }
  func.func @transform_3(%arg0: i32, %arg1: i32, %arg2: i32) -> (i32, i32) {
    %c0_i32 = arith.constant 0 : i32
    %c0_i32_0 = arith.constant 0 : i32
    return %c0_i32, %arg1 : i32, i32
  }
  func.func @transform_4(%arg0: i32, %arg1: i32, %arg2: i32) -> (i32, i32) {
    %c0_i32 = arith.constant 0 : i32
    return %arg0, %arg1 : i32, i32
  }
}

module attributes {stable_mosaic.version = 11 : i64} {
  func.func @_mm_bn_kernel(%arg0: i32, %arg1: i32, %arg2: i32, %arg3: memref<16x256xbf16, #tpu.memory_space<vmem>>, %arg4: memref<256x256xbf16, #tpu.memory_space<vmem>>, %arg5: memref<1x256xf32, #tpu.memory_space<vmem>>, %arg6: memref<1x256xf32, #tpu.memory_space<vmem>>, %arg7: memref<16x256xbf16, #tpu.memory_space<vmem>>, %arg8: memref<16x256xf32, #tpu.memory_space<vmem>>) attributes {dimension_semantics = [#tpu.dimension_semantics<parallel>, #tpu.dimension_semantics<parallel>, #tpu.dimension_semantics<arbitrary>], iteration_bounds = array<i64: 1, 2, 1>, scalar_prefetch = 0 : i64, scratch_operands = 1 : i64, tpu.core_type = #tpu.core_type<tc>, window_params = [{transform_indices = @transform_0, window_bounds = array<i64: 16, 256>}, {transform_indices = @transform_1, window_bounds = array<i64: 256, 256>}, {transform_indices = @transform_2, window_bounds = array<i64: 1, 256>}, {transform_indices = @transform_3, window_bounds = array<i64: 1, 256>}, {transform_indices = @transform_4, window_bounds = array<i64: 16, 256>}]} {
    %c0_i32 = arith.constant 0 : i32
    %0 = arith.cmpi eq, %arg2, %c0_i32 : i32
    %1 = arith.extui %0 : i1 to i32
    %c0_i32_0 = arith.constant 0 : i32
    %2 = arith.cmpi ne, %1, %c0_i32_0 : i32
    scf.if %2 {
      %cst_10 = arith.constant 0.000000e+00 : f32
      %12 = vector.broadcast %cst_10 : f32 to vector<16x256xf32>
      %c0_11 = arith.constant 0 : index
      %c0_12 = arith.constant 0 : index
      %13 = vector.load %arg8[%c0_11, %c0_12] : memref<16x256xf32, #tpu.memory_space<vmem>>, vector<16x256xf32>
      tpu.vector_store %arg8[%c0_11, %c0_12], %12 {strides = array<i32>} : memref<16x256xf32, #tpu.memory_space<vmem>>, vector<16x256xf32>,
    } else {
    }
    %c0 = arith.constant 0 : index
    %c0_1 = arith.constant 0 : index
    %3 = vector.load %arg8[%c0, %c0_1] : memref<16x256xf32, #tpu.memory_space<vmem>>, vector<16x256xf32>
    %c0_2 = arith.constant 0 : index
    %c0_3 = arith.constant 0 : index
    %4 = vector.load %arg3[%c0_2, %c0_3] : memref<16x256xbf16, #tpu.memory_space<vmem>>, vector<16x256xbf16>
    %c0_4 = arith.constant 0 : index
    %c0_5 = arith.constant 0 : index
    %5 = vector.load %arg4[%c0_4, %c0_5] : memref<256x256xbf16, #tpu.memory_space<vmem>>, vector<256x256xbf16>
    %cst = arith.constant dense<0.000000e+00> : vector<16x256xf32>
    %6 = tpu.matmul %4, %5, %cst {dimension_numbers = #tpu.dot_dimension_numbers<[1], [0], [0], [1], [0, 0, 1, 1], [], []>} : vector<16x256xbf16>, vector<256x256xbf16>, vector<16x256xf32> -> vector<16x256xf32>
    %7 = arith.addf %3, %6 : vector<16x256xf32>
    %c0_6 = arith.constant 0 : index
    %c0_7 = arith.constant 0 : index
    %8 = vector.load %arg8[%c0_6, %c0_7] : memref<16x256xf32, #tpu.memory_space<vmem>>, vector<16x256xf32>
    tpu.vector_store %arg8[%c0_6, %c0_7], %7 {strides = array<i32>} : memref<16x256xf32, #tpu.memory_space<vmem>>, vector<16x256xf32>,
    %c0_i32_8 = arith.constant 0 : i32
    %9 = arith.cmpi eq, %arg2, %c0_i32_8 : i32
    %10 = arith.extui %9 : i1 to i32
    %c0_i32_9 = arith.constant 0 : i32
    %11 = arith.cmpi ne, %10, %c0_i32_9 : i32
    scf.if %11 {
      %c0_10 = arith.constant 0 : index
      %c0_11 = arith.constant 0 : index
      %12 = vector.load %arg8[%c0_10, %c0_11] : memref<16x256xf32, #tpu.memory_space<vmem>>, vector<16x256xf32>
      %c0_12 = arith.constant 0 : index
      %c0_13 = arith.constant 0 : index
      %13 = vector.load %arg5[%c0_12, %c0_13] : memref<1x256xf32, #tpu.memory_space<vmem>>, vector<1x256xf32>
      %14 = vector.broadcast %13 : vector<1x256xf32> to vector<16x256xf32>
      %15 = arith.mulf %12, %14 : vector<16x256xf32>
      %c0_14 = arith.constant 0 : index
      %c0_15 = arith.constant 0 : index
      %16 = vector.load %arg6[%c0_14, %c0_15] : memref<1x256xf32, #tpu.memory_space<vmem>>, vector<1x256xf32>
      %17 = vector.broadcast %16 : vector<1x256xf32> to vector<16x256xf32>
      %18 = arith.addf %15, %17 : vector<16x256xf32>
      %19 = arith.truncf %18 : vector<16x256xf32> to vector<16x256xbf16>
      %c0_16 = arith.constant 0 : index
      %c0_17 = arith.constant 0 : index
      %20 = vector.load %arg7[%c0_16, %c0_17] : memref<16x256xbf16, #tpu.memory_space<vmem>>, vector<16x256xbf16>
      tpu.vector_store %arg7[%c0_16, %c0_17], %19 {strides = array<i32>} : memref<16x256xbf16, #tpu.memory_space<vmem>>, vector<16x256xbf16>,
    } else {
    }
    return
  }
  func.func @transform_0(%arg0: i32, %arg1: i32, %arg2: i32) -> (i32, i32) {
    %c0_i32 = arith.constant 0 : i32
    return %arg0, %arg2 : i32, i32
  }
  func.func @transform_1(%arg0: i32, %arg1: i32, %arg2: i32) -> (i32, i32) {
    %c0_i32 = arith.constant 0 : i32
    return %arg2, %arg1 : i32, i32
  }
  func.func @transform_2(%arg0: i32, %arg1: i32, %arg2: i32) -> (i32, i32) {
    %c0_i32 = arith.constant 0 : i32
    %c0_i32_0 = arith.constant 0 : i32
    return %c0_i32, %arg1 : i32, i32
  }
  func.func @transform_3(%arg0: i32, %arg1: i32, %arg2: i32) -> (i32, i32) {
    %c0_i32 = arith.constant 0 : i32
    %c0_i32_0 = arith.constant 0 : i32
    return %c0_i32, %arg1 : i32, i32
  }
  func.func @transform_4(%arg0: i32, %arg1: i32, %arg2: i32) -> (i32, i32) {
    %c0_i32 = arith.constant 0 : i32
    return %arg0, %arg1 : i32, i32
  }
}

module attributes {stable_mosaic.version = 11 : i64} {
  func.func @_mm_bn_res_kernel(%arg0: i32, %arg1: i32, %arg2: i32, %arg3: memref<16x512xbf16, #tpu.memory_space<vmem>>, %arg4: memref<512x256xbf16, #tpu.memory_space<vmem>>, %arg5: memref<1x256xf32, #tpu.memory_space<vmem>>, %arg6: memref<1x256xf32, #tpu.memory_space<vmem>>, %arg7: memref<16x256xbf16, #tpu.memory_space<vmem>>, %arg8: memref<16x256xbf16, #tpu.memory_space<vmem>>, %arg9: memref<16x256xf32, #tpu.memory_space<vmem>>) attributes {dimension_semantics = [#tpu.dimension_semantics<parallel>, #tpu.dimension_semantics<parallel>, #tpu.dimension_semantics<arbitrary>], iteration_bounds = array<i64: 1, 2, 9>, scalar_prefetch = 0 : i64, scratch_operands = 1 : i64, tpu.core_type = #tpu.core_type<tc>, window_params = [{transform_indices = @transform_0, window_bounds = array<i64: 16, 512>}, {transform_indices = @transform_1, window_bounds = array<i64: 512, 256>}, {transform_indices = @transform_2, window_bounds = array<i64: 1, 256>}, {transform_indices = @transform_3, window_bounds = array<i64: 1, 256>}, {transform_indices = @transform_4, window_bounds = array<i64: 16, 256>}, {transform_indices = @transform_5, window_bounds = array<i64: 16, 256>}]} {
    %c0_i32 = arith.constant 0 : i32
    %0 = arith.cmpi eq, %arg2, %c0_i32 : i32
    %1 = arith.extui %0 : i1 to i32
    %c0_i32_0 = arith.constant 0 : i32
    %2 = arith.cmpi ne, %1, %c0_i32_0 : i32
    scf.if %2 {
      %cst_9 = arith.constant 0.000000e+00 : f32
      %12 = vector.broadcast %cst_9 : f32 to vector<16x256xf32>
      %c0_10 = arith.constant 0 : index
      %c0_11 = arith.constant 0 : index
      %13 = vector.load %arg9[%c0_10, %c0_11] : memref<16x256xf32, #tpu.memory_space<vmem>>, vector<16x256xf32>
      tpu.vector_store %arg9[%c0_10, %c0_11], %12 {strides = array<i32>} : memref<16x256xf32, #tpu.memory_space<vmem>>, vector<16x256xf32>,
    } else {
    }
    %c0 = arith.constant 0 : index
    %c0_1 = arith.constant 0 : index
    %3 = vector.load %arg9[%c0, %c0_1] : memref<16x256xf32, #tpu.memory_space<vmem>>, vector<16x256xf32>
    %c0_2 = arith.constant 0 : index
    %c0_3 = arith.constant 0 : index
    %4 = vector.load %arg3[%c0_2, %c0_3] : memref<16x512xbf16, #tpu.memory_space<vmem>>, vector<16x512xbf16>
    %c0_4 = arith.constant 0 : index
    %c0_5 = arith.constant 0 : index
    %5 = vector.load %arg4[%c0_4, %c0_5] : memref<512x256xbf16, #tpu.memory_space<vmem>>, vector<512x256xbf16>
    %cst = arith.constant dense<0.000000e+00> : vector<16x256xf32>
    %6 = tpu.matmul %4, %5, %cst {dimension_numbers = #tpu.dot_dimension_numbers<[1], [0], [0], [1], [0, 0, 1, 1], [], []>} : vector<16x512xbf16>, vector<512x256xbf16>, vector<16x256xf32> -> vector<16x256xf32>
    %7 = arith.addf %3, %6 : vector<16x256xf32>
    %c0_6 = arith.constant 0 : index
    %c0_7 = arith.constant 0 : index
    %8 = vector.load %arg9[%c0_6, %c0_7] : memref<16x256xf32, #tpu.memory_space<vmem>>, vector<16x256xf32>
    tpu.vector_store %arg9[%c0_6, %c0_7], %7 {strides = array<i32>} : memref<16x256xf32, #tpu.memory_space<vmem>>, vector<16x256xf32>,
    %c8_i32 = arith.constant 8 : i32
    %9 = arith.cmpi eq, %arg2, %c8_i32 : i32
    %10 = arith.extui %9 : i1 to i32
    %c0_i32_8 = arith.constant 0 : i32
    %11 = arith.cmpi ne, %10, %c0_i32_8 : i32
    scf.if %11 {
      %c0_9 = arith.constant 0 : index
      %c0_10 = arith.constant 0 : index
      %12 = vector.load %arg9[%c0_9, %c0_10] : memref<16x256xf32, #tpu.memory_space<vmem>>, vector<16x256xf32>
      %c0_11 = arith.constant 0 : index
      %c0_12 = arith.constant 0 : index
      %13 = vector.load %arg5[%c0_11, %c0_12] : memref<1x256xf32, #tpu.memory_space<vmem>>, vector<1x256xf32>
      %14 = vector.broadcast %13 : vector<1x256xf32> to vector<16x256xf32>
      %15 = arith.mulf %12, %14 : vector<16x256xf32>
      %c0_13 = arith.constant 0 : index
      %c0_14 = arith.constant 0 : index
      %16 = vector.load %arg6[%c0_13, %c0_14] : memref<1x256xf32, #tpu.memory_space<vmem>>, vector<1x256xf32>
      %17 = vector.broadcast %16 : vector<1x256xf32> to vector<16x256xf32>
      %18 = arith.addf %15, %17 : vector<16x256xf32>
      %c0_15 = arith.constant 0 : index
      %c0_16 = arith.constant 0 : index
      %19 = vector.load %arg7[%c0_15, %c0_16] : memref<16x256xbf16, #tpu.memory_space<vmem>>, vector<16x256xbf16>
      %20 = arith.extf %19 : vector<16x256xbf16> to vector<16x256xf32>
      %21 = arith.addf %18, %20 : vector<16x256xf32>
      %cst_17 = arith.constant 0.000000e+00 : f32
      %22 = vector.broadcast %cst_17 : f32 to vector<16x256xf32>
      %23 = arith.maximumf %21, %22 : vector<16x256xf32>
      %24 = arith.truncf %23 : vector<16x256xf32> to vector<16x256xbf16>
      %c0_18 = arith.constant 0 : index
      %c0_19 = arith.constant 0 : index
      %25 = vector.load %arg8[%c0_18, %c0_19] : memref<16x256xbf16, #tpu.memory_space<vmem>>, vector<16x256xbf16>
      tpu.vector_store %arg8[%c0_18, %c0_19], %24 {strides = array<i32>} : memref<16x256xbf16, #tpu.memory_space<vmem>>, vector<16x256xbf16>,
    } else {
    }
    return
  }
  func.func @transform_0(%arg0: i32, %arg1: i32, %arg2: i32) -> (i32, i32) {
    %c0_i32 = arith.constant 0 : i32
    return %arg0, %arg2 : i32, i32
  }
  func.func @transform_1(%arg0: i32, %arg1: i32, %arg2: i32) -> (i32, i32) {
    %c0_i32 = arith.constant 0 : i32
    return %arg2, %arg1 : i32, i32
  }
  func.func @transform_2(%arg0: i32, %arg1: i32, %arg2: i32) -> (i32, i32) {
    %c0_i32 = arith.constant 0 : i32
    %c0_i32_0 = arith.constant 0 : i32
    return %c0_i32, %arg1 : i32, i32
  }
  func.func @transform_3(%arg0: i32, %arg1: i32, %arg2: i32) -> (i32, i32) {
    %c0_i32 = arith.constant 0 : i32
    %c0_i32_0 = arith.constant 0 : i32
    return %c0_i32, %arg1 : i32, i32
  }
  func.func @transform_4(%arg0: i32, %arg1: i32, %arg2: i32) -> (i32, i32) {
    %c0_i32 = arith.constant 0 : i32
    return %arg0, %arg1 : i32, i32
  }
  func.func @transform_5(%arg0: i32, %arg1: i32, %arg2: i32) -> (i32, i32) {
    %c0_i32 = arith.constant 0 : i32
    return %arg0, %arg1 : i32, i32
  }
}

module attributes {stable_mosaic.version = 11 : i64} {
  func.func @_mm_bn_kernel(%arg0: i32, %arg1: i32, %arg2: i32, %arg3: memref<16x512xbf16, #tpu.memory_space<vmem>>, %arg4: memref<512x256xbf16, #tpu.memory_space<vmem>>, %arg5: memref<1x256xf32, #tpu.memory_space<vmem>>, %arg6: memref<1x256xf32, #tpu.memory_space<vmem>>, %arg7: memref<16x256xbf16, #tpu.memory_space<vmem>>, %arg8: memref<16x256xf32, #tpu.memory_space<vmem>>) attributes {dimension_semantics = [#tpu.dimension_semantics<parallel>, #tpu.dimension_semantics<parallel>, #tpu.dimension_semantics<arbitrary>], iteration_bounds = array<i64: 1, 2, 9>, scalar_prefetch = 0 : i64, scratch_operands = 1 : i64, tpu.core_type = #tpu.core_type<tc>, window_params = [{transform_indices = @transform_0, window_bounds = array<i64: 16, 512>}, {transform_indices = @transform_1, window_bounds = array<i64: 512, 256>}, {transform_indices = @transform_2, window_bounds = array<i64: 1, 256>}, {transform_indices = @transform_3, window_bounds = array<i64: 1, 256>}, {transform_indices = @transform_4, window_bounds = array<i64: 16, 256>}]} {
    %c0_i32 = arith.constant 0 : i32
    %0 = arith.cmpi eq, %arg2, %c0_i32 : i32
    %1 = arith.extui %0 : i1 to i32
    %c0_i32_0 = arith.constant 0 : i32
    %2 = arith.cmpi ne, %1, %c0_i32_0 : i32
    scf.if %2 {
      %cst_9 = arith.constant 0.000000e+00 : f32
      %12 = vector.broadcast %cst_9 : f32 to vector<16x256xf32>
      %c0_10 = arith.constant 0 : index
      %c0_11 = arith.constant 0 : index
      %13 = vector.load %arg8[%c0_10, %c0_11] : memref<16x256xf32, #tpu.memory_space<vmem>>, vector<16x256xf32>
      tpu.vector_store %arg8[%c0_10, %c0_11], %12 {strides = array<i32>} : memref<16x256xf32, #tpu.memory_space<vmem>>, vector<16x256xf32>,
    } else {
    }
    %c0 = arith.constant 0 : index
    %c0_1 = arith.constant 0 : index
    %3 = vector.load %arg8[%c0, %c0_1] : memref<16x256xf32, #tpu.memory_space<vmem>>, vector<16x256xf32>
    %c0_2 = arith.constant 0 : index
    %c0_3 = arith.constant 0 : index
    %4 = vector.load %arg3[%c0_2, %c0_3] : memref<16x512xbf16, #tpu.memory_space<vmem>>, vector<16x512xbf16>
    %c0_4 = arith.constant 0 : index
    %c0_5 = arith.constant 0 : index
    %5 = vector.load %arg4[%c0_4, %c0_5] : memref<512x256xbf16, #tpu.memory_space<vmem>>, vector<512x256xbf16>
    %cst = arith.constant dense<0.000000e+00> : vector<16x256xf32>
    %6 = tpu.matmul %4, %5, %cst {dimension_numbers = #tpu.dot_dimension_numbers<[1], [0], [0], [1], [0, 0, 1, 1], [], []>} : vector<16x512xbf16>, vector<512x256xbf16>, vector<16x256xf32> -> vector<16x256xf32>
    %7 = arith.addf %3, %6 : vector<16x256xf32>
    %c0_6 = arith.constant 0 : index
    %c0_7 = arith.constant 0 : index
    %8 = vector.load %arg8[%c0_6, %c0_7] : memref<16x256xf32, #tpu.memory_space<vmem>>, vector<16x256xf32>
    tpu.vector_store %arg8[%c0_6, %c0_7], %7 {strides = array<i32>} : memref<16x256xf32, #tpu.memory_space<vmem>>, vector<16x256xf32>,
    %c8_i32 = arith.constant 8 : i32
    %9 = arith.cmpi eq, %arg2, %c8_i32 : i32
    %10 = arith.extui %9 : i1 to i32
    %c0_i32_8 = arith.constant 0 : i32
    %11 = arith.cmpi ne, %10, %c0_i32_8 : i32
    scf.if %11 {
      %c0_9 = arith.constant 0 : index
      %c0_10 = arith.constant 0 : index
      %12 = vector.load %arg8[%c0_9, %c0_10] : memref<16x256xf32, #tpu.memory_space<vmem>>, vector<16x256xf32>
      %c0_11 = arith.constant 0 : index
      %c0_12 = arith.constant 0 : index
      %13 = vector.load %arg5[%c0_11, %c0_12] : memref<1x256xf32, #tpu.memory_space<vmem>>, vector<1x256xf32>
      %14 = vector.broadcast %13 : vector<1x256xf32> to vector<16x256xf32>
      %15 = arith.mulf %12, %14 : vector<16x256xf32>
      %c0_13 = arith.constant 0 : index
      %c0_14 = arith.constant 0 : index
      %16 = vector.load %arg6[%c0_13, %c0_14] : memref<1x256xf32, #tpu.memory_space<vmem>>, vector<1x256xf32>
      %17 = vector.broadcast %16 : vector<1x256xf32> to vector<16x256xf32>
      %18 = arith.addf %15, %17 : vector<16x256xf32>
      %cst_15 = arith.constant 0.000000e+00 : f32
      %19 = vector.broadcast %cst_15 : f32 to vector<16x256xf32>
      %20 = arith.maximumf %18, %19 : vector<16x256xf32>
      %21 = arith.truncf %20 : vector<16x256xf32> to vector<16x256xbf16>
      %c0_16 = arith.constant 0 : index
      %c0_17 = arith.constant 0 : index
      %22 = vector.load %arg7[%c0_16, %c0_17] : memref<16x256xbf16, #tpu.memory_space<vmem>>, vector<16x256xbf16>
      tpu.vector_store %arg7[%c0_16, %c0_17], %21 {strides = array<i32>} : memref<16x256xbf16, #tpu.memory_space<vmem>>, vector<16x256xbf16>,
    } else {
    }
    return
  }
  func.func @transform_0(%arg0: i32, %arg1: i32, %arg2: i32) -> (i32, i32) {
    %c0_i32 = arith.constant 0 : i32
    return %arg0, %arg2 : i32, i32
  }
  func.func @transform_1(%arg0: i32, %arg1: i32, %arg2: i32) -> (i32, i32) {
    %c0_i32 = arith.constant 0 : i32
    return %arg2, %arg1 : i32, i32
  }
  func.func @transform_2(%arg0: i32, %arg1: i32, %arg2: i32) -> (i32, i32) {
    %c0_i32 = arith.constant 0 : i32
    %c0_i32_0 = arith.constant 0 : i32
    return %c0_i32, %arg1 : i32, i32
  }
  func.func @transform_3(%arg0: i32, %arg1: i32, %arg2: i32) -> (i32, i32) {
    %c0_i32 = arith.constant 0 : i32
    %c0_i32_0 = arith.constant 0 : i32
    return %c0_i32, %arg1 : i32, i32
  }
  func.func @transform_4(%arg0: i32, %arg1: i32, %arg2: i32) -> (i32, i32) {
    %c0_i32 = arith.constant 0 : i32
    return %arg0, %arg1 : i32, i32
  }
}

module attributes {stable_mosaic.version = 11 : i64} {
  func.func @_avgpool_fc_kernel(%arg0: memref<2x1x512xbf16, #tpu.memory_space<vmem>>, %arg1: memref<512x128xbf16, #tpu.memory_space<vmem>>, %arg2: memref<1x128xf32, #tpu.memory_space<vmem>>, %arg3: memref<2x128xf32, #tpu.memory_space<vmem>>) attributes {dimension_semantics = [], scalar_prefetch = 0 : i64, scratch_operands = 0 : i64, tpu.core_type = #tpu.core_type<tc>} {
    %c0 = arith.constant 0 : index
    %c0_0 = arith.constant 0 : index
    %c0_1 = arith.constant 0 : index
    %0 = vector.load %arg0[%c0, %c0_0, %c0_1] : memref<2x1x512xbf16, #tpu.memory_space<vmem>>, vector<2x1x512xbf16>
    %1 = arith.extf %0 : vector<2x1x512xbf16> to vector<2x1x512xf32>
    %cst = arith.constant dense<0.000000e+00> : vector<2x512xf32>
    %2 = vector.multi_reduction <add>, %1, %cst [1] : vector<2x1x512xf32> to vector<2x512xf32>
    %cst_2 = arith.constant 1.000000e+00 : f32
    %3 = vector.broadcast %cst_2 : f32 to vector<2x512xf32>
    %4 = arith.mulf %2, %3 : vector<2x512xf32>
    %5 = arith.truncf %4 : vector<2x512xf32> to vector<2x512xbf16>
    %c0_3 = arith.constant 0 : index
    %c0_4 = arith.constant 0 : index
    %6 = vector.load %arg1[%c0_3, %c0_4] : memref<512x128xbf16, #tpu.memory_space<vmem>>, vector<512x128xbf16>
    %cst_5 = arith.constant dense<0.000000e+00> : vector<2x128xf32>
    %7 = tpu.matmul %5, %6, %cst_5 {dimension_numbers = #tpu.dot_dimension_numbers<[1], [0], [0], [1], [0, 0, 1, 1], [], []>} : vector<2x512xbf16>, vector<512x128xbf16>, vector<2x128xf32> -> vector<2x128xf32>
    %c0_6 = arith.constant 0 : index
    %c0_7 = arith.constant 0 : index
    %8 = vector.load %arg2[%c0_6, %c0_7] : memref<1x128xf32, #tpu.memory_space<vmem>>, vector<1x128xf32>
    %9 = vector.broadcast %8 : vector<1x128xf32> to vector<2x128xf32>
    %10 = arith.addf %7, %9 : vector<2x128xf32>
    %c0_8 = arith.constant 0 : index
    %c0_9 = arith.constant 0 : index
    %11 = vector.load %arg3[%c0_8, %c0_9] : memref<2x128xf32, #tpu.memory_space<vmem>>, vector<2x128xf32>
    tpu.vector_store %arg3[%c0_8, %c0_9], %10 {strides = array<i32>} : memref<2x128xf32, #tpu.memory_space<vmem>>, vector<2x128xf32>,
    return
  }
}

</mosaic_0001>

<bundles_post_ra>
// kernel: resnet18_forward.23
= control target key start
LH: loop header
LB: loop body
LE: loop exit
PB: predicated region body
PF: predicated region fallthrough
CT: control target
= control target key end

     0   :  { %s994_s6 = smov 0   ;;  %s996_s7 = smov 0   ;;  %s1353_s0 = inlined_call_operand.vmem [shape: bf16[2,2,2,9,9,64], index: 0, kind: input, shape index: {}]   ;;  %s1354_s1 = inlined_call_operand.vmem [shape: bf16[2,8,8,64], index: 1, kind: output, shape index: {}]  }
   0x1   :  { %s998_s8 = smov 0  }
   0x2 LB: > { %s889_s9 = sadd.s32 4294967295, %s982_s8   ;;  %s1011_s10 = sadd.s32 1, %s982_s8   ;;  %s982_s8 = sphi %s998_s8, %s1360_s8   ;;  %s978_s7 = sphi %s996_s7, %s1359_s7   ;;  %s974_s6 = sphi %s994_s6, %s1358_s6  }
   0x3   : > { %s15_s11 = ssub.s32 %s982_s8, %s1011_s10  ;;  %s18_s12 = sadd.s32 1, %s978_s7 }
   0x4   : > { %p16_p0 = scmp.eq.s32.totalorder %s15_s11, 0  ;;  %p25_p1 = scmp.ne.s32.totalorder %s978_s7, %s974_s6 }
   0x5   : > { %p26_p2 = scmp.eq.s32.totalorder %s982_s8, 0  ;;  %p892_p4 = scmp.ge.s32.totalorder %s982_s8, 2 }
   0x6   : > { %s1020_s13 = scalar_select %p16_p0, %s978_s7, %s18_s12  }
   0x7   : > { %p27_p3 = por %p26_p2, %p25_p1  ;;  %77 = sbr.rel (%p892_p4) target bundleno = 37 (0x25), region = 16 }
   0xe   : > { %80 = sbr.rel (!%p27_p3) target bundleno = 37 (0x25), region = 20  ;;  %s82_s14 = sand.u32 (%p27_p3), 1, %s978_s7  }
   0xf   : > { %s934_s15 = smul.u32 (%p27_p3), 72, %s982_s8 }
  0x10   : > { %s933_s16 = smul.u32 (%p27_p3), 288, %s82_s14 }
  0x11   : > { %s1028_s19 = scalar_lea.vmem (%p27_p3), %s1353_s0, %s934_s15 }
  0x12   : > { %v103_v0 = vld [vmem:[%s1028_s19] sm:$0xff] (%p27_p3)   ;;  %v107_v1 = vld [vmem:[%s1028_s19 + $0x8] sm:$0xff] (%p27_p3)   ;;  %v111_v2 = vld [vmem:[%s1028_s19 + $0x10] sm:$0xff] (%p27_p3)   ;;  %s1033_s20 = scalar_lea.vmem (%p27_p3), [#allocation2], %s933_s16 }
  0x13   : > { %104 = vst [vmem:[%s1033_s20] sm:$0xff] (%p27_p3), %v103_v0   ;;  %108 = vst [vmem:[%s1033_s20 + $0x8] sm:$0xff] (%p27_p3), %v107_v1   ;;  %v115_v3 = vld [vmem:[%s1028_s19 + $0x18] sm:$0xff] (%p27_p3)   ;;  %v119_v4 = vld [vmem:[%s1028_s19 + $0x20] sm:$0xff] (%p27_p3)  }
  0x14   : > { %112 = vst [vmem:[%s1033_s20 + $0x10] sm:$0xff] (%p27_p3), %v111_v2   ;;  %v123_v5 = vld [vmem:[%s1028_s19 + $0x28] sm:$0xff] (%p27_p3)   ;;  %116 = vst [vmem:[%s1033_s20 + $0x18] sm:$0xff] (%p27_p3), %v115_v3   ;;  %v127_v6 = vld [vmem:[%s1028_s19 + $0x30] sm:$0xff] (%p27_p3)  }
  0x15   : > { %120 = vst [vmem:[%s1033_s20 + $0x20] sm:$0xff] %v119_v4   ;;  %124 = vst [vmem:[%s1033_s20 + $0x28] sm:$0xff] %v123_v5   ;;  %v131_v7 = vld [vmem:[%s1028_s19 + $0x38] sm:$0xff]   ;;  %v135_v8 = vld [vmem:[%s1028_s19 + $0x40] sm:$0xff]  }
  0x16   : > { %128 = vst [vmem:[%s1033_s20 + $0x30] sm:$0xff] %v127_v6   ;;  %132 = vst [vmem:[%s1033_s20 + $0x38] sm:$0xff] %v131_v7   ;;  %v139_v9 = vld [vmem:[%s1028_s19 + $0x90] sm:$0xff]   ;;  %v143_v10 = vld [vmem:[%s1028_s19 + $0x98] sm:$0xff]  }
  0x17   : > { %136 = vst [vmem:[%s1033_s20 + $0x40] sm:$0xff] %v135_v8   ;;  %v147_v11 = vld [vmem:[%s1028_s19 + $0xa0] sm:$0xff]   ;;  %140 = vst [vmem:[%s1033_s20 + $0x48] sm:$0xff] %v139_v9   ;;  %v151_v12 = vld [vmem:[%s1028_s19 + $0xa8] sm:$0xff]  }
  0x18   : > { %144 = vst [vmem:[%s1033_s20 + $0x50] sm:$0xff] %v143_v10   ;;  %148 = vst [vmem:[%s1033_s20 + $0x58] sm:$0xff] %v147_v11   ;;  %v155_v13 = vld [vmem:[%s1028_s19 + $0xb0] sm:$0xff]   ;;  %v159_v14 = vld [vmem:[%s1028_s19 + $0xb8] sm:$0xff]  }
  0x19   : > { %152 = vst [vmem:[%s1033_s20 + $0x60] sm:$0xff] %v151_v12   ;;  %156 = vst [vmem:[%s1033_s20 + $0x68] sm:$0xff] %v155_v13   ;;  %v163_v15 = vld [vmem:[%s1028_s19 + $0xc0] sm:$0xff]   ;;  %v167_v16 = vld [vmem:[%s1028_s19 + $0xc8] sm:$0xff]  }
  0x1a   : > { %160 = vst [vmem:[%s1033_s20 + $0x70] sm:$0xff] %v159_v14   ;;  %v171_v17 = vld [vmem:[%s1028_s19 + $0xd0] sm:$0xff]   ;;  %164 = vst [vmem:[%s1033_s20 + $0x78] sm:$0xff] %v163_v15   ;;  %v175_v18 = vld [vmem:[%s1028_s19 + $0x120] sm:$0xff]  }
  0x1b   : > { %168 = vst [vmem:[%s1033_s20 + $0x80] sm:$0xff] %v167_v16   ;;  %172 = vst [vmem:[%s1033_s20 + $0x88] sm:$0xff] %v171_v17   ;;  %v179_v19 = vld [vmem:[%s1028_s19 + $0x128] sm:$0xff]   ;;  %v183_v20 = vld [vmem:[%s1028_s19 + $0x130] sm:$0xff]  }
  0x1c   : > { %176 = vst [vmem:[%s1033_s20 + $0x90] sm:$0xff] %v175_v18   ;;  %180 = vst [vmem:[%s1033_s20 + $0x98] sm:$0xff] %v179_v19   ;;  %v187_v21 = vld [vmem:[%s1028_s19 + $0x138] sm:$0xff]   ;;  %v191_v22 = vld [vmem:[%s1028_s19 + $0x140] sm:$0xff]  }
  0x1d   : > { %184 = vst [vmem:[%s1033_s20 + $0xa0] sm:$0xff] %v183_v20   ;;  %v195_v23 = vld [vmem:[%s1028_s19 + $0x148] sm:$0xff]   ;;  %188 = vst [vmem:[%s1033_s20 + $0xa8] sm:$0xff] %v187_v21   ;;  %v199_v24 = vld [vmem:[%s1028_s19 + $0x150] sm:$0xff]  }
  0x1e   : > { %192 = vst [vmem:[%s1033_s20 + $0xb0] sm:$0xff] %v191_v22   ;;  %196 = vst [vmem:[%s1033_s20 + $0xb8] sm:$0xff] %v195_v23   ;;  %v203_v25 = vld [vmem:[%s1028_s19 + $0x158] sm:$0xff]   ;;  %v207_v26 = vld [vmem:[%s1028_s19 + $0x160] sm:$0xff]  }
  0x1f   : > { %200 = vst [vmem:[%s1033_s20 + $0xc0] sm:$0xff] %v199_v24   ;;  %204 = vst [vmem:[%s1033_s20 + $0xc8] sm:$0xff] %v203_v25   ;;  %v211_v27 = vld [vmem:[%s1028_s19 + $0x1b0] sm:$0xff]   ;;  %v215_v28 = vld [vmem:[%s1028_s19 + $0x1b8] sm:$0xff]  }
  0x20   : > { %208 = vst [vmem:[%s1033_s20 + $0xd0] sm:$0xff] %v207_v26   ;;  %v219_v29 = vld [vmem:[%s1028_s19 + $0x1c0] sm:$0xff]   ;;  %212 = vst [vmem:[%s1033_s20 + $0xd8] sm:$0xff] %v211_v27   ;;  %v223_v30 = vld [vmem:[%s1028_s19 + $0x1c8] sm:$0xff]  }
  0x21   : > { %216 = vst [vmem:[%s1033_s20 + $0xe0] sm:$0xff] %v215_v28   ;;  %220 = vst [vmem:[%s1033_s20 + $0xe8] sm:$0xff] %v219_v29   ;;  %v227_v31 = vld [vmem:[%s1028_s19 + $0x1d0] sm:$0xff]   ;;  %v231_v32 = vld [vmem:[%s1028_s19 + $0x1d8] sm:$0xff]  }
  0x22   : > { %224 = vst [vmem:[%s1033_s20 + $0xf0] sm:$0xff] %v223_v30   ;;  %228 = vst [vmem:[%s1033_s20 + $0xf8] sm:$0xff] %v227_v31   ;;  %v235_v33 = vld [vmem:[%s1028_s19 + $0x1e0] sm:$0xff]   ;;  %v239_v34 = vld [vmem:[%s1028_s19 + $0x1e8] sm:$0xff]  }
  0x23   : > { %232 = vst [vmem:[%s1033_s20 + $0x100] sm:$0xff] %v231_v32   ;;  %v243_v35 = vld [vmem:[%s1028_s19 + $0x1f0] sm:$0xff]   ;;  %236 = vst [vmem:[%s1033_s20 + $0x108] sm:$0xff] %v235_v33  }
  0x24   : > { %240 = vst [vmem:[%s1033_s20 + $0x110] sm:$0xff] %v239_v34   ;;  %244 = vst [vmem:[%s1033_s20 + $0x118] sm:$0xff] %v243_v35  }
  0x25 PF: > { %p894_p5 = scmp.ge.s32.totalorder %s982_s8, 1  ;;  %p412_p6 = scmp.lt.s32.totalorder %s982_s8, 3 }
  0x27   : > { %p413_p7 = pnand %p894_p5, %p412_p6 }
  0x28   : > { %s419_s21 = sand.u32 (!%p413_p7), 1, %s974_s6   ;;  %vm505_vm0 = vsmask.f32 (!%p413_p7), 3328  ;;  %vm506_vm1 = vsmask.f32 (!%p413_p7), 7440  ;;  %p1159_p8 = scmp.lt.s32.totalorder (!%p413_p7), %s889_s9, 1 }
  0x29   : > { %416 = sbr.rel (%p413_p7) target bundleno = 112 (0x70), region = 61  ;;  %vm1142_vm2 = vmor (!%p413_p7), %vm505_vm0, %vm506_vm1  ;;  %vm819_vm3 = vcmask (!%p413_p7), 519168  }
  0x2a   : > { %s935_s22 = smul.u32 (!%p413_p7), 288, %s419_s21 }
  0x2c   : > { %s1107_s23 = scalar_lea.vmem (!%p413_p7), [#allocation2], %s935_s22 }
  0x2d   : > { %v443_v36 = vld [vmem:[%s1107_s23] sm:$0xf] (!%p413_p7)  ;;  %v444_v37 = vld [vmem:[%s1107_s23 + $0x4] sm:$0x1] (!%p413_p7)  ;;  %v1112_v38 = vld [vmem:[%s1107_s23 + $0x8] sm:$0xf] (!%p413_p7) }
  0x2e   : > { %v897_v39 = vld [vmem:[%s1107_s23 + $0x48] sm:$0xf] (!%p413_p7)  ;;  %v446_v40 = vld [vmem:[%s1107_s23 + $0xc] sm:$0x1] (!%p413_p7)  ;;  %v1117_v41 = vld [vmem:[%s1107_s23 + $0x50] sm:$0xf] (!%p413_p7) }
  0x2f   : > { %v1120_v42 = vld [vmem:[%s1107_s23 + $0x90] sm:$0xf] (!%p413_p7)  ;;  %v907_v43 = vld [vmem:[%s1107_s23 + $0x94] sm:$0x1] (!%p413_p7)  ;;  %v497_v44 = vmax.bf16 (!%p413_p7), %v897_v39, %v443_v36  ;;  %v498_v45 = vmax.bf16 (!%p413_p7), %v1117_v41, %v1112_v38  ;;  %v1126_v46 = vld [vmem:[%s1107_s23 + $0x98] sm:$0xf] (!%p413_p7) }
  0x30   : > { %v509_v47 = vshrl.u32 %v443_v36, 16  ;;  %v512_v48 = vshll.u32 %v443_v36, 16  ;;  %v518_v49 = vshll.u32 %v444_v37, 16  ;;  %v523_v50 = vshrl.u32 %v1112_v38, 16  ;;  %v1133_v55 = vld [vmem:[%s1107_s23 + $0x10] sm:$0xf] }
  0x31   : > { %v526_v51 = vshll.u32 %v1112_v38, 16  ;;  %v532_v52 = vshll.u32 %v446_v40, 16  ;;  %v653_v53 = vshrl.u32 %v1120_v42, 16  ;;  %v656_v54 = vshll.u32 %v1120_v42, 16  ;;  %v1136_v60 = vld [vmem:[%s1107_s23 + $0x58] sm:$0xf] }
  0x32   : > { %v511_v56 = vrot.slane %v509_v47, 4  ;;  %v514_v57 = vrot.slane %v512_v48, 5  ;;  %v520_v58 = vrot.slane %v518_v49, 5  ;;  %v525_v59 = vrot.slane %v523_v50, 4  ;;  %v448_v8 = vld [vmem:[%s1107_s23 + $0x14] sm:$0x1] }
  0x33   : > { %v528_v61 = vrot.slane %v526_v51, 5  ;;  %v534_v62 = vrot.slane %v532_v52, 5  ;;  %v655_v63 = vrot.slane %v653_v53, 4  ;;  %v658_v0 = vrot.slane %v656_v54, 5  ;;  %v909_v9 = vld [vmem:[%s1107_s23 + $0x9c] sm:$0x1] }
  0x34   : > { %v515_v1 = vor.u32 %v514_v57, %v511_v56  ;;  %v662_v2 = vshll.u32 %v907_v43, 16  ;;  %v667_v3 = vshrl.u32 %v1126_v46, 16  ;;  %v670_v4 = vshll.u32 %v1126_v46, 16  ;;  %v1155_v22 = vld [vmem:[%s1107_s23 + $0xa0] sm:$0xf]  ;;  %s1362_s9 = smov (!%p1159_p8, %s889_s9), 1 }
  0x35   : > { %v529_v6 = vor.u32 %v528_v61, %v525_v59  ;;  %v659_v7 = vor.u32 %v658_v0, %v655_v63  ;;  %v499_v10 = vmax.bf16 %v1136_v60, %v1133_v55  ;;  %v537_v11 = vshrl.u32 %v1133_v55, 16  ;;  %v1170_v29 = vld [vmem:[%s1107_s23 + $0x18] sm:$0xf]  ;;  %v1173_v30 = vld [vmem:[%s1107_s23 + $0x60] sm:$0xf]  ;;  %s932_s25 = sshll.u32 %s1362_s9, 5 }
  0x36   : > { %v516_v12 = vrot.slane %v515_v1, 4  ;;  %v664_v13 = vrot.slane %v662_v2, 5  ;;  %v669_v14 = vrot.slane %v667_v3, 4  ;;  %v672_v15 = vrot.slane %v670_v4, 5  ;;  %v922_v31 = vld [vmem:[%s1107_s23 + $0xd8] sm:$0xf]  ;;  %s1223_s28 = scalar_lea.vmem %s1354_s1, %s932_s25 }
  0x37   : > { %v530_v16 = vrot.slane %v529_v6, 4  ;;  %v660_v17 = vrot.slane %v659_v7, 4  ;;  %v539_v18 = vrot.slane %v537_v11, 4  ;;  %v540_v19 = vshll.u32 %v1133_v55, 16  ;;  %v923_v36 = vld [vmem:[%s1107_s23 + $0xe0] sm:$0xf] }
  0x38   : > { %v521_v20 = vsel %vm1142_vm2, %v516_v12, %v520_v58  ;;  %v673_v21 = vor.u32 %v672_v15, %v669_v14  ;;  %v546_v23 = vshll.u32 %v448_v8, 16  ;;  %v676_v24 = vshll.u32 %v909_v9, 16  ;;  %v911_v48 = vld [vmem:[%s1107_s23 + $0xa4] sm:$0x1]  ;;  %v1196_v54 = vld [vmem:[%s1107_s23 + $0xa8] sm:$0xf] }
  0x39   : > { %v1165_v25 = vsel %vm1142_vm2, %v530_v16, %v534_v62  ;;  %v628_v26 = vmax.bf16 %v521_v20, %v497_v44  ;;  %v665_v27 = vsel %vm1142_vm2, %v660_v17, %v664_v13  ;;  %v542_v28 = vrot.slane %v540_v19, 5  ;;  %v450_v44 = vld [vmem:[%s1107_s23 + $0x1c] sm:$0x1]  ;;  %v1202_v4 = vld [vmem:[%s1107_s23 + $0x68] sm:$0xf] }
  0x3a   : > { %v629_v32 = vmax.bf16 %v1165_v25, %v498_v45  ;;  %v548_v33 = vrot.slane %v546_v23, 5  ;;  %v674_v34 = vrot.slane %v673_v21, 4  ;;  %v678_v35 = vrot.slane %v676_v24, 5  ;;  %v924_v7 = vld [vmem:[%s1107_s23 + $0xe8] sm:$0xf] }
  0x3b   : > { %v636_v37 = vmax.bf16 %v1120_v42, %v628_v26  ;;  %v543_v39 = vor.u32 %v542_v28, %v539_v18  ;;  %v681_v40 = vshrl.u32 %v1155_v22, 16  ;;  %v684_v43 = vshll.u32 %v1155_v22, 16  ;;  %v1212_v15 = vld [vmem:[%s1107_s23 + $0x20] sm:$0xf]  ;;  %v452_v16 = vld [vmem:[%s1107_s23 + $0x24] sm:$0x1] }
  0x3c   : > { %v637_v47 = vmax.bf16 %v1126_v46, %v629_v32  ;;  %v679_v45 = vsel %vm1142_vm2, %v674_v34, %v678_v35  ;;  %v500_v49 = vmax.bf16 %v1173_v30, %v1170_v29  ;;  %v551_v50 = vshrl.u32 %v1170_v29, 16  ;;  %v1229_v24 = vld [vmem:[%s1107_s23 + $0xb0] sm:$0xf] }
  0x3d   : > { %v644_v42 = vmax.bf16 %v922_v31, %v636_v37  ;;  %v544_v51 = vrot.slane %v543_v39, 4  ;;  %v683_v52 = vrot.slane %v681_v40, 4  ;;  %v686_v46 = vrot.slane %v684_v43, 5  ;;  %v1236_v34 = vld [vmem:[%s1107_s23 + $0x70] sm:$0xf] }
  0x3e   : > { %v645_v53 = vmax.bf16 %v923_v36, %v637_v47  ;;  %v553_v56 = vrot.slane %v551_v50, 4  ;;  %v554_v57 = vshll.u32 %v1170_v29, 16  ;;  %v560_v58 = vshll.u32 %v450_v44, 16  ;;  %v1241_v39 = vld [vmem:[%s1107_s23 + $0x28] sm:$0xf] }
  0x3f   : > { %v772_v59 = vmax.bf16 %v665_v27, %v644_v42  ;;  %v549_v61 = vsel %vm1142_vm2, %v544_v51, %v548_v33  ;;  %v687_v62 = vor.u32 %v686_v46, %v683_v52  ;;  %v690_v63 = vshll.u32 %v911_v48, 16  ;;  %v925_v40 = vld [vmem:[%s1107_s23 + $0xf0] sm:$0xf]  ;;  %v454_v42 = vld [vmem:[%s1107_s23 + $0x2c] sm:$0x1] }
  0x40   : > { %v630_v0 = vmax.bf16 %v549_v61, %v499_v10  ;;  %v773_v1 = vmax.bf16 %v679_v45, %v645_v53  ;;  %v556_v2 = vrot.slane %v554_v57, 5  ;;  %v562_v3 = vrot.slane %v560_v58, 5 }
  0x41   : > { %v780_v6 = vmax.bf16 %v772_v59, %v1112_v38  ;;  %v688_v8 = vrot.slane %v687_v62, 4  ;;  %v692_v9 = vrot.slane %v690_v63, 5  ;;  %v695_v11 = vshrl.u32 %v1196_v54, 16 }
  0x42   : > { %v638_v12 = vmax.bf16 %v1155_v22, %v630_v0  ;;  %v781_v13 = vmax.bf16 %v773_v1, %v1133_v55  ;;  %v557_v10 = vor.u32 %v556_v2, %v553_v56  ;;  %v698_v14 = vshll.u32 %v1196_v54, 16 }
  0x43   : > { %v788_v17 = vmax.bf16 %v1117_v41, %v780_v6  ;;  %v693_v38 = vsel %vm1142_vm2, %v688_v8, %v692_v9  ;;  %v697_v18 = vrot.slane %v695_v11, 4  ;;  %v501_v19 = vmax.bf16 %v1202_v4, %v1212_v15  ;;  %v913_v41 = vld [vmem:[%s1107_s23 + $0xac] sm:$0x1] }
  0x44   : > { %v646_v55 = vmax.bf16 %v924_v7, %v638_v12  ;;  %v789_v20 = vmax.bf16 %v1136_v60, %v781_v13  ;;  %v558_v21 = vrot.slane %v557_v10, 4  ;;  %v700_v22 = vrot.slane %v698_v14, 5  ;;  %v1265_v7 = vld [vmem:[%s1107_s23 + $0x78] sm:$0xf]  ;;  %v1271_v13 = vld [vmem:[%s1107_s23 + $0x30] sm:$0xf] }
  0x45   : > { %v811_v23 = vmax.bf16 %v788_v17, %v1165_v25  ;;  %v565_v26 = vshrl.u32 %v1212_v15, 16  ;;  %v568_v27 = vshll.u32 %v1212_v15, 16  ;;  %v574_v28 = vshll.u32 %v452_v16, 16  ;;  %v926_v10 = vld [vmem:[%s1107_s23 + $0xf8] sm:$0xf] }
  0x46   : > { %v812_v31 = vmax.bf16 %v789_v20, %v549_v61  ;;  %v563_v32 = vsel %vm1142_vm2, %v558_v21, %v562_v3  ;;  %v701_v60 = vor.u32 %v700_v22, %v697_v18  ;;  %v774_v33 = vmax.bf16 %v693_v38, %v646_v55  ;;  %v456_v18 = vld [vmem:[%s1107_s23 + $0x34] sm:$0x1] }
  0x47   : > { %820 = vst.msk [vmem:[%s1223_s28] sm:$0xf] %vm819_vm3, %v811_v23  ;;  %v631_v25 = vmax.bf16 %v563_v32, %v500_v49  ;;  %v567_v35 = vrot.slane %v565_v26, 4  ;;  %v570_v36 = vrot.slane %v568_v27, 5  ;;  %v576_v37 = vrot.slane %v574_v28, 5 }
  0x48   : > { %821 = vst.msk [vmem:[%s1223_s28 + $0x4] sm:$0xf] %vm819_vm3, %v812_v31  ;;  %v782_v43 = vmax.bf16 %v774_v33, %v1170_v29  ;;  %v702_v44 = vrot.slane %v701_v60, 4  ;;  %v704_v47 = vshll.u32 %v913_v41, 16  ;;  %v709_v45 = vshrl.u32 %v1229_v24, 16 }
  0x49   : > { %v639_v48 = vmax.bf16 %v1196_v54, %v631_v25  ;;  %v571_v50 = vor.u32 %v570_v36, %v567_v35  ;;  %v712_v49 = vshll.u32 %v1229_v24, 16  ;;  %v502_v51 = vmax.bf16 %v1236_v34, %v1241_v39  ;;  %v915_v29 = vld [vmem:[%s1107_s23 + $0xb4] sm:$0x1]  ;;  %v1257_v54 = vld [vmem:[%s1107_s23 + $0xb8] sm:$0xf] }
  0x4a   : > { %v790_v52 = vmax.bf16 %v1173_v30, %v782_v43  ;;  %v706_v46 = vrot.slane %v704_v47, 5  ;;  %v711_v53 = vrot.slane %v709_v45, 4  ;;  %v579_v56 = vshrl.u32 %v1241_v39, 16  ;;  %v1286_v28 = vld [vmem:[%s1107_s23 + $0xc0] sm:$0xf] }
  0x4b   : > { %v647_v57 = vmax.bf16 %v925_v40, %v639_v48  ;;  %v572_v58 = vrot.slane %v571_v50, 4  ;;  %v714_v59 = vrot.slane %v712_v49, 5  ;;  %v582_v61 = vshll.u32 %v1241_v39, 16  ;;  %v1292_v35 = vld [vmem:[%s1107_s23 + $0x80] sm:$0xf] }
  0x4c   : > { %v813_v62 = vmax.bf16 %v790_v52, %v563_v32  ;;  %v707_v30 = vsel %vm1142_vm2, %v702_v44, %v706_v46  ;;  %v581_v63 = vrot.slane %v579_v56, 4  ;;  %v588_v0 = vshll.u32 %v454_v42, 16  ;;  %v1295_v44 = vld [vmem:[%s1107_s23 + $0x38] sm:$0xf]  ;;  %v927_v47 = vld [vmem:[%s1107_s23 + $0x100] sm:$0xf] }
  0x4d   : > { %v577_v1 = vsel %vm1142_vm2, %v572_v58, %v576_v37  ;;  %v715_v2 = vor.u32 %v714_v59, %v711_v53  ;;  %v775_v3 = vmax.bf16 %v707_v30, %v647_v57  ;;  %v584_v6 = vrot.slane %v582_v61, 5  ;;  %v458_v46 = vld [vmem:[%s1107_s23 + $0x3c] sm:$0x1] }
  0x4e   : > { %822 = vst.msk [vmem:[%s1223_s28 + $0x8] sm:$0xf] %vm819_vm3, %v813_v62  ;;  %v632_v8 = vmax.bf16 %v577_v1, %v501_v19  ;;  %v590_v9 = vrot.slane %v588_v0, 5  ;;  %v718_v11 = vshll.u32 %v915_v29, 16  ;;  %v723_v12 = vshrl.u32 %v1257_v54, 16 }
  0x4f   : > { %v783_v14 = vmax.bf16 %v775_v3, %v1212_v15  ;;  %v585_v16 = vor.u32 %v584_v6, %v581_v63  ;;  %v716_v17 = vrot.slane %v715_v2, 4  ;;  %v726_v38 = vshll.u32 %v1257_v54, 16  ;;  %v920_v0 = vld [vmem:[%s1107_s23 + $0xc8] sm:$0xf] }
  0x50   : > { %v640_v55 = vmax.bf16 %v1229_v24, %v632_v8  ;;  %v720_v20 = vrot.slane %v718_v11, 5  ;;  %v725_v19 = vrot.slane %v723_v12, 4  ;;  %v503_v21 = vmax.bf16 %v1265_v7, %v1271_v13  ;;  %v917_v24 = vld [vmem:[%s1107_s23 + $0xbc] sm:$0x1]  ;;  %v921_v11 = vld [vmem:[%s1107_s23 + $0xcc] sm:$0x1] }
  0x51   : > { %v791_v22 = vmax.bf16 %v1202_v4, %v783_v14  ;;  %v586_v41 = vrot.slane %v585_v16, 4  ;;  %v728_v23 = vrot.slane %v726_v38, 5  ;;  %v593_v15 = vshrl.u32 %v1271_v13, 16 }
  0x52   : > { %v648_v26 = vmax.bf16 %v926_v10, %v640_v55  ;;  %v721_v27 = vsel %vm1142_vm2, %v716_v17, %v720_v20  ;;  %v596_v31 = vshll.u32 %v1271_v13, 16  ;;  %v602_v32 = vshll.u32 %v456_v18, 16  ;;  %v928_v17 = vld [vmem:[%s1107_s23 + $0x108] sm:$0xf] }
  0x53   : > { %v814_v60 = vmax.bf16 %v791_v22, %v577_v1  ;;  %v591_v4 = vsel %vm1142_vm2, %v586_v41, %v590_v9  ;;  %v729_v33 = vor.u32 %v728_v23, %v725_v19  ;;  %v595_v25 = vrot.slane %v593_v15, 4 }
  0x54   : > { %v633_v36 = vmax.bf16 %v591_v4, %v502_v51  ;;  %v776_v37 = vmax.bf16 %v721_v27, %v648_v26  ;;  %v598_v40 = vrot.slane %v596_v31, 5  ;;  %v604_v43 = vrot.slane %v602_v32, 5 }
  0x55   : > { %823 = vst.msk [vmem:[%s1223_s28 + $0xc] sm:$0xf] %vm819_vm3, %v814_v60  ;;  %v730_v45 = vrot.slane %v729_v33, 4  ;;  %v732_v48 = vshll.u32 %v917_v24, 16  ;;  %v737_v50 = vshrl.u32 %v1286_v28, 16  ;;  %v740_v49 = vshll.u32 %v1286_v28, 16 }
  0x56   : > { %v641_v42 = vmax.bf16 %v1257_v54, %v633_v36  ;;  %v784_v51 = vmax.bf16 %v776_v37, %v1241_v39  ;;  %v599_v52 = vor.u32 %v598_v40, %v595_v25  ;;  %v504_v53 = vmax.bf16 %v1292_v35, %v1295_v44  ;;  %v919_v54 = vld [vmem:[%s1107_s23 + $0xc4] sm:$0x1] }
  0x57   : > { %v734_v29 = vrot.slane %v732_v48, 5  ;;  %v739_v56 = vrot.slane %v737_v50, 4  ;;  %v742_v57 = vrot.slane %v740_v49, 5  ;;  %v607_v58 = vshrl.u32 %v1295_v44, 16 }
  0x58   : > { %v649_v59 = vmax.bf16 %v927_v47, %v641_v42  ;;  %v792_v61 = vmax.bf16 %v1236_v34, %v784_v51  ;;  %v600_v62 = vrot.slane %v599_v52, 4  ;;  %v610_v30 = vshll.u32 %v1295_v44, 16  ;;  %v459_v34 = vld [vmem:[%s1107_s23 + $0x40] sm:$0xf] }
  0x59   : > { %v735_v39 = vsel %vm1142_vm2, %v730_v45, %v734_v29  ;;  %v743_v63 = vor.u32 %v742_v57, %v739_v56  ;;  %v609_v1 = vrot.slane %v607_v58, 4  ;;  %v616_v2 = vshll.u32 %v458_v46, 16  ;;  %v905_v56 = vld [vmem:[%s1107_s23 + $0x88] sm:$0xf] }
  0x5a   : > { %v815_v3 = vmax.bf16 %v792_v61, %v591_v4  ;;  %v605_v6 = vsel %vm1142_vm2, %v600_v62, %v604_v43  ;;  %v777_v8 = vmax.bf16 %v735_v39, %v649_v59  ;;  %v612_v9 = vrot.slane %v610_v30, 5 }
  0x5b   : > { %v634_v12 = vmax.bf16 %v605_v6, %v503_v21  ;;  %v618_v10 = vrot.slane %v616_v2, 5  ;;  %v744_v14 = vrot.slane %v743_v63, 4  ;;  %v746_v16 = vshll.u32 %v919_v54, 16 }
  0x5c   : > { %824 = vst.msk [vmem:[%s1223_s28 + $0x10] sm:$0xf] %vm819_vm3, %v815_v3  ;;  %v785_v38 = vmax.bf16 %v777_v8, %v1271_v13  ;;  %v613_v18 = vor.u32 %v612_v9, %v609_v1  ;;  %v751_v55 = vshrl.u32 %v920_v0, 16  ;;  %v754_v20 = vshll.u32 %v920_v0, 16  ;;  %v460_v13 = vld [vmem:[%s1107_s23 + $0x44] sm:$0x1] }
  0x5d   : > { %v642_v19 = vmax.bf16 %v1286_v28, %v634_v12  ;;  %v748_v22 = vrot.slane %v746_v16, 5  ;;  %v760_v41 = vshll.u32 %v921_v11, 16  ;;  %v797_v23 = vshrl.u32 %v459_v34, 16 }
  0x5e   : > { %v793_v21 = vmax.bf16 %v1265_v7, %v785_v38  ;;  %v614_v15 = vrot.slane %v613_v18, 4  ;;  %v753_v26 = vrot.slane %v751_v55, 4  ;;  %v756_v27 = vrot.slane %v754_v20, 5  ;;  %v929_v7 = vld [vmem:[%s1107_s23 + $0x110] sm:$0xf] }
  0x5f   : > { %v650_v24 = vmax.bf16 %v928_v17, %v642_v19  ;;  %v749_v31 = vsel %vm1142_vm2, %v744_v14, %v748_v22  ;;  %v762_v32 = vrot.slane %v760_v41, 5  ;;  %v799_v60 = vrot.slane %v797_v23, 4 }
  0x60   : > { %v816_v4 = vmax.bf16 %v793_v21, %v605_v6  ;;  %v619_v28 = vsel %vm1142_vm2, %v614_v15, %v618_v10  ;;  %v757_v33 = vor.u32 %v756_v27, %v753_v26  ;;  %v800_v25 = vshll.u32 %v459_v34, 16 }
  0x61   : > { %v635_v36 = vmax.bf16 %v619_v28, %v504_v53  ;;  %v778_v37 = vmax.bf16 %v749_v31, %v650_v24  ;;  %v806_v47 = vshll.u32 %v460_v13, 16 }
  0x62   : > { %825 = vst.msk [vmem:[%s1223_s28 + $0x14] sm:$0xf] %vm819_vm3, %v816_v4  ;;  %v758_v40 = vrot.slane %v757_v33, 4  ;;  %v802_v43 = vrot.slane %v800_v25, 5 }
  0x63   : > { %v643_v45 = vmax.bf16 %v920_v0, %v635_v36  ;;  %v786_v48 = vmax.bf16 %v778_v37, %v1295_v44  ;;  %v808_v46 = vrot.slane %v806_v47, 5 }
  0x64   : > { %v763_v50 = vsel %vm1142_vm2, %v758_v40, %v762_v32  ;;  %v803_v49 = vor.u32 %v802_v43, %v799_v60 }
  0x65   : > { %v651_v42 = vmax.bf16 %v929_v7, %v643_v45  ;;  %v794_v51 = vmax.bf16 %v1292_v35, %v786_v48 }
  0x66   : > { %v804_v52 = vrot.slane %v803_v49, 4 }
  0x67   : > { %v817_v53 = vmax.bf16 %v794_v51, %v619_v28  ;;  %v779_v29 = vmax.bf16 %v763_v50, %v651_v42 }
  0x68   : > { %v809_v58 = vsel %vm1142_vm2, %v804_v52, %v808_v46 }
  0x69   : > { %826 = vst.msk [vmem:[%s1223_s28 + $0x18] sm:$0xf] %vm819_vm3, %v817_v53  ;;  %v787_v57 = vmax.bf16 %v779_v29, %v459_v34 }
  0x6b   : > { %v795_v59 = vmax.bf16 %v905_v56, %v787_v57 }
  0x6d   : > { %v818_v44 = vmax.bf16 %v809_v58, %v795_v59 }
  0x6f   : > { %827 = vst.msk [vmem:[%s1223_s28 + $0x1c] sm:$0xf] %vm819_vm3, %v818_v44 }
  0x70 PF: > { %p8_p9 = scmp.ge.s32.totalorder %s1011_s10, 4   ;;  %s1358_s6 = smov %s978_s7 }
  0x71   : > { %s1359_s7 = smov %s1020_s13  ;;  %s1360_s8 = smov %s1011_s10 }
  0x72   :  { %10 = sbr.rel (!%p8_p9) target bundleno = 2 (0x2), region = 103 }

// kernel: resnet18_forward.22
= control target key start
LH: loop header
LB: loop body
LE: loop exit
PB: predicated region body
PF: predicated region fallthrough
CT: control target
= control target key end

     0   :  { %s1843_s15 = smov 0   ;;  %s1845_s16 = smov 0   ;;  %s2054_s0 = inlined_call_operand.vmem [shape: bf16[512,256], index: 0, kind: input, shape index: {}]   ;;  %s2055_s1 = inlined_call_operand.vmem [shape: bf16[256,128], index: 1, kind: input, shape index: {}]   ;;  %s2056_s2 = inlined_call_operand.vmem [shape: f32[1,128], index: 2, kind: input, shape index: {}]   ;;  %s2057_s3 = inlined_call_operand.vmem [shape: f32[1,128], index: 3, kind: input, shape index: {}]   ;;  %s2058_s4 = inlined_call_operand.vmem [shape: bf16[512,128], index: 4, kind: output, shape index: {}]  }
   0x1   :  { %s1847_s17 = smov 0  }
   0x2 LB: > { %s33_s18 = sadd.s32 1, %s1812_s16  ;;  %p1360_p0 = scmp.ge.s32.totalorder %s1816_s17, 1  ;;  %s1816_s17 = sphi %s1847_s17, %s14_s17   ;;  %s1812_s16 = sphi %s1845_s16, %s2060_s16   ;;  %s1808_s15 = sphi %s1843_s15, %s2059_s15  }
   0x3   : > { %p35_p1 = scmp.ge.s32.totalorder %s33_s18, 2  ;;  %p224_p2 = scmp.lt.s32.totalorder %s1816_s17, 3 }
   0x5   : > { %s2062_s18 = smov (%p35_p1, %s33_s18), 0  ;;  %p225_p3 = pnand %p1360_p0, %p224_p2 }
   0x6   : > { %v1730_v0 = vld [vmem:[%s2055_s1 + $0x40] sm:$0xff] (!%p225_p3)   ;;  %s1361_s21 = sshll.u32 (!%p225_p3), %s1808_s15, 5  ;;  %v1732_v2 = vld [vmem:[%s2055_s1 + $0x48] sm:$0xff] (!%p225_p3)   ;;  %v1734_v4 = vld [vmem:[%s2055_s1 + $0x50] sm:$0xff] (!%p225_p3)  }
   0x7   : > { %228 = sbr.rel (%p225_p3) target bundleno = 322 (0x142), region = 36  ;;  %v1731_v1 = vld [vmem:[%s2055_s1] sm:$0xff] (!%p225_p3)   ;;  %1578 = vmatprep.subr.bf16.mxu0 (!%p225_p3), %v1730_v0  ;;  %1690 = vmatprep.subr.bf16.mxu1 (!%p225_p3), %v1730_v0  ;;  %v1733_v3 = vld [vmem:[%s2055_s1 + $0x8] sm:$0xff] (!%p225_p3)   ;;  %p274_p4 = scmp.lt.s32.totalorder (!%p225_p3), %s1361_s21, 63  ;;  %v1735_v5 = vld [vmem:[%s2055_s1 + $0x10] sm:$0xff] (!%p225_p3)  }
   0x8   : > { %1579 = vmatpush3.bf16.msra.mxu0 (!%p225_p3), %v1731_v1  ;;  %1698 = vmatpush3.bf16.msra.mxu1 (!%p225_p3), %v1731_v1  ;;  %v1736_v6 = vld [vmem:[%s2055_s1 + $0x58] sm:$0xff] (!%p225_p3)   ;;  %v1738_v8 = vld [vmem:[%s2055_s1 + $0x60] sm:$0xff] (!%p225_p3)   ;;  %v1740_v10 = vld [vmem:[%s2055_s1 + $0x68] sm:$0xff] (!%p225_p3)  }
   0x9   : > { %1580 = vmatprep.subr.bf16.mxu0 (!%p225_p3), %v1732_v2  ;;  %1691 = vmatprep.subr.bf16.mxu1 (!%p225_p3), %v1732_v2  ;;  %v1737_v7 = vld [vmem:[%s2055_s1 + $0x18] sm:$0xff] (!%p225_p3)   ;;  %v1739_v9 = vld [vmem:[%s2055_s1 + $0x20] sm:$0xff] (!%p225_p3)   ;;  %v1741_v13 = vld [vmem:[%s2055_s1 + $0x28] sm:$0xff] (!%p225_p3)  }
   0xa   : > { %v1742_v14 = vld [vmem:[%s2055_s1 + $0x70] sm:$0xff] (!%p225_p3)   ;;  %v1744_v16 = vld [vmem:[%s2055_s1 + $0x78] sm:$0xff] (!%p225_p3)   ;;  %v1952_v51 = vld [vmem:[%s2056_s2] ss:$0 sm:$0xff] (!%p225_p3) }
   0xb   : > { %v1743_v15 = vld [vmem:[%s2055_s1 + $0x30] sm:$0xff] (!%p225_p3)   ;;  %v1745_v17 = vld [vmem:[%s2055_s1 + $0x38] sm:$0xff] (!%p225_p3)   ;;  %v1957_v57 = vld [vmem:[%s2057_s3] ss:$0 sm:$0xff] (!%p225_p3) }
   0xc   : > { %1581 = vmatpush3.bf16.msra.mxu0 (!%p225_p3), %v1733_v3  ;;  %1699 = vmatpush3.bf16.msra.mxu1 (!%p225_p3), %v1733_v3 }
   0xd   : > { %1582 = vmatprep.subr.bf16.mxu0 (!%p225_p3), %v1734_v4  ;;  %1692 = vmatprep.subr.bf16.mxu1 (!%p225_p3), %v1734_v4 }
   0xe   : > { %s2064_s21 = smov (!%p274_p4, %s1361_s21), 63 }
   0xf   : > { %s1450_s10 = sshll.u32 %s2064_s21, 3  ;;  %s1365_s12 = sshll.u32 %s2064_s21, 2 }
  0x10   : > { %1583 = vmatpush3.bf16.msra.mxu0 %v1735_v5  ;;  %1700 = vmatpush3.bf16.msra.mxu1 %v1735_v5  ;;  %s1894_s15 = scalar_lea.vmem %s2054_s0, %s1450_s10  ;;  %s1971_s21 = scalar_lea.vmem %s2058_s4, %s1365_s12 }
  0x11   : > { %1584 = vmatprep.subr.bf16.mxu0 %v1736_v6  ;;  %1693 = vmatprep.subr.bf16.mxu1 %v1736_v6  ;;  %v1748_v11 = vld [vmem:[%s1894_s15 + $0x4] ss:$8 sps:$4 sm:$0xff]   ;;  %v1746_v18 = vld [vmem:[%s1894_s15] ss:$8 sps:$4 sm:$0xff]   ;;  %v1752_v20 = vld [vmem:[%s1894_s15 + $0x14] ss:$8 sps:$4 sm:$0xff]  }
  0x12   : > { %v1751_v12 = vld [vmem:[%s1894_s15 + $0x84] ss:$8 sps:$4 sm:$0xff]   ;;  %729 = vmatprep.mubr.bf16.mxu0 %v1748_v11  ;;  %v1749_v19 = vld [vmem:[%s1894_s15 + $0x80] ss:$8 sps:$4 sm:$0xff]   ;;  %v1754_v21 = vld [vmem:[%s1894_s15 + $0x94] ss:$8 sps:$4 sm:$0xff]  }
  0x13   : > { %793 = vmatprep.mubr.bf16.mxu1 %v1751_v12  ;;  %v1756_v22 = vld [vmem:[%s1894_s15 + $0x10] ss:$8 sps:$4 sm:$0xff]   ;;  %v1758_v24 = vld [vmem:[%s1894_s15 + $0x24] ss:$8 sps:$4 sm:$0xff]   ;;  %v1762_v26 = vld [vmem:[%s1894_s15 + $0x20] ss:$8 sps:$4 sm:$0xff]  }
  0x14   : > { %1585 = vmatpush3.bf16.msra.mxu0 %v1737_v7  ;;  %1701 = vmatpush3.bf16.msra.mxu1 %v1737_v7  ;;  %v1757_v23 = vld [vmem:[%s1894_s15 + $0x90] ss:$8 sps:$4 sm:$0xff]   ;;  %v1760_v25 = vld [vmem:[%s1894_s15 + $0xa4] ss:$8 sps:$4 sm:$0xff]   ;;  %v1763_v27 = vld [vmem:[%s1894_s15 + $0xa0] ss:$8 sps:$4 sm:$0xff]  }
  0x15   : > { %1586 = vmatprep.subr.bf16.mxu0 %v1738_v8  ;;  %1694 = vmatprep.subr.bf16.mxu1 %v1738_v8  ;;  %v1764_v28 = vld [vmem:[%s1894_s15 + $0x34] ss:$8 sps:$4 sm:$0xff]   ;;  %v1768_v30 = vld [vmem:[%s1894_s15 + $0x30] ss:$8 sps:$4 sm:$0xff]   ;;  %v1770_v32 = vld [vmem:[%s1894_s15 + $0x44] ss:$8 sps:$4 sm:$0xff]  }
  0x16   : > { %v1766_v29 = vld [vmem:[%s1894_s15 + $0xb4] ss:$8 sps:$4 sm:$0xff]   ;;  %v1769_v31 = vld [vmem:[%s1894_s15 + $0xb0] ss:$8 sps:$4 sm:$0xff]   ;;  %v1772_v33 = vld [vmem:[%s1894_s15 + $0xc4] ss:$8 sps:$4 sm:$0xff]  }
  0x17   : > { %v1774_v34 = vld [vmem:[%s1894_s15 + $0x40] ss:$8 sps:$4 sm:$0xff]   ;;  %v1776_v36 = vld [vmem:[%s1894_s15 + $0x54] ss:$8 sps:$4 sm:$0xff]   ;;  %v1780_v38 = vld [vmem:[%s1894_s15 + $0x50] ss:$8 sps:$4 sm:$0xff]  }
  0x18   : > { %1587 = vmatpush3.bf16.msra.mxu0 %v1739_v9  ;;  %1702 = vmatpush3.bf16.msra.mxu1 %v1739_v9  ;;  %v1775_v35 = vld [vmem:[%s1894_s15 + $0xc0] ss:$8 sps:$4 sm:$0xff]   ;;  %v1778_v37 = vld [vmem:[%s1894_s15 + $0xd4] ss:$8 sps:$4 sm:$0xff]   ;;  %v1781_v39 = vld [vmem:[%s1894_s15 + $0xd0] ss:$8 sps:$4 sm:$0xff]  }
  0x19   : > { %1588 = vmatprep.subr.bf16.mxu0 %v1740_v10  ;;  %1695 = vmatprep.subr.bf16.mxu1 %v1740_v10  ;;  %v1782_v40 = vld [vmem:[%s1894_s15 + $0x64] ss:$8 sps:$4 sm:$0xff]   ;;  %v1786_v42 = vld [vmem:[%s1894_s15 + $0x60] ss:$8 sps:$4 sm:$0xff]   ;;  %v1788_v44 = vld [vmem:[%s1894_s15 + $0x74] ss:$8 sps:$4 sm:$0xff]  }
  0x1a   : > { %v1784_v41 = vld [vmem:[%s1894_s15 + $0xe4] ss:$8 sps:$4 sm:$0xff]   ;;  %v1787_v43 = vld [vmem:[%s1894_s15 + $0xe0] ss:$8 sps:$4 sm:$0xff]   ;;  %v1790_v45 = vld [vmem:[%s1894_s15 + $0xf4] ss:$8 sps:$4 sm:$0xff]  }
  0x1b   : > { %v1792_v46 = vld [vmem:[%s1894_s15 + $0x70] ss:$8 sps:$4 sm:$0xff]  }
  0x1c   : > { %1589 = vmatpush3.bf16.msra.mxu0 %v1741_v13  ;;  %1703 = vmatpush3.bf16.msra.mxu1 %v1741_v13  ;;  %v1793_v47 = vld [vmem:[%s1894_s15 + $0xf0] ss:$8 sps:$4 sm:$0xff]  }
  0x1d   : > { %1590 = vmatprep.subr.bf16.mxu0 %v1742_v14  ;;  %1696 = vmatprep.subr.bf16.mxu1 %v1742_v14 }
  0x20   : > { %1591 = vmatpush3.bf16.msra.mxu0 %v1743_v15  ;;  %1704 = vmatpush3.bf16.msra.mxu1 %v1743_v15 }
  0x21   : > { %1592 = vmatprep.subr.bf16.mxu0 %v1744_v16  ;;  %1697 = vmatprep.subr.bf16.mxu1 %v1744_v16 }
  0x24   : > { %1593 = vmatpush3.bf16.msra.mxu0 %v1745_v17  ;;  %1705 = vmatpush3.bf16.msra.mxu1 %v1745_v17 }
  0x27   : > { %730 = vmatmul.mubr.bf16.vlgmr.msra.gmra.mrb[0].mxu0 %v1746_v18  ;;  %794 = vmatmul.mubr.bf16.vlgmr.msra.gmra.mrb[0].mxu1 %v1749_v19 }
  0x28   : > { %737 = vmatprep.mubr.bf16.mxu0 %v1752_v20  ;;  %801 = vmatprep.mubr.bf16.mxu1 %v1754_v21 }
  0x2f   : > { %738 = vmatmul.mubr.bf16.gmra.mrb[4].mxu0 %v1756_v22  ;;  %802 = vmatmul.mubr.bf16.gmra.mrb[4].mxu1 %v1757_v23 }
  0x30   : > { %745 = vmatprep.mubr.bf16.mxu0 %v1758_v24  ;;  %809 = vmatprep.mubr.bf16.mxu1 %v1760_v25 }
  0x37   : > { %746 = vmatmul.mubr.bf16.gmra.mrb[8].mxu0 %v1762_v26  ;;  %810 = vmatmul.mubr.bf16.gmra.mrb[8].mxu1 %v1763_v27 }
  0x38   : > { %753 = vmatprep.mubr.bf16.mxu0 %v1764_v28  ;;  %817 = vmatprep.mubr.bf16.mxu1 %v1766_v29 }
  0x3f   : > { %754 = vmatmul.mubr.bf16.gmra.mrb[12].mxu0 %v1768_v30  ;;  %818 = vmatmul.mubr.bf16.gmra.mrb[12].mxu1 %v1769_v31 }
  0x40   : > { %761 = vmatprep.mubr.bf16.mxu0 %v1770_v32  ;;  %825 = vmatprep.mubr.bf16.mxu1 %v1772_v33 }
  0x47   : > { %762 = vmatmul.mubr.bf16.gmra.mrb[16].mxu0 %v1774_v34  ;;  %826 = vmatmul.mubr.bf16.gmra.mrb[16].mxu1 %v1775_v35 }
  0x48   : > { %769 = vmatprep.mubr.bf16.mxu0 %v1776_v36  ;;  %833 = vmatprep.mubr.bf16.mxu1 %v1778_v37 }
  0x4f   : > { %770 = vmatmul.mubr.bf16.gmra.mrb[20].mxu0 %v1780_v38  ;;  %834 = vmatmul.mubr.bf16.gmra.mrb[20].mxu1 %v1781_v39 }
  0x50   : > { %777 = vmatprep.mubr.bf16.mxu0 %v1782_v40  ;;  %841 = vmatprep.mubr.bf16.mxu1 %v1784_v41 }
  0x57   : > { %778 = vmatmul.mubr.bf16.gmra.mrb[24].mxu0 %v1786_v42  ;;  %842 = vmatmul.mubr.bf16.gmra.mrb[24].mxu1 %v1787_v43 }
  0x58   : > { %785 = vmatprep.mubr.bf16.mxu0 %v1788_v44  ;;  %849 = vmatprep.mubr.bf16.mxu1 %v1790_v45 }
  0x5f   : > { %786 = vmatmul.mubr.bf16.gmra.mrb[28].mxu0 %v1792_v46  ;;  %850 = vmatmul.mubr.bf16.gmra.mrb[28].mxu1 %v1793_v47 }
  0xfa   : > { %v1594_v48 = vpop.f32.mrb[0].mxu0  ;;  %v1642_v49 = vpop.f32.mrb[0].mxu1 }
  0xfb   : > { %v1595_v50 = vpop.f32.mrb[1].mxu0  ;;  %v1643_v52 = vpop.f32.mrb[1].mxu1 }
  0xfc   : > { %v1596_v53 = vadd.f32 %v1595_v50, %v1594_v48  ;;  %v1644_v54 = vadd.f32 %v1643_v52, %v1642_v49  ;;  %v1597_v55 = vpop.f32.mrb[2].mxu0  ;;  %v1645_v56 = vpop.f32.mrb[2].mxu1 }
  0xfd   : > { %v1598_v58 = vpop.f32.mrb[3].mxu0  ;;  %v1646_v59 = vpop.f32.mrb[3].mxu1 }
  0xfe   : > { %v964_v60 = vmul.f32 %v1596_v53, %v1952_v51  ;;  %v980_v61 = vmul.f32 %v1644_v54, %v1952_v51  ;;  %v1599_v62 = vadd.f32 %v1598_v58, %v1597_v55  ;;  %v1647_v63 = vadd.f32 %v1646_v59, %v1645_v56 }
 0x100   : > { %v1003_v0 = vadd.f32 %v1957_v57, %v964_v60  ;;  %v1019_v1 = vadd.f32 %v1957_v57, %v980_v61  ;;  %v965_v2 = vmul.f32 %v1599_v62, %v1952_v51  ;;  %v981_v3 = vmul.f32 %v1647_v63, %v1952_v51 }
 0x102   : > { %v1004_v4 = vadd.f32 %v1957_v57, %v965_v2  ;;  %v1020_v5 = vadd.f32 %v1957_v57, %v981_v3  ;;  %v1600_v6 = vpop.f32.mrb[4].mxu0  ;;  %v1648_v7 = vpop.f32.mrb[4].mxu1  ;;  %v1035_v8 = vmax.f32 %v1003_v0, 0.0  ;;  %v1051_v9 = vmax.f32 %v1019_v1, 0.0 }
 0x103   : > { %v1601_v10 = vpop.f32.mrb[5].mxu0  ;;  %v1649_v11 = vpop.f32.mrb[5].mxu1 }
 0x104   : > { %v1036_v12 = vmax.f32 %v1004_v4, 0.0  ;;  %v1052_v13 = vmax.f32 %v1020_v5, 0.0  ;;  %v1602_v14 = vadd.f32 %v1601_v10, %v1600_v6  ;;  %v1650_v15 = vadd.f32 %v1649_v11, %v1648_v7  ;;  %v1603_v16 = vpop.f32.mrb[6].mxu0  ;;  %v1651_v17 = vpop.f32.mrb[6].mxu1 }
 0x105   : > { %v1604_v18 = vpop.f32.mrb[7].mxu0  ;;  %v1652_v19 = vpop.f32.mrb[7].mxu1 }
 0x106   : > { %v1486_v20 = vpack.c.bf16 %v1036_v12, %v1035_v8  ;;  %v1526_v21 = vpack.c.bf16 %v1052_v13, %v1051_v9  ;;  %v966_v22 = vmul.f32 %v1602_v14, %v1952_v51  ;;  %v982_v23 = vmul.f32 %v1650_v15, %v1952_v51 }
 0x107   : > { %v1605_v24 = vadd.f32 %v1604_v18, %v1603_v16  ;;  %v1653_v25 = vadd.f32 %v1652_v19, %v1651_v17 }
 0x108   : > { %1487 = vst [vmem:[%s1971_s21] sm:$0xff] %v1486_v20   ;;  %1570 = vst [vmem:[%s1971_s21 + $0x40] sm:$0xff] %v1526_v21   ;;  %v1005_v26 = vadd.f32 %v1957_v57, %v966_v22  ;;  %v1021_v27 = vadd.f32 %v1957_v57, %v982_v23 }
 0x109   : > { %v967_v28 = vmul.f32 %v1605_v24, %v1952_v51  ;;  %v983_v29 = vmul.f32 %v1653_v25, %v1952_v51 }
 0x10a   : > { %v1606_v30 = vpop.f32.mrb[8].mxu0  ;;  %v1654_v31 = vpop.f32.mrb[8].mxu1  ;;  %v1037_v40 = vmax.f32 %v1005_v26, 0.0  ;;  %v1053_v41 = vmax.f32 %v1021_v27, 0.0 }
 0x10b   : > { %v1006_v32 = vadd.f32 %v1957_v57, %v967_v28  ;;  %v1022_v33 = vadd.f32 %v1957_v57, %v983_v29  ;;  %v1607_v34 = vpop.f32.mrb[9].mxu0  ;;  %v1655_v35 = vpop.f32.mrb[9].mxu1 }
 0x10c   : > { %v1608_v36 = vadd.f32 %v1607_v34, %v1606_v30  ;;  %v1656_v37 = vadd.f32 %v1655_v35, %v1654_v31  ;;  %v1609_v38 = vpop.f32.mrb[10].mxu0  ;;  %v1657_v39 = vpop.f32.mrb[10].mxu1 }
 0x10d   : > { %v1038_v42 = vmax.f32 %v1006_v32, 0.0  ;;  %v1054_v43 = vmax.f32 %v1022_v33, 0.0  ;;  %v1610_v44 = vpop.f32.mrb[11].mxu0  ;;  %v1658_v45 = vpop.f32.mrb[11].mxu1 }
 0x10e   : > { %v968_v46 = vmul.f32 %v1608_v36, %v1952_v51  ;;  %v984_v47 = vmul.f32 %v1656_v37, %v1952_v51  ;;  %v1611_v48 = vadd.f32 %v1610_v44, %v1609_v38  ;;  %v1659_v49 = vadd.f32 %v1658_v45, %v1657_v39 }
 0x10f   : > { %v1491_v50 = vpack.c.bf16 %v1038_v42, %v1037_v40  ;;  %v1531_v52 = vpack.c.bf16 %v1054_v43, %v1053_v41 }
 0x110   : > { %v1007_v53 = vadd.f32 %v1957_v57, %v968_v46  ;;  %v1023_v54 = vadd.f32 %v1957_v57, %v984_v47  ;;  %v969_v55 = vmul.f32 %v1611_v48, %v1952_v51  ;;  %v985_v56 = vmul.f32 %v1659_v49, %v1952_v51 }
 0x111   : > { %1563 = vst [vmem:[%s1971_s21 + $0x8] sm:$0xff] %v1491_v50   ;;  %1571 = vst [vmem:[%s1971_s21 + $0x48] sm:$0xff] %v1531_v52  }
 0x112   : > { %v1008_v58 = vadd.f32 %v1957_v57, %v969_v55  ;;  %v1024_v59 = vadd.f32 %v1957_v57, %v985_v56  ;;  %v1612_v60 = vpop.f32.mrb[12].mxu0  ;;  %v1660_v61 = vpop.f32.mrb[12].mxu1  ;;  %v1039_v62 = vmax.f32 %v1007_v53, 0.0  ;;  %v1055_v63 = vmax.f32 %v1023_v54, 0.0 }
 0x113   : > { %v1613_v0 = vpop.f32.mrb[13].mxu0  ;;  %v1661_v1 = vpop.f32.mrb[13].mxu1 }
 0x114   : > { %v1040_v2 = vmax.f32 %v1008_v58, 0.0  ;;  %v1056_v3 = vmax.f32 %v1024_v59, 0.0  ;;  %v1614_v4 = vadd.f32 %v1613_v0, %v1612_v60  ;;  %v1662_v5 = vadd.f32 %v1661_v1, %v1660_v61  ;;  %v1615_v6 = vpop.f32.mrb[14].mxu0  ;;  %v1663_v7 = vpop.f32.mrb[14].mxu1 }
 0x115   : > { %v1616_v8 = vpop.f32.mrb[15].mxu0  ;;  %v1664_v9 = vpop.f32.mrb[15].mxu1 }
 0x116   : > { %v1496_v10 = vpack.c.bf16 %v1040_v2, %v1039_v62  ;;  %v1536_v11 = vpack.c.bf16 %v1056_v3, %v1055_v63  ;;  %v970_v12 = vmul.f32 %v1614_v4, %v1952_v51  ;;  %v986_v13 = vmul.f32 %v1662_v5, %v1952_v51 }
 0x117   : > { %v1617_v14 = vadd.f32 %v1616_v8, %v1615_v6  ;;  %v1665_v15 = vadd.f32 %v1664_v9, %v1663_v7 }
 0x118   : > { %1564 = vst [vmem:[%s1971_s21 + $0x10] sm:$0xff] %v1496_v10   ;;  %1572 = vst [vmem:[%s1971_s21 + $0x50] sm:$0xff] %v1536_v11   ;;  %v1009_v16 = vadd.f32 %v1957_v57, %v970_v12  ;;  %v1025_v17 = vadd.f32 %v1957_v57, %v986_v13 }
 0x119   : > { %v971_v18 = vmul.f32 %v1617_v14, %v1952_v51  ;;  %v987_v19 = vmul.f32 %v1665_v15, %v1952_v51 }
 0x11a   : > { %v1618_v20 = vpop.f32.mrb[16].mxu0  ;;  %v1666_v21 = vpop.f32.mrb[16].mxu1  ;;  %v1041_v30 = vmax.f32 %v1009_v16, 0.0  ;;  %v1057_v31 = vmax.f32 %v1025_v17, 0.0 }
 0x11b   : > { %v1010_v22 = vadd.f32 %v1957_v57, %v971_v18  ;;  %v1026_v23 = vadd.f32 %v1957_v57, %v987_v19  ;;  %v1619_v24 = vpop.f32.mrb[17].mxu0  ;;  %v1667_v25 = vpop.f32.mrb[17].mxu1 }
 0x11c   : > { %v1620_v26 = vadd.f32 %v1619_v24, %v1618_v20  ;;  %v1668_v27 = vadd.f32 %v1667_v25, %v1666_v21  ;;  %v1621_v28 = vpop.f32.mrb[18].mxu0  ;;  %v1669_v29 = vpop.f32.mrb[18].mxu1 }
 0x11d   : > { %v1042_v32 = vmax.f32 %v1010_v22, 0.0  ;;  %v1058_v33 = vmax.f32 %v1026_v23, 0.0  ;;  %v1622_v34 = vpop.f32.mrb[19].mxu0  ;;  %v1670_v35 = vpop.f32.mrb[19].mxu1 }
 0x11e   : > { %v972_v36 = vmul.f32 %v1620_v26, %v1952_v51  ;;  %v988_v37 = vmul.f32 %v1668_v27, %v1952_v51  ;;  %v1623_v38 = vadd.f32 %v1622_v34, %v1621_v28  ;;  %v1671_v39 = vadd.f32 %v1670_v35, %v1669_v29 }
 0x11f   : > { %v1501_v40 = vpack.c.bf16 %v1042_v32, %v1041_v30  ;;  %v1541_v41 = vpack.c.bf16 %v1058_v33, %v1057_v31 }
 0x120   : > { %v1011_v42 = vadd.f32 %v1957_v57, %v972_v36  ;;  %v1027_v43 = vadd.f32 %v1957_v57, %v988_v37  ;;  %v973_v44 = vmul.f32 %v1623_v38, %v1952_v51  ;;  %v989_v45 = vmul.f32 %v1671_v39, %v1952_v51 }
 0x121   : > { %1565 = vst [vmem:[%s1971_s21 + $0x18] sm:$0xff] %v1501_v40   ;;  %1573 = vst [vmem:[%s1971_s21 + $0x58] sm:$0xff] %v1541_v41  }
 0x122   : > { %v1012_v46 = vadd.f32 %v1957_v57, %v973_v44  ;;  %v1028_v47 = vadd.f32 %v1957_v57, %v989_v45  ;;  %v1624_v48 = vpop.f32.mrb[20].mxu0  ;;  %v1672_v49 = vpop.f32.mrb[20].mxu1  ;;  %v1043_v50 = vmax.f32 %v1011_v42, 0.0  ;;  %v1059_v52 = vmax.f32 %v1027_v43, 0.0 }
 0x123   : > { %v1625_v53 = vpop.f32.mrb[21].mxu0  ;;  %v1673_v54 = vpop.f32.mrb[21].mxu1 }
 0x124   : > { %v1044_v55 = vmax.f32 %v1012_v46, 0.0  ;;  %v1060_v56 = vmax.f32 %v1028_v47, 0.0  ;;  %v1626_v58 = vadd.f32 %v1625_v53, %v1624_v48  ;;  %v1674_v59 = vadd.f32 %v1673_v54, %v1672_v49  ;;  %v1627_v60 = vpop.f32.mrb[22].mxu0  ;;  %v1675_v61 = vpop.f32.mrb[22].mxu1 }
 0x125   : > { %v1628_v62 = vpop.f32.mrb[23].mxu0  ;;  %v1676_v63 = vpop.f32.mrb[23].mxu1 }
 0x126   : > { %v1506_v0 = vpack.c.bf16 %v1044_v55, %v1043_v50  ;;  %v1546_v1 = vpack.c.bf16 %v1060_v56, %v1059_v52  ;;  %v974_v2 = vmul.f32 %v1626_v58, %v1952_v51  ;;  %v990_v3 = vmul.f32 %v1674_v59, %v1952_v51 }
 0x127   : > { %v1629_v4 = vadd.f32 %v1628_v62, %v1627_v60  ;;  %v1677_v5 = vadd.f32 %v1676_v63, %v1675_v61 }
 0x128   : > { %1566 = vst [vmem:[%s1971_s21 + $0x20] sm:$0xff] %v1506_v0   ;;  %1574 = vst [vmem:[%s1971_s21 + $0x60] sm:$0xff] %v1546_v1   ;;  %v1013_v6 = vadd.f32 %v1957_v57, %v974_v2  ;;  %v1029_v7 = vadd.f32 %v1957_v57, %v990_v3 }
 0x129   : > { %v975_v8 = vmul.f32 %v1629_v4, %v1952_v51  ;;  %v991_v9 = vmul.f32 %v1677_v5, %v1952_v51 }
 0x12a   : > { %v1630_v10 = vpop.f32.mrb[24].mxu0  ;;  %v1678_v11 = vpop.f32.mrb[24].mxu1  ;;  %v1045_v20 = vmax.f32 %v1013_v6, 0.0  ;;  %v1061_v21 = vmax.f32 %v1029_v7, 0.0 }
 0x12b   : > { %v1014_v12 = vadd.f32 %v1957_v57, %v975_v8  ;;  %v1030_v13 = vadd.f32 %v1957_v57, %v991_v9  ;;  %v1631_v14 = vpop.f32.mrb[25].mxu0  ;;  %v1679_v15 = vpop.f32.mrb[25].mxu1 }
 0x12c   : > { %v1632_v16 = vadd.f32 %v1631_v14, %v1630_v10  ;;  %v1680_v17 = vadd.f32 %v1679_v15, %v1678_v11  ;;  %v1633_v18 = vpop.f32.mrb[26].mxu0  ;;  %v1681_v19 = vpop.f32.mrb[26].mxu1 }
 0x12d   : > { %v1046_v22 = vmax.f32 %v1014_v12, 0.0  ;;  %v1062_v23 = vmax.f32 %v1030_v13, 0.0  ;;  %v1634_v24 = vpop.f32.mrb[27].mxu0  ;;  %v1682_v25 = vpop.f32.mrb[27].mxu1 }
 0x12e   : > { %v976_v26 = vmul.f32 %v1632_v16, %v1952_v51  ;;  %v992_v27 = vmul.f32 %v1680_v17, %v1952_v51  ;;  %v1635_v28 = vadd.f32 %v1634_v24, %v1633_v18  ;;  %v1683_v29 = vadd.f32 %v1682_v25, %v1681_v19 }
 0x12f   : > { %v1511_v30 = vpack.c.bf16 %v1046_v22, %v1045_v20  ;;  %v1551_v31 = vpack.c.bf16 %v1062_v23, %v1061_v21 }
 0x130   : > { %v1015_v32 = vadd.f32 %v1957_v57, %v976_v26  ;;  %v1031_v33 = vadd.f32 %v1957_v57, %v992_v27  ;;  %v977_v34 = vmul.f32 %v1635_v28, %v1952_v51  ;;  %v993_v35 = vmul.f32 %v1683_v29, %v1952_v51 }
 0x131   : > { %1567 = vst [vmem:[%s1971_s21 + $0x28] sm:$0xff] %v1511_v30   ;;  %1575 = vst [vmem:[%s1971_s21 + $0x68] sm:$0xff] %v1551_v31  }
 0x132   : > { %v1016_v36 = vadd.f32 %v1957_v57, %v977_v34  ;;  %v1032_v37 = vadd.f32 %v1957_v57, %v993_v35  ;;  %v1636_v38 = vpop.f32.mrb[28].mxu0  ;;  %v1684_v39 = vpop.f32.mrb[28].mxu1  ;;  %v1047_v40 = vmax.f32 %v1015_v32, 0.0  ;;  %v1063_v41 = vmax.f32 %v1031_v33, 0.0 }
 0x133   : > { %v1637_v42 = vpop.f32.mrb[29].mxu0  ;;  %v1685_v43 = vpop.f32.mrb[29].mxu1 }
 0x134   : > { %v1048_v44 = vmax.f32 %v1016_v36, 0.0  ;;  %v1064_v45 = vmax.f32 %v1032_v37, 0.0  ;;  %v1638_v46 = vadd.f32 %v1637_v42, %v1636_v38  ;;  %v1686_v47 = vadd.f32 %v1685_v43, %v1684_v39  ;;  %v1639_v48 = vpop.f32.mrb[30].mxu0  ;;  %v1687_v49 = vpop.f32.mrb[30].mxu1 }
 0x135   : > { %v1640_v50 = vpop.f32.mrb[31].mxu0  ;;  %v1688_v52 = vpop.f32.mrb[31].mxu1 }
 0x136   : > { %v1516_v53 = vpack.c.bf16 %v1048_v44, %v1047_v40  ;;  %v1556_v54 = vpack.c.bf16 %v1064_v45, %v1063_v41  ;;  %v978_v55 = vmul.f32 %v1638_v46, %v1952_v51  ;;  %v994_v56 = vmul.f32 %v1686_v47, %v1952_v51 }
 0x137   : > { %v1641_v58 = vadd.f32 %v1640_v50, %v1639_v48  ;;  %v1689_v59 = vadd.f32 %v1688_v52, %v1687_v49 }
 0x138   : > { %1568 = vst [vmem:[%s1971_s21 + $0x30] sm:$0xff] %v1516_v53   ;;  %1576 = vst [vmem:[%s1971_s21 + $0x70] sm:$0xff] %v1556_v54   ;;  %v1017_v60 = vadd.f32 %v1957_v57, %v978_v55  ;;  %v1033_v61 = vadd.f32 %v1957_v57, %v994_v56 }
 0x139   : > { %v979_v62 = vmul.f32 %v1641_v58, %v1952_v51  ;;  %v995_v63 = vmul.f32 %v1689_v59, %v1952_v51 }
 0x13a   : > { %v1049_v2 = vmax.f32 %v1017_v60, 0.0  ;;  %v1065_v3 = vmax.f32 %v1033_v61, 0.0 }
 0x13b   : > { %v1018_v0 = vadd.f32 %v1957_v57, %v979_v62  ;;  %v1034_v1 = vadd.f32 %v1957_v57, %v995_v63 }
 0x13d   : > { %v1050_v4 = vmax.f32 %v1018_v0, 0.0  ;;  %v1066_v5 = vmax.f32 %v1034_v1, 0.0 }
 0x13f   : > { %v1521_v6 = vpack.c.bf16 %v1050_v4, %v1049_v2  ;;  %v1561_v7 = vpack.c.bf16 %v1066_v5, %v1065_v3 }
 0x141   : > { %1569 = vst [vmem:[%s1971_s21 + $0x38] sm:$0xff] %v1521_v6   ;;  %1577 = vst [vmem:[%s1971_s21 + $0x78] sm:$0xff] %v1561_v7  }
 0x142 PF: > { %s14_s17 = sadd.s32 1, %s1816_s17   ;;  %s2059_s15 = smov %s1812_s16 }
 0x143   : > { %p11_p5 = scmp.ge.s32.totalorder %s14_s17, 4   ;;  %s2060_s16 = smov %s2062_s18 }
 0x145   :  { %13 = sbr.rel (!%p11_p5) target bundleno = 2 (0x2), region = 83 }

// kernel: resnet18_forward.24
= control target key start
LH: loop header
LB: loop body
LE: loop exit
PB: predicated region body
PF: predicated region fallthrough
CT: control target
= control target key end

     0   :  { %s1055_s15 = smov 0   ;;  %s1057_s16 = smov 0   ;;  %s1177_s0 = inlined_call_operand.vmem [shape: bf16[128,640], index: 0, kind: input, shape index: {}]   ;;  %s1178_s1 = inlined_call_operand.vmem [shape: bf16[640,128], index: 1, kind: input, shape index: {}]   ;;  %s1179_s2 = inlined_call_operand.vmem [shape: f32[1,128], index: 2, kind: input, shape index: {}]   ;;  %s1180_s3 = inlined_call_operand.vmem [shape: f32[1,128], index: 3, kind: input, shape index: {}]   ;;  %s1181_s4 = inlined_call_operand.vmem [shape: bf16[128,128], index: 4, kind: output, shape index: {}]  }
   0x1   :  { %s1059_s17 = smov 0   ;;  %s1061_s18 = smov 0  }
   0x2   :  { %s1063_s19 = smov 0   ;;  %s1065_s20 = smov 0  }
   0x3   :  { %s1067_s21 = smov 0  }
   0x4 LB: > { %s26_s22 = sadd.s32 1, %s1019_s19  ;;  %s33_s23 = sadd.s32 1, %s1023_s20  ;;  %s1027_s21 = sphi %s1067_s21, %s14_s21   ;;  %s1023_s20 = sphi %s1065_s20, %s1187_s20   ;;  %s1019_s19 = sphi %s1063_s19, %s1186_s19   ;;  %s1015_s18 = sphi %s1061_s18, %s1185_s18   ;;  %s1011_s17 = sphi %s1059_s17, %s1184_s17   ;;  %s1007_s16 = sphi %s1057_s16, %s1183_s16   ;;  %s1003_s15 = sphi %s1055_s15, %s1182_s15  }
   0x5   : > { %p27_p0 = scmp.ge.s32.totalorder %s26_s22, 5  ;;  %p49_p1 = scmp.ne.s32.totalorder %s1007_s16, %s1003_s15 }
   0x6   : > { %p50_p2 = scmp.eq.s32.totalorder %s1027_s21, 0  ;;  %s42_s27 = sadd.s32 1, %s1007_s16 }
   0x7   : > { %s1189_s22 = smov (%p27_p0, %s26_s22), 0  ;;  %s1191_s23 = smov (!%p27_p0, %s33_s23), %s1023_s20 }
   0x8   : > { %p51_p3 = por %p50_p2, %p49_p1  ;;  %p35_p4 = scmp.ge.s32.totalorder %s1191_s23, 2 }
   0x9   : > { %s38_s24 = ssub.s32 %s1019_s19, %s1189_s22  ;;  %p783_p6 = scmp.ge.s32.totalorder %s1027_s21, 10 }
   0xa   : > { %s1193_s23 = smov (%p35_p4, %s1191_s23), 0 }
   0xb   : > { %s37_s25 = ssub.s32 %s1023_s20, %s1193_s23  ;;  %195 = sbr.rel (%p783_p6) target bundleno = 30 (0x1e), region = 24 }
   0xc   : > { %s39_s26 = sor.u32 %s38_s24, %s37_s25 }
   0xd   : > { %p40_p5 = scmp.eq.s32.totalorder %s39_s26, 0 }
   0xf   : > { %s1106_s28 = scalar_select %p40_p5, %s1007_s16, %s42_s27  }
  0x12   : > { %198 = sbr.rel (!%p51_p3) target bundleno = 30 (0x1e), region = 28  ;;  %s200_s29 = sand.u32 (%p51_p3), 1, %s1007_s16  }
  0x13   : > { %s903_s30 = smul.u32 (%p51_p3), 40, %s1023_s20  ;;  %s784_s5 = sshll.u32 (%p51_p3), %s200_s29, 5 }
  0x14   : > { %s202_s11 = scalar_lea.vmem (%p51_p3), [#allocation3], %s784_s5 }
  0x15   : > { %s205_s6 = sadd.s32 (%p51_p3), %s1019_s19, %s903_s30 }
  0x16   : > { %s787_s7 = sshll.u32 (%p51_p3), %s205_s6, 2 }
  0x17   : > { %s207_s10 = scalar_lea.vmem (%p51_p3), %s1177_s0, %s787_s7 }
  0x18   : > { %v223_v0 = vld [vmem:[%s207_s10] sm:$0xf] (%p51_p3)  ;;  %v225_v1 = vld [vmem:[%s207_s10 + $0x14] sm:$0xf] (%p51_p3)  ;;  %v227_v2 = vld [vmem:[%s207_s10 + $0x28] sm:$0xf] (%p51_p3) }
  0x19   : > { %224 = vst [vmem:[%s202_s11] sm:$0xf] %v223_v0  ;;  %226 = vst [vmem:[%s202_s11 + $0x4] sm:$0xf] %v225_v1  ;;  %v229_v3 = vld [vmem:[%s207_s10 + $0x3c] sm:$0xf] }
  0x1a   : > { %228 = vst [vmem:[%s202_s11 + $0x8] sm:$0xf] %v227_v2  ;;  %v231_v4 = vld [vmem:[%s207_s10 + $0x50] sm:$0xf]  ;;  %v233_v5 = vld [vmem:[%s207_s10 + $0x64] sm:$0xf] }
  0x1b   : > { %230 = vst [vmem:[%s202_s11 + $0xc] sm:$0xf] %v229_v3  ;;  %232 = vst [vmem:[%s202_s11 + $0x10] sm:$0xf] %v231_v4  ;;  %v235_v6 = vld [vmem:[%s207_s10 + $0x78] sm:$0xf] }
  0x1c   : > { %234 = vst [vmem:[%s202_s11 + $0x14] sm:$0xf] %v233_v5  ;;  %v237_v7 = vld [vmem:[%s207_s10 + $0x8c] sm:$0xf]  ;;  %236 = vst [vmem:[%s202_s11 + $0x18] sm:$0xf] %v235_v6 }
  0x1d   : > { %238 = vst [vmem:[%s202_s11 + $0x1c] sm:$0xf] %v237_v7 }
  0x1e PF: > { %p788_p7 = scmp.ge.s32.totalorder %s1027_s21, 1  ;;  %p288_p8 = scmp.lt.s32.totalorder %s1027_s21, 11 }
  0x20   : > { %p289_p9 = pnand %p788_p7, %p288_p8 }
  0x21   : > { %s295_s12 = sand.u32 (!%p289_p9), 1, %s1003_s15   ;;  %s790_s13 = sshll.u32 (!%p289_p9), %s1011_s17, 4 }
  0x22   : > { %292 = sbr.rel (%p289_p9) target bundleno = 319 (0x13f), region = 73  ;;  %s789_s14 = sshll.u32 (!%p289_p9), %s295_s12, 5 }
  0x23   : > { %p339_p10 = scmp.lt.s32.totalorder (!%p289_p9), %s790_s13, 79  ;;  %s792_s24 = sshll.u32 (!%p289_p9), %s1015_s18, 3 }
  0x24   : > { %p354_p11 = scmp.lt.s32.totalorder (!%p289_p9), %s792_s24, 15  ;;  %s1130_s15 = scalar_lea.vmem (!%p289_p9), [#allocation3], %s789_s14 }
  0x25   : > { %p794_p12 = scmp.ne.s32.totalorder (!%p289_p9), %s1011_s17, 0 }
  0x29   : > { %s1195_s13 = smov (!%p339_p10, %s790_s13), 79  ;;  %s1197_s24 = smov (!%p354_p11, %s792_s24), 15 }
  0x2a   : > { %s791_s25 = sshll.u32 %s1195_s13, 2  ;;  %s793_s30 = sshll.u32 %s1197_s24, 2  ;;  %v1029_v8 = vmov (!%p794_p12), 0.0  }
  0x2b   : > { %s1123_s29 = scalar_lea.vmem %s1178_s1, %s791_s25  ;;  %s1128_s7 = scalar_lea.vmem %s1181_s4, %s793_s30  ;;  %367 = vst [vmem:[#allocation2] sm:$0xff] (!%p794_p12), %v1029_v8  ;;  %368 = vst [vmem:[#allocation2 + $0x8] sm:$0xff] (!%p794_p12), %v1029_v8 }
  0x2c   : > { %366 = sbr.rel (%p794_p12) target bundleno = 51 (0x33), region = 81  ;;  %369 = vst [vmem:[#allocation2 + $0x10] sm:$0xff] (!%p794_p12), %v1029_v8  ;;  %370 = vst [vmem:[#allocation2 + $0x18] sm:$0xff] (!%p794_p12), %v1029_v8 }
  0x2d   : > { %371 = vst [vmem:[#allocation2 + $0x20] sm:$0xff] (!%p794_p12), %v1029_v8  ;;  %372 = vst [vmem:[#allocation2 + $0x28] sm:$0xff] (!%p794_p12), %v1029_v8 }
  0x2e   : > { %373 = vst [vmem:[#allocation2 + $0x30] sm:$0xff] (!%p794_p12), %v1029_v8  ;;  %374 = vst [vmem:[#allocation2 + $0x38] sm:$0xff] (!%p794_p12), %v1029_v8 }
  0x33 PF: > { %v961_v9 = vld [vmem:[%s1123_s29] sm:$0xff]   ;;  %v962_v10 = vld [vmem:[%s1123_s29 + $0x8] sm:$0xff]   ;;  %v963_v11 = vld [vmem:[%s1123_s29 + $0x10] sm:$0xff]   ;;  %p807_p13 = scmp.ne.s32.totalorder %s1011_s17, 4 }
  0x34   : > { %863 = vmatprep.subr.bf16.mxu0 %v961_v9  ;;  %887 = vmatprep.subr.bf16.mxu1 %v961_v9  ;;  %v964_v12 = vld [vmem:[%s1123_s29 + $0x18] sm:$0xff]   ;;  %v969_v13 = vld [vmem:[%s1130_s15] sm:$0xff]   ;;  %v970_v14 = vld [vmem:[%s1130_s15 + $0x10] sm:$0xff]  }
  0x35   : > { %864 = vmatpush3.bf16.msra.mxu0 %v961_v9  ;;  %895 = vmatpush3.bf16.msra.mxu1 %v961_v9  ;;  %v965_v15 = vld [vmem:[%s1123_s29 + $0x20] sm:$0xff]   ;;  %v966_v16 = vld [vmem:[%s1123_s29 + $0x28] sm:$0xff]   ;;  %v967_v17 = vld [vmem:[%s1123_s29 + $0x30] sm:$0xff]  }
  0x36   : > { %865 = vmatprep.subr.bf16.mxu0 %v962_v10  ;;  %888 = vmatprep.subr.bf16.mxu1 %v962_v10  ;;  %v968_v18 = vld [vmem:[%s1123_s29 + $0x38] sm:$0xff]   ;;  %v971_v19 = vld [vmem:[%s1130_s15 + $0x8] sm:$0xff]   ;;  %v377_v21 = vld [vmem:[#allocation2 + $0x10] sm:$0xff] }
  0x37   : > { %879 = vmatprep.mubr.bf16.mxu0 %v969_v13  ;;  %883 = vmatprep.mubr.bf16.mxu1 %v970_v14  ;;  %v972_v20 = vld [vmem:[%s1130_s15 + $0x18] sm:$0xff]   ;;  %v381_v22 = vld [vmem:[#allocation2 + $0x30] sm:$0xff]  ;;  %v375_v23 = vld [vmem:[#allocation2] sm:$0xff] }
  0x38   : > { %v379_v24 = vld [vmem:[#allocation2 + $0x20] sm:$0xff]  ;;  %v378_v27 = vld [vmem:[#allocation2 + $0x18] sm:$0xff]  ;;  %v376_v33 = vld [vmem:[#allocation2 + $0x8] sm:$0xff] }
  0x39   : > { %866 = vmatpush3.bf16.msra.mxu0 %v962_v10  ;;  %896 = vmatpush3.bf16.msra.mxu1 %v962_v10  ;;  %v382_v28 = vld [vmem:[#allocation2 + $0x38] sm:$0xff]  ;;  %v380_v34 = vld [vmem:[#allocation2 + $0x28] sm:$0xff]  ;;  %v808_v47 = vld [vmem:[%s1179_s2] ss:$0 sm:$0xff] (!%p807_p13) }
  0x3a   : > { %867 = vmatprep.subr.bf16.mxu0 %v963_v11  ;;  %889 = vmatprep.subr.bf16.mxu1 %v963_v11  ;;  %v809_v50 = vld [vmem:[%s1180_s3] ss:$0 sm:$0xff] (!%p807_p13) }
  0x3d   : > { %868 = vmatpush3.bf16.msra.mxu0 %v963_v11  ;;  %897 = vmatpush3.bf16.msra.mxu1 %v963_v11 }
  0x3e   : > { %869 = vmatprep.subr.bf16.mxu0 %v964_v12  ;;  %890 = vmatprep.subr.bf16.mxu1 %v964_v12 }
  0x41   : > { %870 = vmatpush3.bf16.msra.mxu0 %v964_v12  ;;  %898 = vmatpush3.bf16.msra.mxu1 %v964_v12 }
  0x42   : > { %871 = vmatprep.subr.bf16.mxu0 %v965_v15  ;;  %891 = vmatprep.subr.bf16.mxu1 %v965_v15 }
  0x45   : > { %872 = vmatpush3.bf16.msra.mxu0 %v965_v15  ;;  %899 = vmatpush3.bf16.msra.mxu1 %v965_v15 }
  0x46   : > { %873 = vmatprep.subr.bf16.mxu0 %v966_v16  ;;  %892 = vmatprep.subr.bf16.mxu1 %v966_v16 }
  0x49   : > { %874 = vmatpush3.bf16.msra.mxu0 %v966_v16  ;;  %900 = vmatpush3.bf16.msra.mxu1 %v966_v16 }
  0x4a   : > { %875 = vmatprep.subr.bf16.mxu0 %v967_v17  ;;  %893 = vmatprep.subr.bf16.mxu1 %v967_v17 }
  0x4d   : > { %876 = vmatpush3.bf16.msra.mxu0 %v967_v17  ;;  %901 = vmatpush3.bf16.msra.mxu1 %v967_v17 }
  0x4e   : > { %877 = vmatprep.subr.bf16.mxu0 %v968_v18  ;;  %894 = vmatprep.subr.bf16.mxu1 %v968_v18 }
  0x51   : > { %878 = vmatpush3.bf16.msra.mxu0 %v968_v18  ;;  %902 = vmatpush3.bf16.msra.mxu1 %v968_v18 }
  0x54   : > { %880 = vmatmul.mubr.bf16.vlgmr.msra.gmra.mrb[0].mxu0 %v971_v19  ;;  %884 = vmatmul.mubr.bf16.vlgmr.msra.gmra.mrb[0].mxu1 %v972_v20 }
 0x127   : > { %v881_v25 = vpop.f32.mrb[0].mxu0  ;;  %v885_v26 = vpop.f32.mrb[0].mxu1  ;;  %563 = sbr.rel (%p807_p13) target bundleno = 319 (0x13f), region = 85 }
 0x128   : > { %v546_v29 = vadd.f32 %v881_v25, %v377_v21  ;;  %v550_v30 = vadd.f32 %v885_v26, %v381_v22  ;;  %v513_v31 = vpop.f32.mrb[1].mxu0  ;;  %v529_v32 = vpop.f32.mrb[1].mxu1 }
 0x129   : > { %v544_v35 = vadd.f32 %v513_v31, %v375_v23  ;;  %v548_v36 = vadd.f32 %v529_v32, %v379_v24  ;;  %v882_v37 = vpop.f32.mrb[2].mxu0  ;;  %v886_v38 = vpop.f32.mrb[2].mxu1 }
 0x12a   : > { %554 = vst [vmem:[#allocation2 + $0x10] sm:$0xff] %v546_v29  ;;  %558 = vst [vmem:[#allocation2 + $0x30] sm:$0xff] %v550_v30  ;;  %v547_v39 = vadd.f32 %v882_v37, %v378_v27  ;;  %v551_v40 = vadd.f32 %v886_v38, %v382_v28  ;;  %v516_v41 = vpop.f32.mrb[3].mxu0  ;;  %v532_v42 = vpop.f32.mrb[3].mxu1 }
 0x12b   : > { %552 = vst [vmem:[#allocation2] sm:$0xff] %v544_v35  ;;  %556 = vst [vmem:[#allocation2 + $0x20] sm:$0xff] %v548_v36  ;;  %v545_v43 = vadd.f32 %v516_v41, %v376_v33  ;;  %v549_v44 = vadd.f32 %v532_v42, %v380_v34 }
 0x12c   : > { %555 = vst [vmem:[#allocation2 + $0x18] sm:$0xff] %v547_v39  ;;  %559 = vst [vmem:[#allocation2 + $0x38] sm:$0xff] %v551_v40 }
 0x12d   : > { %553 = vst [vmem:[#allocation2 + $0x8] sm:$0xff] %v545_v43  ;;  %557 = vst [vmem:[#allocation2 + $0x28] sm:$0xff] %v549_v44 }
 0x131   : > { %v566_v51 = vld [vmem:[#allocation2 + $0x10] sm:$0xff] }
 0x132   : > { %v564_v45 = vld [vmem:[#allocation2] sm:$0xff]  ;;  %v581_v53 = vmul.f32 %v808_v47, %v566_v51  ;;  %v570_v57 = vld [vmem:[#allocation2 + $0x30] sm:$0xff] }
 0x133   : > { %v579_v48 = vmul.f32 %v808_v47, %v564_v45  ;;  %v567_v52 = vld [vmem:[#allocation2 + $0x18] sm:$0xff]  ;;  %v568_v55 = vld [vmem:[#allocation2 + $0x20] sm:$0xff]  ;;  %v585_v1 = vmul.f32 %v808_v47, %v570_v57 }
 0x134   : > { %v565_v46 = vld [vmem:[#allocation2 + $0x8] sm:$0xff]  ;;  %v582_v54 = vmul.f32 %v808_v47, %v567_v52  ;;  %v583_v60 = vmul.f32 %v808_v47, %v568_v55  ;;  %v571_v62 = vld [vmem:[#allocation2 + $0x38] sm:$0xff]  ;;  %v596_v63 = vadd.f32 %v809_v50, %v581_v53 }
 0x135   : > { %v580_v49 = vmul.f32 %v808_v47, %v565_v46  ;;  %v569_v56 = vld [vmem:[#allocation2 + $0x28] sm:$0xff]  ;;  %v594_v58 = vadd.f32 %v809_v50, %v579_v48  ;;  %v586_v2 = vmul.f32 %v808_v47, %v571_v62  ;;  %v600_v9 = vadd.f32 %v809_v50, %v585_v1 }
 0x136   : > { %v584_v61 = vmul.f32 %v808_v47, %v569_v56  ;;  %v597_v0 = vadd.f32 %v809_v50, %v582_v54  ;;  %v598_v5 = vadd.f32 %v809_v50, %v583_v60  ;;  %v604_v7 = vmax.f32 %v596_v63, 0.0 }
 0x137   : > { %v595_v59 = vadd.f32 %v809_v50, %v580_v49  ;;  %v602_v3 = vmax.f32 %v594_v58, 0.0  ;;  %v601_v10 = vadd.f32 %v809_v50, %v586_v2  ;;  %v608_v15 = vmax.f32 %v600_v9, 0.0 }
 0x138   : > { %v599_v6 = vadd.f32 %v809_v50, %v584_v61  ;;  %v605_v8 = vmax.f32 %v597_v0, 0.0  ;;  %v606_v12 = vmax.f32 %v598_v5, 0.0 }
 0x139   : > { %v603_v4 = vmax.f32 %v595_v59, 0.0  ;;  %v609_v16 = vmax.f32 %v601_v10, 0.0 }
 0x13a   : > { %v607_v13 = vmax.f32 %v599_v6, 0.0  ;;  %v836_v14 = vpack.c.bf16 %v605_v8, %v604_v7 }
 0x13b   : > { %v831_v11 = vpack.c.bf16 %v603_v4, %v602_v3  ;;  %v846_v18 = vpack.c.bf16 %v609_v16, %v608_v15 }
 0x13c   : > { %v841_v17 = vpack.c.bf16 %v607_v13, %v606_v12  ;;  %848 = vst [vmem:[%s1128_s7 + $0x8] sm:$0xff] %v836_v14  }
 0x13d   : > { %832 = vst [vmem:[%s1128_s7] sm:$0xff] %v831_v11   ;;  %850 = vst [vmem:[%s1128_s7 + $0x18] sm:$0xff] %v846_v18  }
 0x13e   : > { %849 = vst [vmem:[%s1128_s7 + $0x10] sm:$0xff] %v841_v17  }
 0x13f PF: > { %s14_s21 = sadd.s32 1, %s1027_s21   ;;  %s1182_s15 = smov %s1007_s16 }
 0x140   : > { %p11_p0 = scmp.ge.s32.totalorder %s14_s21, 12   ;;  %s1183_s16 = smov %s1106_s28 }
 0x141   : > { %s1184_s17 = smov %s1019_s19  ;;  %s1185_s18 = smov %s1023_s20 }
 0x142   : > { %s1186_s19 = smov %s1189_s22  ;;  %s1187_s20 = smov %s1193_s23 }
 0x143   :  { %13 = sbr.rel (!%p11_p0) target bundleno = 4 (0x4), region = 129 }

// kernel: resnet18_forward.25
= control target key start
LH: loop header
LB: loop body
LE: loop exit
PB: predicated region body
PF: predicated region fallthrough
CT: control target
= control target key end

     0   :  { %s1180_s18 = smov 0   ;;  %s1182_s19 = smov 0   ;;  %s1311_s0 = inlined_call_operand.vmem [shape: bf16[128,640], index: 0, kind: input, shape index: {}]   ;;  %s1312_s1 = inlined_call_operand.vmem [shape: bf16[640,128], index: 1, kind: input, shape index: {}]   ;;  %s1313_s2 = inlined_call_operand.vmem [shape: f32[1,128], index: 2, kind: input, shape index: {}]   ;;  %s1314_s3 = inlined_call_operand.vmem [shape: f32[1,128], index: 3, kind: input, shape index: {}]   ;;  %s1315_s4 = inlined_call_operand.vmem [shape: bf16[128,128], index: 4, kind: input, shape index: {}]   ;;  %s1316_s5 = inlined_call_operand.vmem [shape: bf16[128,128], index: 5, kind: output, shape index: {}]  }
   0x1   :  { %s1184_s20 = smov 0   ;;  %s1186_s21 = smov 0  }
   0x2   :  { %s1188_s22 = smov 0   ;;  %s1190_s23 = smov 0  }
   0x3   :  { %s1192_s24 = smov 0  }
   0x4 LB: > { %s27_s25 = sadd.s32 1, %s1139_s22  ;;  %s34_s26 = sadd.s32 1, %s1143_s23  ;;  %s1147_s24 = sphi %s1192_s24, %s15_s24   ;;  %s1143_s23 = sphi %s1190_s23, %s1322_s23   ;;  %s1139_s22 = sphi %s1188_s22, %s1321_s22   ;;  %s1135_s21 = sphi %s1186_s21, %s1320_s21   ;;  %s1131_s20 = sphi %s1184_s20, %s1319_s20   ;;  %s1127_s19 = sphi %s1182_s19, %s1318_s19   ;;  %s1123_s18 = sphi %s1180_s18, %s1317_s18  }
   0x5   : > { %p28_p0 = scmp.ge.s32.totalorder %s27_s25, 5  ;;  %p50_p1 = scmp.ne.s32.totalorder %s1127_s19, %s1123_s18 }
   0x6   : > { %p51_p2 = scmp.eq.s32.totalorder %s1147_s24, 0  ;;  %s43_s30 = sadd.s32 1, %s1127_s19 }
   0x7   : > { %s1324_s25 = smov (%p28_p0, %s27_s25), 0  ;;  %s1326_s26 = smov (!%p28_p0, %s34_s26), %s1143_s23 }
   0x8   : > { %p52_p3 = por %p51_p2, %p50_p1  ;;  %p36_p4 = scmp.ge.s32.totalorder %s1326_s26, 2 }
   0x9   : > { %s39_s27 = ssub.s32 %s1139_s22, %s1324_s25  ;;  %p882_p6 = scmp.ge.s32.totalorder %s1147_s24, 10 }
   0xa   : > { %s1328_s26 = smov (%p36_p4, %s1326_s26), 0 }
   0xb   : > { %s38_s28 = ssub.s32 %s1143_s23, %s1328_s26  ;;  %224 = sbr.rel (%p882_p6) target bundleno = 30 (0x1e), region = 24 }
   0xc   : > { %s40_s29 = sor.u32 %s39_s27, %s38_s28 }
   0xd   : > { %p41_p5 = scmp.eq.s32.totalorder %s40_s29, 0 }
   0xf   : > { %s1231_s6 = scalar_select %p41_p5, %s1127_s19, %s43_s30  }
  0x12   : > { %227 = sbr.rel (!%p52_p3) target bundleno = 30 (0x1e), region = 28  ;;  %s229_s7 = sand.u32 (%p52_p3), 1, %s1127_s19  }
  0x13   : > { %s1023_s8 = smul.u32 (%p52_p3), 40, %s1143_s23  ;;  %s883_s9 = sshll.u32 (%p52_p3), %s229_s7, 5 }
  0x14   : > { %s231_s15 = scalar_lea.vmem (%p52_p3), [#allocation3], %s883_s9 }
  0x15   : > { %s234_s10 = sadd.s32 (%p52_p3), %s1139_s22, %s1023_s8 }
  0x16   : > { %s886_s11 = sshll.u32 (%p52_p3), %s234_s10, 2 }
  0x17   : > { %s236_s14 = scalar_lea.vmem (%p52_p3), %s1311_s0, %s886_s11 }
  0x18   : > { %v252_v0 = vld [vmem:[%s236_s14] sm:$0xf] (%p52_p3)  ;;  %v254_v1 = vld [vmem:[%s236_s14 + $0x14] sm:$0xf] (%p52_p3)  ;;  %v256_v2 = vld [vmem:[%s236_s14 + $0x28] sm:$0xf] (%p52_p3) }
  0x19   : > { %253 = vst [vmem:[%s231_s15] sm:$0xf] %v252_v0  ;;  %255 = vst [vmem:[%s231_s15 + $0x4] sm:$0xf] %v254_v1  ;;  %v258_v3 = vld [vmem:[%s236_s14 + $0x3c] sm:$0xf] }
  0x1a   : > { %257 = vst [vmem:[%s231_s15 + $0x8] sm:$0xf] %v256_v2  ;;  %v260_v4 = vld [vmem:[%s236_s14 + $0x50] sm:$0xf]  ;;  %v262_v5 = vld [vmem:[%s236_s14 + $0x64] sm:$0xf] }
  0x1b   : > { %259 = vst [vmem:[%s231_s15 + $0xc] sm:$0xf] %v258_v3  ;;  %261 = vst [vmem:[%s231_s15 + $0x10] sm:$0xf] %v260_v4  ;;  %v264_v6 = vld [vmem:[%s236_s14 + $0x78] sm:$0xf] }
  0x1c   : > { %263 = vst [vmem:[%s231_s15 + $0x14] sm:$0xf] %v262_v5  ;;  %v266_v7 = vld [vmem:[%s236_s14 + $0x8c] sm:$0xf]  ;;  %265 = vst [vmem:[%s231_s15 + $0x18] sm:$0xf] %v264_v6 }
  0x1d   : > { %267 = vst [vmem:[%s231_s15 + $0x1c] sm:$0xf] %v266_v7 }
  0x1e PF: > { %p887_p7 = scmp.ge.s32.totalorder %s1147_s24, 1  ;;  %p329_p8 = scmp.lt.s32.totalorder %s1147_s24, 11 }
  0x20   : > { %p330_p9 = pnand %p887_p7, %p329_p8 }
  0x21   : > { %s336_s16 = sand.u32 (!%p330_p9), 1, %s1123_s18   ;;  %s889_s17 = sshll.u32 (!%p330_p9), %s1131_s20, 4 }
  0x22   : > { %333 = sbr.rel (%p330_p9) target bundleno = 321 (0x141), region = 77  ;;  %s888_s27 = sshll.u32 (!%p330_p9), %s336_s16, 5 }
  0x23   : > { %p390_p10 = scmp.lt.s32.totalorder (!%p330_p9), %s889_s17, 79  ;;  %s891_s28 = sshll.u32 (!%p330_p9), %s1135_s21, 3 }
  0x24   : > { %p405_p11 = scmp.lt.s32.totalorder (!%p330_p9), %s891_s28, 15  ;;  %s1260_s21 = scalar_lea.vmem (!%p330_p9), [#allocation3], %s888_s27 }
  0x25   : > { %p895_p12 = scmp.ne.s32.totalorder (!%p330_p9), %s1131_s20, 0 }
  0x29   : > { %s1330_s17 = smov (!%p390_p10, %s889_s17), 79  ;;  %s1332_s28 = smov (!%p405_p11, %s891_s28), 15 }
  0x2a   : > { %s890_s29 = sshll.u32 %s1330_s17, 2  ;;  %s892_s9 = sshll.u32 %s1332_s28, 2  ;;  %v1149_v8 = vmov (!%p895_p12), 0.0  }
  0x2b   : > { %s1248_s8 = scalar_lea.vmem %s1312_s1, %s890_s29  ;;  %s1253_s12 = scalar_lea.vmem %s1315_s4, %s892_s9  ;;  %427 = vst [vmem:[#allocation2] sm:$0xff] (!%p895_p12), %v1149_v8  ;;  %428 = vst [vmem:[#allocation2 + $0x8] sm:$0xff] (!%p895_p12), %v1149_v8 }
  0x2c   : > { %s1258_s14 = scalar_lea.vmem %s1316_s5, %s892_s9  ;;  %426 = sbr.rel (%p895_p12) target bundleno = 51 (0x33), region = 85  ;;  %429 = vst [vmem:[#allocation2 + $0x10] sm:$0xff] (!%p895_p12), %v1149_v8  ;;  %430 = vst [vmem:[#allocation2 + $0x18] sm:$0xff] (!%p895_p12), %v1149_v8 }
  0x2d   : > { %431 = vst [vmem:[#allocation2 + $0x20] sm:$0xff] (!%p895_p12), %v1149_v8  ;;  %432 = vst [vmem:[#allocation2 + $0x28] sm:$0xff] (!%p895_p12), %v1149_v8 }
  0x2e   : > { %433 = vst [vmem:[#allocation2 + $0x30] sm:$0xff] (!%p895_p12), %v1149_v8  ;;  %434 = vst [vmem:[#allocation2 + $0x38] sm:$0xff] (!%p895_p12), %v1149_v8 }
  0x33 PF: > { %v1081_v9 = vld [vmem:[%s1248_s8] sm:$0xff]   ;;  %v1082_v10 = vld [vmem:[%s1248_s8 + $0x8] sm:$0xff]   ;;  %v1083_v11 = vld [vmem:[%s1248_s8 + $0x10] sm:$0xff]   ;;  %p908_p13 = scmp.ne.s32.totalorder %s1131_s20, 4 }
  0x34   : > { %983 = vmatprep.subr.bf16.mxu0 %v1081_v9  ;;  %1007 = vmatprep.subr.bf16.mxu1 %v1081_v9  ;;  %v1084_v12 = vld [vmem:[%s1248_s8 + $0x18] sm:$0xff]   ;;  %v1089_v13 = vld [vmem:[%s1260_s21] sm:$0xff]   ;;  %v1090_v14 = vld [vmem:[%s1260_s21 + $0x10] sm:$0xff]  }
  0x35   : > { %984 = vmatpush3.bf16.msra.mxu0 %v1081_v9  ;;  %1015 = vmatpush3.bf16.msra.mxu1 %v1081_v9  ;;  %v1085_v15 = vld [vmem:[%s1248_s8 + $0x20] sm:$0xff]   ;;  %v1086_v16 = vld [vmem:[%s1248_s8 + $0x28] sm:$0xff]   ;;  %v1087_v17 = vld [vmem:[%s1248_s8 + $0x30] sm:$0xff]  }
  0x36   : > { %985 = vmatprep.subr.bf16.mxu0 %v1082_v10  ;;  %1008 = vmatprep.subr.bf16.mxu1 %v1082_v10  ;;  %v1088_v18 = vld [vmem:[%s1248_s8 + $0x38] sm:$0xff]   ;;  %v1091_v19 = vld [vmem:[%s1260_s21 + $0x8] sm:$0xff]   ;;  %v437_v21 = vld [vmem:[#allocation2 + $0x10] sm:$0xff] }
  0x37   : > { %999 = vmatprep.mubr.bf16.mxu0 %v1089_v13  ;;  %1003 = vmatprep.mubr.bf16.mxu1 %v1090_v14  ;;  %v1092_v20 = vld [vmem:[%s1260_s21 + $0x18] sm:$0xff]   ;;  %v441_v22 = vld [vmem:[#allocation2 + $0x30] sm:$0xff]  ;;  %v435_v23 = vld [vmem:[#allocation2] sm:$0xff] }
  0x38   : > { %v439_v24 = vld [vmem:[#allocation2 + $0x20] sm:$0xff]  ;;  %v438_v27 = vld [vmem:[#allocation2 + $0x18] sm:$0xff]  ;;  %v436_v33 = vld [vmem:[#allocation2 + $0x8] sm:$0xff] }
  0x39   : > { %986 = vmatpush3.bf16.msra.mxu0 %v1082_v10  ;;  %1016 = vmatpush3.bf16.msra.mxu1 %v1082_v10  ;;  %v442_v28 = vld [vmem:[#allocation2 + $0x38] sm:$0xff]  ;;  %v440_v34 = vld [vmem:[#allocation2 + $0x28] sm:$0xff]  ;;  %v909_v47 = vld [vmem:[%s1313_s2] ss:$0 sm:$0xff] (!%p908_p13) }
  0x3a   : > { %987 = vmatprep.subr.bf16.mxu0 %v1083_v11  ;;  %1009 = vmatprep.subr.bf16.mxu1 %v1083_v11  ;;  %v910_v50 = vld [vmem:[%s1314_s3] ss:$0 sm:$0xff] (!%p908_p13)  ;;  %v965_v57 = vld [vmem:[%s1253_s12 + $0x8] sm:$0xff] (!%p908_p13)   ;;  %v966_v0 = vld [vmem:[%s1253_s12 + $0x10] sm:$0xff] (!%p908_p13)  }
  0x3b   : > { %v930_v51 = vld [vmem:[%s1253_s12] sm:$0xff] (!%p908_p13)   ;;  %v935_v62 = vunpack.c.l.bf16 (!%p908_p13), %v965_v57  ;;  %v936_v2 = vunpack.c.h.bf16 (!%p908_p13), %v965_v57  ;;  %v939_v9 = vunpack.c.l.bf16 (!%p908_p13), %v966_v0  ;;  %v940_v14 = vunpack.c.h.bf16 (!%p908_p13), %v966_v0 }
  0x3c   : > { %v931_v53 = vunpack.c.l.bf16 (!%p908_p13), %v930_v51  ;;  %v932_v54 = vunpack.c.h.bf16 (!%p908_p13), %v930_v51 }
  0x3d   : > { %988 = vmatpush3.bf16.msra.mxu0 %v1083_v11  ;;  %1017 = vmatpush3.bf16.msra.mxu1 %v1083_v11 }
  0x3e   : > { %989 = vmatprep.subr.bf16.mxu0 %v1084_v12  ;;  %1010 = vmatprep.subr.bf16.mxu1 %v1084_v12 }
  0x41   : > { %990 = vmatpush3.bf16.msra.mxu0 %v1084_v12  ;;  %1018 = vmatpush3.bf16.msra.mxu1 %v1084_v12 }
  0x42   : > { %991 = vmatprep.subr.bf16.mxu0 %v1085_v15  ;;  %1011 = vmatprep.subr.bf16.mxu1 %v1085_v15 }
  0x45   : > { %992 = vmatpush3.bf16.msra.mxu0 %v1085_v15  ;;  %1019 = vmatpush3.bf16.msra.mxu1 %v1085_v15  ;;  %v967_v15 = vld [vmem:[%s1253_s12 + $0x18] sm:$0xff] (!%p908_p13)  }
  0x46   : > { %993 = vmatprep.subr.bf16.mxu0 %v1086_v16  ;;  %1012 = vmatprep.subr.bf16.mxu1 %v1086_v16 }
  0x49   : > { %994 = vmatpush3.bf16.msra.mxu0 %v1086_v16  ;;  %1020 = vmatpush3.bf16.msra.mxu1 %v1086_v16 }
  0x4a   : > { %995 = vmatprep.subr.bf16.mxu0 %v1087_v17  ;;  %1013 = vmatprep.subr.bf16.mxu1 %v1087_v17 }
  0x4d   : > { %996 = vmatpush3.bf16.msra.mxu0 %v1087_v17  ;;  %1021 = vmatpush3.bf16.msra.mxu1 %v1087_v17 }
  0x4e   : > { %997 = vmatprep.subr.bf16.mxu0 %v1088_v18  ;;  %1014 = vmatprep.subr.bf16.mxu1 %v1088_v18 }
  0x51   : > { %998 = vmatpush3.bf16.msra.mxu0 %v1088_v18  ;;  %1022 = vmatpush3.bf16.msra.mxu1 %v1088_v18 }
  0x54   : > { %1000 = vmatmul.mubr.bf16.vlgmr.msra.gmra.mrb[0].mxu0 %v1091_v19  ;;  %1004 = vmatmul.mubr.bf16.vlgmr.msra.gmra.mrb[0].mxu1 %v1092_v20 }
 0x127   : > { %v1001_v25 = vpop.f32.mrb[0].mxu0  ;;  %v1005_v26 = vpop.f32.mrb[0].mxu1  ;;  %623 = sbr.rel (%p908_p13) target bundleno = 321 (0x141), region = 89 }
 0x128   : > { %v606_v29 = vadd.f32 %v1001_v25, %v437_v21  ;;  %v610_v30 = vadd.f32 %v1005_v26, %v441_v22  ;;  %v573_v31 = vpop.f32.mrb[1].mxu0  ;;  %v589_v32 = vpop.f32.mrb[1].mxu1 }
 0x129   : > { %v604_v35 = vadd.f32 %v573_v31, %v435_v23  ;;  %v608_v36 = vadd.f32 %v589_v32, %v439_v24  ;;  %v1002_v37 = vpop.f32.mrb[2].mxu0  ;;  %v1006_v38 = vpop.f32.mrb[2].mxu1  ;;  %v944_v31 = vunpack.c.h.bf16 (!%p908_p13), %v967_v15 }
 0x12a   : > { %614 = vst [vmem:[#allocation2 + $0x10] sm:$0xff] %v606_v29  ;;  %618 = vst [vmem:[#allocation2 + $0x30] sm:$0xff] %v610_v30  ;;  %v607_v39 = vadd.f32 %v1002_v37, %v438_v27  ;;  %v611_v40 = vadd.f32 %v1006_v38, %v442_v28  ;;  %v576_v41 = vpop.f32.mrb[3].mxu0  ;;  %v592_v42 = vpop.f32.mrb[3].mxu1  ;;  %v943_v27 = vunpack.c.l.bf16 (!%p908_p13), %v967_v15 }
 0x12b   : > { %612 = vst [vmem:[#allocation2] sm:$0xff] %v604_v35  ;;  %616 = vst [vmem:[#allocation2 + $0x20] sm:$0xff] %v608_v36  ;;  %v605_v43 = vadd.f32 %v576_v41, %v436_v33  ;;  %v609_v44 = vadd.f32 %v592_v42, %v440_v34 }
 0x12c   : > { %615 = vst [vmem:[#allocation2 + $0x18] sm:$0xff] %v607_v39  ;;  %619 = vst [vmem:[#allocation2 + $0x38] sm:$0xff] %v611_v40 }
 0x12d   : > { %613 = vst [vmem:[#allocation2 + $0x8] sm:$0xff] %v605_v43  ;;  %617 = vst [vmem:[#allocation2 + $0x28] sm:$0xff] %v609_v44 }
 0x131   : > { %v626_v52 = vld [vmem:[#allocation2 + $0x10] sm:$0xff] }
 0x132   : > { %v624_v45 = vld [vmem:[#allocation2] sm:$0xff]  ;;  %v641_v56 = vmul.f32 %v909_v47, %v626_v52  ;;  %v630_v5 = vld [vmem:[#allocation2 + $0x30] sm:$0xff] }
 0x133   : > { %v639_v48 = vmul.f32 %v909_v47, %v624_v45  ;;  %v627_v55 = vld [vmem:[#allocation2 + $0x18] sm:$0xff]  ;;  %v628_v58 = vld [vmem:[#allocation2 + $0x20] sm:$0xff]  ;;  %v645_v19 = vmul.f32 %v909_v47, %v630_v5 }
 0x134   : > { %v625_v46 = vld [vmem:[#allocation2 + $0x8] sm:$0xff]  ;;  %v642_v61 = vmul.f32 %v909_v47, %v627_v55  ;;  %v656_v1 = vadd.f32 %v910_v50, %v641_v56  ;;  %v643_v3 = vmul.f32 %v909_v47, %v628_v58  ;;  %v631_v10 = vld [vmem:[#allocation2 + $0x38] sm:$0xff] }
 0x135   : > { %v640_v49 = vmul.f32 %v909_v47, %v625_v46  ;;  %v654_v59 = vadd.f32 %v910_v50, %v639_v48  ;;  %v629_v63 = vld [vmem:[#allocation2 + $0x28] sm:$0xff]  ;;  %v646_v23 = vmul.f32 %v909_v47, %v631_v10  ;;  %v660_v26 = vadd.f32 %v910_v50, %v645_v19 }
 0x136   : > { %v644_v4 = vmul.f32 %v909_v47, %v629_v63  ;;  %v657_v8 = vadd.f32 %v910_v50, %v642_v61  ;;  %v680_v11 = vadd.f32 %v935_v62, %v656_v1  ;;  %v658_v12 = vadd.f32 %v910_v50, %v643_v3 }
 0x137   : > { %v655_v60 = vadd.f32 %v910_v50, %v640_v49  ;;  %v678_v6 = vadd.f32 %v931_v53, %v654_v59  ;;  %v661_v30 = vadd.f32 %v910_v50, %v646_v23  ;;  %v684_v33 = vadd.f32 %v943_v27, %v660_v26 }
 0x138   : > { %v659_v13 = vadd.f32 %v910_v50, %v644_v4  ;;  %v681_v18 = vadd.f32 %v936_v2, %v657_v8  ;;  %v688_v20 = vmax.f32 %v680_v11, 0.0  ;;  %v682_v21 = vadd.f32 %v939_v9, %v658_v12 }
 0x139   : > { %v679_v7 = vadd.f32 %v932_v54, %v655_v60  ;;  %v686_v16 = vmax.f32 %v678_v6, 0.0  ;;  %v685_v35 = vadd.f32 %v944_v31, %v661_v30  ;;  %v692_v36 = vmax.f32 %v684_v33, 0.0 }
 0x13a   : > { %v683_v22 = vadd.f32 %v940_v14, %v659_v13  ;;  %v689_v25 = vmax.f32 %v681_v18, 0.0  ;;  %v690_v28 = vmax.f32 %v682_v21, 0.0 }
 0x13b   : > { %v687_v17 = vmax.f32 %v679_v7, 0.0  ;;  %v693_v37 = vmax.f32 %v685_v35, 0.0 }
 0x13c   : > { %v691_v29 = vmax.f32 %v683_v22, 0.0  ;;  %v953_v32 = vpack.c.bf16 %v689_v25, %v688_v20 }
 0x13d   : > { %v948_v24 = vpack.c.bf16 %v687_v17, %v686_v16  ;;  %v963_v38 = vpack.c.bf16 %v693_v37, %v692_v36 }
 0x13e   : > { %v958_v34 = vpack.c.bf16 %v691_v29, %v690_v28  ;;  %968 = vst [vmem:[%s1258_s14 + $0x8] sm:$0xff] %v953_v32  }
 0x13f   : > { %949 = vst [vmem:[%s1258_s14] sm:$0xff] %v948_v24   ;;  %970 = vst [vmem:[%s1258_s14 + $0x18] sm:$0xff] %v963_v38  }
 0x140   : > { %969 = vst [vmem:[%s1258_s14 + $0x10] sm:$0xff] %v958_v34  }
 0x141 PF: > { %s15_s24 = sadd.s32 1, %s1147_s24   ;;  %s1317_s18 = smov %s1127_s19 }
 0x142   : > { %p12_p0 = scmp.ge.s32.totalorder %s15_s24, 12   ;;  %s1318_s19 = smov %s1231_s6 }
 0x143   : > { %s1319_s20 = smov %s1139_s22  ;;  %s1320_s21 = smov %s1143_s23 }
 0x144   : > { %s1321_s22 = smov %s1324_s25  ;;  %s1322_s23 = smov %s1328_s26 }
 0x145   :  { %14 = sbr.rel (!%p12_p0) target bundleno = 4 (0x4), region = 136 }

// kernel: resnet18_forward.28
= control target key start
LH: loop header
LB: loop body
LE: loop exit
PB: predicated region body
PF: predicated region fallthrough
CT: control target
= control target key end

     0   :  { %s850_s15 = smov 0   ;;  %s852_s16 = smov 0   ;;  %s968_s0 = inlined_call_operand.vmem [shape: bf16[32,640], index: 0, kind: input, shape index: {}]   ;;  %s969_s1 = inlined_call_operand.vmem [shape: bf16[640,128], index: 1, kind: input, shape index: {}]   ;;  %s970_s2 = inlined_call_operand.vmem [shape: f32[1,128], index: 2, kind: input, shape index: {}]   ;;  %s971_s3 = inlined_call_operand.vmem [shape: f32[1,128], index: 3, kind: input, shape index: {}]   ;;  %s972_s4 = inlined_call_operand.vmem [shape: bf16[32,128], index: 4, kind: output, shape index: {}]  }
   0x1   :  { %s854_s17 = smov 0   ;;  %s856_s18 = smov 0  }
   0x2   :  { %s858_s19 = smov 0   ;;  %s860_s20 = smov 0  }
   0x3   :  { %s862_s21 = smov 0  }
   0x4 LB: > { %s26_s22 = sadd.s32 1, %s812_s19  ;;  %s33_s23 = sadd.s32 1, %s816_s20  ;;  %s820_s21 = sphi %s862_s21, %s14_s21   ;;  %s816_s20 = sphi %s860_s20, %s978_s20   ;;  %s812_s19 = sphi %s858_s19, %s977_s19   ;;  %s808_s18 = sphi %s856_s18, %s976_s18   ;;  %s804_s17 = sphi %s854_s17, %s975_s17   ;;  %s800_s16 = sphi %s852_s16, %s974_s16   ;;  %s796_s15 = sphi %s850_s15, %s973_s15  }
   0x5   : > { %p27_p0 = scmp.ge.s32.totalorder %s26_s22, 5  ;;  %p49_p1 = scmp.ne.s32.totalorder %s800_s16, %s796_s15 }
   0x6   : > { %p50_p2 = scmp.eq.s32.totalorder %s820_s21, 0  ;;  %s42_s27 = sadd.s32 1, %s800_s16 }
   0x7   : > { %s980_s22 = smov (%p27_p0, %s26_s22), 0  ;;  %s982_s23 = smov (!%p27_p0, %s33_s23), %s816_s20 }
   0x8   : > { %p51_p3 = por %p50_p2, %p49_p1  ;;  %p35_p4 = scmp.ge.s32.totalorder %s982_s23, 2 }
   0x9   : > { %s38_s24 = ssub.s32 %s812_s19, %s980_s22  ;;  %p633_p6 = scmp.ge.s32.totalorder %s820_s21, 10 }
   0xa   : > { %s984_s23 = smov (%p35_p4, %s982_s23), 0 }
   0xb   : > { %s37_s25 = ssub.s32 %s816_s20, %s984_s23  ;;  %195 = sbr.rel (%p633_p6) target bundleno = 26 (0x1a), region = 24 }
   0xc   : > { %s39_s26 = sor.u32 %s38_s24, %s37_s25 }
   0xd   : > { %p40_p5 = scmp.eq.s32.totalorder %s39_s26, 0 }
   0xf   : > { %s901_s28 = scalar_select %p40_p5, %s800_s16, %s42_s27  }
  0x12   : > { %198 = sbr.rel (!%p51_p3) target bundleno = 26 (0x1a), region = 28  ;;  %s200_s29 = sand.u32 (%p51_p3), 1, %s800_s16  }
  0x13   : > { %s697_s30 = smul.u32 (%p51_p3), 10, %s816_s20  ;;  %s634_s5 = sshll.u32 (%p51_p3), %s200_s29, 3 }
  0x14   : > { %s202_s11 = scalar_lea.vmem (%p51_p3), [#allocation3], %s634_s5 }
  0x15   : > { %s205_s6 = sadd.s32 (%p51_p3), %s812_s19, %s697_s30 }
  0x16   : > { %s637_s7 = sshll.u32 (%p51_p3), %s205_s6, 2 }
  0x17   : > { %s207_s10 = scalar_lea.vmem (%p51_p3), %s968_s0, %s637_s7 }
  0x18   : > { %v223_v0 = vld [vmem:[%s207_s10] sm:$0xf] (%p51_p3)  ;;  %v225_v1 = vld [vmem:[%s207_s10 + $0x14] sm:$0xf] (%p51_p3) }
  0x19   : > { %224 = vst [vmem:[%s202_s11] sm:$0xf] %v223_v0  ;;  %226 = vst [vmem:[%s202_s11 + $0x4] sm:$0xf] %v225_v1 }
  0x1a PF: > { %p638_p7 = scmp.ge.s32.totalorder %s820_s21, 1  ;;  %p264_p8 = scmp.lt.s32.totalorder %s820_s21, 11 }
  0x1c   : > { %p265_p9 = pnand %p638_p7, %p264_p8 }
  0x1d   : > { %s271_s12 = sand.u32 (!%p265_p9), 1, %s796_s15   ;;  %s640_s13 = sshll.u32 (!%p265_p9), %s804_s17, 4 }
  0x1e   : > { %268 = sbr.rel (%p265_p9) target bundleno = 313 (0x139), region = 73  ;;  %s914_s14 = sshll.u32 (!%p265_p9), %s271_s12, 3 }
  0x1f   : > { %p315_p10 = scmp.lt.s32.totalorder (!%p265_p9), %s640_s13, 79  ;;  %s642_s24 = sshll.u32 (!%p265_p9), %s808_s18, 1 }
  0x20   : > { %p330_p11 = scmp.lt.s32.totalorder (!%p265_p9), %s642_s24, 3  ;;  %s273_s7 = scalar_lea.vmem (!%p265_p9), [#allocation3], %s914_s14 }
  0x21   : > { %p644_p12 = scmp.ne.s32.totalorder (!%p265_p9), %s804_s17, 0 }
  0x25   : > { %s986_s13 = smov (!%p315_p10, %s640_s13), 79  ;;  %s988_s24 = smov (!%p330_p11, %s642_s24), 3 }
  0x26   : > { %s641_s25 = sshll.u32 %s986_s13, 2  ;;  %s643_s30 = sshll.u32 %s988_s24, 2  ;;  %v822_v2 = vmov (!%p644_p12), 0.0  }
  0x27   : > { %s920_s29 = scalar_lea.vmem %s969_s1, %s641_s25  ;;  %s925_s15 = scalar_lea.vmem %s972_s4, %s643_s30  ;;  %343 = vst [vmem:[#allocation2] sm:$0xff] (!%p644_p12), %v822_v2  ;;  %344 = vst [vmem:[#allocation2 + $0x8] sm:$0xff] (!%p644_p12), %v822_v2 }
  0x28   : > { %342 = sbr.rel (%p644_p12) target bundleno = 47 (0x2f), region = 81 }
  0x2f PF: > { %v757_v3 = vld [vmem:[%s920_s29] sm:$0xff]   ;;  %v823_v4 = vmov 0.0   ;;  %v758_v5 = vld [vmem:[%s920_s29 + $0x8] sm:$0xff]   ;;  %vm824_vm0 = vmmov 0   ;;  %v759_v6 = vld [vmem:[%s920_s29 + $0x10] sm:$0xff]   ;;  %p654_p13 = scmp.ne.s32.totalorder %s804_s17, 4 }
  0x30   : > { %677 = vmatprep.subr.bf16.mxu0 %v823_v4  ;;  %693 = vmatprep.mubr.msk.bf16.mxu0 %vm824_vm0, %v823_v4  ;;  %v760_v7 = vld [vmem:[%s920_s29 + $0x18] sm:$0xff]   ;;  %v761_v8 = vld [vmem:[%s920_s29 + $0x20] sm:$0xff]   ;;  %v762_v9 = vld [vmem:[%s920_s29 + $0x28] sm:$0xff]  }
  0x31   : > { %678 = vmatpush3.bf16.msra.mxu0 %v757_v3  ;;  %v763_v10 = vld [vmem:[%s920_s29 + $0x30] sm:$0xff]   ;;  %v764_v11 = vld [vmem:[%s920_s29 + $0x38] sm:$0xff]   ;;  %v345_v13 = vld [vmem:[#allocation2] sm:$0xff] }
  0x32   : > { %679 = vmatprep.subr.bf16.mxu0 %v823_v4  ;;  %v765_v12 = vld [vmem:[%s273_s7] sm:$0xff]   ;;  %v346_v15 = vld [vmem:[#allocation2 + $0x8] sm:$0xff]  ;;  %v655_v23 = vld [vmem:[%s970_s2] ss:$0 sm:$0xff] (!%p654_p13) }
  0x33   : > { %v656_v26 = vld [vmem:[%s971_s3] ss:$0 sm:$0xff] (!%p654_p13) }
  0x35   : > { %680 = vmatpush3.bf16.msra.mxu0 %v758_v5 }
  0x36   : > { %681 = vmatprep.subr.bf16.mxu0 %v823_v4 }
  0x39   : > { %682 = vmatpush3.bf16.msra.mxu0 %v759_v6 }
  0x3a   : > { %683 = vmatprep.subr.bf16.mxu0 %v823_v4 }
  0x3d   : > { %684 = vmatpush3.bf16.msra.mxu0 %v760_v7 }
  0x3e   : > { %685 = vmatprep.subr.bf16.mxu0 %v823_v4 }
  0x41   : > { %686 = vmatpush3.bf16.msra.mxu0 %v761_v8 }
  0x42   : > { %687 = vmatprep.subr.bf16.mxu0 %v823_v4 }
  0x45   : > { %688 = vmatpush3.bf16.msra.mxu0 %v762_v9 }
  0x46   : > { %689 = vmatprep.subr.bf16.mxu0 %v823_v4 }
  0x49   : > { %690 = vmatpush3.bf16.msra.mxu0 %v763_v10 }
  0x4a   : > { %691 = vmatprep.subr.bf16.mxu0 %v823_v4 }
  0x4d   : > { %692 = vmatpush3.bf16.msra.mxu0 %v764_v11 }
  0x50   : > { %694 = vmatmul.mubr.bf16.vlgmr.msra.gmra.mrb[0].mxu0 %v765_v12 }
 0x122   : > { %467 = sbr.rel (%p654_p13) target bundleno = 313 (0x139), region = 85 }
 0x123   : > { %v453_v14 = vpop.f32.mrb[0].mxu0 }
 0x124   : > { %v460_v16 = vadd.f32 %v453_v14, %v345_v13  ;;  %v695_v17 = vpop.f32.mrb[1].mxu0 }
 0x125   : > { %v456_v18 = vpop.f32.mrb[2].mxu0 }
 0x126   : > { %462 = vst [vmem:[#allocation2] sm:$0xff] %v460_v16  ;;  %v461_v19 = vadd.f32 %v456_v18, %v346_v15  ;;  %v696_v20 = vpop.f32.mrb[3].mxu0 }
 0x128   : > { %463 = vst [vmem:[#allocation2 + $0x8] sm:$0xff] %v461_v19 }
 0x12d   : > { %v468_v21 = vld [vmem:[#allocation2] sm:$0xff] }
 0x12e   : > { %v477_v24 = vmul.f32 %v655_v23, %v468_v21 }
 0x12f   : > { %v469_v22 = vld [vmem:[#allocation2 + $0x8] sm:$0xff] }
 0x130   : > { %v478_v25 = vmul.f32 %v655_v23, %v469_v22  ;;  %v486_v27 = vadd.f32 %v656_v26, %v477_v24 }
 0x132   : > { %v487_v28 = vadd.f32 %v656_v26, %v478_v25  ;;  %v488_v29 = vmax.f32 %v486_v27, 0.0 }
 0x134   : > { %v489_v30 = vmax.f32 %v487_v28, 0.0 }
 0x136   : > { %v666_v31 = vpack.c.bf16 %v489_v30, %v488_v29 }
 0x138   : > { %667 = vst [vmem:[%s925_s15] sm:$0xff] %v666_v31  }
 0x139 PF: > { %s14_s21 = sadd.s32 1, %s820_s21   ;;  %s973_s15 = smov %s800_s16 }
 0x13a   : > { %p11_p0 = scmp.ge.s32.totalorder %s14_s21, 12   ;;  %s974_s16 = smov %s901_s28 }
 0x13b   : > { %s975_s17 = smov %s812_s19  ;;  %s976_s18 = smov %s816_s20 }
 0x13c   : > { %s977_s19 = smov %s980_s22  ;;  %s978_s20 = smov %s984_s23 }
 0x13d   :  { %13 = sbr.rel (!%p11_p0) target bundleno = 4 (0x4), region = 129 }

// kernel: resnet18_forward.29
= control target key start
LH: loop header
LB: loop body
LE: loop exit
PB: predicated region body
PF: predicated region fallthrough
CT: control target
= control target key end

     0   :  { %s731_s15 = smov 0   ;;  %s733_s16 = smov 0   ;;  %s801_s0 = inlined_call_operand.vmem [shape: bf16[32,128], index: 0, kind: input, shape index: {}]   ;;  %s802_s1 = inlined_call_operand.vmem [shape: bf16[128,128], index: 1, kind: input, shape index: {}]   ;;  %s803_s2 = inlined_call_operand.vmem [shape: f32[1,128], index: 2, kind: input, shape index: {}]   ;;  %s804_s3 = inlined_call_operand.vmem [shape: f32[1,128], index: 3, kind: input, shape index: {}]   ;;  %s805_s4 = inlined_call_operand.vmem [shape: bf16[32,128], index: 4, kind: output, shape index: {}]  }
   0x1   :  { %s735_s17 = smov 0  }
   0x2 LB: > { %s33_s18 = sadd.s32 1, %s698_s16  ;;  %p589_p0 = scmp.ge.s32.totalorder %s702_s17, 1  ;;  %s702_s17 = sphi %s735_s17, %s14_s17   ;;  %s698_s16 = sphi %s733_s16, %s807_s16   ;;  %s694_s15 = sphi %s731_s15, %s806_s15  }
   0x3   : > { %p35_p1 = scmp.ge.s32.totalorder %s33_s18, 2  ;;  %p221_p2 = scmp.lt.s32.totalorder %s702_s17, 3 }
   0x5   : > { %s809_s18 = smov (%p35_p1, %s33_s18), 0  ;;  %p222_p3 = pnand %p589_p0, %p221_p2 }
   0x6   : > { %v671_v0 = vld [vmem:[%s802_s1] sm:$0xff] (!%p222_p3)   ;;  %v704_v1 = vmov (!%p222_p3), 0.0   ;;  %v672_v2 = vld [vmem:[%s802_s1 + $0x8] sm:$0xff] (!%p222_p3)   ;;  %vm705_vm0 = vmmov (!%p222_p3), 0   ;;  %s590_s23 = sshll.u32 (!%p222_p3), %s694_s15, 1  ;;  %v673_v3 = vld [vmem:[%s802_s1 + $0x10] sm:$0xff] (!%p222_p3)  }
   0x7   : > { %225 = sbr.rel (%p222_p3) target bundleno = 260 (0x104), region = 36  ;;  %625 = vmatprep.subr.bf16.mxu0 (!%p222_p3), %v704_v1  ;;  %641 = vmatprep.mubr.msk.bf16.mxu0 (!%p222_p3), %vm705_vm0, %v704_v1  ;;  %p268_p4 = scmp.lt.s32.totalorder (!%p222_p3), %s590_s23, 3  ;;  %v674_v4 = vld [vmem:[%s802_s1 + $0x18] sm:$0xff] (!%p222_p3)   ;;  %v675_v5 = vld [vmem:[%s802_s1 + $0x20] sm:$0xff] (!%p222_p3)   ;;  %v676_v6 = vld [vmem:[%s802_s1 + $0x28] sm:$0xff] (!%p222_p3)  }
   0x8   : > { %626 = vmatpush3.bf16.msra.mxu0 (!%p222_p3), %v671_v0  ;;  %v677_v7 = vld [vmem:[%s802_s1 + $0x30] sm:$0xff] (!%p222_p3)   ;;  %v678_v8 = vld [vmem:[%s802_s1 + $0x38] sm:$0xff] (!%p222_p3)   ;;  %v603_v10 = vld [vmem:[%s803_s2] ss:$0 sm:$0xff] (!%p222_p3) }
   0x9   : > { %627 = vmatprep.subr.bf16.mxu0 (!%p222_p3), %v704_v1  ;;  %v604_v14 = vld [vmem:[%s804_s3] ss:$0 sm:$0xff] (!%p222_p3) }
   0xc   : > { %628 = vmatpush3.bf16.msra.mxu0 (!%p222_p3), %v672_v2 }
   0xd   : > { %629 = vmatprep.subr.bf16.mxu0 (!%p222_p3), %v704_v1 }
   0xe   : > { %s811_s23 = smov (!%p268_p4, %s590_s23), 3 }
   0xf   : > { %s591_s26 = sshll.u32 %s811_s23, 2 }
  0x10   : > { %s274_s29 = scalar_lea.vmem %s801_s0, %s591_s26  ;;  %630 = vmatpush3.bf16.msra.mxu0 %v673_v3  ;;  %s298_s24 = scalar_lea.vmem %s805_s4, %s591_s26 }
  0x11   : > { %631 = vmatprep.subr.bf16.mxu0 %v704_v1  ;;  %v679_v9 = vld [vmem:[%s274_s29] sm:$0xff]  }
  0x14   : > { %632 = vmatpush3.bf16.msra.mxu0 %v674_v4 }
  0x15   : > { %633 = vmatprep.subr.bf16.mxu0 %v704_v1 }
  0x18   : > { %634 = vmatpush3.bf16.msra.mxu0 %v675_v5 }
  0x19   : > { %635 = vmatprep.subr.bf16.mxu0 %v704_v1 }
  0x1c   : > { %636 = vmatpush3.bf16.msra.mxu0 %v676_v6 }
  0x1d   : > { %637 = vmatprep.subr.bf16.mxu0 %v704_v1 }
  0x20   : > { %638 = vmatpush3.bf16.msra.mxu0 %v677_v7 }
  0x21   : > { %639 = vmatprep.subr.bf16.mxu0 %v704_v1 }
  0x24   : > { %640 = vmatpush3.bf16.msra.mxu0 %v678_v8 }
  0x27   : > { %642 = vmatmul.mubr.bf16.vlgmr.msra.gmra.mrb[0].mxu0 %v679_v9 }
  0xfa   : > { %v415_v11 = vpop.f32.mrb[0].mxu0 }
  0xfb   : > { %v438_v12 = vmul.f32 %v603_v10, %v415_v11  ;;  %v643_v13 = vpop.f32.mrb[1].mxu0 }
  0xfc   : > { %v418_v15 = vpop.f32.mrb[2].mxu0 }
  0xfd   : > { %v439_v16 = vmul.f32 %v603_v10, %v418_v15  ;;  %v644_v17 = vpop.f32.mrb[3].mxu0  ;;  %v447_v18 = vadd.f32 %v604_v14, %v438_v12 }
  0xff   : > { %v448_v19 = vadd.f32 %v604_v14, %v439_v16 }
 0x101   : > { %v614_v20 = vpack.c.bf16 %v448_v19, %v447_v18 }
 0x103   : > { %615 = vst [vmem:[%s298_s24] sm:$0xff] %v614_v20  }
 0x104 PF: > { %s14_s17 = sadd.s32 1, %s702_s17   ;;  %s806_s15 = smov %s698_s16 }
 0x105   : > { %p11_p5 = scmp.ge.s32.totalorder %s14_s17, 4   ;;  %s807_s16 = smov %s809_s18 }
 0x107   :  { %13 = sbr.rel (!%p11_p5) target bundleno = 2 (0x2), region = 83 }

// kernel: resnet18_forward.30
= control target key start
LH: loop header
LB: loop body
LE: loop exit
PB: predicated region body
PF: predicated region fallthrough
CT: control target
= control target key end

     0   :  { %s1181_s18 = smov 0   ;;  %s1183_s19 = smov 0   ;;  %s1321_s0 = inlined_call_operand.vmem [shape: bf16[32,1152], index: 0, kind: input, shape index: {}]   ;;  %s1322_s1 = inlined_call_operand.vmem [shape: bf16[1152,128], index: 1, kind: input, shape index: {}]   ;;  %s1323_s2 = inlined_call_operand.vmem [shape: f32[1,128], index: 2, kind: input, shape index: {}]   ;;  %s1324_s3 = inlined_call_operand.vmem [shape: f32[1,128], index: 3, kind: input, shape index: {}]   ;;  %s1325_s4 = inlined_call_operand.vmem [shape: bf16[32,128], index: 4, kind: input, shape index: {}]   ;;  %s1326_s5 = inlined_call_operand.vmem [shape: bf16[32,128], index: 5, kind: output, shape index: {}]  }
   0x1   :  { %s1185_s20 = smov 0   ;;  %s1187_s21 = smov 0  }
   0x2   :  { %s1189_s22 = smov 0   ;;  %s1191_s23 = smov 0  }
   0x3   :  { %s1193_s24 = smov 0  }
   0x4 LB: > { %s27_s25 = sadd.s32 1, %s1138_s22  ;;  %s34_s26 = sadd.s32 1, %s1142_s23  ;;  %s1146_s24 = sphi %s1193_s24, %s15_s24   ;;  %s1142_s23 = sphi %s1191_s23, %s1332_s23   ;;  %s1138_s22 = sphi %s1189_s22, %s1331_s22   ;;  %s1134_s21 = sphi %s1187_s21, %s1330_s21   ;;  %s1130_s20 = sphi %s1185_s20, %s1329_s20   ;;  %s1126_s19 = sphi %s1183_s19, %s1328_s19   ;;  %s1122_s18 = sphi %s1181_s18, %s1327_s18  }
   0x5   : > { %p28_p0 = scmp.ge.s32.totalorder %s27_s25, 3  ;;  %p50_p1 = scmp.ne.s32.totalorder %s1126_s19, %s1122_s18 }
   0x6   : > { %p51_p2 = scmp.eq.s32.totalorder %s1146_s24, 0  ;;  %s43_s30 = sadd.s32 1, %s1126_s19 }
   0x7   : > { %s1334_s25 = smov (%p28_p0, %s27_s25), 0  ;;  %s1336_s26 = smov (!%p28_p0, %s34_s26), %s1142_s23 }
   0x8   : > { %p52_p3 = por %p51_p2, %p50_p1  ;;  %p36_p4 = scmp.ge.s32.totalorder %s1336_s26, 2 }
   0x9   : > { %s39_s27 = ssub.s32 %s1138_s22, %s1334_s25  ;;  %p891_p6 = scmp.ge.s32.totalorder %s1146_s24, 6 }
   0xa   : > { %s1338_s26 = smov (%p36_p4, %s1336_s26), 0 }
   0xb   : > { %s38_s28 = ssub.s32 %s1142_s23, %s1338_s26  ;;  %224 = sbr.rel (%p891_p6) target bundleno = 29 (0x1d), region = 24 }
   0xc   : > { %s40_s29 = sor.u32 %s39_s27, %s38_s28 }
   0xd   : > { %p41_p5 = scmp.eq.s32.totalorder %s40_s29, 0 }
   0xf   : > { %s1232_s6 = scalar_select %p41_p5, %s1126_s19, %s43_s30  }
  0x12   : > { %227 = sbr.rel (!%p52_p3) target bundleno = 29 (0x1d), region = 28  ;;  %s229_s7 = sand.u32 (%p52_p3), 1, %s1126_s19  }
  0x13   : > { %s233_s8 = smul.u32 (%p52_p3), 3, %s1138_s22 }
  0x14   : > { %s1002_s9 = smul.u32 (%p52_p3), 24, %s229_s7 }
  0x15   : > { %s1003_s10 = smul.u32 (%p52_p3), 18, %s1142_s23 }
  0x16   : > { %s231_s16 = scalar_lea.vmem (%p52_p3), [#allocation3], %s1002_s9 }
  0x17   : > { %s235_s11 = sadd.s32 (%p52_p3), %s1003_s10, %s233_s8 }
  0x18   : > { %s894_s12 = sshll.u32 (%p52_p3), %s235_s11, 2 }
  0x19   : > { %s237_s15 = scalar_lea.vmem %s1321_s0, %s894_s12 }
  0x1a   : > { %v252_v0 = vld [vmem:[%s237_s15] sm:$0xff]  ;;  %v895_v2 = vld [vmem:[%s237_s15 + $0x8] sm:$0xf]  ;;  %v897_v3 = vld [vmem:[%s237_s15 + $0x2c] sm:$0xf] }
  0x1b   : > { %v254_v1 = vld [vmem:[%s237_s15 + $0x24] sm:$0xff]  ;;  %253 = vst [vmem:[%s231_s16] sm:$0xff] %v252_v0  ;;  %896 = vst [vmem:[%s231_s16 + $0x8] sm:$0xf] %v895_v2 }
  0x1c   : > { %255 = vst [vmem:[%s231_s16 + $0xc] sm:$0xff] %v254_v1  ;;  %898 = vst [vmem:[%s231_s16 + $0x14] sm:$0xf] %v897_v3 }
  0x1d PF: > { %p899_p7 = scmp.ge.s32.totalorder %s1146_s24, 1  ;;  %p295_p8 = scmp.lt.s32.totalorder %s1146_s24, 7 }
  0x1f   : > { %p296_p9 = pnand %p899_p7, %p295_p8 }
  0x20   : > { %s302_s17 = sand.u32 (!%p296_p9), 1, %s1122_s18   ;;  %s356_s27 = smul.u32 (!%p296_p9), 48, %s1130_s20 }
  0x21   : > { %299 = sbr.rel (%p296_p9) target bundleno = 323 (0x143), region = 62  ;;  %s901_s29 = sshll.u32 (!%p296_p9), %s1134_s21, 1 }
  0x22   : > { %s1004_s28 = smul.u32 (!%p296_p9), 24, %s302_s17  ;;  %p357_p10 = scmp.lt.s32.totalorder (!%p296_p9), %s356_s27, 143 }
  0x23   : > { %p372_p11 = scmp.lt.s32.totalorder (!%p296_p9), %s901_s29, 3  ;;  %p905_p12 = scmp.ne.s32.totalorder (!%p296_p9), %s1130_s20, 0 }
  0x24   : > { %s1261_s15 = scalar_lea.vmem (!%p296_p9), [#allocation3], %s1004_s28 }
  0x28   : > { %s1340_s27 = smov (!%p357_p10, %s356_s27), 143  ;;  %s1342_s29 = smov (!%p372_p11, %s901_s29), 3 }
  0x29   : > { %s900_s30 = sshll.u32 %s1340_s27, 2  ;;  %s902_s10 = sshll.u32 %s1342_s29, 2  ;;  %v1148_v4 = vmov (!%p905_p12), 0.0  }
  0x2a   : > { %s1249_s9 = scalar_lea.vmem %s1322_s1, %s900_s30  ;;  %s1254_s13 = scalar_lea.vmem %s1325_s4, %s902_s10  ;;  %394 = vst [vmem:[#allocation2] sm:$0xff] (!%p905_p12), %v1148_v4  ;;  %395 = vst [vmem:[#allocation2 + $0x8] sm:$0xff] (!%p905_p12), %v1148_v4 }
  0x2b   : > { %s1259_s21 = scalar_lea.vmem %s1326_s5, %s902_s10  ;;  %393 = sbr.rel (%p905_p12) target bundleno = 50 (0x32), region = 70 }
  0x32 PF: > { %v1064_v5 = vld [vmem:[%s1249_s9 + $0x40] sm:$0xff]   ;;  %v1149_v6 = vmov 0.0   ;;  %vm1150_vm0 = vmmov 0   ;;  %v1067_v9 = vld [vmem:[%s1249_s9 + $0x48] sm:$0xff]   ;;  %v1070_v12 = vld [vmem:[%s1249_s9 + $0x50] sm:$0xff]   ;;  %p933_p13 = scmp.ne.s32.totalorder %s1130_s20, 2 }
  0x33   : > { %982 = vmatprep.subr.bf16.mxu1 %v1149_v6  ;;  %v1065_v7 = vld [vmem:[%s1249_s9] sm:$0xff]   ;;  %951 = vmatprep.subr.bf16.mxu0 %v1064_v5  ;;  %v1068_v10 = vld [vmem:[%s1249_s9 + $0x8] sm:$0xff]   ;;  %v1071_v13 = vld [vmem:[%s1249_s9 + $0x10] sm:$0xff]  }
  0x34   : > { %v1066_v8 = vld [vmem:[%s1249_s9 + $0x80] sm:$0xff]   ;;  %998 = vmatprep.mubr.msk.bf16.mxu1 %vm1150_vm0, %v1149_v6  ;;  %952 = vmatpush3.bf16.msra.mxu0 %v1065_v7  ;;  %v1069_v11 = vld [vmem:[%s1249_s9 + $0x88] sm:$0xff]   ;;  %v1072_v14 = vld [vmem:[%s1249_s9 + $0x90] sm:$0xff]  }
  0x35   : > { %983 = vmatpush3.bf16.msra.mxu1 %v1066_v8  ;;  %953 = vmatprep.subr.bf16.mxu0 %v1067_v9  ;;  %v1073_v15 = vld [vmem:[%s1249_s9 + $0x58] sm:$0xff]   ;;  %v1076_v18 = vld [vmem:[%s1249_s9 + $0x60] sm:$0xff]   ;;  %v1079_v21 = vld [vmem:[%s1249_s9 + $0x68] sm:$0xff]  }
  0x36   : > { %984 = vmatprep.subr.bf16.mxu1 %v1149_v6  ;;  %v1074_v16 = vld [vmem:[%s1249_s9 + $0x18] sm:$0xff]   ;;  %v1077_v19 = vld [vmem:[%s1249_s9 + $0x20] sm:$0xff]   ;;  %v1080_v22 = vld [vmem:[%s1249_s9 + $0x28] sm:$0xff]  }
  0x37   : > { %v1075_v17 = vld [vmem:[%s1249_s9 + $0x98] sm:$0xff]   ;;  %v1078_v20 = vld [vmem:[%s1249_s9 + $0xa0] sm:$0xff]   ;;  %v1081_v23 = vld [vmem:[%s1249_s9 + $0xa8] sm:$0xff]  }
  0x38   : > { %954 = vmatpush3.bf16.msra.mxu0 %v1068_v10  ;;  %v1082_v24 = vld [vmem:[%s1249_s9 + $0x70] sm:$0xff]   ;;  %v1085_v27 = vld [vmem:[%s1249_s9 + $0x78] sm:$0xff]   ;;  %v396_v39 = vld [vmem:[#allocation2] sm:$0xff] }
  0x39   : > { %985 = vmatpush3.bf16.msra.mxu1 %v1069_v11  ;;  %955 = vmatprep.subr.bf16.mxu0 %v1070_v12  ;;  %v1083_v25 = vld [vmem:[%s1249_s9 + $0x30] sm:$0xff]   ;;  %v1086_v29 = vld [vmem:[%s1249_s9 + $0x38] sm:$0xff]   ;;  %v397_v45 = vld [vmem:[#allocation2 + $0x8] sm:$0xff] }
  0x3a   : > { %986 = vmatprep.subr.bf16.mxu1 %v1149_v6  ;;  %v1084_v26 = vld [vmem:[%s1249_s9 + $0xb0] sm:$0xff]   ;;  %v1087_v30 = vld [vmem:[%s1249_s9 + $0xb8] sm:$0xff]   ;;  %v934_v51 = vld [vmem:[%s1323_s2] ss:$0 sm:$0xff] (!%p933_p13) }
  0x3b   : > { %v1090_v28 = vld [vmem:[%s1261_s15 + $0x4] ss:$12 sps:$4 sm:$0xff]   ;;  %v1088_v31 = vld [vmem:[%s1261_s15] ss:$12 sps:$4 sm:$0xff]   ;;  %v1091_v32 = vld [vmem:[%s1261_s15 + $0x8] ss:$12 sps:$4 sm:$0xff]  }
  0x3c   : > { %956 = vmatpush3.bf16.msra.mxu0 %v1071_v13  ;;  %642 = vmatprep.mubr.bf16.mxu0 %v1090_v28  ;;  %v935_v54 = vld [vmem:[%s1324_s3] ss:$0 sm:$0xff] (!%p933_p13) }
  0x3d   : > { %987 = vmatpush3.bf16.msra.mxu1 %v1072_v14  ;;  %957 = vmatprep.subr.bf16.mxu0 %v1073_v15  ;;  %v943_v55 = vld [vmem:[%s1254_s13] sm:$0xff] (!%p933_p13)  }
  0x3e   : > { %988 = vmatprep.subr.bf16.mxu1 %v1149_v6  ;;  %v944_v56 = vunpack.c.l.bf16 (!%p933_p13), %v943_v55  ;;  %v945_v57 = vunpack.c.h.bf16 (!%p933_p13), %v943_v55 }
  0x40   : > { %958 = vmatpush3.bf16.msra.mxu0 %v1074_v16 }
  0x41   : > { %989 = vmatpush3.bf16.msra.mxu1 %v1075_v17  ;;  %959 = vmatprep.subr.bf16.mxu0 %v1076_v18 }
  0x42   : > { %990 = vmatprep.subr.bf16.mxu1 %v1149_v6 }
  0x44   : > { %960 = vmatpush3.bf16.msra.mxu0 %v1077_v19 }
  0x45   : > { %991 = vmatpush3.bf16.msra.mxu1 %v1078_v20  ;;  %961 = vmatprep.subr.bf16.mxu0 %v1079_v21 }
  0x46   : > { %992 = vmatprep.subr.bf16.mxu1 %v1149_v6 }
  0x48   : > { %962 = vmatpush3.bf16.msra.mxu0 %v1080_v22 }
  0x49   : > { %993 = vmatpush3.bf16.msra.mxu1 %v1081_v23  ;;  %963 = vmatprep.subr.bf16.mxu0 %v1082_v24 }
  0x4a   : > { %994 = vmatprep.subr.bf16.mxu1 %v1149_v6 }
  0x4c   : > { %964 = vmatpush3.bf16.msra.mxu0 %v1083_v25 }
  0x4d   : > { %995 = vmatpush3.bf16.msra.mxu1 %v1084_v26  ;;  %965 = vmatprep.subr.bf16.mxu0 %v1085_v27 }
  0x4e   : > { %996 = vmatprep.subr.bf16.mxu1 %v1149_v6 }
  0x50   : > { %966 = vmatpush3.bf16.msra.mxu0 %v1086_v29 }
  0x51   : > { %997 = vmatpush3.bf16.msra.mxu1 %v1087_v30 }
  0x53   : > { %643 = vmatmul.mubr.bf16.vlgmr.msra.gmra.mrb[0].mxu0 %v1088_v31 }
  0x54   : > { %999 = vmatmul.mubr.bf16.vlgmr.msra.gmra.mrb[0].mxu1 %v1091_v32 }
 0x126   : > { %v967_v33 = vpop.f32.mrb[0].mxu0 }
 0x127   : > { %v685_v34 = vpop.f32.mrb[0].mxu1  ;;  %v968_v35 = vpop.f32.mrb[1].mxu0 }
 0x128   : > { %v969_v36 = vadd.f32 %v968_v35, %v967_v33  ;;  %v1000_v37 = vpop.f32.mrb[1].mxu1  ;;  %v970_v38 = vpop.f32.mrb[2].mxu0 }
 0x129   : > { %v688_v40 = vpop.f32.mrb[2].mxu1  ;;  %v971_v41 = vpop.f32.mrb[3].mxu0 }
 0x12a   : > { %v686_v42 = vadd.f32 %v969_v36, %v685_v34  ;;  %v972_v43 = vadd.f32 %v971_v41, %v970_v38  ;;  %v1001_v44 = vpop.f32.mrb[3].mxu1  ;;  %699 = sbr.rel (%p933_p13) target bundleno = 323 (0x143), region = 74 }
 0x12c   : > { %v692_v46 = vadd.f32 %v686_v42, %v396_v39  ;;  %v689_v47 = vadd.f32 %v972_v43, %v688_v40 }
 0x12e   : > { %694 = vst [vmem:[#allocation2] sm:$0xff] %v692_v46  ;;  %v693_v48 = vadd.f32 %v689_v47, %v397_v45 }
 0x130   : > { %695 = vst [vmem:[#allocation2 + $0x8] sm:$0xff] %v693_v48 }
 0x135   : > { %v700_v49 = vld [vmem:[#allocation2] sm:$0xff] }
 0x136   : > { %v709_v52 = vmul.f32 %v934_v51, %v700_v49 }
 0x137   : > { %v701_v50 = vld [vmem:[#allocation2 + $0x8] sm:$0xff] }
 0x138   : > { %v710_v53 = vmul.f32 %v934_v51, %v701_v50  ;;  %v718_v58 = vadd.f32 %v935_v54, %v709_v52 }
 0x13a   : > { %v719_v59 = vadd.f32 %v935_v54, %v710_v53  ;;  %v724_v60 = vadd.f32 %v944_v56, %v718_v58 }
 0x13c   : > { %v725_v61 = vadd.f32 %v945_v57, %v719_v59  ;;  %v726_v62 = vmax.f32 %v724_v60, 0.0 }
 0x13e   : > { %v727_v63 = vmax.f32 %v725_v61, 0.0 }
 0x140   : > { %v949_v0 = vpack.c.bf16 %v727_v63, %v726_v62 }
 0x142   : > { %950 = vst [vmem:[%s1259_s21] sm:$0xff] %v949_v0  }
 0x143 PF: > { %s15_s24 = sadd.s32 1, %s1146_s24   ;;  %s1327_s18 = smov %s1126_s19 }
 0x144   : > { %p12_p0 = scmp.ge.s32.totalorder %s15_s24, 8   ;;  %s1328_s19 = smov %s1232_s6 }
 0x145   : > { %s1329_s20 = smov %s1138_s22  ;;  %s1330_s21 = smov %s1142_s23 }
 0x146   : > { %s1331_s22 = smov %s1334_s25  ;;  %s1332_s23 = smov %s1338_s26 }
 0x147   :  { %14 = sbr.rel (!%p12_p0) target bundleno = 4 (0x4), region = 127 }

// kernel: resnet18_forward.31
= control target key start
LH: loop header
LB: loop body
LE: loop exit
PB: predicated region body
PF: predicated region fallthrough
CT: control target
= control target key end

     0   :  { %s1089_s15 = smov 0   ;;  %s1091_s16 = smov 0   ;;  %s1223_s0 = inlined_call_operand.vmem [shape: bf16[32,1152], index: 0, kind: input, shape index: {}]   ;;  %s1224_s1 = inlined_call_operand.vmem [shape: bf16[1152,128], index: 1, kind: input, shape index: {}]   ;;  %s1225_s2 = inlined_call_operand.vmem [shape: f32[1,128], index: 2, kind: input, shape index: {}]   ;;  %s1226_s3 = inlined_call_operand.vmem [shape: f32[1,128], index: 3, kind: input, shape index: {}]   ;;  %s1227_s4 = inlined_call_operand.vmem [shape: bf16[32,128], index: 4, kind: output, shape index: {}]  }
   0x1   :  { %s1093_s17 = smov 0   ;;  %s1095_s18 = smov 0  }
   0x2   :  { %s1097_s19 = smov 0   ;;  %s1099_s20 = smov 0  }
   0x3   :  { %s1101_s21 = smov 0  }
   0x4 LB: > { %s26_s22 = sadd.s32 1, %s1051_s19  ;;  %s33_s23 = sadd.s32 1, %s1055_s20  ;;  %s1059_s21 = sphi %s1101_s21, %s14_s21   ;;  %s1055_s20 = sphi %s1099_s20, %s1233_s20   ;;  %s1051_s19 = sphi %s1097_s19, %s1232_s19   ;;  %s1047_s18 = sphi %s1095_s18, %s1231_s18   ;;  %s1043_s17 = sphi %s1093_s17, %s1230_s17   ;;  %s1039_s16 = sphi %s1091_s16, %s1229_s16   ;;  %s1035_s15 = sphi %s1089_s15, %s1228_s15  }
   0x5   : > { %p27_p0 = scmp.ge.s32.totalorder %s26_s22, 3  ;;  %p49_p1 = scmp.ne.s32.totalorder %s1039_s16, %s1035_s15 }
   0x6   : > { %p50_p2 = scmp.eq.s32.totalorder %s1059_s21, 0  ;;  %s42_s27 = sadd.s32 1, %s1039_s16 }
   0x7   : > { %s1235_s22 = smov (%p27_p0, %s26_s22), 0  ;;  %s1237_s23 = smov (!%p27_p0, %s33_s23), %s1055_s20 }
   0x8   : > { %p51_p3 = por %p50_p2, %p49_p1  ;;  %p35_p4 = scmp.ge.s32.totalorder %s1237_s23, 2 }
   0x9   : > { %s38_s24 = ssub.s32 %s1051_s19, %s1235_s22  ;;  %p810_p6 = scmp.ge.s32.totalorder %s1059_s21, 6 }
   0xa   : > { %s1239_s23 = smov (%p35_p4, %s1237_s23), 0 }
   0xb   : > { %s37_s25 = ssub.s32 %s1055_s20, %s1239_s23  ;;  %195 = sbr.rel (%p810_p6) target bundleno = 29 (0x1d), region = 24 }
   0xc   : > { %s39_s26 = sor.u32 %s38_s24, %s37_s25 }
   0xd   : > { %p40_p5 = scmp.eq.s32.totalorder %s39_s26, 0 }
   0xf   : > { %s1140_s28 = scalar_select %p40_p5, %s1039_s16, %s42_s27  }
  0x12   : > { %198 = sbr.rel (!%p51_p3) target bundleno = 29 (0x1d), region = 28  ;;  %s200_s29 = sand.u32 (%p51_p3), 1, %s1039_s16  }
  0x13   : > { %s204_s30 = smul.u32 (%p51_p3), 3, %s1051_s19 }
  0x14   : > { %s915_s5 = smul.u32 (%p51_p3), 24, %s200_s29 }
  0x15   : > { %s916_s6 = smul.u32 (%p51_p3), 18, %s1055_s20 }
  0x16   : > { %s202_s12 = scalar_lea.vmem (%p51_p3), [#allocation3], %s915_s5 }
  0x17   : > { %s206_s7 = sadd.s32 (%p51_p3), %s916_s6, %s204_s30 }
  0x18   : > { %s813_s8 = sshll.u32 (%p51_p3), %s206_s7, 2 }
  0x19   : > { %s208_s11 = scalar_lea.vmem %s1223_s0, %s813_s8 }
  0x1a   : > { %v223_v0 = vld [vmem:[%s208_s11] sm:$0xff]  ;;  %v814_v2 = vld [vmem:[%s208_s11 + $0x8] sm:$0xf]  ;;  %v816_v3 = vld [vmem:[%s208_s11 + $0x2c] sm:$0xf] }
  0x1b   : > { %v225_v1 = vld [vmem:[%s208_s11 + $0x24] sm:$0xff]  ;;  %224 = vst [vmem:[%s202_s12] sm:$0xff] %v223_v0  ;;  %815 = vst [vmem:[%s202_s12 + $0x8] sm:$0xf] %v814_v2 }
  0x1c   : > { %226 = vst [vmem:[%s202_s12 + $0xc] sm:$0xff] %v225_v1  ;;  %817 = vst [vmem:[%s202_s12 + $0x14] sm:$0xf] %v816_v3 }
  0x1d PF: > { %p818_p7 = scmp.ge.s32.totalorder %s1059_s21, 1  ;;  %p254_p8 = scmp.lt.s32.totalorder %s1059_s21, 7 }
  0x1f   : > { %p255_p9 = pnand %p818_p7, %p254_p8 }
  0x20   : > { %s261_s13 = sand.u32 (!%p255_p9), 1, %s1035_s15   ;;  %s305_s14 = smul.u32 (!%p255_p9), 48, %s1043_s17 }
  0x21   : > { %258 = sbr.rel (%p255_p9) target bundleno = 321 (0x141), region = 58  ;;  %s820_s25 = sshll.u32 (!%p255_p9), %s1047_s18, 1 }
  0x22   : > { %s917_s24 = smul.u32 (!%p255_p9), 24, %s261_s13  ;;  %p306_p10 = scmp.lt.s32.totalorder (!%p255_p9), %s305_s14, 143 }
  0x23   : > { %p321_p11 = scmp.lt.s32.totalorder (!%p255_p9), %s820_s25, 3  ;;  %p822_p12 = scmp.ne.s32.totalorder (!%p255_p9), %s1043_s17, 0 }
  0x24   : > { %s1164_s15 = scalar_lea.vmem (!%p255_p9), [#allocation3], %s917_s24 }
  0x28   : > { %s1241_s14 = smov (!%p306_p10, %s305_s14), 143  ;;  %s1243_s25 = smov (!%p321_p11, %s820_s25), 3 }
  0x29   : > { %s819_s26 = sshll.u32 %s1241_s14, 2  ;;  %s821_s5 = sshll.u32 %s1243_s25, 2  ;;  %v1061_v4 = vmov (!%p822_p12), 0.0  }
  0x2a   : > { %s1157_s30 = scalar_lea.vmem %s1224_s1, %s819_s26  ;;  %s1162_s8 = scalar_lea.vmem %s1227_s4, %s821_s5  ;;  %334 = vst [vmem:[#allocation2] sm:$0xff] (!%p822_p12), %v1061_v4  ;;  %335 = vst [vmem:[#allocation2 + $0x8] sm:$0xff] (!%p822_p12), %v1061_v4 }
  0x2b   : > { %333 = sbr.rel (%p822_p12) target bundleno = 50 (0x32), region = 66 }
  0x32 PF: > { %v977_v5 = vld [vmem:[%s1157_s30 + $0x40] sm:$0xff]   ;;  %v1062_v6 = vmov 0.0   ;;  %vm1063_vm0 = vmmov 0   ;;  %v980_v9 = vld [vmem:[%s1157_s30 + $0x48] sm:$0xff]   ;;  %v983_v12 = vld [vmem:[%s1157_s30 + $0x50] sm:$0xff]   ;;  %p850_p13 = scmp.ne.s32.totalorder %s1043_s17, 2 }
  0x33   : > { %895 = vmatprep.subr.bf16.mxu1 %v1062_v6  ;;  %v978_v7 = vld [vmem:[%s1157_s30] sm:$0xff]   ;;  %864 = vmatprep.subr.bf16.mxu0 %v977_v5  ;;  %v981_v10 = vld [vmem:[%s1157_s30 + $0x8] sm:$0xff]   ;;  %v984_v13 = vld [vmem:[%s1157_s30 + $0x10] sm:$0xff]  }
  0x34   : > { %v979_v8 = vld [vmem:[%s1157_s30 + $0x80] sm:$0xff]   ;;  %911 = vmatprep.mubr.msk.bf16.mxu1 %vm1063_vm0, %v1062_v6  ;;  %865 = vmatpush3.bf16.msra.mxu0 %v978_v7  ;;  %v982_v11 = vld [vmem:[%s1157_s30 + $0x88] sm:$0xff]   ;;  %v985_v14 = vld [vmem:[%s1157_s30 + $0x90] sm:$0xff]  }
  0x35   : > { %896 = vmatpush3.bf16.msra.mxu1 %v979_v8  ;;  %866 = vmatprep.subr.bf16.mxu0 %v980_v9  ;;  %v986_v15 = vld [vmem:[%s1157_s30 + $0x58] sm:$0xff]   ;;  %v989_v18 = vld [vmem:[%s1157_s30 + $0x60] sm:$0xff]   ;;  %v992_v21 = vld [vmem:[%s1157_s30 + $0x68] sm:$0xff]  }
  0x36   : > { %897 = vmatprep.subr.bf16.mxu1 %v1062_v6  ;;  %v987_v16 = vld [vmem:[%s1157_s30 + $0x18] sm:$0xff]   ;;  %v990_v19 = vld [vmem:[%s1157_s30 + $0x20] sm:$0xff]   ;;  %v993_v22 = vld [vmem:[%s1157_s30 + $0x28] sm:$0xff]  }
  0x37   : > { %v988_v17 = vld [vmem:[%s1157_s30 + $0x98] sm:$0xff]   ;;  %v991_v20 = vld [vmem:[%s1157_s30 + $0xa0] sm:$0xff]   ;;  %v994_v23 = vld [vmem:[%s1157_s30 + $0xa8] sm:$0xff]  }
  0x38   : > { %867 = vmatpush3.bf16.msra.mxu0 %v981_v10  ;;  %v995_v24 = vld [vmem:[%s1157_s30 + $0x70] sm:$0xff]   ;;  %v998_v27 = vld [vmem:[%s1157_s30 + $0x78] sm:$0xff]   ;;  %v336_v39 = vld [vmem:[#allocation2] sm:$0xff] }
  0x39   : > { %898 = vmatpush3.bf16.msra.mxu1 %v982_v11  ;;  %868 = vmatprep.subr.bf16.mxu0 %v983_v12  ;;  %v996_v25 = vld [vmem:[%s1157_s30 + $0x30] sm:$0xff]   ;;  %v999_v29 = vld [vmem:[%s1157_s30 + $0x38] sm:$0xff]   ;;  %v337_v45 = vld [vmem:[#allocation2 + $0x8] sm:$0xff] }
  0x3a   : > { %899 = vmatprep.subr.bf16.mxu1 %v1062_v6  ;;  %v997_v26 = vld [vmem:[%s1157_s30 + $0xb0] sm:$0xff]   ;;  %v1000_v30 = vld [vmem:[%s1157_s30 + $0xb8] sm:$0xff]   ;;  %v851_v51 = vld [vmem:[%s1225_s2] ss:$0 sm:$0xff] (!%p850_p13) }
  0x3b   : > { %v1003_v28 = vld [vmem:[%s1164_s15 + $0x4] ss:$12 sps:$4 sm:$0xff]   ;;  %v1001_v31 = vld [vmem:[%s1164_s15] ss:$12 sps:$4 sm:$0xff]   ;;  %v1004_v32 = vld [vmem:[%s1164_s15 + $0x8] ss:$12 sps:$4 sm:$0xff]  }
  0x3c   : > { %869 = vmatpush3.bf16.msra.mxu0 %v984_v13  ;;  %582 = vmatprep.mubr.bf16.mxu0 %v1003_v28  ;;  %v852_v54 = vld [vmem:[%s1226_s3] ss:$0 sm:$0xff] (!%p850_p13) }
  0x3d   : > { %900 = vmatpush3.bf16.msra.mxu1 %v985_v14  ;;  %870 = vmatprep.subr.bf16.mxu0 %v986_v15 }
  0x3e   : > { %901 = vmatprep.subr.bf16.mxu1 %v1062_v6 }
  0x40   : > { %871 = vmatpush3.bf16.msra.mxu0 %v987_v16 }
  0x41   : > { %902 = vmatpush3.bf16.msra.mxu1 %v988_v17  ;;  %872 = vmatprep.subr.bf16.mxu0 %v989_v18 }
  0x42   : > { %903 = vmatprep.subr.bf16.mxu1 %v1062_v6 }
  0x44   : > { %873 = vmatpush3.bf16.msra.mxu0 %v990_v19 }
  0x45   : > { %904 = vmatpush3.bf16.msra.mxu1 %v991_v20  ;;  %874 = vmatprep.subr.bf16.mxu0 %v992_v21 }
  0x46   : > { %905 = vmatprep.subr.bf16.mxu1 %v1062_v6 }
  0x48   : > { %875 = vmatpush3.bf16.msra.mxu0 %v993_v22 }
  0x49   : > { %906 = vmatpush3.bf16.msra.mxu1 %v994_v23  ;;  %876 = vmatprep.subr.bf16.mxu0 %v995_v24 }
  0x4a   : > { %907 = vmatprep.subr.bf16.mxu1 %v1062_v6 }
  0x4c   : > { %877 = vmatpush3.bf16.msra.mxu0 %v996_v25 }
  0x4d   : > { %908 = vmatpush3.bf16.msra.mxu1 %v997_v26  ;;  %878 = vmatprep.subr.bf16.mxu0 %v998_v27 }
  0x4e   : > { %909 = vmatprep.subr.bf16.mxu1 %v1062_v6 }
  0x50   : > { %879 = vmatpush3.bf16.msra.mxu0 %v999_v29 }
  0x51   : > { %910 = vmatpush3.bf16.msra.mxu1 %v1000_v30 }
  0x53   : > { %583 = vmatmul.mubr.bf16.vlgmr.msra.gmra.mrb[0].mxu0 %v1001_v31 }
  0x54   : > { %912 = vmatmul.mubr.bf16.vlgmr.msra.gmra.mrb[0].mxu1 %v1004_v32 }
 0x126   : > { %v880_v33 = vpop.f32.mrb[0].mxu0 }
 0x127   : > { %v625_v34 = vpop.f32.mrb[0].mxu1  ;;  %v881_v35 = vpop.f32.mrb[1].mxu0 }
 0x128   : > { %v882_v36 = vadd.f32 %v881_v35, %v880_v33  ;;  %v913_v37 = vpop.f32.mrb[1].mxu1  ;;  %v883_v38 = vpop.f32.mrb[2].mxu0 }
 0x129   : > { %v628_v40 = vpop.f32.mrb[2].mxu1  ;;  %v884_v41 = vpop.f32.mrb[3].mxu0 }
 0x12a   : > { %v626_v42 = vadd.f32 %v882_v36, %v625_v34  ;;  %v885_v43 = vadd.f32 %v884_v41, %v883_v38  ;;  %v914_v44 = vpop.f32.mrb[3].mxu1  ;;  %639 = sbr.rel (%p850_p13) target bundleno = 321 (0x141), region = 70 }
 0x12c   : > { %v632_v46 = vadd.f32 %v626_v42, %v336_v39  ;;  %v629_v47 = vadd.f32 %v885_v43, %v628_v40 }
 0x12e   : > { %634 = vst [vmem:[#allocation2] sm:$0xff] %v632_v46  ;;  %v633_v48 = vadd.f32 %v629_v47, %v337_v45 }
 0x130   : > { %635 = vst [vmem:[#allocation2 + $0x8] sm:$0xff] %v633_v48 }
 0x135   : > { %v640_v49 = vld [vmem:[#allocation2] sm:$0xff] }
 0x136   : > { %v649_v52 = vmul.f32 %v851_v51, %v640_v49 }
 0x137   : > { %v641_v50 = vld [vmem:[#allocation2 + $0x8] sm:$0xff] }
 0x138   : > { %v650_v53 = vmul.f32 %v851_v51, %v641_v50  ;;  %v658_v55 = vadd.f32 %v852_v54, %v649_v52 }
 0x13a   : > { %v659_v56 = vadd.f32 %v852_v54, %v650_v53  ;;  %v660_v57 = vmax.f32 %v658_v55, 0.0 }
 0x13c   : > { %v661_v58 = vmax.f32 %v659_v56, 0.0 }
 0x13e   : > { %v862_v59 = vpack.c.bf16 %v661_v58, %v660_v57 }
 0x140   : > { %863 = vst [vmem:[%s1162_s8] sm:$0xff] %v862_v59  }
 0x141 PF: > { %s14_s21 = sadd.s32 1, %s1059_s21   ;;  %s1228_s15 = smov %s1039_s16 }
 0x142   : > { %p11_p0 = scmp.ge.s32.totalorder %s14_s21, 8   ;;  %s1229_s16 = smov %s1140_s28 }
 0x143   : > { %s1230_s17 = smov %s1051_s19  ;;  %s1231_s18 = smov %s1055_s20 }
 0x144   : > { %s1232_s19 = smov %s1235_s22  ;;  %s1233_s20 = smov %s1239_s23 }
 0x145   :  { %13 = sbr.rel (!%p11_p0) target bundleno = 4 (0x4), region = 120 }

// kernel: resnet18_forward.33
= control target key start
LH: loop header
LB: loop body
LE: loop exit
PB: predicated region body
PF: predicated region fallthrough
CT: control target
= control target key end

     0   :  { %s1722_s0 = inlined_call_operand.vmem [shape: bf16[16,1152], index: 0, kind: input, shape index: {}]   ;;  %s1723_s1 = inlined_call_operand.vmem [shape: bf16[1152,256], index: 1, kind: input, shape index: {}]   ;;  %s1724_s2 = inlined_call_operand.vmem [shape: f32[1,256], index: 2, kind: input, shape index: {}]   ;;  %s1725_s3 = inlined_call_operand.vmem [shape: f32[1,256], index: 3, kind: input, shape index: {}]   ;;  %s1726_s4 = inlined_call_operand.vmem [shape: bf16[16,256], index: 4, kind: output, shape index: {}]  }
   0x1   :  { %1730 = sst [smem:[#allocation9_spill]] %s1722_s0 }
   0x2   :  { %1731 = sst [smem:[#allocation10_spill]] %s1723_s1 }
   0x3   :  { %s1404_s15 = smov 0   ;;  %s1406_s16 = smov 0  }
   0x4   :  { %s1408_s17 = smov 0   ;;  %s1410_s18 = smov 0  }
   0x5   :  { %s1412_s19 = smov 0   ;;  %s1414_s20 = smov 0  }
   0x6   :  { %s1416_s21 = smov 0   ;;  %s1418_s22 = smov 0  }
   0x7   :  { %s1420_s23 = smov 0   ;;  %s1422_s24 = smov 0  }
   0x8   :  { %s1424_s25 = smov 0  }
   0x9 LB: > { %1732 = sst [smem:[#allocation6_spill]] %s1370_s24  ;;  %s1055_s26 = sadd.s32 4294967295, %s1374_s25   ;;  %s1374_s25 = sphi %s1424_s25, %s14_s25   ;;  %s1370_s24 = sphi %s1422_s24, %s1742_s24   ;;  %s1366_s23 = sphi %s1420_s23, %s1750_s23   ;;  %s1362_s22 = sphi %s1418_s22, %s1740_s22   ;;  %s1358_s21 = sphi %s1416_s21, %s1749_s21   ;;  %s1354_s20 = sphi %s1414_s20, %s1748_s20   ;;  %s1350_s19 = sphi %s1412_s19, %s1747_s19   ;;  %s1346_s18 = sphi %s1410_s18, %s1746_s18   ;;  %s1342_s17 = sphi %s1408_s17, %s1745_s17   ;;  %s1338_s16 = sphi %s1406_s16, %s1744_s16   ;;  %s1334_s15 = sphi %s1404_s15, %s1743_s15  }
   0xa   : > { %s26_s27 = sadd.s32 1, %s1366_s23  ;;  %s29_s28 = sadd.s32 1, %s1370_s24 }
   0xb   : > { %p27_p0 = scmp.ge.s32.totalorder %s26_s27, 3  ;;  %s42_s29 = sadd.s32 1, %s1354_s20 }
   0xc   : > { %p49_p1 = scmp.ne.s32.totalorder %s1354_s20, %s1350_s19  ;;  %p50_p2 = scmp.eq.s32.totalorder %s1374_s25, 0 }
   0xd   : > { %s1752_s27 = smov (%p27_p0, %s26_s27), 0  ;;  %s1754_s28 = smov (!%p27_p0, %s29_s28), %s1370_s24 }
   0xe   : > { %1733 = sst [smem:[#allocation7_spill]] %s1752_s27  ;;  %s38_s30 = ssub.s32 %s1366_s23, %s1752_s27 }
   0xf   : > { %p31_p3 = scmp.ge.s32.totalorder %s1754_s28, 2  ;;  %p40_p4 = scmp.eq.s32.totalorder %s38_s30, 0 }
  0x10   : > { %p1471_p5 = por %p50_p2, %p49_p1  ;;  %s70_s6 = sadd.s32 1, %s1346_s18 }
  0x11   : > { %s1756_s28 = smov (%p31_p3, %s1754_s28), 0  ;;  %p77_p6 = scmp.ne.s32.totalorder %s1346_s18, %s1342_s17 }
  0x12   : > { %1735 = sst [smem:[#allocation8_spill]] %s1756_s28  ;;  %s66_s8 = ssub.s32 %s1370_s24, %s1756_s28 }
  0x13   : > { %s1479_s7 = scalar_select %p40_p4, %s1354_s20, %s42_s29  }
  0x14   : > { %s67_s9 = sor.u32 %s66_s8, %s38_s30  ;;  %p148_p7 = scmp.eq.s32.totalorder %s66_s8, 0 }
  0x15   : > { %p68_p8 = scmp.eq.s32.totalorder %s67_s9, 0  ;;  %p1485_p9 = por %p77_p6, %p50_p2 }
  0x16   : > { %s150_s11 = sadd.s32 1, %s1338_s16  ;;  %p160_p10 = scmp.ne.s32.totalorder %s1338_s16, %s1334_s15 }
  0x17   : > { %s1493_s12 = scalar_select %p68_p8, %s1346_s18, %s70_s6  }
  0x18   : > { %s1496_s13 = scalar_select %p148_p7, %s1338_s16, %s150_s11  }
  0x19   : > { %p161_p11 = scmp.eq.s32.totalorder %s1055_s26, 5  ;;  %p1058_p13 = scmp.ge.s32.totalorder %s1374_s25, 6 }
  0x1b   : > { %p1498_p12 = por %p161_p11, %p160_p10  ;;  %183 = sbr.rel (%p1058_p13) target bundleno = 86 (0x56), region = 16 }
  0x22   : > { %186 = sbr.rel (!%p1471_p5) target bundleno = 45 (0x2d), region = 20  ;;  %s188_s29 = sand.u32 (%p1471_p5), 1, %s1354_s20  }
  0x23   : > { %s1105_s30 = smul.u32 (%p1471_p5), 12, %s1366_s23  ;;  %s1738_s0 = sld [smem:[#allocation9_spill]] (%p1471_p5) }
  0x24   : > { %s1165_s8 = smul.u32 (%p1471_p5), 24, %s188_s29 }
  0x26   : > { %s190_s26 = scalar_lea.vmem (%p1471_p5), [#allocation3], %s1165_s8 }
  0x29   : > { %s196_s11 = scalar_lea.vmem %s1738_s0, %s1105_s30 }
  0x2a   : > { %v211_v0 = vld [vmem:[%s196_s11] sm:$0xff]  ;;  %v1060_v2 = vld [vmem:[%s196_s11 + $0x8] sm:$0xf]  ;;  %v1062_v3 = vld [vmem:[%s196_s11 + $0x2c] sm:$0xf] }
  0x2b   : > { %v213_v1 = vld [vmem:[%s196_s11 + $0x24] sm:$0xff]  ;;  %212 = vst [vmem:[%s190_s26] sm:$0xff] %v211_v0  ;;  %1061 = vst [vmem:[%s190_s26 + $0x8] sm:$0xf] %v1060_v2 }
  0x2c   : > { %214 = vst [vmem:[%s190_s26 + $0xc] sm:$0xff] %v213_v1  ;;  %1063 = vst [vmem:[%s190_s26 + $0x14] sm:$0xf] %v1062_v3 }
  0x2d PF: > { %231 = sbr.rel (!%p1485_p9) target bundleno = 86 (0x56), region = 46  ;;  %s233_s5 = sand.u32 (%p1485_p9), 1, %s1346_s18  }
  0x2e   : > { %s1106_s29 = smul.u32 (%p1485_p9), 96, %s1366_s23  ;;  %s1739_s1 = sld [smem:[#allocation10_spill]] (%p1485_p9) }
  0x2f   : > { %s1166_s6 = smul.u32 (%p1485_p9), 192, %s233_s5 }
  0x30   : > { %s238_s30 = sadd.s32 (%p1485_p9), %s1370_s24, %s1106_s29 }
  0x31   : > { %s1065_s9 = sshll.u32 (%p1485_p9), %s238_s30, 2  ;;  %s1523_s10 = scalar_lea.vmem (%p1485_p9), [#allocation4], %s1166_s6 }
  0x34   : > { %s1518_s8 = scalar_lea.vmem %s1739_s1, %s1065_s9 }
  0x35   : > { %v256_v4 = vld [vmem:[%s1518_s8] sm:$0xf]  ;;  %v258_v5 = vld [vmem:[%s1518_s8 + $0x8] sm:$0xf]  ;;  %v260_v6 = vld [vmem:[%s1518_s8 + $0x10] sm:$0xf] }
  0x36   : > { %257 = vst [vmem:[%s1523_s10] sm:$0xf] %v256_v4  ;;  %259 = vst [vmem:[%s1523_s10 + $0x4] sm:$0xf] %v258_v5  ;;  %v262_v7 = vld [vmem:[%s1518_s8 + $0x18] sm:$0xf] }
  0x37   : > { %261 = vst [vmem:[%s1523_s10 + $0x8] sm:$0xf] %v260_v6  ;;  %v264_v8 = vld [vmem:[%s1518_s8 + $0x20] sm:$0xf]  ;;  %v266_v9 = vld [vmem:[%s1518_s8 + $0x28] sm:$0xf] }
  0x38   : > { %263 = vst [vmem:[%s1523_s10 + $0xc] sm:$0xf] %v262_v7  ;;  %265 = vst [vmem:[%s1523_s10 + $0x10] sm:$0xf] %v264_v8  ;;  %v268_v10 = vld [vmem:[%s1518_s8 + $0x30] sm:$0xf] }
  0x39   : > { %267 = vst [vmem:[%s1523_s10 + $0x14] sm:$0xf] %v266_v9  ;;  %v270_v11 = vld [vmem:[%s1518_s8 + $0x38] sm:$0xf]  ;;  %v272_v12 = vld [vmem:[%s1518_s8 + $0x40] sm:$0xf] }
  0x3a   : > { %269 = vst [vmem:[%s1523_s10 + $0x18] sm:$0xf] %v268_v10  ;;  %271 = vst [vmem:[%s1523_s10 + $0x1c] sm:$0xf] %v270_v11  ;;  %v274_v13 = vld [vmem:[%s1518_s8 + $0x48] sm:$0xf] }
  0x3b   : > { %273 = vst [vmem:[%s1523_s10 + $0x20] sm:$0xf] %v272_v12  ;;  %v276_v14 = vld [vmem:[%s1518_s8 + $0x50] sm:$0xf]  ;;  %v278_v15 = vld [vmem:[%s1518_s8 + $0x58] sm:$0xf] }
  0x3c   : > { %275 = vst [vmem:[%s1523_s10 + $0x24] sm:$0xf] %v274_v13  ;;  %277 = vst [vmem:[%s1523_s10 + $0x28] sm:$0xf] %v276_v14  ;;  %v280_v16 = vld [vmem:[%s1518_s8 + $0x60] sm:$0xf] }
  0x3d   : > { %279 = vst [vmem:[%s1523_s10 + $0x2c] sm:$0xf] %v278_v15  ;;  %v282_v17 = vld [vmem:[%s1518_s8 + $0x68] sm:$0xf]  ;;  %v284_v18 = vld [vmem:[%s1518_s8 + $0x70] sm:$0xf] }
  0x3e   : > { %281 = vst [vmem:[%s1523_s10 + $0x30] sm:$0xf] %v280_v16  ;;  %283 = vst [vmem:[%s1523_s10 + $0x34] sm:$0xf] %v282_v17  ;;  %v286_v19 = vld [vmem:[%s1518_s8 + $0x78] sm:$0xf] }
  0x3f   : > { %285 = vst [vmem:[%s1523_s10 + $0x38] sm:$0xf] %v284_v18  ;;  %v288_v20 = vld [vmem:[%s1518_s8 + $0x80] sm:$0xf]  ;;  %v290_v21 = vld [vmem:[%s1518_s8 + $0x88] sm:$0xf] }
  0x40   : > { %287 = vst [vmem:[%s1523_s10 + $0x3c] sm:$0xf] %v286_v19  ;;  %289 = vst [vmem:[%s1523_s10 + $0x40] sm:$0xf] %v288_v20  ;;  %v292_v22 = vld [vmem:[%s1518_s8 + $0x90] sm:$0xf] }
  0x41   : > { %291 = vst [vmem:[%s1523_s10 + $0x44] sm:$0xf] %v290_v21  ;;  %v294_v23 = vld [vmem:[%s1518_s8 + $0x98] sm:$0xf]  ;;  %v296_v24 = vld [vmem:[%s1518_s8 + $0xa0] sm:$0xf] }
  0x42   : > { %293 = vst [vmem:[%s1523_s10 + $0x48] sm:$0xf] %v292_v22  ;;  %295 = vst [vmem:[%s1523_s10 + $0x4c] sm:$0xf] %v294_v23  ;;  %v298_v25 = vld [vmem:[%s1518_s8 + $0xa8] sm:$0xf] }
  0x43   : > { %297 = vst [vmem:[%s1523_s10 + $0x50] sm:$0xf] %v296_v24  ;;  %v300_v26 = vld [vmem:[%s1518_s8 + $0xb0] sm:$0xf]  ;;  %v302_v27 = vld [vmem:[%s1518_s8 + $0xb8] sm:$0xf] }
  0x44   : > { %299 = vst [vmem:[%s1523_s10 + $0x54] sm:$0xf] %v298_v25  ;;  %301 = vst [vmem:[%s1523_s10 + $0x58] sm:$0xf] %v300_v26  ;;  %v304_v28 = vld [vmem:[%s1518_s8 + $0xc0] sm:$0xf] }
  0x45   : > { %303 = vst [vmem:[%s1523_s10 + $0x5c] sm:$0xf] %v302_v27  ;;  %v306_v29 = vld [vmem:[%s1518_s8 + $0xc8] sm:$0xf]  ;;  %v308_v30 = vld [vmem:[%s1518_s8 + $0xd0] sm:$0xf] }
  0x46   : > { %305 = vst [vmem:[%s1523_s10 + $0x60] sm:$0xf] %v304_v28  ;;  %307 = vst [vmem:[%s1523_s10 + $0x64] sm:$0xf] %v306_v29  ;;  %v310_v31 = vld [vmem:[%s1518_s8 + $0xd8] sm:$0xf] }
  0x47   : > { %309 = vst [vmem:[%s1523_s10 + $0x68] sm:$0xf] %v308_v30  ;;  %v312_v32 = vld [vmem:[%s1518_s8 + $0xe0] sm:$0xf]  ;;  %v314_v33 = vld [vmem:[%s1518_s8 + $0xe8] sm:$0xf] }
  0x48   : > { %311 = vst [vmem:[%s1523_s10 + $0x6c] sm:$0xf] %v310_v31  ;;  %313 = vst [vmem:[%s1523_s10 + $0x70] sm:$0xf] %v312_v32  ;;  %v316_v34 = vld [vmem:[%s1518_s8 + $0xf0] sm:$0xf] }
  0x49   : > { %315 = vst [vmem:[%s1523_s10 + $0x74] sm:$0xf] %v314_v33  ;;  %v318_v35 = vld [vmem:[%s1518_s8 + $0xf8] sm:$0xf]  ;;  %v320_v36 = vld [vmem:[%s1518_s8 + $0x100] sm:$0xf] }
  0x4a   : > { %317 = vst [vmem:[%s1523_s10 + $0x78] sm:$0xf] %v316_v34  ;;  %319 = vst [vmem:[%s1523_s10 + $0x7c] sm:$0xf] %v318_v35  ;;  %v322_v37 = vld [vmem:[%s1518_s8 + $0x108] sm:$0xf] }
  0x4b   : > { %321 = vst [vmem:[%s1523_s10 + $0x80] sm:$0xf] %v320_v36  ;;  %v324_v38 = vld [vmem:[%s1518_s8 + $0x110] sm:$0xf]  ;;  %v326_v39 = vld [vmem:[%s1518_s8 + $0x118] sm:$0xf] }
  0x4c   : > { %323 = vst [vmem:[%s1523_s10 + $0x84] sm:$0xf] %v322_v37  ;;  %325 = vst [vmem:[%s1523_s10 + $0x88] sm:$0xf] %v324_v38  ;;  %v328_v40 = vld [vmem:[%s1518_s8 + $0x120] sm:$0xf] }
  0x4d   : > { %327 = vst [vmem:[%s1523_s10 + $0x8c] sm:$0xf] %v326_v39  ;;  %v330_v41 = vld [vmem:[%s1518_s8 + $0x128] sm:$0xf]  ;;  %v332_v42 = vld [vmem:[%s1518_s8 + $0x130] sm:$0xf] }
  0x4e   : > { %329 = vst [vmem:[%s1523_s10 + $0x90] sm:$0xf] %v328_v40  ;;  %331 = vst [vmem:[%s1523_s10 + $0x94] sm:$0xf] %v330_v41  ;;  %v334_v43 = vld [vmem:[%s1518_s8 + $0x138] sm:$0xf] }
  0x4f   : > { %333 = vst [vmem:[%s1523_s10 + $0x98] sm:$0xf] %v332_v42  ;;  %v336_v44 = vld [vmem:[%s1518_s8 + $0x140] sm:$0xf]  ;;  %v338_v45 = vld [vmem:[%s1518_s8 + $0x148] sm:$0xf] }
  0x50   : > { %335 = vst [vmem:[%s1523_s10 + $0x9c] sm:$0xf] %v334_v43  ;;  %337 = vst [vmem:[%s1523_s10 + $0xa0] sm:$0xf] %v336_v44  ;;  %v340_v46 = vld [vmem:[%s1518_s8 + $0x150] sm:$0xf] }
  0x51   : > { %339 = vst [vmem:[%s1523_s10 + $0xa4] sm:$0xf] %v338_v45  ;;  %v342_v47 = vld [vmem:[%s1518_s8 + $0x158] sm:$0xf]  ;;  %v344_v48 = vld [vmem:[%s1518_s8 + $0x160] sm:$0xf] }
  0x52   : > { %341 = vst [vmem:[%s1523_s10 + $0xa8] sm:$0xf] %v340_v46  ;;  %343 = vst [vmem:[%s1523_s10 + $0xac] sm:$0xf] %v342_v47  ;;  %v346_v49 = vld [vmem:[%s1518_s8 + $0x168] sm:$0xf] }
  0x53   : > { %345 = vst [vmem:[%s1523_s10 + $0xb0] sm:$0xf] %v344_v48  ;;  %v348_v50 = vld [vmem:[%s1518_s8 + $0x170] sm:$0xf]  ;;  %v350_v51 = vld [vmem:[%s1518_s8 + $0x178] sm:$0xf] }
  0x54   : > { %347 = vst [vmem:[%s1523_s10 + $0xb4] sm:$0xf] %v346_v49  ;;  %349 = vst [vmem:[%s1523_s10 + $0xb8] sm:$0xf] %v348_v50 }
  0x55   : > { %351 = vst [vmem:[%s1523_s10 + $0xbc] sm:$0xf] %v350_v51 }
  0x56 PF: > { %p1066_p0 = scmp.ge.s32.totalorder %s1374_s25, 1  ;;  %p481_p1 = scmp.lt.s32.totalorder %s1374_s25, 7 }
  0x58   : > { %p482_p2 = pnand %p1066_p0, %p481_p1 }
  0x59   : > { %s488_s0 = sand.u32 (!%p482_p2), 1, %s1350_s19   ;;  %s495_s28 = sand.u32 (!%p482_p2), 1, %s1342_s17  }
  0x5a   : > { %485 = sbr.rel (%p482_p2) target bundleno = 384 (0x180), region = 95  ;;  %s526_s26 = sand.u32 (!%p482_p2), 1, %s1334_s15  }
  0x5b   : > { %s1167_s11 = smul.u32 (!%p482_p2), 24, %s488_s0  ;;  %s1067_s29 = sshll.u32 (!%p482_p2), %s526_s26, 3 }
  0x5c   : > { %s1168_s5 = smul.u32 (!%p482_p2), 192, %s495_s28  ;;  %p532_p3 = scmp.lt.s32.totalorder (!%p482_p2), %s1362_s22, 1 }
  0x5d   : > { %s1635_s24 = scalar_lea.vmem (!%p482_p2), [#allocation3], %s1167_s11  ;;  %s1639_s15 = scalar_lea.vmem (!%p482_p2), [#allocation5], %s1067_s29 }
  0x5e   : > { %s1637_s17 = scalar_lea.vmem (!%p482_p2), [#allocation4], %s1168_s5  ;;  %p1068_p4 = scmp.ne.s32.totalorder (!%p482_p2), %s1358_s21, 0 }
  0x61   : > { %s1625_s6 = scalar_select %p532_p3, %s1362_s22, 1 }
  0x62   : > { %543 = sbr.rel (%p1068_p4) target bundleno = 105 (0x69), region = 107  ;;  %v1376_v52 = vmov (!%p1068_p4), 0.0  }
  0x63   : > { %s534_s8 = scalar_lea.vmem %s1724_s2, %s1625_s6  ;;  %s537_s27 = scalar_lea.vmem %s1725_s3, %s1625_s6  ;;  %544 = vst [vmem:[#allocation2] sm:$0xff] (!%p1068_p4), %v1376_v52  ;;  %545 = vst [vmem:[#allocation2 + $0x8] sm:$0xff] (!%p1068_p4), %v1376_v52 }
  0x69 PF: > { %v1260_v53 = vld [vmem:[%s1637_s17 + $0x40] sm:$0xff]   ;;  %v1377_v54 = vmov 0.0   ;;  %vm1378_vm0 = vmmov 0   ;;  %v1263_v57 = vld [vmem:[%s1637_s17 + $0x48] sm:$0xff]   ;;  %v1266_v60 = vld [vmem:[%s1637_s17 + $0x50] sm:$0xff]   ;;  %p1096_p5 = scmp.ne.s32.totalorder %s1358_s21, 2 }
  0x6a   : > { %1145 = vmatprep.subr.bf16.mxu1 %v1377_v54  ;;  %v1261_v55 = vld [vmem:[%s1637_s17] sm:$0xff]   ;;  %1114 = vmatprep.subr.bf16.mxu0 %v1260_v53  ;;  %v1264_v58 = vld [vmem:[%s1637_s17 + $0x8] sm:$0xff]   ;;  %v1267_v61 = vld [vmem:[%s1637_s17 + $0x10] sm:$0xff]  }
  0x6b   : > { %v1262_v56 = vld [vmem:[%s1637_s17 + $0x80] sm:$0xff]   ;;  %1161 = vmatprep.mubr.msk.bf16.mxu1 %vm1378_vm0, %v1377_v54  ;;  %1115 = vmatpush3.bf16.msra.mxu0 %v1261_v55  ;;  %v1265_v59 = vld [vmem:[%s1637_s17 + $0x88] sm:$0xff]   ;;  %v1268_v62 = vld [vmem:[%s1637_s17 + $0x90] sm:$0xff]  }
  0x6c   : > { %1146 = vmatpush3.bf16.msra.mxu1 %v1262_v56  ;;  %1116 = vmatprep.subr.bf16.mxu0 %v1263_v57  ;;  %v1269_v63 = vld [vmem:[%s1637_s17 + $0x58] sm:$0xff]   ;;  %v1272_v2 = vld [vmem:[%s1637_s17 + $0x60] sm:$0xff]   ;;  %v1275_v5 = vld [vmem:[%s1637_s17 + $0x68] sm:$0xff]  }
  0x6d   : > { %1147 = vmatprep.subr.bf16.mxu1 %v1377_v54  ;;  %v1270_v0 = vld [vmem:[%s1637_s17 + $0x18] sm:$0xff]   ;;  %v1273_v3 = vld [vmem:[%s1637_s17 + $0x20] sm:$0xff]   ;;  %v1276_v6 = vld [vmem:[%s1637_s17 + $0x28] sm:$0xff]  }
  0x6e   : > { %v1271_v1 = vld [vmem:[%s1637_s17 + $0x98] sm:$0xff]   ;;  %v1274_v4 = vld [vmem:[%s1637_s17 + $0xa0] sm:$0xff]   ;;  %v1277_v7 = vld [vmem:[%s1637_s17 + $0xa8] sm:$0xff]  }
  0x6f   : > { %1117 = vmatpush3.bf16.msra.mxu0 %v1264_v58  ;;  %v1278_v8 = vld [vmem:[%s1637_s17 + $0x70] sm:$0xff]   ;;  %v1281_v11 = vld [vmem:[%s1637_s17 + $0x78] sm:$0xff]   ;;  %v546_v23 = vld [vmem:[#allocation2] sm:$0xff] }
  0x70   : > { %1148 = vmatpush3.bf16.msra.mxu1 %v1265_v59  ;;  %1118 = vmatprep.subr.bf16.mxu0 %v1266_v60  ;;  %v1279_v9 = vld [vmem:[%s1637_s17 + $0x30] sm:$0xff]   ;;  %v1282_v13 = vld [vmem:[%s1637_s17 + $0x38] sm:$0xff]   ;;  %v547_v29 = vld [vmem:[#allocation2 + $0x8] sm:$0xff] }
  0x71   : > { %1149 = vmatprep.subr.bf16.mxu1 %v1377_v54  ;;  %v1280_v10 = vld [vmem:[%s1637_s17 + $0xb0] sm:$0xff]   ;;  %v1283_v14 = vld [vmem:[%s1637_s17 + $0xb8] sm:$0xff]   ;;  %v1097_v35 = vld [vmem:[%s534_s8] ss:$0 sm:$0xff] (!%p1096_p5) }
  0x72   : > { %v1286_v12 = vld [vmem:[%s1635_s24 + $0x4] ss:$12 sps:$4 sm:$0xff]   ;;  %v1284_v15 = vld [vmem:[%s1635_s24] ss:$12 sps:$4 sm:$0xff]   ;;  %v1287_v16 = vld [vmem:[%s1635_s24 + $0x8] ss:$12 sps:$4 sm:$0xff]  }
  0x73   : > { %1119 = vmatpush3.bf16.msra.mxu0 %v1267_v61  ;;  %792 = vmatprep.mubr.bf16.mxu0 %v1286_v12  ;;  %v1098_v38 = vld [vmem:[%s537_s27] ss:$0 sm:$0xff] (!%p1096_p5) }
  0x74   : > { %1150 = vmatpush3.bf16.msra.mxu1 %v1268_v62  ;;  %1120 = vmatprep.subr.bf16.mxu0 %v1269_v63 }
  0x75   : > { %1151 = vmatprep.subr.bf16.mxu1 %v1377_v54 }
  0x77   : > { %1121 = vmatpush3.bf16.msra.mxu0 %v1270_v0 }
  0x78   : > { %1152 = vmatpush3.bf16.msra.mxu1 %v1271_v1  ;;  %1122 = vmatprep.subr.bf16.mxu0 %v1272_v2 }
  0x79   : > { %1153 = vmatprep.subr.bf16.mxu1 %v1377_v54 }
  0x7b   : > { %1123 = vmatpush3.bf16.msra.mxu0 %v1273_v3 }
  0x7c   : > { %1154 = vmatpush3.bf16.msra.mxu1 %v1274_v4  ;;  %1124 = vmatprep.subr.bf16.mxu0 %v1275_v5 }
  0x7d   : > { %1155 = vmatprep.subr.bf16.mxu1 %v1377_v54 }
  0x7f   : > { %1125 = vmatpush3.bf16.msra.mxu0 %v1276_v6 }
  0x80   : > { %1156 = vmatpush3.bf16.msra.mxu1 %v1277_v7  ;;  %1126 = vmatprep.subr.bf16.mxu0 %v1278_v8 }
  0x81   : > { %1157 = vmatprep.subr.bf16.mxu1 %v1377_v54 }
  0x83   : > { %1127 = vmatpush3.bf16.msra.mxu0 %v1279_v9 }
  0x84   : > { %1158 = vmatpush3.bf16.msra.mxu1 %v1280_v10  ;;  %1128 = vmatprep.subr.bf16.mxu0 %v1281_v11 }
  0x85   : > { %1159 = vmatprep.subr.bf16.mxu1 %v1377_v54 }
  0x87   : > { %1129 = vmatpush3.bf16.msra.mxu0 %v1282_v13 }
  0x88   : > { %1160 = vmatpush3.bf16.msra.mxu1 %v1283_v14 }
  0x8a   : > { %793 = vmatmul.mubr.bf16.vlgmr.msra.gmra.mrb[0].mxu0 %v1284_v15 }
  0x8b   : > { %1162 = vmatmul.mubr.bf16.vlgmr.msra.gmra.mrb[0].mxu1 %v1287_v16 }
 0x15d   : > { %v1130_v17 = vpop.f32.mrb[0].mxu0 }
 0x15e   : > { %v835_v18 = vpop.f32.mrb[0].mxu1  ;;  %v1131_v19 = vpop.f32.mrb[1].mxu0 }
 0x15f   : > { %v1132_v20 = vadd.f32 %v1131_v19, %v1130_v17  ;;  %v1163_v21 = vpop.f32.mrb[1].mxu1  ;;  %v1133_v22 = vpop.f32.mrb[2].mxu0 }
 0x160   : > { %v838_v24 = vpop.f32.mrb[2].mxu1  ;;  %v1134_v25 = vpop.f32.mrb[3].mxu0 }
 0x161   : > { %v836_v26 = vadd.f32 %v1132_v20, %v835_v18  ;;  %v1135_v27 = vadd.f32 %v1134_v25, %v1133_v22  ;;  %v1164_v28 = vpop.f32.mrb[3].mxu1  ;;  %849 = sbr.rel (%p1096_p5) target bundleno = 376 (0x178), region = 111 }
 0x163   : > { %v842_v30 = vadd.f32 %v836_v26, %v546_v23  ;;  %v839_v31 = vadd.f32 %v1135_v27, %v838_v24 }
 0x165   : > { %844 = vst [vmem:[#allocation2] sm:$0xff] %v842_v30  ;;  %v843_v32 = vadd.f32 %v839_v31, %v547_v29 }
 0x167   : > { %845 = vst [vmem:[#allocation2 + $0x8] sm:$0xff] %v843_v32 }
 0x16c   : > { %v850_v33 = vld [vmem:[#allocation2] sm:$0xff] }
 0x16d   : > { %v859_v36 = vmul.f32 %v1097_v35, %v850_v33 }
 0x16e   : > { %v851_v34 = vld [vmem:[#allocation2 + $0x8] sm:$0xff] }
 0x16f   : > { %v860_v37 = vmul.f32 %v1097_v35, %v851_v34  ;;  %v868_v39 = vadd.f32 %v1098_v38, %v859_v36 }
 0x171   : > { %v869_v40 = vadd.f32 %v1098_v38, %v860_v37  ;;  %v870_v41 = vmax.f32 %v868_v39, 0.0 }
 0x173   : > { %v871_v42 = vmax.f32 %v869_v40, 0.0 }
 0x175   : > { %v1112_v43 = vpack.c.bf16 %v871_v42, %v870_v41 }
 0x177   : > { %1113 = vst [vmem:[%s1639_s15] sm:$0xff] %v1112_v43  }
 0x178 PF: > { %888 = sbr.rel (!%p1498_p12) target bundleno = 384 (0x180), region = 115  ;;  %s1102_s21 = sshll.u32 (%p1498_p12), %s1362_s22, 2 }
 0x179   : > { %s893_s27 = scalar_lea.vmem (%p1498_p12), %s1726_s4, %s1102_s21 }
 0x17e   : > { %v909_v44 = vld [vmem:[%s1639_s15] sm:$0xf] (%p1498_p12)  ;;  %v911_v45 = vld [vmem:[%s1639_s15 + $0x4] sm:$0xf] (%p1498_p12) }
 0x17f   : > { %910 = vst [vmem:[%s893_s27] sm:$0xf] %v909_v44  ;;  %912 = vst [vmem:[%s893_s27 + $0x8] sm:$0xf] %v911_v45 }
 0x180 PF: > { %s14_s25 = sadd.s32 1, %s1374_s25   ;;  %s1740_s22 = sld [smem:[#allocation6_spill]] }
 0x181   : > { %p11_p6 = scmp.ge.s32.totalorder %s14_s25, 8   ;;  %s1741_s14 = sld [smem:[#allocation7_spill]] }
 0x182   : > { %s1742_s24 = sld [smem:[#allocation8_spill]]  ;;  %s1743_s15 = smov %s1338_s16 }
 0x183   : > { %s1744_s16 = smov %s1496_s13  ;;  %s1745_s17 = smov %s1346_s18 }
 0x184   : > { %s1746_s18 = smov %s1493_s12  ;;  %s1747_s19 = smov %s1354_s20 }
 0x185   : > { %s1748_s20 = smov %s1479_s7  ;;  %s1749_s21 = smov %s1366_s23 }
 0x186   :  { %13 = sbr.rel (!%p11_p6) target bundleno = 9 (0x9), region = 207 }
 0x187   : > { %s1750_s23 = smov %s1741_s14 }

// kernel: resnet18_forward.34
= control target key start
LH: loop header
LB: loop body
LE: loop exit
PB: predicated region body
PF: predicated region fallthrough
CT: control target
= control target key end

     0   :  { %s885_s15 = smov 0   ;;  %s887_s16 = smov 0   ;;  %s990_s0 = inlined_call_operand.vmem [shape: bf16[16,128], index: 0, kind: input, shape index: {}]   ;;  %s991_s1 = inlined_call_operand.vmem [shape: bf16[128,256], index: 1, kind: input, shape index: {}]   ;;  %s992_s2 = inlined_call_operand.vmem [shape: f32[1,256], index: 2, kind: input, shape index: {}]   ;;  %s993_s3 = inlined_call_operand.vmem [shape: f32[1,256], index: 3, kind: input, shape index: {}]   ;;  %s994_s4 = inlined_call_operand.vmem [shape: bf16[16,256], index: 4, kind: output, shape index: {}]  }
   0x1   :  { %s889_s17 = smov 0   ;;  %s891_s18 = smov 0  }
   0x2   :  { %s893_s19 = smov 0  }
   0x3 LB: > { %s29_s20 = sadd.s32 1, %s852_s18  ;;  %s704_s21 = sadd.s32 4294967295, %s856_s19   ;;  %s856_s19 = sphi %s893_s19, %s14_s19   ;;  %s852_s18 = sphi %s891_s18, %s999_s18   ;;  %s848_s17 = sphi %s889_s17, %s998_s17   ;;  %s844_s16 = sphi %s887_s16, %s997_s16   ;;  %s840_s15 = sphi %s885_s15, %s996_s15  }
   0x4   : > { %p31_p0 = scmp.ge.s32.totalorder %s29_s20, 2  ;;  %p77_p1 = scmp.ne.s32.totalorder %s844_s16, %s840_s15 }
   0x5   : > { %p78_p2 = scmp.eq.s32.totalorder %s856_s19, 0  ;;  %p161_p4 = scmp.eq.s32.totalorder %s704_s21, 1 }
   0x6   : > { %s1001_s20 = smov (%p31_p0, %s29_s20), 0  ;;  %s70_s23 = sadd.s32 1, %s844_s16 }
   0x7   : > { %p79_p3 = por %p78_p2, %p77_p1  ;;  %s66_s22 = ssub.s32 %s852_s18, %s1001_s20 }
   0x8   : > { %p68_p5 = scmp.eq.s32.totalorder %s66_s22, 0  ;;  %p920_p6 = por %p161_p4, %p77_p1 }
   0x9   : > { %p708_p7 = scmp.ge.s32.totalorder %s856_s19, 2 }
   0xa   : > { %s925_s25 = scalar_select %p68_p5, %s844_s16, %s70_s23  }
   0xb   : > { %195 = sbr.rel (%p708_p7) target bundleno = 32 (0x20), region = 20 }
  0x12   : > { %198 = sbr.rel (!%p79_p3) target bundleno = 32 (0x20), region = 24  ;;  %s200_s26 = sand.u32 (%p79_p3), 1, %s844_s16  }
  0x13   : > { %s710_s27 = sshll.u32 (%p79_p3), %s852_s18, 2  ;;  %s709_s28 = sshll.u32 (%p79_p3), %s200_s26, 6 }
  0x14   : > { %s933_s5 = scalar_lea.vmem (%p79_p3), %s991_s1, %s710_s27  ;;  %s202_s6 = scalar_lea.vmem (%p79_p3), [#allocation3], %s709_s28 }
  0x15   : > { %v223_v0 = vld [vmem:[%s933_s5] sm:$0xf] (%p79_p3)  ;;  %v225_v1 = vld [vmem:[%s933_s5 + $0x8] sm:$0xf] (%p79_p3)  ;;  %v227_v2 = vld [vmem:[%s933_s5 + $0x10] sm:$0xf] (%p79_p3) }
  0x16   : > { %224 = vst [vmem:[%s202_s6] sm:$0xf] (%p79_p3), %v223_v0  ;;  %226 = vst [vmem:[%s202_s6 + $0x4] sm:$0xf] (%p79_p3), %v225_v1  ;;  %v229_v3 = vld [vmem:[%s933_s5 + $0x18] sm:$0xf] (%p79_p3) }
  0x17   : > { %v231_v4 = vld [vmem:[%s933_s5 + $0x20] sm:$0xf] (%p79_p3)  ;;  %228 = vst [vmem:[%s202_s6 + $0x8] sm:$0xf] (%p79_p3), %v227_v2  ;;  %230 = vst [vmem:[%s202_s6 + $0xc] sm:$0xf] (%p79_p3), %v229_v3 }
  0x18   : > { %232 = vst [vmem:[%s202_s6 + $0x10] sm:$0xf] (%p79_p3), %v231_v4  ;;  %v233_v5 = vld [vmem:[%s933_s5 + $0x28] sm:$0xf] (%p79_p3)  ;;  %v235_v6 = vld [vmem:[%s933_s5 + $0x30] sm:$0xf] (%p79_p3) }
  0x19   : > { %v237_v7 = vld [vmem:[%s933_s5 + $0x38] sm:$0xf]  ;;  %234 = vst [vmem:[%s202_s6 + $0x14] sm:$0xf] %v233_v5  ;;  %236 = vst [vmem:[%s202_s6 + $0x18] sm:$0xf] %v235_v6 }
  0x1a   : > { %238 = vst [vmem:[%s202_s6 + $0x1c] sm:$0xf] %v237_v7  ;;  %v239_v8 = vld [vmem:[%s933_s5 + $0x40] sm:$0xf]  ;;  %v241_v9 = vld [vmem:[%s933_s5 + $0x48] sm:$0xf] }
  0x1b   : > { %v243_v10 = vld [vmem:[%s933_s5 + $0x50] sm:$0xf]  ;;  %240 = vst [vmem:[%s202_s6 + $0x20] sm:$0xf] %v239_v8  ;;  %242 = vst [vmem:[%s202_s6 + $0x24] sm:$0xf] %v241_v9 }
  0x1c   : > { %244 = vst [vmem:[%s202_s6 + $0x28] sm:$0xf] %v243_v10  ;;  %v245_v11 = vld [vmem:[%s933_s5 + $0x58] sm:$0xf]  ;;  %v247_v12 = vld [vmem:[%s933_s5 + $0x60] sm:$0xf] }
  0x1d   : > { %v249_v13 = vld [vmem:[%s933_s5 + $0x68] sm:$0xf]  ;;  %246 = vst [vmem:[%s202_s6 + $0x2c] sm:$0xf] %v245_v11  ;;  %248 = vst [vmem:[%s202_s6 + $0x30] sm:$0xf] %v247_v12 }
  0x1e   : > { %250 = vst [vmem:[%s202_s6 + $0x34] sm:$0xf] %v249_v13  ;;  %v251_v14 = vld [vmem:[%s933_s5 + $0x70] sm:$0xf]  ;;  %v253_v15 = vld [vmem:[%s933_s5 + $0x78] sm:$0xf] }
  0x1f   : > { %252 = vst [vmem:[%s202_s6 + $0x38] sm:$0xf] %v251_v14  ;;  %254 = vst [vmem:[%s202_s6 + $0x3c] sm:$0xf] %v253_v15 }
  0x20 PF: > { %p711_p8 = scmp.ge.s32.totalorder %s856_s19, 1  ;;  %p320_p9 = scmp.lt.s32.totalorder %s856_s19, 3 }
  0x22   : > { %p321_p10 = pnand %p711_p8, %p320_p9 }
  0x23   : > { %s327_s7 = sand.u32 (!%p321_p10), 1, %s840_s15   ;;  %v858_v16 = vmov (!%p321_p10), 0.0   ;;  %vm859_vm0 = vmmov (!%p321_p10), 0   ;;  %v817_v25 = vld [vmem:[%s990_s0] sm:$0xff] (!%p321_p10)   ;;  %p375_p11 = scmp.lt.s32.totalorder (!%p321_p10), %s848_s17, 1 }
  0x24   : > { %324 = sbr.rel (%p321_p10) target bundleno = 299 (0x12b), region = 73  ;;  %747 = vmatprep.subr.bf16.mxu0 (!%p321_p10), %v858_v16  ;;  %s712_s8 = sshll.u32 (!%p321_p10), %s327_s7, 6  ;;  %763 = vmatprep.mubr.msk.bf16.mxu0 (!%p321_p10), %vm859_vm0, %v858_v16 }
  0x25   : > { %s329_s9 = scalar_lea.vmem (!%p321_p10), [#allocation3], %s712_s8  ;;  %s713_s27 = sshll.u32 (!%p321_p10), %s327_s7, 3 }
  0x26   : > { %v809_v17 = vld [vmem:[%s329_s9] sm:$0xff] (!%p321_p10)   ;;  %v810_v18 = vld [vmem:[%s329_s9 + $0x8] sm:$0xff] (!%p321_p10)   ;;  %v811_v19 = vld [vmem:[%s329_s9 + $0x10] sm:$0xff] (!%p321_p10)   ;;  %s364_s28 = scalar_lea.vmem (!%p321_p10), [#allocation4], %s713_s27 }
  0x27   : > { %748 = vmatpush3.bf16.msra.mxu0 (!%p321_p10), %v809_v17  ;;  %v812_v20 = vld [vmem:[%s329_s9 + $0x18] sm:$0xff] (!%p321_p10)   ;;  %v813_v21 = vld [vmem:[%s329_s9 + $0x20] sm:$0xff] (!%p321_p10)   ;;  %v814_v22 = vld [vmem:[%s329_s9 + $0x28] sm:$0xff] (!%p321_p10)  }
  0x28   : > { %749 = vmatprep.subr.bf16.mxu0 (!%p321_p10), %v858_v16  ;;  %v815_v23 = vld [vmem:[%s329_s9 + $0x30] sm:$0xff] (!%p321_p10)   ;;  %v816_v24 = vld [vmem:[%s329_s9 + $0x38] sm:$0xff] (!%p321_p10)  }
  0x2b   : > { %750 = vmatpush3.bf16.msra.mxu0 %v810_v18  ;;  %s376_s12 = scalar_select %p375_p11, %s848_s17, 1 }
  0x2c   : > { %751 = vmatprep.subr.bf16.mxu0 %v858_v16  ;;  %s728_s29 = sshll.u32 (%p920_p6), %s848_s17, 2 }
  0x2d   : > { %s377_s21 = scalar_lea.vmem %s992_s2, %s376_s12  ;;  %s380_s26 = scalar_lea.vmem %s993_s3, %s376_s12 }
  0x2e   : > { %v723_v26 = vld [vmem:[%s377_s21] ss:$0 sm:$0xff]  ;;  %s552_s6 = scalar_lea.vmem (%p920_p6), %s994_s4, %s728_s29 }
  0x2f   : > { %752 = vmatpush3.bf16.msra.mxu0 %v811_v19  ;;  %v724_v30 = vld [vmem:[%s380_s26] ss:$0 sm:$0xff] }
  0x30   : > { %753 = vmatprep.subr.bf16.mxu0 %v858_v16 }
  0x33   : > { %754 = vmatpush3.bf16.msra.mxu0 %v812_v20 }
  0x34   : > { %755 = vmatprep.subr.bf16.mxu0 %v858_v16 }
  0x37   : > { %756 = vmatpush3.bf16.msra.mxu0 %v813_v21 }
  0x38   : > { %757 = vmatprep.subr.bf16.mxu0 %v858_v16 }
  0x3b   : > { %758 = vmatpush3.bf16.msra.mxu0 %v814_v22 }
  0x3c   : > { %759 = vmatprep.subr.bf16.mxu0 %v858_v16 }
  0x3f   : > { %760 = vmatpush3.bf16.msra.mxu0 %v815_v23 }
  0x40   : > { %761 = vmatprep.subr.bf16.mxu0 %v858_v16 }
  0x43   : > { %762 = vmatpush3.bf16.msra.mxu0 %v816_v24 }
  0x46   : > { %764 = vmatmul.mubr.bf16.vlgmr.msra.gmra.mrb[0].mxu0 %v817_v25 }
 0x119   : > { %v497_v27 = vpop.f32.mrb[0].mxu0 }
 0x11a   : > { %v520_v28 = vmul.f32 %v723_v26, %v497_v27  ;;  %v765_v29 = vpop.f32.mrb[1].mxu0 }
 0x11b   : > { %v500_v31 = vpop.f32.mrb[2].mxu0 }
 0x11c   : > { %v521_v32 = vmul.f32 %v723_v26, %v500_v31  ;;  %v766_v33 = vpop.f32.mrb[3].mxu0  ;;  %v529_v34 = vadd.f32 %v724_v30, %v520_v28  ;;  %547 = sbr.rel (!%p920_p6) target bundleno = 299 (0x12b), region = 89 }
 0x11e   : > { %v530_v35 = vadd.f32 %v724_v30, %v521_v32 }
 0x120   : > { %v736_v36 = vpack.c.bf16 %v530_v35, %v529_v34 }
 0x122   : > { %737 = vst [vmem:[%s364_s28] sm:$0xff] %v736_v36  }
 0x129   : > { %v568_v37 = vld [vmem:[%s364_s28] sm:$0xf]  ;;  %v570_v38 = vld [vmem:[%s364_s28 + $0x4] sm:$0xf] }
 0x12a   : > { %569 = vst [vmem:[%s552_s6] sm:$0xf] %v568_v37  ;;  %571 = vst [vmem:[%s552_s6 + $0x8] sm:$0xf] %v570_v38 }
 0x12b PF: > { %s14_s19 = sadd.s32 1, %s856_s19   ;;  %s996_s15 = smov %s844_s16 }
 0x12c   : > { %p11_p12 = scmp.ge.s32.totalorder %s14_s19, 4   ;;  %s997_s16 = smov %s925_s25 }
 0x12d   : > { %s998_s17 = smov %s852_s18  ;;  %s999_s18 = smov %s1001_s20 }
 0x12e   :  { %13 = sbr.rel (!%p11_p12) target bundleno = 3 (0x3), region = 170 }

// kernel: resnet18_forward.36
= control target key start
LH: loop header
LB: loop body
LE: loop exit
PB: predicated region body
PF: predicated region fallthrough
CT: control target
= control target key end

     0   :  { %s1722_s0 = inlined_call_operand.vmem [shape: bf16[16,2304], index: 0, kind: input, shape index: {}]   ;;  %s1723_s1 = inlined_call_operand.vmem [shape: bf16[2304,256], index: 1, kind: input, shape index: {}]   ;;  %s1724_s2 = inlined_call_operand.vmem [shape: f32[1,256], index: 2, kind: input, shape index: {}]   ;;  %s1725_s3 = inlined_call_operand.vmem [shape: f32[1,256], index: 3, kind: input, shape index: {}]   ;;  %s1726_s4 = inlined_call_operand.vmem [shape: bf16[16,256], index: 4, kind: output, shape index: {}]  }
   0x1   :  { %1730 = sst [smem:[#allocation9_spill]] %s1722_s0 }
   0x2   :  { %1731 = sst [smem:[#allocation10_spill]] %s1723_s1 }
   0x3   :  { %s1404_s15 = smov 0   ;;  %s1406_s16 = smov 0  }
   0x4   :  { %s1408_s17 = smov 0   ;;  %s1410_s18 = smov 0  }
   0x5   :  { %s1412_s19 = smov 0   ;;  %s1414_s20 = smov 0  }
   0x6   :  { %s1416_s21 = smov 0   ;;  %s1418_s22 = smov 0  }
   0x7   :  { %s1420_s23 = smov 0   ;;  %s1422_s24 = smov 0  }
   0x8   :  { %s1424_s25 = smov 0  }
   0x9 LB: > { %1732 = sst [smem:[#allocation6_spill]] %s1370_s24  ;;  %s1055_s26 = sadd.s32 4294967295, %s1374_s25   ;;  %s1374_s25 = sphi %s1424_s25, %s14_s25   ;;  %s1370_s24 = sphi %s1422_s24, %s1742_s24   ;;  %s1366_s23 = sphi %s1420_s23, %s1750_s23   ;;  %s1362_s22 = sphi %s1418_s22, %s1740_s22   ;;  %s1358_s21 = sphi %s1416_s21, %s1749_s21   ;;  %s1354_s20 = sphi %s1414_s20, %s1748_s20   ;;  %s1350_s19 = sphi %s1412_s19, %s1747_s19   ;;  %s1346_s18 = sphi %s1410_s18, %s1746_s18   ;;  %s1342_s17 = sphi %s1408_s17, %s1745_s17   ;;  %s1338_s16 = sphi %s1406_s16, %s1744_s16   ;;  %s1334_s15 = sphi %s1404_s15, %s1743_s15  }
   0xa   : > { %s26_s27 = sadd.s32 1, %s1366_s23  ;;  %s29_s28 = sadd.s32 1, %s1370_s24 }
   0xb   : > { %p27_p0 = scmp.ge.s32.totalorder %s26_s27, 6  ;;  %s42_s29 = sadd.s32 1, %s1354_s20 }
   0xc   : > { %p49_p1 = scmp.ne.s32.totalorder %s1354_s20, %s1350_s19  ;;  %p50_p2 = scmp.eq.s32.totalorder %s1374_s25, 0 }
   0xd   : > { %s1752_s27 = smov (%p27_p0, %s26_s27), 0  ;;  %s1754_s28 = smov (!%p27_p0, %s29_s28), %s1370_s24 }
   0xe   : > { %1733 = sst [smem:[#allocation7_spill]] %s1752_s27  ;;  %s38_s30 = ssub.s32 %s1366_s23, %s1752_s27 }
   0xf   : > { %p31_p3 = scmp.ge.s32.totalorder %s1754_s28, 2  ;;  %p40_p4 = scmp.eq.s32.totalorder %s38_s30, 0 }
  0x10   : > { %p1471_p5 = por %p50_p2, %p49_p1  ;;  %s70_s6 = sadd.s32 1, %s1346_s18 }
  0x11   : > { %s1756_s28 = smov (%p31_p3, %s1754_s28), 0  ;;  %p77_p6 = scmp.ne.s32.totalorder %s1346_s18, %s1342_s17 }
  0x12   : > { %1735 = sst [smem:[#allocation8_spill]] %s1756_s28  ;;  %s66_s8 = ssub.s32 %s1370_s24, %s1756_s28 }
  0x13   : > { %s1479_s7 = scalar_select %p40_p4, %s1354_s20, %s42_s29  }
  0x14   : > { %s67_s9 = sor.u32 %s66_s8, %s38_s30  ;;  %p148_p7 = scmp.eq.s32.totalorder %s66_s8, 0 }
  0x15   : > { %p68_p8 = scmp.eq.s32.totalorder %s67_s9, 0  ;;  %p1485_p9 = por %p77_p6, %p50_p2 }
  0x16   : > { %s150_s11 = sadd.s32 1, %s1338_s16  ;;  %p160_p10 = scmp.ne.s32.totalorder %s1338_s16, %s1334_s15 }
  0x17   : > { %s1493_s12 = scalar_select %p68_p8, %s1346_s18, %s70_s6  }
  0x18   : > { %s1496_s13 = scalar_select %p148_p7, %s1338_s16, %s150_s11  }
  0x19   : > { %p161_p11 = scmp.eq.s32.totalorder %s1055_s26, 11  ;;  %p1058_p13 = scmp.ge.s32.totalorder %s1374_s25, 12 }
  0x1b   : > { %p1498_p12 = por %p161_p11, %p160_p10  ;;  %183 = sbr.rel (%p1058_p13) target bundleno = 86 (0x56), region = 16 }
  0x22   : > { %186 = sbr.rel (!%p1471_p5) target bundleno = 45 (0x2d), region = 20  ;;  %s188_s29 = sand.u32 (%p1471_p5), 1, %s1354_s20  }
  0x23   : > { %s1105_s30 = smul.u32 (%p1471_p5), 12, %s1366_s23  ;;  %s1738_s0 = sld [smem:[#allocation9_spill]] (%p1471_p5) }
  0x24   : > { %s1165_s8 = smul.u32 (%p1471_p5), 24, %s188_s29 }
  0x26   : > { %s190_s26 = scalar_lea.vmem (%p1471_p5), [#allocation3], %s1165_s8 }
  0x29   : > { %s196_s11 = scalar_lea.vmem %s1738_s0, %s1105_s30 }
  0x2a   : > { %v211_v0 = vld [vmem:[%s196_s11] sm:$0xff]  ;;  %v213_v1 = vld [vmem:[%s196_s11 + $0x48] sm:$0xff]  ;;  %v1062_v3 = vld [vmem:[%s196_s11 + $0x50] sm:$0xf] }
  0x2b   : > { %v1060_v2 = vld [vmem:[%s196_s11 + $0x8] sm:$0xf]  ;;  %212 = vst [vmem:[%s190_s26] sm:$0xff] %v211_v0  ;;  %214 = vst [vmem:[%s190_s26 + $0xc] sm:$0xff] %v213_v1 }
  0x2c   : > { %1061 = vst [vmem:[%s190_s26 + $0x8] sm:$0xf] %v1060_v2  ;;  %1063 = vst [vmem:[%s190_s26 + $0x14] sm:$0xf] %v1062_v3 }
  0x2d PF: > { %231 = sbr.rel (!%p1485_p9) target bundleno = 86 (0x56), region = 46  ;;  %s233_s5 = sand.u32 (%p1485_p9), 1, %s1346_s18  }
  0x2e   : > { %s1106_s29 = smul.u32 (%p1485_p9), 96, %s1366_s23  ;;  %s1739_s1 = sld [smem:[#allocation10_spill]] (%p1485_p9) }
  0x2f   : > { %s1166_s6 = smul.u32 (%p1485_p9), 192, %s233_s5 }
  0x30   : > { %s238_s30 = sadd.s32 (%p1485_p9), %s1370_s24, %s1106_s29 }
  0x31   : > { %s1065_s9 = sshll.u32 (%p1485_p9), %s238_s30, 2  ;;  %s1523_s10 = scalar_lea.vmem (%p1485_p9), [#allocation4], %s1166_s6 }
  0x34   : > { %s1518_s8 = scalar_lea.vmem %s1739_s1, %s1065_s9 }
  0x35   : > { %v256_v4 = vld [vmem:[%s1518_s8] sm:$0xf]  ;;  %v258_v5 = vld [vmem:[%s1518_s8 + $0x8] sm:$0xf]  ;;  %v260_v6 = vld [vmem:[%s1518_s8 + $0x10] sm:$0xf] }
  0x36   : > { %257 = vst [vmem:[%s1523_s10] sm:$0xf] %v256_v4  ;;  %259 = vst [vmem:[%s1523_s10 + $0x4] sm:$0xf] %v258_v5  ;;  %v262_v7 = vld [vmem:[%s1518_s8 + $0x18] sm:$0xf] }
  0x37   : > { %261 = vst [vmem:[%s1523_s10 + $0x8] sm:$0xf] %v260_v6  ;;  %v264_v8 = vld [vmem:[%s1518_s8 + $0x20] sm:$0xf]  ;;  %v266_v9 = vld [vmem:[%s1518_s8 + $0x28] sm:$0xf] }
  0x38   : > { %263 = vst [vmem:[%s1523_s10 + $0xc] sm:$0xf] %v262_v7  ;;  %265 = vst [vmem:[%s1523_s10 + $0x10] sm:$0xf] %v264_v8  ;;  %v268_v10 = vld [vmem:[%s1518_s8 + $0x30] sm:$0xf] }
  0x39   : > { %267 = vst [vmem:[%s1523_s10 + $0x14] sm:$0xf] %v266_v9  ;;  %v270_v11 = vld [vmem:[%s1518_s8 + $0x38] sm:$0xf]  ;;  %v272_v12 = vld [vmem:[%s1518_s8 + $0x40] sm:$0xf] }
  0x3a   : > { %269 = vst [vmem:[%s1523_s10 + $0x18] sm:$0xf] %v268_v10  ;;  %271 = vst [vmem:[%s1523_s10 + $0x1c] sm:$0xf] %v270_v11  ;;  %v274_v13 = vld [vmem:[%s1518_s8 + $0x48] sm:$0xf] }
  0x3b   : > { %273 = vst [vmem:[%s1523_s10 + $0x20] sm:$0xf] %v272_v12  ;;  %v276_v14 = vld [vmem:[%s1518_s8 + $0x50] sm:$0xf]  ;;  %v278_v15 = vld [vmem:[%s1518_s8 + $0x58] sm:$0xf] }
  0x3c   : > { %275 = vst [vmem:[%s1523_s10 + $0x24] sm:$0xf] %v274_v13  ;;  %277 = vst [vmem:[%s1523_s10 + $0x28] sm:$0xf] %v276_v14  ;;  %v280_v16 = vld [vmem:[%s1518_s8 + $0x60] sm:$0xf] }
  0x3d   : > { %279 = vst [vmem:[%s1523_s10 + $0x2c] sm:$0xf] %v278_v15  ;;  %v282_v17 = vld [vmem:[%s1518_s8 + $0x68] sm:$0xf]  ;;  %v284_v18 = vld [vmem:[%s1518_s8 + $0x70] sm:$0xf] }
  0x3e   : > { %281 = vst [vmem:[%s1523_s10 + $0x30] sm:$0xf] %v280_v16  ;;  %283 = vst [vmem:[%s1523_s10 + $0x34] sm:$0xf] %v282_v17  ;;  %v286_v19 = vld [vmem:[%s1518_s8 + $0x78] sm:$0xf] }
  0x3f   : > { %285 = vst [vmem:[%s1523_s10 + $0x38] sm:$0xf] %v284_v18  ;;  %v288_v20 = vld [vmem:[%s1518_s8 + $0x80] sm:$0xf]  ;;  %v290_v21 = vld [vmem:[%s1518_s8 + $0x88] sm:$0xf] }
  0x40   : > { %287 = vst [vmem:[%s1523_s10 + $0x3c] sm:$0xf] %v286_v19  ;;  %289 = vst [vmem:[%s1523_s10 + $0x40] sm:$0xf] %v288_v20  ;;  %v292_v22 = vld [vmem:[%s1518_s8 + $0x90] sm:$0xf] }
  0x41   : > { %291 = vst [vmem:[%s1523_s10 + $0x44] sm:$0xf] %v290_v21  ;;  %v294_v23 = vld [vmem:[%s1518_s8 + $0x98] sm:$0xf]  ;;  %v296_v24 = vld [vmem:[%s1518_s8 + $0xa0] sm:$0xf] }
  0x42   : > { %293 = vst [vmem:[%s1523_s10 + $0x48] sm:$0xf] %v292_v22  ;;  %295 = vst [vmem:[%s1523_s10 + $0x4c] sm:$0xf] %v294_v23  ;;  %v298_v25 = vld [vmem:[%s1518_s8 + $0xa8] sm:$0xf] }
  0x43   : > { %297 = vst [vmem:[%s1523_s10 + $0x50] sm:$0xf] %v296_v24  ;;  %v300_v26 = vld [vmem:[%s1518_s8 + $0xb0] sm:$0xf]  ;;  %v302_v27 = vld [vmem:[%s1518_s8 + $0xb8] sm:$0xf] }
  0x44   : > { %299 = vst [vmem:[%s1523_s10 + $0x54] sm:$0xf] %v298_v25  ;;  %301 = vst [vmem:[%s1523_s10 + $0x58] sm:$0xf] %v300_v26  ;;  %v304_v28 = vld [vmem:[%s1518_s8 + $0xc0] sm:$0xf] }
  0x45   : > { %303 = vst [vmem:[%s1523_s10 + $0x5c] sm:$0xf] %v302_v27  ;;  %v306_v29 = vld [vmem:[%s1518_s8 + $0xc8] sm:$0xf]  ;;  %v308_v30 = vld [vmem:[%s1518_s8 + $0xd0] sm:$0xf] }
  0x46   : > { %305 = vst [vmem:[%s1523_s10 + $0x60] sm:$0xf] %v304_v28  ;;  %307 = vst [vmem:[%s1523_s10 + $0x64] sm:$0xf] %v306_v29  ;;  %v310_v31 = vld [vmem:[%s1518_s8 + $0xd8] sm:$0xf] }
  0x47   : > { %309 = vst [vmem:[%s1523_s10 + $0x68] sm:$0xf] %v308_v30  ;;  %v312_v32 = vld [vmem:[%s1518_s8 + $0xe0] sm:$0xf]  ;;  %v314_v33 = vld [vmem:[%s1518_s8 + $0xe8] sm:$0xf] }
  0x48   : > { %311 = vst [vmem:[%s1523_s10 + $0x6c] sm:$0xf] %v310_v31  ;;  %313 = vst [vmem:[%s1523_s10 + $0x70] sm:$0xf] %v312_v32  ;;  %v316_v34 = vld [vmem:[%s1518_s8 + $0xf0] sm:$0xf] }
  0x49   : > { %315 = vst [vmem:[%s1523_s10 + $0x74] sm:$0xf] %v314_v33  ;;  %v318_v35 = vld [vmem:[%s1518_s8 + $0xf8] sm:$0xf]  ;;  %v320_v36 = vld [vmem:[%s1518_s8 + $0x100] sm:$0xf] }
  0x4a   : > { %317 = vst [vmem:[%s1523_s10 + $0x78] sm:$0xf] %v316_v34  ;;  %319 = vst [vmem:[%s1523_s10 + $0x7c] sm:$0xf] %v318_v35  ;;  %v322_v37 = vld [vmem:[%s1518_s8 + $0x108] sm:$0xf] }
  0x4b   : > { %321 = vst [vmem:[%s1523_s10 + $0x80] sm:$0xf] %v320_v36  ;;  %v324_v38 = vld [vmem:[%s1518_s8 + $0x110] sm:$0xf]  ;;  %v326_v39 = vld [vmem:[%s1518_s8 + $0x118] sm:$0xf] }
  0x4c   : > { %323 = vst [vmem:[%s1523_s10 + $0x84] sm:$0xf] %v322_v37  ;;  %325 = vst [vmem:[%s1523_s10 + $0x88] sm:$0xf] %v324_v38  ;;  %v328_v40 = vld [vmem:[%s1518_s8 + $0x120] sm:$0xf] }
  0x4d   : > { %327 = vst [vmem:[%s1523_s10 + $0x8c] sm:$0xf] %v326_v39  ;;  %v330_v41 = vld [vmem:[%s1518_s8 + $0x128] sm:$0xf]  ;;  %v332_v42 = vld [vmem:[%s1518_s8 + $0x130] sm:$0xf] }
  0x4e   : > { %329 = vst [vmem:[%s1523_s10 + $0x90] sm:$0xf] %v328_v40  ;;  %331 = vst [vmem:[%s1523_s10 + $0x94] sm:$0xf] %v330_v41  ;;  %v334_v43 = vld [vmem:[%s1518_s8 + $0x138] sm:$0xf] }
  0x4f   : > { %333 = vst [vmem:[%s1523_s10 + $0x98] sm:$0xf] %v332_v42  ;;  %v336_v44 = vld [vmem:[%s1518_s8 + $0x140] sm:$0xf]  ;;  %v338_v45 = vld [vmem:[%s1518_s8 + $0x148] sm:$0xf] }
  0x50   : > { %335 = vst [vmem:[%s1523_s10 + $0x9c] sm:$0xf] %v334_v43  ;;  %337 = vst [vmem:[%s1523_s10 + $0xa0] sm:$0xf] %v336_v44  ;;  %v340_v46 = vld [vmem:[%s1518_s8 + $0x150] sm:$0xf] }
  0x51   : > { %339 = vst [vmem:[%s1523_s10 + $0xa4] sm:$0xf] %v338_v45  ;;  %v342_v47 = vld [vmem:[%s1518_s8 + $0x158] sm:$0xf]  ;;  %v344_v48 = vld [vmem:[%s1518_s8 + $0x160] sm:$0xf] }
  0x52   : > { %341 = vst [vmem:[%s1523_s10 + $0xa8] sm:$0xf] %v340_v46  ;;  %343 = vst [vmem:[%s1523_s10 + $0xac] sm:$0xf] %v342_v47  ;;  %v346_v49 = vld [vmem:[%s1518_s8 + $0x168] sm:$0xf] }
  0x53   : > { %345 = vst [vmem:[%s1523_s10 + $0xb0] sm:$0xf] %v344_v48  ;;  %v348_v50 = vld [vmem:[%s1518_s8 + $0x170] sm:$0xf]  ;;  %v350_v51 = vld [vmem:[%s1518_s8 + $0x178] sm:$0xf] }
  0x54   : > { %347 = vst [vmem:[%s1523_s10 + $0xb4] sm:$0xf] %v346_v49  ;;  %349 = vst [vmem:[%s1523_s10 + $0xb8] sm:$0xf] %v348_v50 }
  0x55   : > { %351 = vst [vmem:[%s1523_s10 + $0xbc] sm:$0xf] %v350_v51 }
  0x56 PF: > { %p1066_p0 = scmp.ge.s32.totalorder %s1374_s25, 1  ;;  %p481_p1 = scmp.lt.s32.totalorder %s1374_s25, 13 }
  0x58   : > { %p482_p2 = pnand %p1066_p0, %p481_p1 }
  0x59   : > { %s488_s0 = sand.u32 (!%p482_p2), 1, %s1350_s19   ;;  %s495_s28 = sand.u32 (!%p482_p2), 1, %s1342_s17  }
  0x5a   : > { %485 = sbr.rel (%p482_p2) target bundleno = 384 (0x180), region = 95  ;;  %s526_s26 = sand.u32 (!%p482_p2), 1, %s1334_s15  }
  0x5b   : > { %s1167_s11 = smul.u32 (!%p482_p2), 24, %s488_s0  ;;  %s1067_s29 = sshll.u32 (!%p482_p2), %s526_s26, 3 }
  0x5c   : > { %s1168_s5 = smul.u32 (!%p482_p2), 192, %s495_s28  ;;  %p532_p3 = scmp.lt.s32.totalorder (!%p482_p2), %s1362_s22, 1 }
  0x5d   : > { %s1635_s24 = scalar_lea.vmem (!%p482_p2), [#allocation3], %s1167_s11  ;;  %s1639_s15 = scalar_lea.vmem (!%p482_p2), [#allocation5], %s1067_s29 }
  0x5e   : > { %s1637_s17 = scalar_lea.vmem (!%p482_p2), [#allocation4], %s1168_s5  ;;  %p1068_p4 = scmp.ne.s32.totalorder (!%p482_p2), %s1358_s21, 0 }
  0x61   : > { %s1625_s6 = scalar_select %p532_p3, %s1362_s22, 1 }
  0x62   : > { %543 = sbr.rel (%p1068_p4) target bundleno = 105 (0x69), region = 107  ;;  %v1376_v52 = vmov (!%p1068_p4), 0.0  }
  0x63   : > { %s534_s8 = scalar_lea.vmem %s1724_s2, %s1625_s6  ;;  %s537_s27 = scalar_lea.vmem %s1725_s3, %s1625_s6  ;;  %544 = vst [vmem:[#allocation2] sm:$0xff] (!%p1068_p4), %v1376_v52  ;;  %545 = vst [vmem:[#allocation2 + $0x8] sm:$0xff] (!%p1068_p4), %v1376_v52 }
  0x69 PF: > { %v1260_v53 = vld [vmem:[%s1637_s17 + $0x40] sm:$0xff]   ;;  %v1377_v54 = vmov 0.0   ;;  %vm1378_vm0 = vmmov 0   ;;  %v1263_v57 = vld [vmem:[%s1637_s17 + $0x48] sm:$0xff]   ;;  %v1266_v60 = vld [vmem:[%s1637_s17 + $0x50] sm:$0xff]   ;;  %p1096_p5 = scmp.ne.s32.totalorder %s1358_s21, 5 }
  0x6a   : > { %1145 = vmatprep.subr.bf16.mxu1 %v1377_v54  ;;  %v1261_v55 = vld [vmem:[%s1637_s17] sm:$0xff]   ;;  %1114 = vmatprep.subr.bf16.mxu0 %v1260_v53  ;;  %v1264_v58 = vld [vmem:[%s1637_s17 + $0x8] sm:$0xff]   ;;  %v1267_v61 = vld [vmem:[%s1637_s17 + $0x10] sm:$0xff]  }
  0x6b   : > { %v1262_v56 = vld [vmem:[%s1637_s17 + $0x80] sm:$0xff]   ;;  %1161 = vmatprep.mubr.msk.bf16.mxu1 %vm1378_vm0, %v1377_v54  ;;  %1115 = vmatpush3.bf16.msra.mxu0 %v1261_v55  ;;  %v1265_v59 = vld [vmem:[%s1637_s17 + $0x88] sm:$0xff]   ;;  %v1268_v62 = vld [vmem:[%s1637_s17 + $0x90] sm:$0xff]  }
  0x6c   : > { %1146 = vmatpush3.bf16.msra.mxu1 %v1262_v56  ;;  %1116 = vmatprep.subr.bf16.mxu0 %v1263_v57  ;;  %v1269_v63 = vld [vmem:[%s1637_s17 + $0x58] sm:$0xff]   ;;  %v1272_v2 = vld [vmem:[%s1637_s17 + $0x60] sm:$0xff]   ;;  %v1275_v5 = vld [vmem:[%s1637_s17 + $0x68] sm:$0xff]  }
  0x6d   : > { %1147 = vmatprep.subr.bf16.mxu1 %v1377_v54  ;;  %v1270_v0 = vld [vmem:[%s1637_s17 + $0x18] sm:$0xff]   ;;  %v1273_v3 = vld [vmem:[%s1637_s17 + $0x20] sm:$0xff]   ;;  %v1276_v6 = vld [vmem:[%s1637_s17 + $0x28] sm:$0xff]  }
  0x6e   : > { %v1271_v1 = vld [vmem:[%s1637_s17 + $0x98] sm:$0xff]   ;;  %v1274_v4 = vld [vmem:[%s1637_s17 + $0xa0] sm:$0xff]   ;;  %v1277_v7 = vld [vmem:[%s1637_s17 + $0xa8] sm:$0xff]  }
  0x6f   : > { %1117 = vmatpush3.bf16.msra.mxu0 %v1264_v58  ;;  %v1278_v8 = vld [vmem:[%s1637_s17 + $0x70] sm:$0xff]   ;;  %v1281_v11 = vld [vmem:[%s1637_s17 + $0x78] sm:$0xff]   ;;  %v546_v23 = vld [vmem:[#allocation2] sm:$0xff] }
  0x70   : > { %1148 = vmatpush3.bf16.msra.mxu1 %v1265_v59  ;;  %1118 = vmatprep.subr.bf16.mxu0 %v1266_v60  ;;  %v1279_v9 = vld [vmem:[%s1637_s17 + $0x30] sm:$0xff]   ;;  %v1282_v13 = vld [vmem:[%s1637_s17 + $0x38] sm:$0xff]   ;;  %v547_v29 = vld [vmem:[#allocation2 + $0x8] sm:$0xff] }
  0x71   : > { %1149 = vmatprep.subr.bf16.mxu1 %v1377_v54  ;;  %v1280_v10 = vld [vmem:[%s1637_s17 + $0xb0] sm:$0xff]   ;;  %v1283_v14 = vld [vmem:[%s1637_s17 + $0xb8] sm:$0xff]   ;;  %v1097_v35 = vld [vmem:[%s534_s8] ss:$0 sm:$0xff] (!%p1096_p5) }
  0x72   : > { %v1286_v12 = vld [vmem:[%s1635_s24 + $0x4] ss:$12 sps:$4 sm:$0xff]   ;;  %v1284_v15 = vld [vmem:[%s1635_s24] ss:$12 sps:$4 sm:$0xff]   ;;  %v1287_v16 = vld [vmem:[%s1635_s24 + $0x8] ss:$12 sps:$4 sm:$0xff]  }
  0x73   : > { %1119 = vmatpush3.bf16.msra.mxu0 %v1267_v61  ;;  %792 = vmatprep.mubr.bf16.mxu0 %v1286_v12  ;;  %v1098_v38 = vld [vmem:[%s537_s27] ss:$0 sm:$0xff] (!%p1096_p5) }
  0x74   : > { %1150 = vmatpush3.bf16.msra.mxu1 %v1268_v62  ;;  %1120 = vmatprep.subr.bf16.mxu0 %v1269_v63 }
  0x75   : > { %1151 = vmatprep.subr.bf16.mxu1 %v1377_v54 }
  0x77   : > { %1121 = vmatpush3.bf16.msra.mxu0 %v1270_v0 }
  0x78   : > { %1152 = vmatpush3.bf16.msra.mxu1 %v1271_v1  ;;  %1122 = vmatprep.subr.bf16.mxu0 %v1272_v2 }
  0x79   : > { %1153 = vmatprep.subr.bf16.mxu1 %v1377_v54 }
  0x7b   : > { %1123 = vmatpush3.bf16.msra.mxu0 %v1273_v3 }
  0x7c   : > { %1154 = vmatpush3.bf16.msra.mxu1 %v1274_v4  ;;  %1124 = vmatprep.subr.bf16.mxu0 %v1275_v5 }
  0x7d   : > { %1155 = vmatprep.subr.bf16.mxu1 %v1377_v54 }
  0x7f   : > { %1125 = vmatpush3.bf16.msra.mxu0 %v1276_v6 }
  0x80   : > { %1156 = vmatpush3.bf16.msra.mxu1 %v1277_v7  ;;  %1126 = vmatprep.subr.bf16.mxu0 %v1278_v8 }
  0x81   : > { %1157 = vmatprep.subr.bf16.mxu1 %v1377_v54 }
  0x83   : > { %1127 = vmatpush3.bf16.msra.mxu0 %v1279_v9 }
  0x84   : > { %1158 = vmatpush3.bf16.msra.mxu1 %v1280_v10  ;;  %1128 = vmatprep.subr.bf16.mxu0 %v1281_v11 }
  0x85   : > { %1159 = vmatprep.subr.bf16.mxu1 %v1377_v54 }
  0x87   : > { %1129 = vmatpush3.bf16.msra.mxu0 %v1282_v13 }
  0x88   : > { %1160 = vmatpush3.bf16.msra.mxu1 %v1283_v14 }
  0x8a   : > { %793 = vmatmul.mubr.bf16.vlgmr.msra.gmra.mrb[0].mxu0 %v1284_v15 }
  0x8b   : > { %1162 = vmatmul.mubr.bf16.vlgmr.msra.gmra.mrb[0].mxu1 %v1287_v16 }
 0x15d   : > { %v1130_v17 = vpop.f32.mrb[0].mxu0 }
 0x15e   : > { %v835_v18 = vpop.f32.mrb[0].mxu1  ;;  %v1131_v19 = vpop.f32.mrb[1].mxu0 }
 0x15f   : > { %v1132_v20 = vadd.f32 %v1131_v19, %v1130_v17  ;;  %v1163_v21 = vpop.f32.mrb[1].mxu1  ;;  %v1133_v22 = vpop.f32.mrb[2].mxu0 }
 0x160   : > { %v838_v24 = vpop.f32.mrb[2].mxu1  ;;  %v1134_v25 = vpop.f32.mrb[3].mxu0 }
 0x161   : > { %v836_v26 = vadd.f32 %v1132_v20, %v835_v18  ;;  %v1135_v27 = vadd.f32 %v1134_v25, %v1133_v22  ;;  %v1164_v28 = vpop.f32.mrb[3].mxu1  ;;  %849 = sbr.rel (%p1096_p5) target bundleno = 376 (0x178), region = 111 }
 0x163   : > { %v842_v30 = vadd.f32 %v836_v26, %v546_v23  ;;  %v839_v31 = vadd.f32 %v1135_v27, %v838_v24 }
 0x165   : > { %844 = vst [vmem:[#allocation2] sm:$0xff] %v842_v30  ;;  %v843_v32 = vadd.f32 %v839_v31, %v547_v29 }
 0x167   : > { %845 = vst [vmem:[#allocation2 + $0x8] sm:$0xff] %v843_v32 }
 0x16c   : > { %v850_v33 = vld [vmem:[#allocation2] sm:$0xff] }
 0x16d   : > { %v859_v36 = vmul.f32 %v1097_v35, %v850_v33 }
 0x16e   : > { %v851_v34 = vld [vmem:[#allocation2 + $0x8] sm:$0xff] }
 0x16f   : > { %v860_v37 = vmul.f32 %v1097_v35, %v851_v34  ;;  %v868_v39 = vadd.f32 %v1098_v38, %v859_v36 }
 0x171   : > { %v869_v40 = vadd.f32 %v1098_v38, %v860_v37  ;;  %v870_v41 = vmax.f32 %v868_v39, 0.0 }
 0x173   : > { %v871_v42 = vmax.f32 %v869_v40, 0.0 }
 0x175   : > { %v1112_v43 = vpack.c.bf16 %v871_v42, %v870_v41 }
 0x177   : > { %1113 = vst [vmem:[%s1639_s15] sm:$0xff] %v1112_v43  }
 0x178 PF: > { %888 = sbr.rel (!%p1498_p12) target bundleno = 384 (0x180), region = 115  ;;  %s1102_s21 = sshll.u32 (%p1498_p12), %s1362_s22, 2 }
 0x179   : > { %s893_s27 = scalar_lea.vmem (%p1498_p12), %s1726_s4, %s1102_s21 }
 0x17e   : > { %v909_v44 = vld [vmem:[%s1639_s15] sm:$0xf] (%p1498_p12)  ;;  %v911_v45 = vld [vmem:[%s1639_s15 + $0x4] sm:$0xf] (%p1498_p12) }
 0x17f   : > { %910 = vst [vmem:[%s893_s27] sm:$0xf] %v909_v44  ;;  %912 = vst [vmem:[%s893_s27 + $0x8] sm:$0xf] %v911_v45 }
 0x180 PF: > { %s14_s25 = sadd.s32 1, %s1374_s25   ;;  %s1740_s22 = sld [smem:[#allocation6_spill]] }
 0x181   : > { %p11_p6 = scmp.ge.s32.totalorder %s14_s25, 14   ;;  %s1741_s14 = sld [smem:[#allocation7_spill]] }
 0x182   : > { %s1742_s24 = sld [smem:[#allocation8_spill]]  ;;  %s1743_s15 = smov %s1338_s16 }
 0x183   : > { %s1744_s16 = smov %s1496_s13  ;;  %s1745_s17 = smov %s1346_s18 }
 0x184   : > { %s1746_s18 = smov %s1493_s12  ;;  %s1747_s19 = smov %s1354_s20 }
 0x185   : > { %s1748_s20 = smov %s1479_s7  ;;  %s1749_s21 = smov %s1366_s23 }
 0x186   :  { %13 = sbr.rel (!%p11_p6) target bundleno = 9 (0x9), region = 207 }
 0x187   : > { %s1750_s23 = smov %s1741_s14 }

// kernel: resnet18_forward.35
= control target key start
LH: loop header
LB: loop body
LE: loop exit
PB: predicated region body
PF: predicated region fallthrough
CT: control target
= control target key end

     0   :  { %s1881_s0 = inlined_call_operand.vmem [shape: bf16[16,2304], index: 0, kind: input, shape index: {}]   ;;  %s1882_s1 = inlined_call_operand.vmem [shape: bf16[2304,256], index: 1, kind: input, shape index: {}]   ;;  %s1883_s2 = inlined_call_operand.vmem [shape: f32[1,256], index: 2, kind: input, shape index: {}]   ;;  %s1884_s3 = inlined_call_operand.vmem [shape: f32[1,256], index: 3, kind: input, shape index: {}]   ;;  %s1885_s4 = inlined_call_operand.vmem [shape: bf16[16,256], index: 4, kind: input, shape index: {}]   ;;  %s1886_s5 = inlined_call_operand.vmem [shape: bf16[16,256], index: 5, kind: output, shape index: {}]  }
   0x1   :  { %1889 = sst [smem:[#allocation10_spill]] %s1881_s0 }
   0x2   :  { %s1540_s18 = smov 0   ;;  %s1542_s19 = smov 0  }
   0x3   :  { %s1544_s20 = smov 0   ;;  %s1546_s21 = smov 0  }
   0x4   :  { %s1548_s22 = smov 0   ;;  %s1550_s23 = smov 0  }
   0x5   :  { %s1552_s24 = smov 0   ;;  %s1554_s25 = smov 0  }
   0x6   :  { %s1556_s26 = smov 0   ;;  %s1558_s27 = smov 0  }
   0x7   :  { %s1560_s28 = smov 0  }
   0x8 LB: > { %s1179_s29 = sadd.s32 4294967295, %s1505_s28   ;;  %s27_s30 = sadd.s32 1, %s1497_s26  ;;  %s1505_s28 = sphi %s1560_s28, %s15_s28   ;;  %s1501_s27 = sphi %s1558_s27, %s1910_s27   ;;  %s1497_s26 = sphi %s1556_s26, %s1909_s26   ;;  %s1493_s25 = sphi %s1554_s25, %s1908_s25   ;;  %s1489_s24 = sphi %s1552_s24, %s1907_s24   ;;  %s1485_s23 = sphi %s1550_s23, %s1906_s23   ;;  %s1481_s22 = sphi %s1548_s22, %s1905_s22   ;;  %s1477_s21 = sphi %s1546_s21, %s1904_s21   ;;  %s1473_s20 = sphi %s1544_s20, %s1903_s20   ;;  %s1469_s19 = sphi %s1542_s19, %s1902_s19   ;;  %s1465_s18 = sphi %s1540_s18, %s1901_s18  }
   0x9   : > { %p28_p0 = scmp.ge.s32.totalorder %s27_s30, 6  ;;  %s30_s6 = sadd.s32 1, %s1501_s27 }
   0xa   : > { %s43_s7 = sadd.s32 1, %s1485_s23  ;;  %p50_p1 = scmp.ne.s32.totalorder %s1485_s23, %s1481_s22 }
   0xb   : > { %s1912_s30 = smov (%p28_p0, %s27_s30), 0  ;;  %s1914_s6 = smov (!%p28_p0, %s30_s6), %s1501_s27 }
   0xc   : > { %1890 = sst [smem:[#allocation7_spill]] %s1912_s30  ;;  %s39_s8 = ssub.s32 %s1497_s26, %s1912_s30 }
   0xd   : > { %p51_p2 = scmp.eq.s32.totalorder %s1505_s28, 0  ;;  %p32_p3 = scmp.ge.s32.totalorder %s1914_s6, 2 }
   0xe   : > { %p41_p4 = scmp.eq.s32.totalorder %s39_s8, 0  ;;  %s71_s10 = sadd.s32 1, %s1477_s21 }
   0xf   : > { %p1609_p5 = por %p51_p2, %p50_p1  ;;  %s1916_s6 = smov (%p32_p3, %s1914_s6), 0 }
  0x10   : > { %1892 = sst [smem:[#allocation8_spill]] %s1916_s6  ;;  %s67_s12 = ssub.s32 %s1501_s27, %s1916_s6 }
  0x11   : > { %s1617_s11 = scalar_select %p41_p4, %s1485_s23, %s43_s7  }
  0x12   : > { %p78_p6 = scmp.ne.s32.totalorder %s1477_s21, %s1473_s20  ;;  %s68_s13 = sor.u32 %s67_s12, %s39_s8 }
  0x13   : > { %1893 = sst [smem:[#allocation9_spill]] %s1617_s11  ;;  %p149_p7 = scmp.eq.s32.totalorder %s67_s12, 0 }
  0x14   : > { %p69_p8 = scmp.eq.s32.totalorder %s68_s13, 0  ;;  %p1625_p9 = por %p78_p6, %p51_p2 }
  0x15   : > { %s151_s15 = sadd.s32 1, %s1469_s19  ;;  %p158_p10 = scmp.ne.s32.totalorder %s1469_s19, %s1465_s18 }
  0x16   : > { %s1633_s16 = scalar_select %p69_p8, %s1477_s21, %s71_s10  }
  0x17   : > { %s1636_s17 = scalar_select %p149_p7, %s1469_s19, %s151_s15  }
  0x18   : > { %p1640_p11 = por %p158_p10, %p51_p2  ;;  %p190_p12 = scmp.eq.s32.totalorder %s1179_s29, 11 }
  0x19   : > { %p1182_p0 = scmp.ge.s32.totalorder %s1505_s28, 12 }
  0x1a   : > { %p1644_p13 = por %p190_p12, %p158_p10 }
  0x1b   : > { %212 = sbr.rel (%p1182_p0) target bundleno = 91 (0x5b), region = 16 }
  0x22   : > { %215 = sbr.rel (!%p1609_p5) target bundleno = 45 (0x2d), region = 20  ;;  %s217_s10 = sand.u32 (%p1609_p5), 1, %s1485_s23  }
  0x23   : > { %s1232_s12 = smul.u32 (%p1609_p5), 12, %s1497_s26  ;;  %s1897_s0 = sld [smem:[#allocation10_spill]] (%p1609_p5) }
  0x24   : > { %s1296_s13 = smul.u32 (%p1609_p5), 24, %s217_s10 }
  0x26   : > { %s219_s29 = scalar_lea.vmem (%p1609_p5), [#allocation3], %s1296_s13 }
  0x29   : > { %s225_s30 = scalar_lea.vmem %s1897_s0, %s1232_s12 }
  0x2a   : > { %v240_v0 = vld [vmem:[%s225_s30] sm:$0xff]  ;;  %v242_v1 = vld [vmem:[%s225_s30 + $0x48] sm:$0xff]  ;;  %v1186_v3 = vld [vmem:[%s225_s30 + $0x50] sm:$0xf] }
  0x2b   : > { %v1184_v2 = vld [vmem:[%s225_s30 + $0x8] sm:$0xf]  ;;  %241 = vst [vmem:[%s219_s29] sm:$0xff] %v240_v0  ;;  %243 = vst [vmem:[%s219_s29 + $0xc] sm:$0xff] %v242_v1 }
  0x2c   : > { %1185 = vst [vmem:[%s219_s29 + $0x8] sm:$0xf] %v1184_v2  ;;  %1187 = vst [vmem:[%s219_s29 + $0x14] sm:$0xf] %v1186_v3 }
  0x2d PF: > { %260 = sbr.rel (!%p1625_p9) target bundleno = 84 (0x54), region = 46  ;;  %s262_s9 = sand.u32 (%p1625_p9), 1, %s1477_s21  }
  0x2e   : > { %s1233_s10 = smul.u32 (%p1625_p9), 96, %s1497_s26 }
  0x2f   : > { %s1297_s6 = smul.u32 (%p1625_p9), 192, %s262_s9 }
  0x30   : > { %s267_s12 = sadd.s32 (%p1625_p9), %s1501_s27, %s1233_s10 }
  0x31   : > { %s1189_s15 = sshll.u32 (%p1625_p9), %s267_s12, 2  ;;  %s1669_s30 = scalar_lea.vmem (%p1625_p9), [#allocation4], %s1297_s6 }
  0x32   : > { %s1664_s13 = scalar_lea.vmem (%p1625_p9), %s1882_s1, %s1189_s15 }
  0x33   : > { %v285_v4 = vld [vmem:[%s1664_s13] sm:$0xf] (%p1625_p9)  ;;  %v287_v5 = vld [vmem:[%s1664_s13 + $0x8] sm:$0xf] (%p1625_p9)  ;;  %v289_v6 = vld [vmem:[%s1664_s13 + $0x10] sm:$0xf] (%p1625_p9) }
  0x34   : > { %286 = vst [vmem:[%s1669_s30] sm:$0xf] %v285_v4  ;;  %288 = vst [vmem:[%s1669_s30 + $0x4] sm:$0xf] %v287_v5  ;;  %v291_v7 = vld [vmem:[%s1664_s13 + $0x18] sm:$0xf] }
  0x35   : > { %290 = vst [vmem:[%s1669_s30 + $0x8] sm:$0xf] %v289_v6  ;;  %v293_v8 = vld [vmem:[%s1664_s13 + $0x20] sm:$0xf]  ;;  %v295_v9 = vld [vmem:[%s1664_s13 + $0x28] sm:$0xf] }
  0x36   : > { %292 = vst [vmem:[%s1669_s30 + $0xc] sm:$0xf] %v291_v7  ;;  %294 = vst [vmem:[%s1669_s30 + $0x10] sm:$0xf] %v293_v8  ;;  %v297_v10 = vld [vmem:[%s1664_s13 + $0x30] sm:$0xf] }
  0x37   : > { %296 = vst [vmem:[%s1669_s30 + $0x14] sm:$0xf] %v295_v9  ;;  %v299_v11 = vld [vmem:[%s1664_s13 + $0x38] sm:$0xf]  ;;  %v301_v12 = vld [vmem:[%s1664_s13 + $0x40] sm:$0xf] }
  0x38   : > { %298 = vst [vmem:[%s1669_s30 + $0x18] sm:$0xf] %v297_v10  ;;  %300 = vst [vmem:[%s1669_s30 + $0x1c] sm:$0xf] %v299_v11  ;;  %v303_v13 = vld [vmem:[%s1664_s13 + $0x48] sm:$0xf] }
  0x39   : > { %302 = vst [vmem:[%s1669_s30 + $0x20] sm:$0xf] %v301_v12  ;;  %v305_v14 = vld [vmem:[%s1664_s13 + $0x50] sm:$0xf]  ;;  %v307_v15 = vld [vmem:[%s1664_s13 + $0x58] sm:$0xf] }
  0x3a   : > { %304 = vst [vmem:[%s1669_s30 + $0x24] sm:$0xf] %v303_v13  ;;  %306 = vst [vmem:[%s1669_s30 + $0x28] sm:$0xf] %v305_v14  ;;  %v309_v16 = vld [vmem:[%s1664_s13 + $0x60] sm:$0xf] }
  0x3b   : > { %308 = vst [vmem:[%s1669_s30 + $0x2c] sm:$0xf] %v307_v15  ;;  %v311_v17 = vld [vmem:[%s1664_s13 + $0x68] sm:$0xf]  ;;  %v313_v18 = vld [vmem:[%s1664_s13 + $0x70] sm:$0xf] }
  0x3c   : > { %310 = vst [vmem:[%s1669_s30 + $0x30] sm:$0xf] %v309_v16  ;;  %312 = vst [vmem:[%s1669_s30 + $0x34] sm:$0xf] %v311_v17  ;;  %v315_v19 = vld [vmem:[%s1664_s13 + $0x78] sm:$0xf] }
  0x3d   : > { %314 = vst [vmem:[%s1669_s30 + $0x38] sm:$0xf] %v313_v18  ;;  %v317_v20 = vld [vmem:[%s1664_s13 + $0x80] sm:$0xf]  ;;  %v319_v21 = vld [vmem:[%s1664_s13 + $0x88] sm:$0xf] }
  0x3e   : > { %316 = vst [vmem:[%s1669_s30 + $0x3c] sm:$0xf] %v315_v19  ;;  %318 = vst [vmem:[%s1669_s30 + $0x40] sm:$0xf] %v317_v20  ;;  %v321_v22 = vld [vmem:[%s1664_s13 + $0x90] sm:$0xf] }
  0x3f   : > { %320 = vst [vmem:[%s1669_s30 + $0x44] sm:$0xf] %v319_v21  ;;  %v323_v23 = vld [vmem:[%s1664_s13 + $0x98] sm:$0xf]  ;;  %v325_v24 = vld [vmem:[%s1664_s13 + $0xa0] sm:$0xf] }
  0x40   : > { %322 = vst [vmem:[%s1669_s30 + $0x48] sm:$0xf] %v321_v22  ;;  %324 = vst [vmem:[%s1669_s30 + $0x4c] sm:$0xf] %v323_v23  ;;  %v327_v25 = vld [vmem:[%s1664_s13 + $0xa8] sm:$0xf] }
  0x41   : > { %326 = vst [vmem:[%s1669_s30 + $0x50] sm:$0xf] %v325_v24  ;;  %v329_v26 = vld [vmem:[%s1664_s13 + $0xb0] sm:$0xf]  ;;  %v331_v27 = vld [vmem:[%s1664_s13 + $0xb8] sm:$0xf] }
  0x42   : > { %328 = vst [vmem:[%s1669_s30 + $0x54] sm:$0xf] %v327_v25  ;;  %330 = vst [vmem:[%s1669_s30 + $0x58] sm:$0xf] %v329_v26  ;;  %v333_v28 = vld [vmem:[%s1664_s13 + $0xc0] sm:$0xf] }
  0x43   : > { %332 = vst [vmem:[%s1669_s30 + $0x5c] sm:$0xf] %v331_v27  ;;  %v335_v29 = vld [vmem:[%s1664_s13 + $0xc8] sm:$0xf]  ;;  %v337_v30 = vld [vmem:[%s1664_s13 + $0xd0] sm:$0xf] }
  0x44   : > { %334 = vst [vmem:[%s1669_s30 + $0x60] sm:$0xf] %v333_v28  ;;  %336 = vst [vmem:[%s1669_s30 + $0x64] sm:$0xf] %v335_v29  ;;  %v339_v31 = vld [vmem:[%s1664_s13 + $0xd8] sm:$0xf] }
  0x45   : > { %338 = vst [vmem:[%s1669_s30 + $0x68] sm:$0xf] %v337_v30  ;;  %v341_v32 = vld [vmem:[%s1664_s13 + $0xe0] sm:$0xf]  ;;  %v343_v33 = vld [vmem:[%s1664_s13 + $0xe8] sm:$0xf] }
  0x46   : > { %340 = vst [vmem:[%s1669_s30 + $0x6c] sm:$0xf] %v339_v31  ;;  %342 = vst [vmem:[%s1669_s30 + $0x70] sm:$0xf] %v341_v32  ;;  %v345_v34 = vld [vmem:[%s1664_s13 + $0xf0] sm:$0xf] }
  0x47   : > { %344 = vst [vmem:[%s1669_s30 + $0x74] sm:$0xf] %v343_v33  ;;  %v347_v35 = vld [vmem:[%s1664_s13 + $0xf8] sm:$0xf]  ;;  %v349_v36 = vld [vmem:[%s1664_s13 + $0x100] sm:$0xf] }
  0x48   : > { %346 = vst [vmem:[%s1669_s30 + $0x78] sm:$0xf] %v345_v34  ;;  %348 = vst [vmem:[%s1669_s30 + $0x7c] sm:$0xf] %v347_v35  ;;  %v351_v37 = vld [vmem:[%s1664_s13 + $0x108] sm:$0xf] }
  0x49   : > { %350 = vst [vmem:[%s1669_s30 + $0x80] sm:$0xf] %v349_v36  ;;  %v353_v38 = vld [vmem:[%s1664_s13 + $0x110] sm:$0xf]  ;;  %v355_v39 = vld [vmem:[%s1664_s13 + $0x118] sm:$0xf] }
  0x4a   : > { %352 = vst [vmem:[%s1669_s30 + $0x84] sm:$0xf] %v351_v37  ;;  %354 = vst [vmem:[%s1669_s30 + $0x88] sm:$0xf] %v353_v38  ;;  %v357_v40 = vld [vmem:[%s1664_s13 + $0x120] sm:$0xf] }
  0x4b   : > { %356 = vst [vmem:[%s1669_s30 + $0x8c] sm:$0xf] %v355_v39  ;;  %v359_v41 = vld [vmem:[%s1664_s13 + $0x128] sm:$0xf]  ;;  %v361_v42 = vld [vmem:[%s1664_s13 + $0x130] sm:$0xf] }
  0x4c   : > { %358 = vst [vmem:[%s1669_s30 + $0x90] sm:$0xf] %v357_v40  ;;  %360 = vst [vmem:[%s1669_s30 + $0x94] sm:$0xf] %v359_v41  ;;  %v363_v43 = vld [vmem:[%s1664_s13 + $0x138] sm:$0xf] }
  0x4d   : > { %362 = vst [vmem:[%s1669_s30 + $0x98] sm:$0xf] %v361_v42  ;;  %v365_v44 = vld [vmem:[%s1664_s13 + $0x140] sm:$0xf]  ;;  %v367_v45 = vld [vmem:[%s1664_s13 + $0x148] sm:$0xf] }
  0x4e   : > { %364 = vst [vmem:[%s1669_s30 + $0x9c] sm:$0xf] %v363_v43  ;;  %366 = vst [vmem:[%s1669_s30 + $0xa0] sm:$0xf] %v365_v44  ;;  %v369_v46 = vld [vmem:[%s1664_s13 + $0x150] sm:$0xf] }
  0x4f   : > { %368 = vst [vmem:[%s1669_s30 + $0xa4] sm:$0xf] %v367_v45  ;;  %v371_v47 = vld [vmem:[%s1664_s13 + $0x158] sm:$0xf]  ;;  %v373_v48 = vld [vmem:[%s1664_s13 + $0x160] sm:$0xf] }
  0x50   : > { %370 = vst [vmem:[%s1669_s30 + $0xa8] sm:$0xf] %v369_v46  ;;  %372 = vst [vmem:[%s1669_s30 + $0xac] sm:$0xf] %v371_v47  ;;  %v375_v49 = vld [vmem:[%s1664_s13 + $0x168] sm:$0xf] }
  0x51   : > { %374 = vst [vmem:[%s1669_s30 + $0xb0] sm:$0xf] %v373_v48  ;;  %v377_v50 = vld [vmem:[%s1664_s13 + $0x170] sm:$0xf]  ;;  %v379_v51 = vld [vmem:[%s1664_s13 + $0x178] sm:$0xf] }
  0x52   : > { %376 = vst [vmem:[%s1669_s30 + $0xb4] sm:$0xf] %v375_v49  ;;  %378 = vst [vmem:[%s1669_s30 + $0xb8] sm:$0xf] %v377_v50 }
  0x53   : > { %380 = vst [vmem:[%s1669_s30 + $0xbc] sm:$0xf] %v379_v51 }
  0x54 PF: > { %511 = sbr.rel (!%p1640_p11) target bundleno = 91 (0x5b), region = 95  ;;  %s513_s0 = sand.u32 (%p1640_p11), 1, %s1469_s19  }
  0x55   : > { %s1191_s11 = sshll.u32 (%p1640_p11), %s1501_s27, 2  ;;  %s1190_s14 = sshll.u32 (%p1640_p11), %s513_s0, 3 }
  0x56   : > { %s520_s10 = scalar_lea.vmem (%p1640_p11), %s1885_s4, %s1191_s11  ;;  %s515_s6 = scalar_lea.vmem (%p1640_p11), [#allocation5], %s1190_s14 }
  0x57   : > { %v536_v52 = vld [vmem:[%s520_s10] sm:$0xf] (%p1640_p11)  ;;  %v538_v53 = vld [vmem:[%s520_s10 + $0x8] sm:$0xf] (%p1640_p11) }
  0x58   : > { %537 = vst [vmem:[%s515_s6] sm:$0xf] (%p1640_p11), %v536_v52  ;;  %539 = vst [vmem:[%s515_s6 + $0x4] sm:$0xf] (%p1640_p11), %v538_v53 }
  0x5b PF: > { %p1192_p1 = scmp.ge.s32.totalorder %s1505_s28, 1  ;;  %p565_p2 = scmp.lt.s32.totalorder %s1505_s28, 13 }
  0x5d   : > { %p566_p3 = pnand %p1192_p1, %p565_p2 }
  0x5e   : > { %s572_s7 = sand.u32 (!%p566_p3), 1, %s1481_s22   ;;  %s579_s12 = sand.u32 (!%p566_p3), 1, %s1473_s20  }
  0x5f   : > { %569 = sbr.rel (%p566_p3) target bundleno = 391 (0x187), region = 136  ;;  %s586_s13 = sand.u32 (!%p566_p3), 1, %s1465_s18  }
  0x60   : > { %s1298_s15 = smul.u32 (!%p566_p3), 24, %s572_s7  ;;  %s1776_s0 = sshll.u32 (!%p566_p3), %s586_s13, 3 }
  0x61   : > { %s1299_s30 = smul.u32 (!%p566_p3), 192, %s579_s12  ;;  %p629_p4 = scmp.lt.s32.totalorder (!%p566_p3), %s1493_s25, 1 }
  0x62   : > { %s1790_s22 = scalar_lea.vmem (!%p566_p3), [#allocation3], %s1298_s15  ;;  %s588_s7 = scalar_lea.vmem (!%p566_p3), [#allocation5], %s1776_s0 }
  0x63   : > { %s1792_s18 = scalar_lea.vmem (!%p566_p3), [#allocation4], %s1299_s30  ;;  %s1796_s12 = scalar_lea.vmem (!%p566_p3), [#allocation6], %s1776_s0 }
  0x64   : > { %p1195_p5 = scmp.ne.s32.totalorder (!%p566_p3), %s1489_s24, 0 }
  0x66   : > { %s1780_s11 = scalar_select %p629_p4, %s1493_s25, 1 }
  0x67   : > { %641 = sbr.rel (%p1195_p5) target bundleno = 110 (0x6e), region = 152  ;;  %v1507_v54 = vmov (!%p1195_p5), 0.0  }
  0x68   : > { %s631_s9 = scalar_lea.vmem %s1883_s2, %s1780_s11  ;;  %s634_s20 = scalar_lea.vmem %s1884_s3, %s1780_s11  ;;  %642 = vst [vmem:[#allocation2] sm:$0xff] (!%p1195_p5), %v1507_v54  ;;  %643 = vst [vmem:[#allocation2 + $0x8] sm:$0xff] (!%p1195_p5), %v1507_v54 }
  0x6e PF: > { %v1391_v55 = vld [vmem:[%s1792_s18 + $0x40] sm:$0xff]   ;;  %v1508_v56 = vmov 0.0   ;;  %vm1509_vm0 = vmmov 0   ;;  %v1394_v59 = vld [vmem:[%s1792_s18 + $0x48] sm:$0xff]   ;;  %v1397_v62 = vld [vmem:[%s1792_s18 + $0x50] sm:$0xff]   ;;  %p1223_p6 = scmp.ne.s32.totalorder %s1489_s24, 5 }
  0x6f   : > { %1276 = vmatprep.subr.bf16.mxu1 %v1508_v56  ;;  %v1392_v57 = vld [vmem:[%s1792_s18] sm:$0xff]   ;;  %1245 = vmatprep.subr.bf16.mxu0 %v1391_v55  ;;  %v1395_v60 = vld [vmem:[%s1792_s18 + $0x8] sm:$0xff]   ;;  %v1398_v63 = vld [vmem:[%s1792_s18 + $0x10] sm:$0xff]  }
  0x70   : > { %v1393_v58 = vld [vmem:[%s1792_s18 + $0x80] sm:$0xff]   ;;  %1292 = vmatprep.mubr.msk.bf16.mxu1 %vm1509_vm0, %v1508_v56  ;;  %1246 = vmatpush3.bf16.msra.mxu0 %v1392_v57  ;;  %v1396_v61 = vld [vmem:[%s1792_s18 + $0x88] sm:$0xff]   ;;  %v1399_v0 = vld [vmem:[%s1792_s18 + $0x90] sm:$0xff]  }
  0x71   : > { %1277 = vmatpush3.bf16.msra.mxu1 %v1393_v58  ;;  %1247 = vmatprep.subr.bf16.mxu0 %v1394_v59  ;;  %v1400_v1 = vld [vmem:[%s1792_s18 + $0x58] sm:$0xff]   ;;  %v1403_v4 = vld [vmem:[%s1792_s18 + $0x60] sm:$0xff]   ;;  %v1406_v7 = vld [vmem:[%s1792_s18 + $0x68] sm:$0xff]  }
  0x72   : > { %1278 = vmatprep.subr.bf16.mxu1 %v1508_v56  ;;  %v1401_v2 = vld [vmem:[%s1792_s18 + $0x18] sm:$0xff]   ;;  %v1404_v5 = vld [vmem:[%s1792_s18 + $0x20] sm:$0xff]   ;;  %v1407_v8 = vld [vmem:[%s1792_s18 + $0x28] sm:$0xff]  }
  0x73   : > { %v1402_v3 = vld [vmem:[%s1792_s18 + $0x98] sm:$0xff]   ;;  %v1405_v6 = vld [vmem:[%s1792_s18 + $0xa0] sm:$0xff]   ;;  %v1408_v9 = vld [vmem:[%s1792_s18 + $0xa8] sm:$0xff]  }
  0x74   : > { %1248 = vmatpush3.bf16.msra.mxu0 %v1395_v60  ;;  %v1409_v10 = vld [vmem:[%s1792_s18 + $0x70] sm:$0xff]   ;;  %v1412_v13 = vld [vmem:[%s1792_s18 + $0x78] sm:$0xff]   ;;  %v644_v25 = vld [vmem:[#allocation2] sm:$0xff] }
  0x75   : > { %1279 = vmatpush3.bf16.msra.mxu1 %v1396_v61  ;;  %1249 = vmatprep.subr.bf16.mxu0 %v1397_v62  ;;  %v1410_v11 = vld [vmem:[%s1792_s18 + $0x30] sm:$0xff]   ;;  %v1413_v15 = vld [vmem:[%s1792_s18 + $0x38] sm:$0xff]   ;;  %v645_v31 = vld [vmem:[#allocation2 + $0x8] sm:$0xff] }
  0x76   : > { %1280 = vmatprep.subr.bf16.mxu1 %v1508_v56  ;;  %v1411_v12 = vld [vmem:[%s1792_s18 + $0xb0] sm:$0xff]   ;;  %v1414_v16 = vld [vmem:[%s1792_s18 + $0xb8] sm:$0xff]   ;;  %v1224_v37 = vld [vmem:[%s631_s9] ss:$0 sm:$0xff] (!%p1223_p6) }
  0x77   : > { %v1417_v14 = vld [vmem:[%s1790_s22 + $0x4] ss:$12 sps:$4 sm:$0xff]   ;;  %v1415_v17 = vld [vmem:[%s1790_s22] ss:$12 sps:$4 sm:$0xff]   ;;  %v1418_v18 = vld [vmem:[%s1790_s22 + $0x8] ss:$12 sps:$4 sm:$0xff]  }
  0x78   : > { %1250 = vmatpush3.bf16.msra.mxu0 %v1398_v63  ;;  %890 = vmatprep.mubr.bf16.mxu0 %v1417_v14  ;;  %v1225_v40 = vld [vmem:[%s634_s20] ss:$0 sm:$0xff] (!%p1223_p6) }
  0x79   : > { %1281 = vmatpush3.bf16.msra.mxu1 %v1399_v0  ;;  %1251 = vmatprep.subr.bf16.mxu0 %v1400_v1  ;;  %v1237_v41 = vld [vmem:[%s588_s7] sm:$0xff] (!%p1223_p6)  }
  0x7a   : > { %1282 = vmatprep.subr.bf16.mxu1 %v1508_v56  ;;  %v1238_v42 = vunpack.c.l.bf16 (!%p1223_p6), %v1237_v41  ;;  %v1239_v43 = vunpack.c.h.bf16 (!%p1223_p6), %v1237_v41 }
  0x7c   : > { %1252 = vmatpush3.bf16.msra.mxu0 %v1401_v2 }
  0x7d   : > { %1283 = vmatpush3.bf16.msra.mxu1 %v1402_v3  ;;  %1253 = vmatprep.subr.bf16.mxu0 %v1403_v4 }
  0x7e   : > { %1284 = vmatprep.subr.bf16.mxu1 %v1508_v56 }
  0x80   : > { %1254 = vmatpush3.bf16.msra.mxu0 %v1404_v5 }
  0x81   : > { %1285 = vmatpush3.bf16.msra.mxu1 %v1405_v6  ;;  %1255 = vmatprep.subr.bf16.mxu0 %v1406_v7 }
  0x82   : > { %1286 = vmatprep.subr.bf16.mxu1 %v1508_v56 }
  0x84   : > { %1256 = vmatpush3.bf16.msra.mxu0 %v1407_v8 }
  0x85   : > { %1287 = vmatpush3.bf16.msra.mxu1 %v1408_v9  ;;  %1257 = vmatprep.subr.bf16.mxu0 %v1409_v10 }
  0x86   : > { %1288 = vmatprep.subr.bf16.mxu1 %v1508_v56 }
  0x88   : > { %1258 = vmatpush3.bf16.msra.mxu0 %v1410_v11 }
  0x89   : > { %1289 = vmatpush3.bf16.msra.mxu1 %v1411_v12  ;;  %1259 = vmatprep.subr.bf16.mxu0 %v1412_v13 }
  0x8a   : > { %1290 = vmatprep.subr.bf16.mxu1 %v1508_v56 }
  0x8c   : > { %1260 = vmatpush3.bf16.msra.mxu0 %v1413_v15 }
  0x8d   : > { %1291 = vmatpush3.bf16.msra.mxu1 %v1414_v16 }
  0x8f   : > { %891 = vmatmul.mubr.bf16.vlgmr.msra.gmra.mrb[0].mxu0 %v1415_v17 }
  0x90   : > { %1293 = vmatmul.mubr.bf16.vlgmr.msra.gmra.mrb[0].mxu1 %v1418_v18 }
 0x162   : > { %v1261_v19 = vpop.f32.mrb[0].mxu0 }
 0x163   : > { %v933_v20 = vpop.f32.mrb[0].mxu1  ;;  %v1262_v21 = vpop.f32.mrb[1].mxu0 }
 0x164   : > { %v1263_v22 = vadd.f32 %v1262_v21, %v1261_v19  ;;  %v1294_v23 = vpop.f32.mrb[1].mxu1  ;;  %v1264_v24 = vpop.f32.mrb[2].mxu0 }
 0x165   : > { %v936_v26 = vpop.f32.mrb[2].mxu1  ;;  %v1265_v27 = vpop.f32.mrb[3].mxu0 }
 0x166   : > { %v934_v28 = vadd.f32 %v1263_v22, %v933_v20  ;;  %v1266_v29 = vadd.f32 %v1265_v27, %v1264_v24  ;;  %v1295_v30 = vpop.f32.mrb[3].mxu1  ;;  %947 = sbr.rel (%p1223_p6) target bundleno = 383 (0x17f), region = 156 }
 0x168   : > { %v940_v32 = vadd.f32 %v934_v28, %v644_v25  ;;  %v937_v33 = vadd.f32 %v1266_v29, %v936_v26 }
 0x16a   : > { %942 = vst [vmem:[#allocation2] sm:$0xff] %v940_v32  ;;  %v941_v34 = vadd.f32 %v937_v33, %v645_v31 }
 0x16c   : > { %943 = vst [vmem:[#allocation2 + $0x8] sm:$0xff] %v941_v34 }
 0x171   : > { %v948_v35 = vld [vmem:[#allocation2] sm:$0xff] }
 0x172   : > { %v957_v38 = vmul.f32 %v1224_v37, %v948_v35 }
 0x173   : > { %v949_v36 = vld [vmem:[#allocation2 + $0x8] sm:$0xff] }
 0x174   : > { %v958_v39 = vmul.f32 %v1224_v37, %v949_v36  ;;  %v966_v44 = vadd.f32 %v1225_v40, %v957_v38 }
 0x176   : > { %v967_v45 = vadd.f32 %v1225_v40, %v958_v39  ;;  %v972_v46 = vadd.f32 %v1238_v42, %v966_v44 }
 0x178   : > { %v973_v47 = vadd.f32 %v1239_v43, %v967_v45  ;;  %v974_v48 = vmax.f32 %v972_v46, 0.0 }
 0x17a   : > { %v975_v49 = vmax.f32 %v973_v47, 0.0 }
 0x17c   : > { %v1243_v50 = vpack.c.bf16 %v975_v49, %v974_v48 }
 0x17e   : > { %1244 = vst [vmem:[%s1796_s12] sm:$0xff] %v1243_v50  }
 0x17f PF: > { %992 = sbr.rel (!%p1644_p13) target bundleno = 391 (0x187), region = 160  ;;  %s1229_s24 = sshll.u32 (%p1644_p13), %s1493_s25, 2 }
 0x180   : > { %s997_s29 = scalar_lea.vmem (%p1644_p13), %s1886_s5, %s1229_s24 }
 0x185   : > { %v1013_v51 = vld [vmem:[%s1796_s12] sm:$0xf] (%p1644_p13)  ;;  %v1015_v52 = vld [vmem:[%s1796_s12 + $0x4] sm:$0xf] (%p1644_p13) }
 0x186   : > { %1014 = vst [vmem:[%s997_s29] sm:$0xf] %v1013_v51  ;;  %1016 = vst [vmem:[%s997_s29 + $0x8] sm:$0xf] %v1015_v52 }
 0x187 PF: > { %s15_s28 = sadd.s32 1, %s1505_s28   ;;  %s1898_s8 = sld [smem:[#allocation9_spill]] }
 0x188   : > { %p12_p7 = scmp.ge.s32.totalorder %s15_s28, 14   ;;  %s1899_s9 = sld [smem:[#allocation7_spill]] }
 0x189   : > { %s1900_s10 = sld [smem:[#allocation8_spill]]  ;;  %s1901_s18 = smov %s1469_s19 }
 0x18a   : > { %s1902_s19 = smov %s1636_s17  ;;  %s1903_s20 = smov %s1477_s21 }
 0x18b   : > { %s1904_s21 = smov %s1633_s16  ;;  %s1905_s22 = smov %s1485_s23 }
 0x18c   : > { %s1907_s24 = smov %s1497_s26  ;;  %s1908_s25 = smov %s1501_s27 }
 0x18d   : > { %s1906_s23 = smov %s1898_s8  ;;  %14 = sbr.rel (!%p12_p7) target bundleno = 8 (0x8), region = 260 }
 0x18e   : > { %s1909_s26 = smov %s1899_s9 }
 0x18f   : > { %s1910_s27 = smov %s1900_s10 }

// kernel: resnet18_forward.38
= control target key start
LH: loop header
LB: loop body
LE: loop exit
PB: predicated region body
PF: predicated region fallthrough
CT: control target
= control target key end

     0   :  { %s1899_s0 = inlined_call_operand.vmem [shape: bf16[16,2304], index: 0, kind: input, shape index: {}]   ;;  %s1900_s1 = inlined_call_operand.vmem [shape: bf16[2304,512], index: 1, kind: input, shape index: {}]   ;;  %s1901_s2 = inlined_call_operand.vmem [shape: f32[1,512], index: 2, kind: input, shape index: {}]   ;;  %s1902_s3 = inlined_call_operand.vmem [shape: f32[1,512], index: 3, kind: input, shape index: {}]   ;;  %s1903_s4 = inlined_call_operand.vmem [shape: bf16[16,512], index: 4, kind: output, shape index: {}]  }
   0x1   :  { %1906 = sst [smem:[#allocation8_spill]] %s1899_s0 }
   0x2   :  { %1907 = sst [smem:[#allocation9_spill]] %s1900_s1 }
   0x3   :  { %s1557_s15 = smov 0   ;;  %s1559_s16 = smov 0  }
   0x4   :  { %s1561_s17 = smov 0   ;;  %s1563_s18 = smov 0  }
   0x5   :  { %s1565_s19 = smov 0   ;;  %s1567_s20 = smov 0  }
   0x6   :  { %s1569_s21 = smov 0   ;;  %s1571_s22 = smov 0  }
   0x7   :  { %s1573_s23 = smov 0   ;;  %s1575_s24 = smov 0  }
   0x8   :  { %s1577_s25 = smov 0  }
   0x9 LB: > { %s1187_s26 = sadd.s32 4294967295, %s1528_s25   ;;  %s26_s27 = sadd.s32 1, %s1520_s23  ;;  %s1528_s25 = sphi %s1577_s25, %s14_s25   ;;  %s1524_s24 = sphi %s1575_s24, %s1926_s24   ;;  %s1520_s23 = sphi %s1573_s23, %s1925_s23   ;;  %s1516_s22 = sphi %s1571_s22, %s1924_s22   ;;  %s1512_s21 = sphi %s1569_s21, %s1923_s21   ;;  %s1508_s20 = sphi %s1567_s20, %s1922_s20   ;;  %s1504_s19 = sphi %s1565_s19, %s1921_s19   ;;  %s1500_s18 = sphi %s1563_s18, %s1920_s18   ;;  %s1496_s17 = sphi %s1561_s17, %s1919_s17   ;;  %s1492_s16 = sphi %s1559_s16, %s1918_s16   ;;  %s1488_s15 = sphi %s1557_s15, %s1917_s15  }
   0xa   : > { %p27_p0 = scmp.ge.s32.totalorder %s26_s27, 6  ;;  %s29_s28 = sadd.s32 1, %s1524_s24 }
   0xb   : > { %s42_s29 = sadd.s32 1, %s1508_s20  ;;  %p49_p1 = scmp.ne.s32.totalorder %s1508_s20, %s1504_s19 }
   0xc   : > { %s1928_s27 = smov (%p27_p0, %s26_s27), 0  ;;  %s1930_s28 = smov (!%p27_p0, %s29_s28), %s1524_s24 }
   0xd   : > { %1908 = sst [smem:[#allocation6_spill]] %s1928_s27  ;;  %s38_s30 = ssub.s32 %s1520_s23, %s1928_s27 }
   0xe   : > { %p50_p2 = scmp.eq.s32.totalorder %s1528_s25, 0  ;;  %p31_p3 = scmp.ge.s32.totalorder %s1930_s28, 2 }
   0xf   : > { %p40_p4 = scmp.eq.s32.totalorder %s38_s30, 0  ;;  %s70_s6 = sadd.s32 1, %s1500_s18 }
  0x10   : > { %p1624_p5 = por %p50_p2, %p49_p1  ;;  %s1932_s28 = smov (%p31_p3, %s1930_s28), 0 }
  0x11   : > { %1910 = sst [smem:[#allocation7_spill]] %s1932_s28  ;;  %s66_s8 = ssub.s32 %s1524_s24, %s1932_s28 }
  0x12   : > { %s1632_s7 = scalar_select %p40_p4, %s1508_s20, %s42_s29  }
  0x13   : > { %p77_p6 = scmp.ne.s32.totalorder %s1500_s18, %s1496_s17  ;;  %s67_s9 = sor.u32 %s66_s8, %s38_s30 }
  0x14   : > { %p148_p7 = scmp.eq.s32.totalorder %s66_s8, 0  ;;  %p68_p8 = scmp.eq.s32.totalorder %s67_s9, 0 }
  0x15   : > { %p1638_p9 = por %p77_p6, %p50_p2  ;;  %s150_s11 = sadd.s32 1, %s1492_s16 }
  0x16   : > { %p160_p10 = scmp.ne.s32.totalorder %s1492_s16, %s1488_s15  ;;  %p161_p11 = scmp.eq.s32.totalorder %s1187_s26, 11 }
  0x17   : > { %s1646_s12 = scalar_select %p68_p8, %s1500_s18, %s70_s6  }
  0x18   : > { %s1649_s13 = scalar_select %p148_p7, %s1492_s16, %s150_s11  }
  0x19   : > { %p1651_p12 = por %p161_p11, %p160_p10  ;;  %p1190_p13 = scmp.ge.s32.totalorder %s1528_s25, 12 }
  0x1b   : > { %183 = sbr.rel (%p1190_p13) target bundleno = 79 (0x4f), region = 16 }
  0x22   : > { %186 = sbr.rel (!%p1624_p5) target bundleno = 45 (0x2d), region = 20  ;;  %s188_s29 = sand.u32 (%p1624_p5), 1, %s1508_s20  }
  0x23   : > { %s1263_s30 = smul.u32 (%p1624_p5), 12, %s1520_s23  ;;  %s1913_s0 = sld [smem:[#allocation8_spill]] (%p1624_p5) }
  0x24   : > { %s1272_s8 = smul.u32 (%p1624_p5), 24, %s188_s29 }
  0x26   : > { %s190_s26 = scalar_lea.vmem (%p1624_p5), [#allocation3], %s1272_s8 }
  0x29   : > { %s196_s11 = scalar_lea.vmem %s1913_s0, %s1263_s30 }
  0x2a   : > { %v211_v0 = vld [vmem:[%s196_s11] sm:$0xff]  ;;  %v213_v1 = vld [vmem:[%s196_s11 + $0x48] sm:$0xff]  ;;  %v1194_v3 = vld [vmem:[%s196_s11 + $0x50] sm:$0xf] }
  0x2b   : > { %v1192_v2 = vld [vmem:[%s196_s11 + $0x8] sm:$0xf]  ;;  %212 = vst [vmem:[%s190_s26] sm:$0xff] %v211_v0  ;;  %214 = vst [vmem:[%s190_s26 + $0xc] sm:$0xff] %v213_v1 }
  0x2c   : > { %1193 = vst [vmem:[%s190_s26 + $0x8] sm:$0xf] %v1192_v2  ;;  %1195 = vst [vmem:[%s190_s26 + $0x14] sm:$0xf] %v1194_v3 }
  0x2d PF: > { %231 = sbr.rel (!%p1638_p9) target bundleno = 79 (0x4f), region = 46  ;;  %s233_s5 = sand.u32 (%p1638_p9), 1, %s1500_s18  }
  0x2e   : > { %s1273_s29 = smul.u32 (%p1638_p9), 384, %s233_s5  ;;  %s1196_s6 = sshll.u32 (%p1638_p9), %s1524_s24, 1 }
  0x2f   : > { %s1264_s30 = smul.u32 (%p1638_p9), 192, %s1520_s23  ;;  %s1914_s1 = sld [smem:[#allocation9_spill]] (%p1638_p9) }
  0x30   : > { %s1676_s10 = scalar_lea.vmem (%p1638_p9), [#allocation4], %s1273_s29 }
  0x31   : > { %s239_s9 = sadd.s32 (%p1638_p9), %s1264_s30, %s1196_s6 }
  0x32   : > { %s1198_s0 = sshll.u32 (%p1638_p9), %s239_s9, 2 }
  0x35   : > { %s1671_s27 = scalar_lea.vmem %s1914_s1, %s1198_s0 }
  0x36   : > { %v363_v4 = vld [vmem:[%s1671_s27] sm:$0xff]  ;;  %v365_v5 = vld [vmem:[%s1671_s27 + $0x10] sm:$0xff] }
  0x37   : > { %v367_v6 = vld [vmem:[%s1671_s27 + $0x20] sm:$0xff]  ;;  %364 = vst [vmem:[%s1676_s10] sm:$0xff] %v363_v4  ;;  %366 = vst [vmem:[%s1676_s10 + $0x8] sm:$0xff] %v365_v5  ;;  %v369_v7 = vld [vmem:[%s1671_s27 + $0x30] sm:$0xff] }
  0x38   : > { %368 = vst [vmem:[%s1676_s10 + $0x10] sm:$0xff] %v367_v6  ;;  %v371_v8 = vld [vmem:[%s1671_s27 + $0x40] sm:$0xff]  ;;  %v373_v9 = vld [vmem:[%s1671_s27 + $0x50] sm:$0xff]  ;;  %370 = vst [vmem:[%s1676_s10 + $0x18] sm:$0xff] %v369_v7 }
  0x39   : > { %372 = vst [vmem:[%s1676_s10 + $0x20] sm:$0xff] %v371_v8  ;;  %374 = vst [vmem:[%s1676_s10 + $0x28] sm:$0xff] %v373_v9  ;;  %v375_v10 = vld [vmem:[%s1671_s27 + $0x60] sm:$0xff]  ;;  %v377_v11 = vld [vmem:[%s1671_s27 + $0x70] sm:$0xff] }
  0x3a   : > { %v379_v12 = vld [vmem:[%s1671_s27 + $0x80] sm:$0xff]  ;;  %376 = vst [vmem:[%s1676_s10 + $0x30] sm:$0xff] %v375_v10  ;;  %378 = vst [vmem:[%s1676_s10 + $0x38] sm:$0xff] %v377_v11  ;;  %v381_v13 = vld [vmem:[%s1671_s27 + $0x90] sm:$0xff] }
  0x3b   : > { %380 = vst [vmem:[%s1676_s10 + $0x40] sm:$0xff] %v379_v12  ;;  %v383_v14 = vld [vmem:[%s1671_s27 + $0xa0] sm:$0xff]  ;;  %v385_v15 = vld [vmem:[%s1671_s27 + $0xb0] sm:$0xff]  ;;  %382 = vst [vmem:[%s1676_s10 + $0x48] sm:$0xff] %v381_v13 }
  0x3c   : > { %384 = vst [vmem:[%s1676_s10 + $0x50] sm:$0xff] %v383_v14  ;;  %386 = vst [vmem:[%s1676_s10 + $0x58] sm:$0xff] %v385_v15  ;;  %v387_v16 = vld [vmem:[%s1671_s27 + $0xc0] sm:$0xff]  ;;  %v389_v17 = vld [vmem:[%s1671_s27 + $0xd0] sm:$0xff] }
  0x3d   : > { %v391_v18 = vld [vmem:[%s1671_s27 + $0xe0] sm:$0xff]  ;;  %388 = vst [vmem:[%s1676_s10 + $0x60] sm:$0xff] %v387_v16  ;;  %390 = vst [vmem:[%s1676_s10 + $0x68] sm:$0xff] %v389_v17  ;;  %v393_v19 = vld [vmem:[%s1671_s27 + $0xf0] sm:$0xff] }
  0x3e   : > { %392 = vst [vmem:[%s1676_s10 + $0x70] sm:$0xff] %v391_v18  ;;  %v395_v20 = vld [vmem:[%s1671_s27 + $0x100] sm:$0xff]  ;;  %v397_v21 = vld [vmem:[%s1671_s27 + $0x110] sm:$0xff]  ;;  %394 = vst [vmem:[%s1676_s10 + $0x78] sm:$0xff] %v393_v19 }
  0x3f   : > { %396 = vst [vmem:[%s1676_s10 + $0x80] sm:$0xff] %v395_v20  ;;  %398 = vst [vmem:[%s1676_s10 + $0x88] sm:$0xff] %v397_v21  ;;  %v399_v22 = vld [vmem:[%s1671_s27 + $0x120] sm:$0xff]  ;;  %v401_v23 = vld [vmem:[%s1671_s27 + $0x130] sm:$0xff] }
  0x40   : > { %v403_v24 = vld [vmem:[%s1671_s27 + $0x140] sm:$0xff]  ;;  %400 = vst [vmem:[%s1676_s10 + $0x90] sm:$0xff] %v399_v22  ;;  %402 = vst [vmem:[%s1676_s10 + $0x98] sm:$0xff] %v401_v23  ;;  %v405_v25 = vld [vmem:[%s1671_s27 + $0x150] sm:$0xff] }
  0x41   : > { %404 = vst [vmem:[%s1676_s10 + $0xa0] sm:$0xff] %v403_v24  ;;  %v407_v26 = vld [vmem:[%s1671_s27 + $0x160] sm:$0xff]  ;;  %v409_v27 = vld [vmem:[%s1671_s27 + $0x170] sm:$0xff]  ;;  %406 = vst [vmem:[%s1676_s10 + $0xa8] sm:$0xff] %v405_v25 }
  0x42   : > { %408 = vst [vmem:[%s1676_s10 + $0xb0] sm:$0xff] %v407_v26  ;;  %410 = vst [vmem:[%s1676_s10 + $0xb8] sm:$0xff] %v409_v27  ;;  %v411_v28 = vld [vmem:[%s1671_s27 + $0x180] sm:$0xff]  ;;  %v413_v29 = vld [vmem:[%s1671_s27 + $0x190] sm:$0xff] }
  0x43   : > { %v415_v30 = vld [vmem:[%s1671_s27 + $0x1a0] sm:$0xff]  ;;  %412 = vst [vmem:[%s1676_s10 + $0xc0] sm:$0xff] %v411_v28  ;;  %414 = vst [vmem:[%s1676_s10 + $0xc8] sm:$0xff] %v413_v29  ;;  %v417_v31 = vld [vmem:[%s1671_s27 + $0x1b0] sm:$0xff] }
  0x44   : > { %416 = vst [vmem:[%s1676_s10 + $0xd0] sm:$0xff] %v415_v30  ;;  %v419_v32 = vld [vmem:[%s1671_s27 + $0x1c0] sm:$0xff]  ;;  %v421_v33 = vld [vmem:[%s1671_s27 + $0x1d0] sm:$0xff]  ;;  %418 = vst [vmem:[%s1676_s10 + $0xd8] sm:$0xff] %v417_v31 }
  0x45   : > { %420 = vst [vmem:[%s1676_s10 + $0xe0] sm:$0xff] %v419_v32  ;;  %422 = vst [vmem:[%s1676_s10 + $0xe8] sm:$0xff] %v421_v33  ;;  %v423_v34 = vld [vmem:[%s1671_s27 + $0x1e0] sm:$0xff]  ;;  %v425_v35 = vld [vmem:[%s1671_s27 + $0x1f0] sm:$0xff] }
  0x46   : > { %v427_v36 = vld [vmem:[%s1671_s27 + $0x200] sm:$0xff]  ;;  %424 = vst [vmem:[%s1676_s10 + $0xf0] sm:$0xff] %v423_v34  ;;  %426 = vst [vmem:[%s1676_s10 + $0xf8] sm:$0xff] %v425_v35  ;;  %v429_v37 = vld [vmem:[%s1671_s27 + $0x210] sm:$0xff] }
  0x47   : > { %428 = vst [vmem:[%s1676_s10 + $0x100] sm:$0xff] %v427_v36  ;;  %v431_v38 = vld [vmem:[%s1671_s27 + $0x220] sm:$0xff]  ;;  %v433_v39 = vld [vmem:[%s1671_s27 + $0x230] sm:$0xff]  ;;  %430 = vst [vmem:[%s1676_s10 + $0x108] sm:$0xff] %v429_v37 }
  0x48   : > { %432 = vst [vmem:[%s1676_s10 + $0x110] sm:$0xff] %v431_v38  ;;  %434 = vst [vmem:[%s1676_s10 + $0x118] sm:$0xff] %v433_v39  ;;  %v435_v40 = vld [vmem:[%s1671_s27 + $0x240] sm:$0xff]  ;;  %v437_v41 = vld [vmem:[%s1671_s27 + $0x250] sm:$0xff] }
  0x49   : > { %v439_v42 = vld [vmem:[%s1671_s27 + $0x260] sm:$0xff]  ;;  %436 = vst [vmem:[%s1676_s10 + $0x120] sm:$0xff] %v435_v40  ;;  %438 = vst [vmem:[%s1676_s10 + $0x128] sm:$0xff] %v437_v41  ;;  %v441_v43 = vld [vmem:[%s1671_s27 + $0x270] sm:$0xff] }
  0x4a   : > { %440 = vst [vmem:[%s1676_s10 + $0x130] sm:$0xff] %v439_v42  ;;  %v443_v44 = vld [vmem:[%s1671_s27 + $0x280] sm:$0xff]  ;;  %v445_v45 = vld [vmem:[%s1671_s27 + $0x290] sm:$0xff]  ;;  %442 = vst [vmem:[%s1676_s10 + $0x138] sm:$0xff] %v441_v43 }
  0x4b   : > { %444 = vst [vmem:[%s1676_s10 + $0x140] sm:$0xff] %v443_v44  ;;  %446 = vst [vmem:[%s1676_s10 + $0x148] sm:$0xff] %v445_v45  ;;  %v447_v46 = vld [vmem:[%s1671_s27 + $0x2a0] sm:$0xff]  ;;  %v449_v47 = vld [vmem:[%s1671_s27 + $0x2b0] sm:$0xff] }
  0x4c   : > { %v451_v48 = vld [vmem:[%s1671_s27 + $0x2c0] sm:$0xff]  ;;  %448 = vst [vmem:[%s1676_s10 + $0x150] sm:$0xff] %v447_v46  ;;  %450 = vst [vmem:[%s1676_s10 + $0x158] sm:$0xff] %v449_v47  ;;  %v453_v49 = vld [vmem:[%s1671_s27 + $0x2d0] sm:$0xff] }
  0x4d   : > { %452 = vst [vmem:[%s1676_s10 + $0x160] sm:$0xff] %v451_v48  ;;  %v455_v50 = vld [vmem:[%s1671_s27 + $0x2e0] sm:$0xff]  ;;  %v457_v51 = vld [vmem:[%s1671_s27 + $0x2f0] sm:$0xff]  ;;  %454 = vst [vmem:[%s1676_s10 + $0x168] sm:$0xff] %v453_v49 }
  0x4e   : > { %456 = vst [vmem:[%s1676_s10 + $0x170] sm:$0xff] %v455_v50  ;;  %458 = vst [vmem:[%s1676_s10 + $0x178] sm:$0xff] %v457_v51 }
  0x4f PF: > { %p1199_p0 = scmp.ge.s32.totalorder %s1528_s25, 1  ;;  %p479_p1 = scmp.lt.s32.totalorder %s1528_s25, 13 }
  0x51   : > { %p480_p2 = pnand %p1199_p0, %p479_p1 }
  0x52   : > { %s486_s0 = sand.u32 (!%p480_p2), 1, %s1504_s19   ;;  %s493_s28 = sand.u32 (!%p480_p2), 1, %s1496_s17  }
  0x53   : > { %483 = sbr.rel (%p480_p2) target bundleno = 406 (0x196), region = 92  ;;  %s526_s26 = sand.u32 (!%p480_p2), 1, %s1488_s15  }
  0x54   : > { %s1274_s11 = smul.u32 (!%p480_p2), 24, %s486_s0  ;;  %s1200_s5 = sshll.u32 (!%p480_p2), %s526_s26, 4 }
  0x55   : > { %s1275_s27 = smul.u32 (!%p480_p2), 384, %s493_s28  ;;  %s1201_s29 = sshll.u32 (!%p480_p2), %s1516_s22, 1 }
  0x56   : > { %p534_p3 = scmp.lt.s32.totalorder (!%p480_p2), %s1201_s29, 3  ;;  %s1787_s19 = scalar_lea.vmem (!%p480_p2), [#allocation3], %s1274_s11 }
  0x57   : > { %s1789_s17 = scalar_lea.vmem (!%p480_p2), [#allocation4], %s1275_s27  ;;  %s1791_s15 = scalar_lea.vmem (!%p480_p2), [#allocation5], %s1200_s5 }
  0x58   : > { %p1203_p4 = scmp.ne.s32.totalorder (!%p480_p2), %s1512_s21, 0 }
  0x5a   : > { %s1934_s29 = smov (!%p534_p3, %s1201_s29), 3  ;;  %549 = sbr.rel (%p1203_p4) target bundleno = 97 (0x61), region = 104 }
  0x5b   : > { %s536_s9 = scalar_lea.vmem %s1901_s2, %s1934_s29  ;;  %s541_s1 = scalar_lea.vmem %s1902_s3, %s1934_s29  ;;  %v1530_v52 = vmov (!%p1203_p4), 0.0  }
  0x5c   : > { %550 = vst [vmem:[#allocation2] sm:$0xff] (!%p1203_p4), %v1530_v52  ;;  %551 = vst [vmem:[#allocation2 + $0x8] sm:$0xff] (!%p1203_p4), %v1530_v52 }
  0x5d   : > { %552 = vst [vmem:[#allocation2 + $0x10] sm:$0xff] (!%p1203_p4), %v1530_v52  ;;  %553 = vst [vmem:[#allocation2 + $0x18] sm:$0xff] (!%p1203_p4), %v1530_v52 }
  0x61 PF: > { %v1366_v53 = vld [vmem:[%s1789_s17 + $0x4] ss:$8 sps:$4 sm:$0xff]   ;;  %v1368_v54 = vld [vmem:[%s1789_s17] ss:$8 sps:$4 sm:$0xff]   ;;  %v1531_v55 = vmov 0   ;;  %p1255_p5 = scmp.ne.s32.totalorder %s1512_s21, 5 }
  0x62   : > { %941 = vmatprep.mubr.bf16.mxu0 %v1531_v55  ;;  %866 = vmatprep.subr.bf16.mxu1 %v1366_v53  ;;  %v1369_v56 = vld [vmem:[%s1789_s17 + $0x14] ss:$8 sps:$4 sm:$0xff]   ;;  %v1371_v57 = vld [vmem:[%s1789_s17 + $0x10] ss:$8 sps:$4 sm:$0xff]   ;;  %v1372_v58 = vld [vmem:[%s1789_s17 + $0x24] ss:$8 sps:$4 sm:$0xff]  }
  0x63   : > { %867 = vmatpush1.bf16.msra.mxu1 %v1368_v54  ;;  %v1374_v59 = vld [vmem:[%s1789_s17 + $0x20] ss:$8 sps:$4 sm:$0xff]   ;;  %v1375_v60 = vld [vmem:[%s1789_s17 + $0x34] ss:$8 sps:$4 sm:$0xff]   ;;  %v1377_v61 = vld [vmem:[%s1789_s17 + $0x30] ss:$8 sps:$4 sm:$0xff]  }
  0x64   : > { %868 = vmatprep.subr.bf16.mxu1 %v1369_v56  ;;  %v1390_v62 = vld [vmem:[%s1789_s17 + $0x104] ss:$8 sps:$4 sm:$0xff]   ;;  %v1392_v63 = vld [vmem:[%s1789_s17 + $0x100] ss:$8 sps:$4 sm:$0xff]   ;;  %v1396_v1 = vld [vmem:[%s1789_s17 + $0x114] ss:$8 sps:$4 sm:$0xff]  }
  0x65   : > { %v1378_v0 = vld [vmem:[%s1789_s17 + $0x44] ss:$8 sps:$4 sm:$0xff]   ;;  %909 = vmatprep.subr.bf16.mxu0 %v1390_v62  ;;  %v1398_v2 = vld [vmem:[%s1789_s17 + $0x110] ss:$8 sps:$4 sm:$0xff]   ;;  %v1380_v3 = vld [vmem:[%s1789_s17 + $0x40] ss:$8 sps:$4 sm:$0xff]  }
  0x66   : > { %910 = vmatpush1.bf16.msra.mxu0 %v1392_v63  ;;  %v1381_v4 = vld [vmem:[%s1789_s17 + $0x54] ss:$8 sps:$4 sm:$0xff]   ;;  %v1402_v5 = vld [vmem:[%s1789_s17 + $0x124] ss:$8 sps:$4 sm:$0xff]   ;;  %v1404_v6 = vld [vmem:[%s1789_s17 + $0x120] ss:$8 sps:$4 sm:$0xff]  }
  0x67   : > { %869 = vmatpush1.bf16.msra.mxu1 %v1371_v57  ;;  %911 = vmatprep.subr.bf16.mxu0 %v1396_v1  ;;  %v1383_v7 = vld [vmem:[%s1789_s17 + $0x50] ss:$8 sps:$4 sm:$0xff]   ;;  %v1408_v8 = vld [vmem:[%s1789_s17 + $0x134] ss:$8 sps:$4 sm:$0xff]   ;;  %v1384_v9 = vld [vmem:[%s1789_s17 + $0x64] ss:$8 sps:$4 sm:$0xff]  }
  0x68   : > { %870 = vmatprep.subr.bf16.mxu1 %v1372_v58  ;;  %v1410_v10 = vld [vmem:[%s1789_s17 + $0x130] ss:$8 sps:$4 sm:$0xff]   ;;  %v1386_v11 = vld [vmem:[%s1789_s17 + $0x60] ss:$8 sps:$4 sm:$0xff]   ;;  %v1414_v12 = vld [vmem:[%s1789_s17 + $0x144] ss:$8 sps:$4 sm:$0xff]  }
  0x69   : > { %v1387_v13 = vld [vmem:[%s1789_s17 + $0x74] ss:$8 sps:$4 sm:$0xff]   ;;  %v1416_v14 = vld [vmem:[%s1789_s17 + $0x140] ss:$8 sps:$4 sm:$0xff]   ;;  %v1389_v15 = vld [vmem:[%s1789_s17 + $0x70] ss:$8 sps:$4 sm:$0xff]  }
  0x6a   : > { %912 = vmatpush1.bf16.msra.mxu0 %v1398_v2  ;;  %v1420_v16 = vld [vmem:[%s1789_s17 + $0x154] ss:$8 sps:$4 sm:$0xff]   ;;  %v1393_v17 = vld [vmem:[%s1789_s17 + $0x84] ss:$8 sps:$4 sm:$0xff]   ;;  %v1422_v18 = vld [vmem:[%s1789_s17 + $0x150] ss:$8 sps:$4 sm:$0xff]  }
  0x6b   : > { %871 = vmatpush1.bf16.msra.mxu1 %v1374_v59  ;;  %913 = vmatprep.subr.bf16.mxu0 %v1402_v5  ;;  %v1395_v19 = vld [vmem:[%s1789_s17 + $0x80] ss:$8 sps:$4 sm:$0xff]   ;;  %v1426_v20 = vld [vmem:[%s1789_s17 + $0x164] ss:$8 sps:$4 sm:$0xff]   ;;  %v1399_v21 = vld [vmem:[%s1789_s17 + $0x94] ss:$8 sps:$4 sm:$0xff]  }
  0x6c   : > { %872 = vmatprep.subr.bf16.mxu1 %v1375_v60  ;;  %v1428_v22 = vld [vmem:[%s1789_s17 + $0x160] ss:$8 sps:$4 sm:$0xff]   ;;  %v1401_v24 = vld [vmem:[%s1789_s17 + $0x90] ss:$8 sps:$4 sm:$0xff]   ;;  %v1432_v25 = vld [vmem:[%s1789_s17 + $0x174] ss:$8 sps:$4 sm:$0xff]  }
  0x6d   : > { %v1441_v23 = vld [vmem:[%s1787_s19 + $0x4] ss:$12 sps:$4 sm:$0xff]   ;;  %v1438_v30 = vld [vmem:[%s1787_s19 + $0x8] ss:$12 sps:$4 sm:$0xff]   ;;  %v1439_v40 = vld [vmem:[%s1787_s19] ss:$12 sps:$4 sm:$0xff]  }
  0x6e   : > { %914 = vmatpush1.bf16.msra.mxu0 %v1404_v6  ;;  %v1405_v26 = vld [vmem:[%s1789_s17 + $0xa4] ss:$8 sps:$4 sm:$0xff]   ;;  %898 = vmatprep.mubr.bf16.mxu1 %v1441_v23  ;;  %v1434_v27 = vld [vmem:[%s1789_s17 + $0x170] ss:$8 sps:$4 sm:$0xff]   ;;  %v1407_v28 = vld [vmem:[%s1789_s17 + $0xa0] ss:$8 sps:$4 sm:$0xff]  }
  0x6f   : > { %873 = vmatpush1.bf16.msra.mxu1 %v1377_v61  ;;  %915 = vmatprep.subr.bf16.mxu0 %v1408_v8  ;;  %v1411_v29 = vld [vmem:[%s1789_s17 + $0xb4] ss:$8 sps:$4 sm:$0xff]   ;;  %v1413_v31 = vld [vmem:[%s1789_s17 + $0xb0] ss:$8 sps:$4 sm:$0xff]   ;;  %v1417_v32 = vld [vmem:[%s1789_s17 + $0xc4] ss:$8 sps:$4 sm:$0xff]   ;;  %v970_v61 = vlaneseq (!%p1255_p5) }
  0x70   : > { %874 = vmatprep.subr.bf16.mxu1 %v1378_v0  ;;  %v1419_v33 = vld [vmem:[%s1789_s17 + $0xc0] ss:$8 sps:$4 sm:$0xff]   ;;  %v1423_v34 = vld [vmem:[%s1789_s17 + $0xd4] ss:$8 sps:$4 sm:$0xff]   ;;  %v1425_v35 = vld [vmem:[%s1789_s17 + $0xd0] ss:$8 sps:$4 sm:$0xff]  }
  0x71   : > { %v1429_v36 = vld [vmem:[%s1789_s17 + $0xe4] ss:$8 sps:$4 sm:$0xff]   ;;  %v1431_v37 = vld [vmem:[%s1789_s17 + $0xe0] ss:$8 sps:$4 sm:$0xff]   ;;  %v1435_v38 = vld [vmem:[%s1789_s17 + $0xf4] ss:$8 sps:$4 sm:$0xff]  }
  0x72   : > { %916 = vmatpush1.bf16.msra.mxu0 %v1410_v10  ;;  %v1437_v39 = vld [vmem:[%s1789_s17 + $0xf0] ss:$8 sps:$4 sm:$0xff]   ;;  %v556_v51 = vld [vmem:[#allocation2 + $0x10] sm:$0xff]  ;;  %v557_v55 = vld [vmem:[#allocation2 + $0x18] sm:$0xff]  ;;  %v971_v62 = vshrl.u32 (!%p1255_p5), %v970_v61, 7 }
  0x73   : > { %875 = vmatpush1.bf16.msra.mxu1 %v1380_v3  ;;  %917 = vmatprep.subr.bf16.mxu0 %v1414_v12  ;;  %v554_v45 = vld [vmem:[#allocation2] sm:$0xff]  ;;  %v555_v48 = vld [vmem:[#allocation2 + $0x8] sm:$0xff] }
  0x74   : > { %876 = vmatprep.subr.bf16.mxu1 %v1381_v4  ;;  %v968_v63 = vld [vmem:[%s536_s9] sm:$0x3] (!%p1255_p5)  ;;  %v972_v2 = vsub.s32 (!%p1255_p5), 0, %v971_v62  ;;  %v976_v3 = vsub.s32 (!%p1255_p5), 1, %v971_v62 }
  0x75   : > { %v984_v0 = vld [vmem:[%s541_s1] sm:$0x3] (!%p1255_p5) }
  0x76   : > { %918 = vmatpush1.bf16.msra.mxu0 %v1416_v14  ;;  %v977_v8 = vrot.slane (!%p1255_p5), %v968_v63, %v976_v3  ;;  %v993_v10 = vrot.slane (!%p1255_p5), %v984_v0, %v976_v3 }
  0x77   : > { %877 = vmatpush1.bf16.msra.mxu1 %v1383_v7  ;;  %919 = vmatprep.subr.bf16.mxu0 %v1420_v16  ;;  %v973_v7 = vrot.slane (!%p1255_p5), %v968_v63, %v972_v2 }
  0x78   : > { %878 = vmatprep.subr.bf16.mxu1 %v1384_v9  ;;  %v989_v9 = vrot.slane (!%p1255_p5), %v984_v0, %v972_v2 }
  0x7a   : > { %920 = vmatpush1.bf16.msra.mxu0 %v1422_v18 }
  0x7b   : > { %879 = vmatpush1.bf16.msra.mxu1 %v1386_v11  ;;  %921 = vmatprep.subr.bf16.mxu0 %v1426_v20 }
  0x7c   : > { %880 = vmatprep.subr.bf16.mxu1 %v1387_v13 }
  0x7e   : > { %922 = vmatpush1.bf16.msra.mxu0 %v1428_v22 }
  0x7f   : > { %881 = vmatpush1.bf16.msra.mxu1 %v1389_v15  ;;  %923 = vmatprep.subr.bf16.mxu0 %v1432_v25 }
  0x80   : > { %882 = vmatprep.subr.bf16.mxu1 %v1393_v17 }
  0x82   : > { %924 = vmatpush1.bf16.msra.mxu0 %v1434_v27 }
  0x83   : > { %883 = vmatpush1.bf16.msra.mxu1 %v1395_v19 }
  0x84   : > { %884 = vmatprep.subr.bf16.mxu1 %v1399_v21 }
  0x85   : > { %942 = vmatmul.mubr.bf16.vlgmr.msra.gmra.mrb[0].mxu0 %v1438_v30 }
  0x87   : > { %885 = vmatpush1.bf16.msra.mxu1 %v1401_v24 }
  0x88   : > { %886 = vmatprep.subr.bf16.mxu1 %v1405_v26 }
  0x8b   : > { %887 = vmatpush1.bf16.msra.mxu1 %v1407_v28 }
  0x8c   : > { %888 = vmatprep.subr.bf16.mxu1 %v1411_v29 }
  0x8f   : > { %889 = vmatpush1.bf16.msra.mxu1 %v1413_v31 }
  0x90   : > { %890 = vmatprep.subr.bf16.mxu1 %v1417_v32 }
  0x93   : > { %891 = vmatpush1.bf16.msra.mxu1 %v1419_v33 }
  0x94   : > { %892 = vmatprep.subr.bf16.mxu1 %v1423_v34 }
  0x97   : > { %893 = vmatpush1.bf16.msra.mxu1 %v1425_v35 }
  0x98   : > { %894 = vmatprep.subr.bf16.mxu1 %v1429_v36 }
  0x9b   : > { %895 = vmatpush1.bf16.msra.mxu1 %v1431_v37 }
  0x9c   : > { %896 = vmatprep.subr.bf16.mxu1 %v1435_v38 }
  0x9f   : > { %897 = vmatpush1.bf16.msra.mxu1 %v1437_v39 }
  0xa2   : > { %899 = vmatmul.mubr.bf16.vlgmr.msra.gmra.mrb[0].mxu1 %v1439_v40 }
 0x158   : > { %v943_v41 = vpop.f32.mrb[0].mxu0 }
 0x159   : > { %v945_v42 = vpop.f32.mrb[1].mxu0 }
 0x15a   : > { %v947_v43 = vpop.f32.mrb[2].mxu0 }
 0x15b   : > { %v949_v44 = vpop.f32.mrb[3].mxu0 }
 0x175   : > { %v900_v46 = vpop.f32.mrb[0].mxu1 }
 0x176   : > { %v944_v47 = vadd.f32 %v943_v41, %v900_v46  ;;  %v902_v49 = vpop.f32.mrb[1].mxu1 }
 0x177   : > { %v946_v50 = vadd.f32 %v945_v42, %v902_v49  ;;  %v904_v52 = vpop.f32.mrb[2].mxu1  ;;  %963 = sbr.rel (%p1255_p5) target bundleno = 398 (0x18e), region = 108 }
 0x178   : > { %v952_v53 = vadd.f32 %v944_v47, %v554_v45  ;;  %v948_v54 = vadd.f32 %v947_v43, %v904_v52  ;;  %v906_v56 = vpop.f32.mrb[3].mxu1 }
 0x179   : > { %v953_v57 = vadd.f32 %v946_v50, %v555_v48  ;;  %v950_v58 = vadd.f32 %v949_v44, %v906_v56 }
 0x17a   : > { %956 = vst [vmem:[#allocation2] sm:$0xff] %v952_v53  ;;  %v954_v59 = vadd.f32 %v948_v54, %v556_v51 }
 0x17b   : > { %957 = vst [vmem:[#allocation2 + $0x8] sm:$0xff] %v953_v57  ;;  %v955_v60 = vadd.f32 %v950_v58, %v557_v55 }
 0x17c   : > { %958 = vst [vmem:[#allocation2 + $0x10] sm:$0xff] %v954_v59 }
 0x17d   : > { %959 = vst [vmem:[#allocation2 + $0x18] sm:$0xff] %v955_v60 }
 0x181   : > { %v964_v1 = vld [vmem:[#allocation2] sm:$0xff] }
 0x182   : > { %v965_v4 = vld [vmem:[#allocation2 + $0x8] sm:$0xff]  ;;  %v980_v11 = vmul.f32 %v973_v7, %v964_v1 }
 0x183   : > { %v966_v5 = vld [vmem:[#allocation2 + $0x10] sm:$0xff]  ;;  %v981_v12 = vmul.f32 %v977_v8, %v965_v4 }
 0x184   : > { %v967_v6 = vld [vmem:[#allocation2 + $0x18] sm:$0xff]  ;;  %v982_v13 = vmul.f32 %v973_v7, %v966_v5  ;;  %v996_v15 = vadd.f32 %v989_v9, %v980_v11 }
 0x185   : > { %v983_v14 = vmul.f32 %v977_v8, %v967_v6  ;;  %v997_v16 = vadd.f32 %v993_v10, %v981_v12 }
 0x186   : > { %v998_v17 = vadd.f32 %v989_v9, %v982_v13  ;;  %v1000_v19 = vmax.f32 %v996_v15, 0.0 }
 0x187   : > { %v999_v18 = vadd.f32 %v993_v10, %v983_v14  ;;  %v1001_v20 = vmax.f32 %v997_v16, 0.0 }
 0x188   : > { %v1002_v21 = vmax.f32 %v998_v17, 0.0 }
 0x189   : > { %v1003_v22 = vmax.f32 %v999_v18, 0.0  ;;  %v1265_v23 = vpack.c.bf16 %v1001_v20, %v1000_v19 }
 0x18b   : > { %v1266_v24 = vpack.c.bf16 %v1003_v22, %v1002_v21  ;;  %1016 = vst [vmem:[%s1791_s15] sm:$0xff] %v1265_v23 }
 0x18d   : > { %1017 = vst [vmem:[%s1791_s15 + $0x8] sm:$0xff] %v1266_v24 }
 0x18e PF: > { %1024 = sbr.rel (!%p1651_p12) target bundleno = 406 (0x196), region = 112  ;;  %s1267_s1 = sshll.u32 (%p1651_p12), %s1516_s22, 3 }
 0x18f   : > { %s1030_s5 = scalar_lea.vmem (%p1651_p12), %s1903_s4, %s1267_s1 }
 0x192   : > { %v1060_v25 = vld [vmem:[%s1791_s15] sm:$0xff] (%p1651_p12) }
 0x193   : > { %1061 = vst [vmem:[%s1030_s5] sm:$0xff] (%p1651_p12), %v1060_v25 }
 0x194   : > { %v1062_v26 = vld [vmem:[%s1791_s15 + $0x8] sm:$0xff] (%p1651_p12) }
 0x195   : > { %1063 = vst [vmem:[%s1030_s5 + $0x10] sm:$0xff] %v1062_v26 }
 0x196 PF: > { %s14_s25 = sadd.s32 1, %s1528_s25   ;;  %s1915_s14 = sld [smem:[#allocation6_spill]] }
 0x197   : > { %p11_p6 = scmp.ge.s32.totalorder %s14_s25, 14   ;;  %s1916_s29 = sld [smem:[#allocation7_spill]] }
 0x198   : > { %s1917_s15 = smov %s1492_s16  ;;  %s1918_s16 = smov %s1649_s13 }
 0x199   : > { %s1919_s17 = smov %s1500_s18  ;;  %s1920_s18 = smov %s1646_s12 }
 0x19a   : > { %s1921_s19 = smov %s1508_s20  ;;  %s1922_s20 = smov %s1632_s7 }
 0x19b   : > { %s1923_s21 = smov %s1520_s23  ;;  %s1924_s22 = smov %s1524_s24 }
 0x19c   : > { %s1925_s23 = smov %s1915_s14  ;;  %13 = sbr.rel (!%p11_p6) target bundleno = 9 (0x9), region = 201 }
 0x19d   : > { %s1926_s24 = smov %s1916_s29 }

// kernel: resnet18_forward.39
= control target key start
LH: loop header
LB: loop body
LE: loop exit
PB: predicated region body
PF: predicated region fallthrough
CT: control target
= control target key end

     0   :  { %s1156_s15 = smov 0   ;;  %s1158_s16 = smov 0   ;;  %s1347_s0 = inlined_call_operand.vmem [shape: bf16[16,256], index: 0, kind: input, shape index: {}]   ;;  %s1348_s1 = inlined_call_operand.vmem [shape: bf16[256,512], index: 1, kind: input, shape index: {}]   ;;  %s1349_s2 = inlined_call_operand.vmem [shape: f32[1,512], index: 2, kind: input, shape index: {}]   ;;  %s1350_s3 = inlined_call_operand.vmem [shape: f32[1,512], index: 3, kind: input, shape index: {}]   ;;  %s1351_s4 = inlined_call_operand.vmem [shape: bf16[16,512], index: 4, kind: output, shape index: {}]  }
   0x1   :  { %s1160_s17 = smov 0   ;;  %s1162_s18 = smov 0  }
   0x2   :  { %s1164_s19 = smov 0  }
   0x3 LB: > { %s29_s20 = sadd.s32 1, %s1125_s18  ;;  %s942_s21 = sadd.s32 4294967295, %s1129_s19   ;;  %s1129_s19 = sphi %s1164_s19, %s14_s19   ;;  %s1125_s18 = sphi %s1162_s18, %s1356_s18   ;;  %s1121_s17 = sphi %s1160_s17, %s1355_s17   ;;  %s1117_s16 = sphi %s1158_s16, %s1354_s16   ;;  %s1113_s15 = sphi %s1156_s15, %s1353_s15  }
   0x4   : > { %p31_p0 = scmp.ge.s32.totalorder %s29_s20, 2  ;;  %p77_p1 = scmp.ne.s32.totalorder %s1117_s16, %s1113_s15 }
   0x5   : > { %p78_p2 = scmp.eq.s32.totalorder %s1129_s19, 0  ;;  %p161_p4 = scmp.eq.s32.totalorder %s942_s21, 1 }
   0x6   : > { %s1358_s20 = smov (%p31_p0, %s29_s20), 0  ;;  %s70_s23 = sadd.s32 1, %s1117_s16 }
   0x7   : > { %p79_p3 = por %p78_p2, %p77_p1  ;;  %s66_s22 = ssub.s32 %s1125_s18, %s1358_s20 }
   0x8   : > { %p68_p5 = scmp.eq.s32.totalorder %s66_s22, 0  ;;  %p1191_p6 = por %p161_p4, %p77_p1 }
   0x9   : > { %p946_p7 = scmp.ge.s32.totalorder %s1129_s19, 2 }
   0xa   : > { %s1196_s25 = scalar_select %p68_p5, %s1117_s16, %s70_s23  }
   0xb   : > { %198 = sbr.rel (%p946_p7) target bundleno = 38 (0x26), region = 20 }
  0x12   : > { %201 = sbr.rel (!%p79_p3) target bundleno = 38 (0x26), region = 24  ;;  %s203_s26 = sand.u32 (%p79_p3), 1, %s1117_s16  }
  0x13   : > { %s996_s27 = sshll.u32 (%p79_p3), %s1125_s18, 3  ;;  %s947_s28 = sshll.u32 (%p79_p3), %s203_s26, 8 }
  0x14   : > { %s1204_s5 = scalar_lea.vmem (%p79_p3), %s1348_s1, %s996_s27  ;;  %s1209_s6 = scalar_lea.vmem (%p79_p3), [#allocation3], %s947_s28 }
  0x15   : > { %v301_v0 = vld [vmem:[%s1204_s5] sm:$0xff] (%p79_p3)  ;;  %v303_v1 = vld [vmem:[%s1204_s5 + $0x10] sm:$0xff] (%p79_p3) }
  0x16   : > { %v305_v2 = vld [vmem:[%s1204_s5 + $0x20] sm:$0xff] (%p79_p3)  ;;  %302 = vst [vmem:[%s1209_s6] sm:$0xff] (%p79_p3), %v301_v0  ;;  %304 = vst [vmem:[%s1209_s6 + $0x8] sm:$0xff] (%p79_p3), %v303_v1  ;;  %v307_v3 = vld [vmem:[%s1204_s5 + $0x30] sm:$0xff] (%p79_p3) }
  0x17   : > { %306 = vst [vmem:[%s1209_s6 + $0x10] sm:$0xff] (%p79_p3), %v305_v2  ;;  %v309_v4 = vld [vmem:[%s1204_s5 + $0x40] sm:$0xff] (%p79_p3)  ;;  %v311_v5 = vld [vmem:[%s1204_s5 + $0x50] sm:$0xff] (%p79_p3)  ;;  %308 = vst [vmem:[%s1209_s6 + $0x18] sm:$0xff] (%p79_p3), %v307_v3 }
  0x18   : > { %310 = vst [vmem:[%s1209_s6 + $0x20] sm:$0xff] (%p79_p3), %v309_v4  ;;  %312 = vst [vmem:[%s1209_s6 + $0x28] sm:$0xff] (%p79_p3), %v311_v5  ;;  %v313_v6 = vld [vmem:[%s1204_s5 + $0x60] sm:$0xff] (%p79_p3)  ;;  %v315_v7 = vld [vmem:[%s1204_s5 + $0x70] sm:$0xff] (%p79_p3) }
  0x19   : > { %v317_v8 = vld [vmem:[%s1204_s5 + $0x80] sm:$0xff]  ;;  %314 = vst [vmem:[%s1209_s6 + $0x30] sm:$0xff] %v313_v6  ;;  %316 = vst [vmem:[%s1209_s6 + $0x38] sm:$0xff] %v315_v7  ;;  %v319_v9 = vld [vmem:[%s1204_s5 + $0x90] sm:$0xff] }
  0x1a   : > { %318 = vst [vmem:[%s1209_s6 + $0x40] sm:$0xff] %v317_v8  ;;  %v321_v10 = vld [vmem:[%s1204_s5 + $0xa0] sm:$0xff]  ;;  %v323_v11 = vld [vmem:[%s1204_s5 + $0xb0] sm:$0xff]  ;;  %320 = vst [vmem:[%s1209_s6 + $0x48] sm:$0xff] %v319_v9 }
  0x1b   : > { %322 = vst [vmem:[%s1209_s6 + $0x50] sm:$0xff] %v321_v10  ;;  %324 = vst [vmem:[%s1209_s6 + $0x58] sm:$0xff] %v323_v11  ;;  %v325_v12 = vld [vmem:[%s1204_s5 + $0xc0] sm:$0xff]  ;;  %v327_v13 = vld [vmem:[%s1204_s5 + $0xd0] sm:$0xff] }
  0x1c   : > { %v329_v14 = vld [vmem:[%s1204_s5 + $0xe0] sm:$0xff]  ;;  %326 = vst [vmem:[%s1209_s6 + $0x60] sm:$0xff] %v325_v12  ;;  %328 = vst [vmem:[%s1209_s6 + $0x68] sm:$0xff] %v327_v13  ;;  %v331_v15 = vld [vmem:[%s1204_s5 + $0xf0] sm:$0xff] }
  0x1d   : > { %330 = vst [vmem:[%s1209_s6 + $0x70] sm:$0xff] %v329_v14  ;;  %v333_v16 = vld [vmem:[%s1204_s5 + $0x100] sm:$0xff]  ;;  %v335_v17 = vld [vmem:[%s1204_s5 + $0x110] sm:$0xff]  ;;  %332 = vst [vmem:[%s1209_s6 + $0x78] sm:$0xff] %v331_v15 }
  0x1e   : > { %334 = vst [vmem:[%s1209_s6 + $0x80] sm:$0xff] %v333_v16  ;;  %336 = vst [vmem:[%s1209_s6 + $0x88] sm:$0xff] %v335_v17  ;;  %v337_v18 = vld [vmem:[%s1204_s5 + $0x120] sm:$0xff]  ;;  %v339_v19 = vld [vmem:[%s1204_s5 + $0x130] sm:$0xff] }
  0x1f   : > { %v341_v20 = vld [vmem:[%s1204_s5 + $0x140] sm:$0xff]  ;;  %338 = vst [vmem:[%s1209_s6 + $0x90] sm:$0xff] %v337_v18  ;;  %340 = vst [vmem:[%s1209_s6 + $0x98] sm:$0xff] %v339_v19  ;;  %v343_v21 = vld [vmem:[%s1204_s5 + $0x150] sm:$0xff] }
  0x20   : > { %342 = vst [vmem:[%s1209_s6 + $0xa0] sm:$0xff] %v341_v20  ;;  %v345_v22 = vld [vmem:[%s1204_s5 + $0x160] sm:$0xff]  ;;  %v347_v23 = vld [vmem:[%s1204_s5 + $0x170] sm:$0xff]  ;;  %344 = vst [vmem:[%s1209_s6 + $0xa8] sm:$0xff] %v343_v21 }
  0x21   : > { %346 = vst [vmem:[%s1209_s6 + $0xb0] sm:$0xff] %v345_v22  ;;  %348 = vst [vmem:[%s1209_s6 + $0xb8] sm:$0xff] %v347_v23  ;;  %v349_v24 = vld [vmem:[%s1204_s5 + $0x180] sm:$0xff]  ;;  %v351_v25 = vld [vmem:[%s1204_s5 + $0x190] sm:$0xff] }
  0x22   : > { %v353_v26 = vld [vmem:[%s1204_s5 + $0x1a0] sm:$0xff]  ;;  %350 = vst [vmem:[%s1209_s6 + $0xc0] sm:$0xff] %v349_v24  ;;  %352 = vst [vmem:[%s1209_s6 + $0xc8] sm:$0xff] %v351_v25  ;;  %v355_v27 = vld [vmem:[%s1204_s5 + $0x1b0] sm:$0xff] }
  0x23   : > { %354 = vst [vmem:[%s1209_s6 + $0xd0] sm:$0xff] %v353_v26  ;;  %v357_v28 = vld [vmem:[%s1204_s5 + $0x1c0] sm:$0xff]  ;;  %v359_v29 = vld [vmem:[%s1204_s5 + $0x1d0] sm:$0xff]  ;;  %356 = vst [vmem:[%s1209_s6 + $0xd8] sm:$0xff] %v355_v27 }
  0x24   : > { %358 = vst [vmem:[%s1209_s6 + $0xe0] sm:$0xff] %v357_v28  ;;  %360 = vst [vmem:[%s1209_s6 + $0xe8] sm:$0xff] %v359_v29  ;;  %v361_v30 = vld [vmem:[%s1204_s5 + $0x1e0] sm:$0xff]  ;;  %v363_v31 = vld [vmem:[%s1204_s5 + $0x1f0] sm:$0xff] }
  0x25   : > { %362 = vst [vmem:[%s1209_s6 + $0xf0] sm:$0xff] %v361_v30  ;;  %364 = vst [vmem:[%s1209_s6 + $0xf8] sm:$0xff] %v363_v31 }
  0x26 PF: > { %p950_p8 = scmp.ge.s32.totalorder %s1129_s19, 1  ;;  %p385_p9 = scmp.lt.s32.totalorder %s1129_s19, 3 }
  0x28   : > { %p386_p10 = pnand %p950_p8, %p385_p9 }
  0x29   : > { %s392_s7 = sand.u32 (!%p386_p10), 1, %s1113_s15   ;;  %v1090_v32 = vld [vmem:[%s1347_s0 + $0x4] ss:$8 sps:$4 sm:$0xff] (!%p386_p10)   ;;  %v1088_v1 = vld [vmem:[%s1347_s0] ss:$8 sps:$4 sm:$0xff] (!%p386_p10)   ;;  %s953_s14 = sshll.u32 (!%p386_p10), %s1121_s17, 1  ;;  %v736_v2 = vlaneseq (!%p386_p10) }
  0x2a   : > { %389 = sbr.rel (%p386_p10) target bundleno = 339 (0x153), region = 70  ;;  %s951_s8 = sshll.u32 (!%p386_p10), %s392_s7, 8  ;;  %708 = vmatprep.mubr.bf16.mxu0 (!%p386_p10), %v1090_v32 }
  0x2b   : > { %s1280_s11 = scalar_lea.vmem (!%p386_p10), [#allocation3], %s951_s8  ;;  %p449_p11 = scmp.lt.s32.totalorder (!%p386_p10), %s953_s14, 3  ;;  %v737_v3 = vshrl.u32 (!%p386_p10), %v736_v2, 7 }
  0x2c   : > { %v1040_v33 = vld [vmem:[%s1280_s11 + $0x4] ss:$8 sps:$4 sm:$0xff] (!%p386_p10)   ;;  %v1042_v34 = vld [vmem:[%s1280_s11] ss:$8 sps:$4 sm:$0xff] (!%p386_p10)   ;;  %v1043_v35 = vld [vmem:[%s1280_s11 + $0x14] ss:$8 sps:$4 sm:$0xff] (!%p386_p10)  }
  0x2d   : > { %676 = vmatprep.subr.bf16.mxu0 (!%p386_p10), %v1040_v33  ;;  %v1045_v36 = vld [vmem:[%s1280_s11 + $0x10] ss:$8 sps:$4 sm:$0xff] (!%p386_p10)   ;;  %v1046_v37 = vld [vmem:[%s1280_s11 + $0x24] ss:$8 sps:$4 sm:$0xff] (!%p386_p10)   ;;  %v1048_v38 = vld [vmem:[%s1280_s11 + $0x20] ss:$8 sps:$4 sm:$0xff] (!%p386_p10)  }
  0x2e   : > { %677 = vmatpush1.bf16.msra.mxu0 (!%p386_p10), %v1042_v34  ;;  %v1049_v39 = vld [vmem:[%s1280_s11 + $0x34] ss:$8 sps:$4 sm:$0xff] (!%p386_p10)   ;;  %v1051_v40 = vld [vmem:[%s1280_s11 + $0x30] ss:$8 sps:$4 sm:$0xff] (!%p386_p10)   ;;  %v1052_v41 = vld [vmem:[%s1280_s11 + $0x44] ss:$8 sps:$4 sm:$0xff] (!%p386_p10)  }
  0x2f   : > { %678 = vmatprep.subr.bf16.mxu0 (!%p386_p10), %v1043_v35  ;;  %v1054_v42 = vld [vmem:[%s1280_s11 + $0x40] ss:$8 sps:$4 sm:$0xff] (!%p386_p10)   ;;  %v1055_v43 = vld [vmem:[%s1280_s11 + $0x54] ss:$8 sps:$4 sm:$0xff] (!%p386_p10)   ;;  %v1057_v44 = vld [vmem:[%s1280_s11 + $0x50] ss:$8 sps:$4 sm:$0xff] (!%p386_p10)  }
  0x30   : > { %v1058_v45 = vld [vmem:[%s1280_s11 + $0x64] ss:$8 sps:$4 sm:$0xff] (!%p386_p10)   ;;  %v1060_v46 = vld [vmem:[%s1280_s11 + $0x60] ss:$8 sps:$4 sm:$0xff] (!%p386_p10)   ;;  %v1061_v47 = vld [vmem:[%s1280_s11 + $0x74] ss:$8 sps:$4 sm:$0xff] (!%p386_p10)  }
  0x31   : > { %v1063_v48 = vld [vmem:[%s1280_s11 + $0x70] ss:$8 sps:$4 sm:$0xff]   ;;  %v1064_v49 = vld [vmem:[%s1280_s11 + $0x84] ss:$8 sps:$4 sm:$0xff]   ;;  %v1066_v50 = vld [vmem:[%s1280_s11 + $0x80] ss:$8 sps:$4 sm:$0xff]  }
  0x32   : > { %679 = vmatpush1.bf16.msra.mxu0 %v1045_v36  ;;  %v1067_v51 = vld [vmem:[%s1280_s11 + $0x94] ss:$8 sps:$4 sm:$0xff]   ;;  %v1069_v52 = vld [vmem:[%s1280_s11 + $0x90] ss:$8 sps:$4 sm:$0xff]   ;;  %v1070_v53 = vld [vmem:[%s1280_s11 + $0xa4] ss:$8 sps:$4 sm:$0xff]  }
  0x33   : > { %680 = vmatprep.subr.bf16.mxu0 %v1046_v37  ;;  %v1072_v54 = vld [vmem:[%s1280_s11 + $0xa0] ss:$8 sps:$4 sm:$0xff]   ;;  %v1073_v55 = vld [vmem:[%s1280_s11 + $0xb4] ss:$8 sps:$4 sm:$0xff]   ;;  %v1075_v56 = vld [vmem:[%s1280_s11 + $0xb0] ss:$8 sps:$4 sm:$0xff]  }
  0x34   : > { %v1076_v57 = vld [vmem:[%s1280_s11 + $0xc4] ss:$8 sps:$4 sm:$0xff]   ;;  %v1078_v58 = vld [vmem:[%s1280_s11 + $0xc0] ss:$8 sps:$4 sm:$0xff]   ;;  %v1079_v59 = vld [vmem:[%s1280_s11 + $0xd4] ss:$8 sps:$4 sm:$0xff]  }
  0x35   : > { %v1081_v60 = vld [vmem:[%s1280_s11 + $0xd0] ss:$8 sps:$4 sm:$0xff]   ;;  %v1082_v61 = vld [vmem:[%s1280_s11 + $0xe4] ss:$8 sps:$4 sm:$0xff]   ;;  %v1084_v62 = vld [vmem:[%s1280_s11 + $0xe0] ss:$8 sps:$4 sm:$0xff]  }
  0x36   : > { %681 = vmatpush1.bf16.msra.mxu0 %v1048_v38  ;;  %v1085_v63 = vld [vmem:[%s1280_s11 + $0xf4] ss:$8 sps:$4 sm:$0xff]   ;;  %v1087_v0 = vld [vmem:[%s1280_s11 + $0xf0] ss:$8 sps:$4 sm:$0xff]   ;;  %s1360_s14 = smov (!%p449_p11, %s953_s14), 3  ;;  %v738_v4 = vsub.s32 0, %v737_v3 }
  0x37   : > { %682 = vmatprep.subr.bf16.mxu0 %v1049_v39  ;;  %s451_s23 = scalar_lea.vmem %s1349_s2, %s1360_s14  ;;  %s456_s28 = scalar_lea.vmem %s1350_s3, %s1360_s14  ;;  %v742_v6 = vsub.s32 1, %v737_v3 }
  0x38   : > { %v734_v5 = vld [vmem:[%s451_s23] sm:$0x3]  ;;  %s952_s29 = sshll.u32 %s392_s7, 4  ;;  %s999_s15 = sshll.u32 (%p1191_p6), %s1121_s17, 3 }
  0x39   : > { %v750_v7 = vld [vmem:[%s456_s28] sm:$0x3]  ;;  %v739_v8 = vrot.slane %v734_v5, %v738_v4  ;;  %v743_v9 = vrot.slane %v734_v5, %v742_v6  ;;  %s433_s30 = scalar_lea.vmem [#allocation4], %s952_s29  ;;  %s792_s7 = scalar_lea.vmem (%p1191_p6), %s1351_s4, %s999_s15 }
  0x3a   : > { %683 = vmatpush1.bf16.msra.mxu0 %v1051_v40  ;;  %v755_v10 = vrot.slane %v750_v7, %v738_v4  ;;  %v759_v12 = vrot.slane %v750_v7, %v742_v6 }
  0x3b   : > { %684 = vmatprep.subr.bf16.mxu0 %v1052_v41 }
  0x3e   : > { %685 = vmatpush1.bf16.msra.mxu0 %v1054_v42 }
  0x3f   : > { %686 = vmatprep.subr.bf16.mxu0 %v1055_v43 }
  0x42   : > { %687 = vmatpush1.bf16.msra.mxu0 %v1057_v44 }
  0x43   : > { %688 = vmatprep.subr.bf16.mxu0 %v1058_v45 }
  0x46   : > { %689 = vmatpush1.bf16.msra.mxu0 %v1060_v46 }
  0x47   : > { %690 = vmatprep.subr.bf16.mxu0 %v1061_v47 }
  0x4a   : > { %691 = vmatpush1.bf16.msra.mxu0 %v1063_v48 }
  0x4b   : > { %692 = vmatprep.subr.bf16.mxu0 %v1064_v49 }
  0x4e   : > { %693 = vmatpush1.bf16.msra.mxu0 %v1066_v50 }
  0x4f   : > { %694 = vmatprep.subr.bf16.mxu0 %v1067_v51 }
  0x52   : > { %695 = vmatpush1.bf16.msra.mxu0 %v1069_v52 }
  0x53   : > { %696 = vmatprep.subr.bf16.mxu0 %v1070_v53 }
  0x56   : > { %697 = vmatpush1.bf16.msra.mxu0 %v1072_v54 }
  0x57   : > { %698 = vmatprep.subr.bf16.mxu0 %v1073_v55 }
  0x5a   : > { %699 = vmatpush1.bf16.msra.mxu0 %v1075_v56 }
  0x5b   : > { %700 = vmatprep.subr.bf16.mxu0 %v1076_v57 }
  0x5e   : > { %701 = vmatpush1.bf16.msra.mxu0 %v1078_v58 }
  0x5f   : > { %702 = vmatprep.subr.bf16.mxu0 %v1079_v59 }
  0x62   : > { %703 = vmatpush1.bf16.msra.mxu0 %v1081_v60 }
  0x63   : > { %704 = vmatprep.subr.bf16.mxu0 %v1082_v61 }
  0x66   : > { %705 = vmatpush1.bf16.msra.mxu0 %v1084_v62 }
  0x67   : > { %706 = vmatprep.subr.bf16.mxu0 %v1085_v63 }
  0x6a   : > { %707 = vmatpush1.bf16.msra.mxu0 %v1087_v0 }
  0x6d   : > { %709 = vmatmul.mubr.bf16.vlgmr.msra.gmra.mrb[0].mxu0 %v1088_v1 }
 0x140   : > { %v710_v11 = vpop.f32.mrb[0].mxu0 }
 0x141   : > { %v746_v13 = vmul.f32 %v739_v8, %v710_v11  ;;  %v712_v14 = vpop.f32.mrb[1].mxu0 }
 0x142   : > { %v747_v15 = vmul.f32 %v743_v9, %v712_v14  ;;  %v714_v16 = vpop.f32.mrb[2].mxu0 }
 0x143   : > { %v762_v17 = vadd.f32 %v755_v10, %v746_v13  ;;  %v748_v18 = vmul.f32 %v739_v8, %v714_v16  ;;  %v716_v19 = vpop.f32.mrb[3].mxu0 }
 0x144   : > { %v763_v20 = vadd.f32 %v759_v12, %v747_v15  ;;  %v749_v21 = vmul.f32 %v743_v9, %v716_v19  ;;  %786 = sbr.rel (!%p1191_p6) target bundleno = 339 (0x153), region = 86 }
 0x145   : > { %v764_v22 = vadd.f32 %v755_v10, %v748_v18 }
 0x146   : > { %v997_v23 = vpack.c.bf16 %v763_v20, %v762_v17  ;;  %v765_v24 = vadd.f32 %v759_v12, %v749_v21 }
 0x148   : > { %778 = vst [vmem:[%s433_s30] sm:$0xff] %v997_v23  ;;  %v998_v25 = vpack.c.bf16 %v765_v24, %v764_v22 }
 0x14a   : > { %779 = vst [vmem:[%s433_s30 + $0x8] sm:$0xff] %v998_v25 }
 0x14f   : > { %v822_v26 = vld [vmem:[%s433_s30] sm:$0xff] }
 0x150   : > { %823 = vst [vmem:[%s792_s7] sm:$0xff] %v822_v26 }
 0x151   : > { %v824_v27 = vld [vmem:[%s433_s30 + $0x8] sm:$0xff] }
 0x152   : > { %825 = vst [vmem:[%s792_s7 + $0x10] sm:$0xff] %v824_v27 }
 0x153 PF: > { %s14_s19 = sadd.s32 1, %s1129_s19   ;;  %s1353_s15 = smov %s1117_s16 }
 0x154   : > { %p11_p12 = scmp.ge.s32.totalorder %s14_s19, 4   ;;  %s1354_s16 = smov %s1196_s25 }
 0x155   : > { %s1355_s17 = smov %s1125_s18  ;;  %s1356_s18 = smov %s1358_s20 }
 0x156   :  { %13 = sbr.rel (!%p11_p12) target bundleno = 3 (0x3), region = 164 }

// kernel: resnet18_forward.41
= control target key start
LH: loop header
LB: loop body
LE: loop exit
PB: predicated region body
PF: predicated region fallthrough
CT: control target
= control target key end

     0   :  { %s2137_s0 = inlined_call_operand.vmem [shape: bf16[16,4608], index: 0, kind: input, shape index: {}]   ;;  %s2138_s1 = inlined_call_operand.vmem [shape: bf16[4608,512], index: 1, kind: input, shape index: {}]   ;;  %s2139_s2 = inlined_call_operand.vmem [shape: f32[1,512], index: 2, kind: input, shape index: {}]   ;;  %s2140_s3 = inlined_call_operand.vmem [shape: f32[1,512], index: 3, kind: input, shape index: {}]   ;;  %s2141_s4 = inlined_call_operand.vmem [shape: bf16[16,512], index: 4, kind: output, shape index: {}]  }
   0x1   :  { %2144 = sst [smem:[#allocation8_spill]] %s2137_s0 }
   0x2   :  { %2145 = sst [smem:[#allocation9_spill]] %s2138_s1 }
   0x3   :  { %s1746_s15 = smov 0   ;;  %s1748_s16 = smov 0  }
   0x4   :  { %s1750_s17 = smov 0   ;;  %s1752_s18 = smov 0  }
   0x5   :  { %s1754_s19 = smov 0   ;;  %s1756_s20 = smov 0  }
   0x6   :  { %s1758_s21 = smov 0   ;;  %s1760_s22 = smov 0  }
   0x7   :  { %s1762_s23 = smov 0   ;;  %s1764_s24 = smov 0  }
   0x8   :  { %s1766_s25 = smov 0  }
   0x9 LB: > { %s1337_s26 = sadd.s32 4294967295, %s1718_s25   ;;  %s26_s27 = sadd.s32 1, %s1710_s23  ;;  %s1718_s25 = sphi %s1766_s25, %s14_s25   ;;  %s1714_s24 = sphi %s1764_s24, %s2164_s24   ;;  %s1710_s23 = sphi %s1762_s23, %s2163_s23   ;;  %s1706_s22 = sphi %s1760_s22, %s2162_s22   ;;  %s1702_s21 = sphi %s1758_s21, %s2161_s21   ;;  %s1698_s20 = sphi %s1756_s20, %s2160_s20   ;;  %s1694_s19 = sphi %s1754_s19, %s2159_s19   ;;  %s1690_s18 = sphi %s1752_s18, %s2158_s18   ;;  %s1686_s17 = sphi %s1750_s17, %s2157_s17   ;;  %s1682_s16 = sphi %s1748_s16, %s2156_s16   ;;  %s1678_s15 = sphi %s1746_s15, %s2155_s15  }
   0xa   : > { %p27_p0 = scmp.ge.s32.totalorder %s26_s27, 9  ;;  %s29_s28 = sadd.s32 1, %s1714_s24 }
   0xb   : > { %s42_s29 = sadd.s32 1, %s1698_s20  ;;  %p49_p1 = scmp.ne.s32.totalorder %s1698_s20, %s1694_s19 }
   0xc   : > { %s2166_s27 = smov (%p27_p0, %s26_s27), 0  ;;  %s2168_s28 = smov (!%p27_p0, %s29_s28), %s1714_s24 }
   0xd   : > { %2146 = sst [smem:[#allocation6_spill]] %s2166_s27  ;;  %s38_s30 = ssub.s32 %s1710_s23, %s2166_s27 }
   0xe   : > { %p50_p2 = scmp.eq.s32.totalorder %s1718_s25, 0  ;;  %p31_p3 = scmp.ge.s32.totalorder %s2168_s28, 2 }
   0xf   : > { %p40_p4 = scmp.eq.s32.totalorder %s38_s30, 0  ;;  %s70_s6 = sadd.s32 1, %s1690_s18 }
  0x10   : > { %p1813_p5 = por %p50_p2, %p49_p1  ;;  %s2170_s28 = smov (%p31_p3, %s2168_s28), 0 }
  0x11   : > { %2148 = sst [smem:[#allocation7_spill]] %s2170_s28  ;;  %s66_s8 = ssub.s32 %s1714_s24, %s2170_s28 }
  0x12   : > { %s1821_s7 = scalar_select %p40_p4, %s1698_s20, %s42_s29  }
  0x13   : > { %p77_p6 = scmp.ne.s32.totalorder %s1690_s18, %s1686_s17  ;;  %s67_s9 = sor.u32 %s66_s8, %s38_s30 }
  0x14   : > { %p148_p7 = scmp.eq.s32.totalorder %s66_s8, 0  ;;  %p68_p8 = scmp.eq.s32.totalorder %s67_s9, 0 }
  0x15   : > { %p1827_p9 = por %p77_p6, %p50_p2  ;;  %s150_s11 = sadd.s32 1, %s1682_s16 }
  0x16   : > { %p160_p10 = scmp.ne.s32.totalorder %s1682_s16, %s1678_s15  ;;  %p161_p11 = scmp.eq.s32.totalorder %s1337_s26, 17 }
  0x17   : > { %s1835_s12 = scalar_select %p68_p8, %s1690_s18, %s70_s6  }
  0x18   : > { %s1838_s13 = scalar_select %p148_p7, %s1682_s16, %s150_s11  }
  0x19   : > { %p1840_p12 = por %p161_p11, %p160_p10  ;;  %p1340_p13 = scmp.ge.s32.totalorder %s1718_s25, 18 }
  0x1b   : > { %183 = sbr.rel (%p1340_p13) target bundleno = 88 (0x58), region = 16 }
  0x22   : > { %186 = sbr.rel (!%p1813_p5) target bundleno = 46 (0x2e), region = 20  ;;  %s188_s29 = sand.u32 (%p1813_p5), 1, %s1698_s20  }
  0x23   : > { %s1432_s30 = sshll.u32 (%p1813_p5), %s1710_s23, 4  ;;  %s1341_s8 = sshll.u32 (%p1813_p5), %s188_s29, 5 }
  0x24   : > { %s2151_s0 = sld [smem:[#allocation8_spill]] (%p1813_p5)  ;;  %s190_s26 = scalar_lea.vmem (%p1813_p5), [#allocation3], %s1341_s8 }
  0x2a   : > { %s196_s11 = scalar_lea.vmem %s2151_s0, %s1432_s30 }
  0x2b   : > { %v209_v0 = vld [vmem:[%s196_s11] sm:$0xff]  ;;  %v211_v1 = vld [vmem:[%s196_s11 + $0x8] sm:$0xff]  ;;  %v213_v2 = vld [vmem:[%s196_s11 + $0x90] sm:$0xff] }
  0x2c   : > { %210 = vst [vmem:[%s190_s26] sm:$0xff] %v209_v0  ;;  %212 = vst [vmem:[%s190_s26 + $0x8] sm:$0xff] %v211_v1  ;;  %v215_v3 = vld [vmem:[%s196_s11 + $0x98] sm:$0xff] }
  0x2d   : > { %214 = vst [vmem:[%s190_s26 + $0x10] sm:$0xff] %v213_v2  ;;  %216 = vst [vmem:[%s190_s26 + $0x18] sm:$0xff] %v215_v3 }
  0x2e PF: > { %222 = sbr.rel (!%p1827_p9) target bundleno = 88 (0x58), region = 43  ;;  %s224_s5 = sand.u32 (%p1827_p9), 1, %s1690_s18  }
  0x2f   : > { %s1346_s29 = sshll.u32 (%p1827_p9), %s1714_s24, 1  ;;  %s1344_s6 = sshll.u32 (%p1827_p9), %s224_s5, 9 }
  0x30   : > { %s1433_s30 = sshll.u32 (%p1827_p9), %s1710_s23, 8  ;;  %s2152_s1 = sld [smem:[#allocation9_spill]] (%p1827_p9) }
  0x31   : > { %s230_s9 = sadd.s32 (%p1827_p9), %s1433_s30, %s1346_s29  ;;  %s1865_s10 = scalar_lea.vmem (%p1827_p9), [#allocation4], %s1344_s6 }
  0x32   : > { %s1348_s0 = sshll.u32 (%p1827_p9), %s230_s9, 2 }
  0x36   : > { %s1860_s27 = scalar_lea.vmem %s2152_s1, %s1348_s0 }
  0x37   : > { %v386_v4 = vld [vmem:[%s1860_s27] sm:$0xff]  ;;  %v388_v5 = vld [vmem:[%s1860_s27 + $0x10] sm:$0xff] }
  0x38   : > { %v390_v6 = vld [vmem:[%s1860_s27 + $0x20] sm:$0xff]  ;;  %387 = vst [vmem:[%s1865_s10] sm:$0xff] %v386_v4  ;;  %389 = vst [vmem:[%s1865_s10 + $0x8] sm:$0xff] %v388_v5  ;;  %v392_v7 = vld [vmem:[%s1860_s27 + $0x30] sm:$0xff] }
  0x39   : > { %391 = vst [vmem:[%s1865_s10 + $0x10] sm:$0xff] %v390_v6  ;;  %v394_v8 = vld [vmem:[%s1860_s27 + $0x40] sm:$0xff]  ;;  %v396_v9 = vld [vmem:[%s1860_s27 + $0x50] sm:$0xff]  ;;  %393 = vst [vmem:[%s1865_s10 + $0x18] sm:$0xff] %v392_v7 }
  0x3a   : > { %395 = vst [vmem:[%s1865_s10 + $0x20] sm:$0xff] %v394_v8  ;;  %397 = vst [vmem:[%s1865_s10 + $0x28] sm:$0xff] %v396_v9  ;;  %v398_v10 = vld [vmem:[%s1860_s27 + $0x60] sm:$0xff]  ;;  %v400_v11 = vld [vmem:[%s1860_s27 + $0x70] sm:$0xff] }
  0x3b   : > { %v402_v12 = vld [vmem:[%s1860_s27 + $0x80] sm:$0xff]  ;;  %399 = vst [vmem:[%s1865_s10 + $0x30] sm:$0xff] %v398_v10  ;;  %401 = vst [vmem:[%s1865_s10 + $0x38] sm:$0xff] %v400_v11  ;;  %v404_v13 = vld [vmem:[%s1860_s27 + $0x90] sm:$0xff] }
  0x3c   : > { %403 = vst [vmem:[%s1865_s10 + $0x40] sm:$0xff] %v402_v12  ;;  %v406_v14 = vld [vmem:[%s1860_s27 + $0xa0] sm:$0xff]  ;;  %v408_v15 = vld [vmem:[%s1860_s27 + $0xb0] sm:$0xff]  ;;  %405 = vst [vmem:[%s1865_s10 + $0x48] sm:$0xff] %v404_v13 }
  0x3d   : > { %407 = vst [vmem:[%s1865_s10 + $0x50] sm:$0xff] %v406_v14  ;;  %409 = vst [vmem:[%s1865_s10 + $0x58] sm:$0xff] %v408_v15  ;;  %v410_v16 = vld [vmem:[%s1860_s27 + $0xc0] sm:$0xff]  ;;  %v412_v17 = vld [vmem:[%s1860_s27 + $0xd0] sm:$0xff] }
  0x3e   : > { %v414_v18 = vld [vmem:[%s1860_s27 + $0xe0] sm:$0xff]  ;;  %411 = vst [vmem:[%s1865_s10 + $0x60] sm:$0xff] %v410_v16  ;;  %413 = vst [vmem:[%s1865_s10 + $0x68] sm:$0xff] %v412_v17  ;;  %v416_v19 = vld [vmem:[%s1860_s27 + $0xf0] sm:$0xff] }
  0x3f   : > { %415 = vst [vmem:[%s1865_s10 + $0x70] sm:$0xff] %v414_v18  ;;  %v418_v20 = vld [vmem:[%s1860_s27 + $0x100] sm:$0xff]  ;;  %v420_v21 = vld [vmem:[%s1860_s27 + $0x110] sm:$0xff]  ;;  %417 = vst [vmem:[%s1865_s10 + $0x78] sm:$0xff] %v416_v19 }
  0x40   : > { %419 = vst [vmem:[%s1865_s10 + $0x80] sm:$0xff] %v418_v20  ;;  %421 = vst [vmem:[%s1865_s10 + $0x88] sm:$0xff] %v420_v21  ;;  %v422_v22 = vld [vmem:[%s1860_s27 + $0x120] sm:$0xff]  ;;  %v424_v23 = vld [vmem:[%s1860_s27 + $0x130] sm:$0xff] }
  0x41   : > { %v426_v24 = vld [vmem:[%s1860_s27 + $0x140] sm:$0xff]  ;;  %423 = vst [vmem:[%s1865_s10 + $0x90] sm:$0xff] %v422_v22  ;;  %425 = vst [vmem:[%s1865_s10 + $0x98] sm:$0xff] %v424_v23  ;;  %v428_v25 = vld [vmem:[%s1860_s27 + $0x150] sm:$0xff] }
  0x42   : > { %427 = vst [vmem:[%s1865_s10 + $0xa0] sm:$0xff] %v426_v24  ;;  %v430_v26 = vld [vmem:[%s1860_s27 + $0x160] sm:$0xff]  ;;  %v432_v27 = vld [vmem:[%s1860_s27 + $0x170] sm:$0xff]  ;;  %429 = vst [vmem:[%s1865_s10 + $0xa8] sm:$0xff] %v428_v25 }
  0x43   : > { %431 = vst [vmem:[%s1865_s10 + $0xb0] sm:$0xff] %v430_v26  ;;  %433 = vst [vmem:[%s1865_s10 + $0xb8] sm:$0xff] %v432_v27  ;;  %v434_v28 = vld [vmem:[%s1860_s27 + $0x180] sm:$0xff]  ;;  %v436_v29 = vld [vmem:[%s1860_s27 + $0x190] sm:$0xff] }
  0x44   : > { %v438_v30 = vld [vmem:[%s1860_s27 + $0x1a0] sm:$0xff]  ;;  %435 = vst [vmem:[%s1865_s10 + $0xc0] sm:$0xff] %v434_v28  ;;  %437 = vst [vmem:[%s1865_s10 + $0xc8] sm:$0xff] %v436_v29  ;;  %v440_v31 = vld [vmem:[%s1860_s27 + $0x1b0] sm:$0xff] }
  0x45   : > { %439 = vst [vmem:[%s1865_s10 + $0xd0] sm:$0xff] %v438_v30  ;;  %v442_v32 = vld [vmem:[%s1860_s27 + $0x1c0] sm:$0xff]  ;;  %v444_v33 = vld [vmem:[%s1860_s27 + $0x1d0] sm:$0xff]  ;;  %441 = vst [vmem:[%s1865_s10 + $0xd8] sm:$0xff] %v440_v31 }
  0x46   : > { %443 = vst [vmem:[%s1865_s10 + $0xe0] sm:$0xff] %v442_v32  ;;  %445 = vst [vmem:[%s1865_s10 + $0xe8] sm:$0xff] %v444_v33  ;;  %v446_v34 = vld [vmem:[%s1860_s27 + $0x1e0] sm:$0xff]  ;;  %v448_v35 = vld [vmem:[%s1860_s27 + $0x1f0] sm:$0xff] }
  0x47   : > { %v450_v36 = vld [vmem:[%s1860_s27 + $0x200] sm:$0xff]  ;;  %447 = vst [vmem:[%s1865_s10 + $0xf0] sm:$0xff] %v446_v34  ;;  %449 = vst [vmem:[%s1865_s10 + $0xf8] sm:$0xff] %v448_v35  ;;  %v452_v37 = vld [vmem:[%s1860_s27 + $0x210] sm:$0xff] }
  0x48   : > { %451 = vst [vmem:[%s1865_s10 + $0x100] sm:$0xff] %v450_v36  ;;  %v454_v38 = vld [vmem:[%s1860_s27 + $0x220] sm:$0xff]  ;;  %v456_v39 = vld [vmem:[%s1860_s27 + $0x230] sm:$0xff]  ;;  %453 = vst [vmem:[%s1865_s10 + $0x108] sm:$0xff] %v452_v37 }
  0x49   : > { %455 = vst [vmem:[%s1865_s10 + $0x110] sm:$0xff] %v454_v38  ;;  %457 = vst [vmem:[%s1865_s10 + $0x118] sm:$0xff] %v456_v39  ;;  %v458_v40 = vld [vmem:[%s1860_s27 + $0x240] sm:$0xff]  ;;  %v460_v41 = vld [vmem:[%s1860_s27 + $0x250] sm:$0xff] }
  0x4a   : > { %v462_v42 = vld [vmem:[%s1860_s27 + $0x260] sm:$0xff]  ;;  %459 = vst [vmem:[%s1865_s10 + $0x120] sm:$0xff] %v458_v40  ;;  %461 = vst [vmem:[%s1865_s10 + $0x128] sm:$0xff] %v460_v41  ;;  %v464_v43 = vld [vmem:[%s1860_s27 + $0x270] sm:$0xff] }
  0x4b   : > { %463 = vst [vmem:[%s1865_s10 + $0x130] sm:$0xff] %v462_v42  ;;  %v466_v44 = vld [vmem:[%s1860_s27 + $0x280] sm:$0xff]  ;;  %v468_v45 = vld [vmem:[%s1860_s27 + $0x290] sm:$0xff]  ;;  %465 = vst [vmem:[%s1865_s10 + $0x138] sm:$0xff] %v464_v43 }
  0x4c   : > { %467 = vst [vmem:[%s1865_s10 + $0x140] sm:$0xff] %v466_v44  ;;  %469 = vst [vmem:[%s1865_s10 + $0x148] sm:$0xff] %v468_v45  ;;  %v470_v46 = vld [vmem:[%s1860_s27 + $0x2a0] sm:$0xff]  ;;  %v472_v47 = vld [vmem:[%s1860_s27 + $0x2b0] sm:$0xff] }
  0x4d   : > { %v474_v48 = vld [vmem:[%s1860_s27 + $0x2c0] sm:$0xff]  ;;  %471 = vst [vmem:[%s1865_s10 + $0x150] sm:$0xff] %v470_v46  ;;  %473 = vst [vmem:[%s1865_s10 + $0x158] sm:$0xff] %v472_v47  ;;  %v476_v49 = vld [vmem:[%s1860_s27 + $0x2d0] sm:$0xff] }
  0x4e   : > { %475 = vst [vmem:[%s1865_s10 + $0x160] sm:$0xff] %v474_v48  ;;  %v478_v50 = vld [vmem:[%s1860_s27 + $0x2e0] sm:$0xff]  ;;  %v480_v51 = vld [vmem:[%s1860_s27 + $0x2f0] sm:$0xff]  ;;  %477 = vst [vmem:[%s1865_s10 + $0x168] sm:$0xff] %v476_v49 }
  0x4f   : > { %479 = vst [vmem:[%s1865_s10 + $0x170] sm:$0xff] %v478_v50  ;;  %481 = vst [vmem:[%s1865_s10 + $0x178] sm:$0xff] %v480_v51  ;;  %v482_v52 = vld [vmem:[%s1860_s27 + $0x300] sm:$0xff]  ;;  %v484_v53 = vld [vmem:[%s1860_s27 + $0x310] sm:$0xff] }
  0x50   : > { %v486_v54 = vld [vmem:[%s1860_s27 + $0x320] sm:$0xff]  ;;  %483 = vst [vmem:[%s1865_s10 + $0x180] sm:$0xff] %v482_v52  ;;  %485 = vst [vmem:[%s1865_s10 + $0x188] sm:$0xff] %v484_v53  ;;  %v488_v55 = vld [vmem:[%s1860_s27 + $0x330] sm:$0xff] }
  0x51   : > { %487 = vst [vmem:[%s1865_s10 + $0x190] sm:$0xff] %v486_v54  ;;  %v490_v56 = vld [vmem:[%s1860_s27 + $0x340] sm:$0xff]  ;;  %v492_v57 = vld [vmem:[%s1860_s27 + $0x350] sm:$0xff]  ;;  %489 = vst [vmem:[%s1865_s10 + $0x198] sm:$0xff] %v488_v55 }
  0x52   : > { %491 = vst [vmem:[%s1865_s10 + $0x1a0] sm:$0xff] %v490_v56  ;;  %493 = vst [vmem:[%s1865_s10 + $0x1a8] sm:$0xff] %v492_v57  ;;  %v494_v58 = vld [vmem:[%s1860_s27 + $0x360] sm:$0xff]  ;;  %v496_v59 = vld [vmem:[%s1860_s27 + $0x370] sm:$0xff] }
  0x53   : > { %v498_v60 = vld [vmem:[%s1860_s27 + $0x380] sm:$0xff]  ;;  %495 = vst [vmem:[%s1865_s10 + $0x1b0] sm:$0xff] %v494_v58  ;;  %497 = vst [vmem:[%s1865_s10 + $0x1b8] sm:$0xff] %v496_v59  ;;  %v500_v61 = vld [vmem:[%s1860_s27 + $0x390] sm:$0xff] }
  0x54   : > { %499 = vst [vmem:[%s1865_s10 + $0x1c0] sm:$0xff] %v498_v60  ;;  %v502_v62 = vld [vmem:[%s1860_s27 + $0x3a0] sm:$0xff]  ;;  %v504_v63 = vld [vmem:[%s1860_s27 + $0x3b0] sm:$0xff]  ;;  %501 = vst [vmem:[%s1865_s10 + $0x1c8] sm:$0xff] %v500_v61 }
  0x55   : > { %503 = vst [vmem:[%s1865_s10 + $0x1d0] sm:$0xff] %v502_v62  ;;  %505 = vst [vmem:[%s1865_s10 + $0x1d8] sm:$0xff] %v504_v63  ;;  %v506_v0 = vld [vmem:[%s1860_s27 + $0x3c0] sm:$0xff]  ;;  %v508_v1 = vld [vmem:[%s1860_s27 + $0x3d0] sm:$0xff] }
  0x56   : > { %v510_v2 = vld [vmem:[%s1860_s27 + $0x3e0] sm:$0xff]  ;;  %507 = vst [vmem:[%s1865_s10 + $0x1e0] sm:$0xff] %v506_v0  ;;  %509 = vst [vmem:[%s1865_s10 + $0x1e8] sm:$0xff] %v508_v1  ;;  %v512_v3 = vld [vmem:[%s1860_s27 + $0x3f0] sm:$0xff] }
  0x57   : > { %511 = vst [vmem:[%s1865_s10 + $0x1f0] sm:$0xff] %v510_v2  ;;  %513 = vst [vmem:[%s1865_s10 + $0x1f8] sm:$0xff] %v512_v3 }
  0x58 PF: > { %p1349_p0 = scmp.ge.s32.totalorder %s1718_s25, 1  ;;  %p534_p1 = scmp.lt.s32.totalorder %s1718_s25, 19 }
  0x5a   : > { %p535_p2 = pnand %p1349_p0, %p534_p1 }
  0x5b   : > { %s541_s0 = sand.u32 (!%p535_p2), 1, %s1694_s19   ;;  %s548_s28 = sand.u32 (!%p535_p2), 1, %s1686_s17  }
  0x5c   : > { %538 = sbr.rel (%p535_p2) target bundleno = 416 (0x1a0), region = 89  ;;  %s1350_s11 = sshll.u32 (!%p535_p2), %s541_s0, 5 }
  0x5d   : > { %s1351_s26 = sshll.u32 (!%p535_p2), %s548_s28, 9  ;;  %s581_s5 = sand.u32 (!%p535_p2), 1, %s1678_s15  }
  0x5e   : > { %s1353_s29 = sshll.u32 (!%p535_p2), %s1706_s22, 1  ;;  %s1352_s27 = sshll.u32 (!%p535_p2), %s581_s5, 4 }
  0x5f   : > { %p589_p3 = scmp.lt.s32.totalorder (!%p535_p2), %s1353_s29, 3  ;;  %s2008_s19 = scalar_lea.vmem (!%p535_p2), [#allocation3], %s1350_s11 }
  0x60   : > { %s2010_s17 = scalar_lea.vmem (!%p535_p2), [#allocation4], %s1351_s26  ;;  %s2012_s15 = scalar_lea.vmem (!%p535_p2), [#allocation5], %s1352_s27 }
  0x61   : > { %p1355_p4 = scmp.ne.s32.totalorder (!%p535_p2), %s1702_s21, 0 }
  0x63   : > { %s2172_s29 = smov (!%p589_p3, %s1353_s29), 3  ;;  %603 = sbr.rel (%p1355_p4) target bundleno = 106 (0x6a), region = 101 }
  0x64   : > { %s591_s9 = scalar_lea.vmem %s2139_s2, %s2172_s29  ;;  %s596_s1 = scalar_lea.vmem %s2140_s3, %s2172_s29  ;;  %v1720_v4 = vmov (!%p1355_p4), 0.0  }
  0x65   : > { %604 = vst [vmem:[#allocation2] sm:$0xff] (!%p1355_p4), %v1720_v4  ;;  %605 = vst [vmem:[#allocation2 + $0x8] sm:$0xff] (!%p1355_p4), %v1720_v4 }
  0x66   : > { %606 = vst [vmem:[#allocation2 + $0x10] sm:$0xff] (!%p1355_p4), %v1720_v4  ;;  %607 = vst [vmem:[#allocation2 + $0x18] sm:$0xff] (!%p1355_p4), %v1720_v4 }
  0x6a PF: > { %v1530_v5 = vld [vmem:[%s2010_s17 + $0x4] ss:$8 sps:$4 sm:$0xff]   ;;  %v1534_v7 = vld [vmem:[%s2010_s17] ss:$8 sps:$4 sm:$0xff]   ;;  %v1536_v9 = vld [vmem:[%s2010_s17 + $0x14] ss:$8 sps:$4 sm:$0xff]  }
  0x6b   : > { %v1532_v6 = vld [vmem:[%s2010_s17 + $0x104] ss:$8 sps:$4 sm:$0xff]   ;;  %1020 = vmatprep.subr.bf16.mxu1 %v1530_v5  ;;  %v1535_v8 = vld [vmem:[%s2010_s17 + $0x100] ss:$8 sps:$4 sm:$0xff]   ;;  %v1538_v10 = vld [vmem:[%s2010_s17 + $0x114] ss:$8 sps:$4 sm:$0xff]  }
  0x6c   : > { %1063 = vmatprep.subr.bf16.mxu0 %v1532_v6  ;;  %1021 = vmatpush1.bf16.msra.mxu1 %v1534_v7  ;;  %v1540_v11 = vld [vmem:[%s2010_s17 + $0x10] ss:$8 sps:$4 sm:$0xff]   ;;  %v1542_v13 = vld [vmem:[%s2010_s17 + $0x24] ss:$8 sps:$4 sm:$0xff]   ;;  %v1546_v15 = vld [vmem:[%s2010_s17 + $0x20] ss:$8 sps:$4 sm:$0xff]  }
  0x6d   : > { %1064 = vmatpush1.bf16.msra.mxu0 %v1535_v8  ;;  %1022 = vmatprep.subr.bf16.mxu1 %v1536_v9  ;;  %v1541_v12 = vld [vmem:[%s2010_s17 + $0x110] ss:$8 sps:$4 sm:$0xff]   ;;  %v1544_v14 = vld [vmem:[%s2010_s17 + $0x124] ss:$8 sps:$4 sm:$0xff]   ;;  %v1547_v16 = vld [vmem:[%s2010_s17 + $0x120] ss:$8 sps:$4 sm:$0xff]  }
  0x6e   : > { %1065 = vmatprep.subr.bf16.mxu0 %v1538_v10  ;;  %v1548_v17 = vld [vmem:[%s2010_s17 + $0x34] ss:$8 sps:$4 sm:$0xff]   ;;  %v1552_v19 = vld [vmem:[%s2010_s17 + $0x30] ss:$8 sps:$4 sm:$0xff]   ;;  %v1554_v21 = vld [vmem:[%s2010_s17 + $0x44] ss:$8 sps:$4 sm:$0xff]  }
  0x6f   : > { %v1550_v18 = vld [vmem:[%s2010_s17 + $0x134] ss:$8 sps:$4 sm:$0xff]   ;;  %v1553_v20 = vld [vmem:[%s2010_s17 + $0x130] ss:$8 sps:$4 sm:$0xff]   ;;  %v1556_v22 = vld [vmem:[%s2010_s17 + $0x144] ss:$8 sps:$4 sm:$0xff]  }
  0x70   : > { %1023 = vmatpush1.bf16.msra.mxu1 %v1540_v11  ;;  %v1558_v23 = vld [vmem:[%s2010_s17 + $0x40] ss:$8 sps:$4 sm:$0xff]   ;;  %v1560_v25 = vld [vmem:[%s2010_s17 + $0x54] ss:$8 sps:$4 sm:$0xff]   ;;  %v1564_v27 = vld [vmem:[%s2010_s17 + $0x50] ss:$8 sps:$4 sm:$0xff]  }
  0x71   : > { %1066 = vmatpush1.bf16.msra.mxu0 %v1541_v12  ;;  %1024 = vmatprep.subr.bf16.mxu1 %v1542_v13  ;;  %v1559_v24 = vld [vmem:[%s2010_s17 + $0x140] ss:$8 sps:$4 sm:$0xff]   ;;  %v1562_v26 = vld [vmem:[%s2010_s17 + $0x154] ss:$8 sps:$4 sm:$0xff]   ;;  %v1565_v28 = vld [vmem:[%s2010_s17 + $0x150] ss:$8 sps:$4 sm:$0xff]  }
  0x72   : > { %1067 = vmatprep.subr.bf16.mxu0 %v1544_v14  ;;  %v1566_v29 = vld [vmem:[%s2010_s17 + $0x64] ss:$8 sps:$4 sm:$0xff]   ;;  %v1570_v31 = vld [vmem:[%s2010_s17 + $0x60] ss:$8 sps:$4 sm:$0xff]   ;;  %v1572_v33 = vld [vmem:[%s2010_s17 + $0x74] ss:$8 sps:$4 sm:$0xff]  }
  0x73   : > { %v1568_v30 = vld [vmem:[%s2010_s17 + $0x164] ss:$8 sps:$4 sm:$0xff]   ;;  %v1571_v32 = vld [vmem:[%s2010_s17 + $0x160] ss:$8 sps:$4 sm:$0xff]   ;;  %v1574_v34 = vld [vmem:[%s2010_s17 + $0x174] ss:$8 sps:$4 sm:$0xff]  }
  0x74   : > { %1025 = vmatpush1.bf16.msra.mxu1 %v1546_v15  ;;  %v1576_v35 = vld [vmem:[%s2010_s17 + $0x70] ss:$8 sps:$4 sm:$0xff]   ;;  %v1578_v37 = vld [vmem:[%s2010_s17 + $0x84] ss:$8 sps:$4 sm:$0xff]   ;;  %v1582_v39 = vld [vmem:[%s2010_s17 + $0x80] ss:$8 sps:$4 sm:$0xff]  }
  0x75   : > { %1068 = vmatpush1.bf16.msra.mxu0 %v1547_v16  ;;  %1026 = vmatprep.subr.bf16.mxu1 %v1548_v17  ;;  %v1577_v36 = vld [vmem:[%s2010_s17 + $0x170] ss:$8 sps:$4 sm:$0xff]   ;;  %v1580_v38 = vld [vmem:[%s2010_s17 + $0x184] ss:$8 sps:$4 sm:$0xff]   ;;  %v1583_v40 = vld [vmem:[%s2010_s17 + $0x180] ss:$8 sps:$4 sm:$0xff]  }
  0x76   : > { %1069 = vmatprep.subr.bf16.mxu0 %v1550_v18  ;;  %v1584_v41 = vld [vmem:[%s2010_s17 + $0x94] ss:$8 sps:$4 sm:$0xff]   ;;  %v1588_v43 = vld [vmem:[%s2010_s17 + $0x90] ss:$8 sps:$4 sm:$0xff]   ;;  %v1590_v45 = vld [vmem:[%s2010_s17 + $0xa4] ss:$8 sps:$4 sm:$0xff]  }
  0x77   : > { %v1586_v42 = vld [vmem:[%s2010_s17 + $0x194] ss:$8 sps:$4 sm:$0xff]   ;;  %v1589_v44 = vld [vmem:[%s2010_s17 + $0x190] ss:$8 sps:$4 sm:$0xff]   ;;  %v1592_v46 = vld [vmem:[%s2010_s17 + $0x1a4] ss:$8 sps:$4 sm:$0xff]  }
  0x78   : > { %1027 = vmatpush1.bf16.msra.mxu1 %v1552_v19  ;;  %v1594_v47 = vld [vmem:[%s2010_s17 + $0xa0] ss:$8 sps:$4 sm:$0xff]   ;;  %v1596_v49 = vld [vmem:[%s2010_s17 + $0xb4] ss:$8 sps:$4 sm:$0xff]   ;;  %v1600_v51 = vld [vmem:[%s2010_s17 + $0xb0] ss:$8 sps:$4 sm:$0xff]  }
  0x79   : > { %1070 = vmatpush1.bf16.msra.mxu0 %v1553_v20  ;;  %1028 = vmatprep.subr.bf16.mxu1 %v1554_v21  ;;  %v1595_v48 = vld [vmem:[%s2010_s17 + $0x1a0] ss:$8 sps:$4 sm:$0xff]   ;;  %v1598_v50 = vld [vmem:[%s2010_s17 + $0x1b4] ss:$8 sps:$4 sm:$0xff]   ;;  %v1601_v53 = vld [vmem:[%s2010_s17 + $0x1b0] ss:$8 sps:$4 sm:$0xff]  }
  0x7a   : > { %1071 = vmatprep.subr.bf16.mxu0 %v1556_v22  ;;  %v1628_v52 = vld [vmem:[%s2008_s19 + $0x4] ss:$16 sps:$4 sm:$0xff]   ;;  %v1631_v56 = vld [vmem:[%s2008_s19 + $0xc] ss:$16 sps:$4 sm:$0xff]   ;;  %v1606_v57 = vld [vmem:[%s2010_s17 + $0xc0] ss:$8 sps:$4 sm:$0xff]  }
  0x7b   : > { %v1602_v54 = vld [vmem:[%s2010_s17 + $0xc4] ss:$8 sps:$4 sm:$0xff]   ;;  %1052 = vmatprep.mubr.bf16.mxu1 %v1628_v52  ;;  %1095 = vmatprep.mubr.bf16.mxu0 %v1631_v56  ;;  %v1607_v58 = vld [vmem:[%s2010_s17 + $0x1c0] ss:$8 sps:$4 sm:$0xff]   ;;  %v1608_v59 = vld [vmem:[%s2010_s17 + $0xd4] ss:$8 sps:$4 sm:$0xff]  }
  0x7c   : > { %1029 = vmatpush1.bf16.msra.mxu1 %v1558_v23  ;;  %v1604_v55 = vld [vmem:[%s2010_s17 + $0x1c4] ss:$8 sps:$4 sm:$0xff]   ;;  %v1610_v60 = vld [vmem:[%s2010_s17 + $0x1d4] ss:$8 sps:$4 sm:$0xff]   ;;  %v1612_v61 = vld [vmem:[%s2010_s17 + $0xd0] ss:$8 sps:$4 sm:$0xff]  }
  0x7d   : > { %1072 = vmatpush1.bf16.msra.mxu0 %v1559_v24  ;;  %1030 = vmatprep.subr.bf16.mxu1 %v1560_v25  ;;  %v1613_v62 = vld [vmem:[%s2010_s17 + $0x1d0] ss:$8 sps:$4 sm:$0xff]   ;;  %v1614_v63 = vld [vmem:[%s2010_s17 + $0xe4] ss:$8 sps:$4 sm:$0xff]   ;;  %v1618_v1 = vld [vmem:[%s2010_s17 + $0xe0] ss:$8 sps:$4 sm:$0xff]  }
  0x7e   : > { %1073 = vmatprep.subr.bf16.mxu0 %v1562_v26  ;;  %v1616_v0 = vld [vmem:[%s2010_s17 + $0x1e4] ss:$8 sps:$4 sm:$0xff]   ;;  %v1619_v2 = vld [vmem:[%s2010_s17 + $0x1e0] ss:$8 sps:$4 sm:$0xff]   ;;  %v1620_v3 = vld [vmem:[%s2010_s17 + $0xf4] ss:$8 sps:$4 sm:$0xff]  }
  0x7f   : > { %v1622_v4 = vld [vmem:[%s2010_s17 + $0x1f4] ss:$8 sps:$4 sm:$0xff]   ;;  %v1624_v5 = vld [vmem:[%s2010_s17 + $0xf0] ss:$8 sps:$4 sm:$0xff]   ;;  %v608_v10 = vld [vmem:[#allocation2] sm:$0xff]  ;;  %p1424_p5 = scmp.ne.s32.totalorder %s1702_s21, 8 }
  0x80   : > { %1031 = vmatpush1.bf16.msra.mxu1 %v1564_v27  ;;  %v1625_v6 = vld [vmem:[%s2010_s17 + $0x1f0] ss:$8 sps:$4 sm:$0xff]   ;;  %v609_v14 = vld [vmem:[#allocation2 + $0x8] sm:$0xff] }
  0x81   : > { %1074 = vmatpush1.bf16.msra.mxu0 %v1565_v28  ;;  %1032 = vmatprep.subr.bf16.mxu1 %v1566_v29  ;;  %v1626_v7 = vld [vmem:[%s2008_s19] ss:$16 sps:$4 sm:$0xff]   ;;  %v1629_v8 = vld [vmem:[%s2008_s19 + $0x8] ss:$16 sps:$4 sm:$0xff]   ;;  %v1124_v29 = vlaneseq (!%p1424_p5) }
  0x82   : > { %1075 = vmatprep.subr.bf16.mxu0 %v1568_v30  ;;  %v610_v18 = vld [vmem:[#allocation2 + $0x10] sm:$0xff]  ;;  %v611_v23 = vld [vmem:[#allocation2 + $0x18] sm:$0xff] }
  0x83   : > { %v1125_v30 = vshrl.u32 (!%p1424_p5), %v1124_v29, 7 }
  0x84   : > { %1033 = vmatpush1.bf16.msra.mxu1 %v1570_v31  ;;  %v1122_v31 = vld [vmem:[%s591_s9] sm:$0x3] (!%p1424_p5) }
  0x85   : > { %1076 = vmatpush1.bf16.msra.mxu0 %v1571_v32  ;;  %1034 = vmatprep.subr.bf16.mxu1 %v1572_v33  ;;  %v1138_v32 = vld [vmem:[%s596_s1] sm:$0x3] (!%p1424_p5) }
  0x86   : > { %1077 = vmatprep.subr.bf16.mxu0 %v1574_v34  ;;  %v1126_v34 = vsub.s32 (!%p1424_p5), 0, %v1125_v30 }
  0x88   : > { %1035 = vmatpush1.bf16.msra.mxu1 %v1576_v35  ;;  %v1130_v35 = vsub.s32 (!%p1424_p5), 1, %v1125_v30 }
  0x89   : > { %1078 = vmatpush1.bf16.msra.mxu0 %v1577_v36  ;;  %1036 = vmatprep.subr.bf16.mxu1 %v1578_v37 }
  0x8a   : > { %1079 = vmatprep.subr.bf16.mxu0 %v1580_v38 }
  0x8c   : > { %1037 = vmatpush1.bf16.msra.mxu1 %v1582_v39  ;;  %v1127_v39 = vrot.slane (!%p1424_p5), %v1122_v31, %v1126_v34 }
  0x8d   : > { %1080 = vmatpush1.bf16.msra.mxu0 %v1583_v40  ;;  %1038 = vmatprep.subr.bf16.mxu1 %v1584_v41  ;;  %v1131_v40 = vrot.slane (!%p1424_p5), %v1122_v31, %v1130_v35  ;;  %v1143_v41 = vrot.slane (!%p1424_p5), %v1138_v32, %v1126_v34 }
  0x8e   : > { %1081 = vmatprep.subr.bf16.mxu0 %v1586_v42  ;;  %v1147_v42 = vrot.slane (!%p1424_p5), %v1138_v32, %v1130_v35 }
  0x90   : > { %1039 = vmatpush1.bf16.msra.mxu1 %v1588_v43 }
  0x91   : > { %1082 = vmatpush1.bf16.msra.mxu0 %v1589_v44  ;;  %1040 = vmatprep.subr.bf16.mxu1 %v1590_v45 }
  0x92   : > { %1083 = vmatprep.subr.bf16.mxu0 %v1592_v46 }
  0x94   : > { %1041 = vmatpush1.bf16.msra.mxu1 %v1594_v47 }
  0x95   : > { %1084 = vmatpush1.bf16.msra.mxu0 %v1595_v48  ;;  %1042 = vmatprep.subr.bf16.mxu1 %v1596_v49 }
  0x96   : > { %1085 = vmatprep.subr.bf16.mxu0 %v1598_v50 }
  0x98   : > { %1043 = vmatpush1.bf16.msra.mxu1 %v1600_v51 }
  0x99   : > { %1086 = vmatpush1.bf16.msra.mxu0 %v1601_v53  ;;  %1044 = vmatprep.subr.bf16.mxu1 %v1602_v54 }
  0x9a   : > { %1087 = vmatprep.subr.bf16.mxu0 %v1604_v55 }
  0x9c   : > { %1045 = vmatpush1.bf16.msra.mxu1 %v1606_v57 }
  0x9d   : > { %1088 = vmatpush1.bf16.msra.mxu0 %v1607_v58  ;;  %1046 = vmatprep.subr.bf16.mxu1 %v1608_v59 }
  0x9e   : > { %1089 = vmatprep.subr.bf16.mxu0 %v1610_v60 }
  0xa0   : > { %1047 = vmatpush1.bf16.msra.mxu1 %v1612_v61 }
  0xa1   : > { %1090 = vmatpush1.bf16.msra.mxu0 %v1613_v62  ;;  %1048 = vmatprep.subr.bf16.mxu1 %v1614_v63 }
  0xa2   : > { %1091 = vmatprep.subr.bf16.mxu0 %v1616_v0 }
  0xa4   : > { %1049 = vmatpush1.bf16.msra.mxu1 %v1618_v1 }
  0xa5   : > { %1092 = vmatpush1.bf16.msra.mxu0 %v1619_v2  ;;  %1050 = vmatprep.subr.bf16.mxu1 %v1620_v3 }
  0xa6   : > { %1093 = vmatprep.subr.bf16.mxu0 %v1622_v4 }
  0xa8   : > { %1051 = vmatpush1.bf16.msra.mxu1 %v1624_v5 }
  0xa9   : > { %1094 = vmatpush1.bf16.msra.mxu0 %v1625_v6 }
  0xab   : > { %1053 = vmatmul.mubr.bf16.vlgmr.msra.gmra.mrb[0].mxu1 %v1626_v7 }
  0xac   : > { %1096 = vmatmul.mubr.bf16.vlgmr.msra.gmra.mrb[0].mxu0 %v1629_v8 }
 0x17e   : > { %v1054_v9 = vpop.f32.mrb[0].mxu1 }
 0x17f   : > { %v1097_v11 = vpop.f32.mrb[0].mxu0  ;;  %v1056_v13 = vpop.f32.mrb[1].mxu1 }
 0x180   : > { %v1098_v12 = vadd.f32 %v1097_v11, %v1054_v9  ;;  %v1099_v15 = vpop.f32.mrb[1].mxu0  ;;  %v1058_v17 = vpop.f32.mrb[2].mxu1 }
 0x181   : > { %v1100_v16 = vadd.f32 %v1099_v15, %v1056_v13  ;;  %v1101_v19 = vpop.f32.mrb[2].mxu0  ;;  %v1060_v22 = vpop.f32.mrb[3].mxu1  ;;  %1117 = sbr.rel (%p1424_p5) target bundleno = 408 (0x198), region = 105 }
 0x182   : > { %v1106_v20 = vadd.f32 %v1098_v12, %v608_v10  ;;  %v1102_v21 = vadd.f32 %v1101_v19, %v1058_v17  ;;  %v1103_v24 = vpop.f32.mrb[3].mxu0 }
 0x183   : > { %v1107_v25 = vadd.f32 %v1100_v16, %v609_v14  ;;  %v1104_v26 = vadd.f32 %v1103_v24, %v1060_v22 }
 0x184   : > { %1110 = vst [vmem:[#allocation2] sm:$0xff] %v1106_v20  ;;  %v1108_v27 = vadd.f32 %v1102_v21, %v610_v18 }
 0x185   : > { %1111 = vst [vmem:[#allocation2 + $0x8] sm:$0xff] %v1107_v25  ;;  %v1109_v28 = vadd.f32 %v1104_v26, %v611_v23 }
 0x186   : > { %1112 = vst [vmem:[#allocation2 + $0x10] sm:$0xff] %v1108_v27 }
 0x187   : > { %1113 = vst [vmem:[#allocation2 + $0x18] sm:$0xff] %v1109_v28 }
 0x18b   : > { %v1118_v33 = vld [vmem:[#allocation2] sm:$0xff] }
 0x18c   : > { %v1119_v36 = vld [vmem:[#allocation2 + $0x8] sm:$0xff]  ;;  %v1134_v43 = vmul.f32 %v1127_v39, %v1118_v33 }
 0x18d   : > { %v1120_v37 = vld [vmem:[#allocation2 + $0x10] sm:$0xff]  ;;  %v1135_v44 = vmul.f32 %v1131_v40, %v1119_v36 }
 0x18e   : > { %v1121_v38 = vld [vmem:[#allocation2 + $0x18] sm:$0xff]  ;;  %v1136_v45 = vmul.f32 %v1127_v39, %v1120_v37  ;;  %v1150_v47 = vadd.f32 %v1143_v41, %v1134_v43 }
 0x18f   : > { %v1137_v46 = vmul.f32 %v1131_v40, %v1121_v38  ;;  %v1151_v48 = vadd.f32 %v1147_v42, %v1135_v44 }
 0x190   : > { %v1152_v49 = vadd.f32 %v1143_v41, %v1136_v45  ;;  %v1154_v51 = vmax.f32 %v1150_v47, 0.0 }
 0x191   : > { %v1153_v50 = vadd.f32 %v1147_v42, %v1137_v46  ;;  %v1155_v52 = vmax.f32 %v1151_v48, 0.0 }
 0x192   : > { %v1156_v53 = vmax.f32 %v1152_v49, 0.0 }
 0x193   : > { %v1157_v54 = vmax.f32 %v1153_v50, 0.0  ;;  %v1434_v55 = vpack.c.bf16 %v1155_v52, %v1154_v51 }
 0x195   : > { %v1435_v56 = vpack.c.bf16 %v1157_v54, %v1156_v53  ;;  %1170 = vst [vmem:[%s2012_s15] sm:$0xff] %v1434_v55 }
 0x197   : > { %1171 = vst [vmem:[%s2012_s15 + $0x8] sm:$0xff] %v1435_v56 }
 0x198 PF: > { %1178 = sbr.rel (!%p1840_p12) target bundleno = 416 (0x1a0), region = 109  ;;  %s1436_s1 = sshll.u32 (%p1840_p12), %s1706_s22, 3 }
 0x199   : > { %s1184_s29 = scalar_lea.vmem (%p1840_p12), %s2141_s4, %s1436_s1 }
 0x19c   : > { %v1214_v57 = vld [vmem:[%s2012_s15] sm:$0xff] (%p1840_p12) }
 0x19d   : > { %1215 = vst [vmem:[%s1184_s29] sm:$0xff] (%p1840_p12), %v1214_v57 }
 0x19e   : > { %v1216_v58 = vld [vmem:[%s2012_s15 + $0x8] sm:$0xff] (%p1840_p12) }
 0x19f   : > { %1217 = vst [vmem:[%s1184_s29 + $0x10] sm:$0xff] %v1216_v58 }
 0x1a0 PF: > { %s14_s25 = sadd.s32 1, %s1718_s25   ;;  %s2153_s14 = sld [smem:[#allocation6_spill]] }
 0x1a1   : > { %p11_p6 = scmp.ge.s32.totalorder %s14_s25, 20   ;;  %s2154_s27 = sld [smem:[#allocation7_spill]] }
 0x1a2   : > { %s2155_s15 = smov %s1682_s16  ;;  %s2156_s16 = smov %s1838_s13 }
 0x1a3   : > { %s2157_s17 = smov %s1690_s18  ;;  %s2158_s18 = smov %s1835_s12 }
 0x1a4   : > { %s2159_s19 = smov %s1698_s20  ;;  %s2160_s20 = smov %s1821_s7 }
 0x1a5   : > { %s2161_s21 = smov %s1710_s23  ;;  %s2162_s22 = smov %s1714_s24 }
 0x1a6   : > { %s2163_s23 = smov %s2153_s14  ;;  %13 = sbr.rel (!%p11_p6) target bundleno = 9 (0x9), region = 192 }
 0x1a7   : > { %s2164_s24 = smov %s2154_s27 }

// kernel: resnet18_forward.40
= control target key start
LH: loop header
LB: loop body
LE: loop exit
PB: predicated region body
PF: predicated region fallthrough
CT: control target
= control target key end

     0   :  { %s2296_s0 = inlined_call_operand.vmem [shape: bf16[16,4608], index: 0, kind: input, shape index: {}]   ;;  %s2297_s1 = inlined_call_operand.vmem [shape: bf16[4608,512], index: 1, kind: input, shape index: {}]   ;;  %s2298_s2 = inlined_call_operand.vmem [shape: f32[1,512], index: 2, kind: input, shape index: {}]   ;;  %s2299_s3 = inlined_call_operand.vmem [shape: f32[1,512], index: 3, kind: input, shape index: {}]   ;;  %s2300_s4 = inlined_call_operand.vmem [shape: bf16[16,512], index: 4, kind: input, shape index: {}]   ;;  %s2301_s5 = inlined_call_operand.vmem [shape: bf16[16,512], index: 5, kind: output, shape index: {}]  }
   0x1   :  { %2305 = sst [smem:[#allocation11_spill]] %s2296_s0 }
   0x2   :  { %s1880_s18 = smov 0   ;;  %s1882_s19 = smov 0  }
   0x3   :  { %s1884_s20 = smov 0   ;;  %s1886_s21 = smov 0  }
   0x4   :  { %s1888_s22 = smov 0   ;;  %s1890_s23 = smov 0  }
   0x5   :  { %s1892_s24 = smov 0   ;;  %s1894_s25 = smov 0  }
   0x6   :  { %s1896_s26 = smov 0   ;;  %s1898_s27 = smov 0  }
   0x7   :  { %s1900_s28 = smov 0  }
   0x8 LB: > { %2306 = sst [smem:[#allocation7_spill]] %s1827_s23  ;;  %s1461_s29 = sadd.s32 4294967295, %s1847_s28   ;;  %s1847_s28 = sphi %s1900_s28, %s15_s28   ;;  %s1843_s27 = sphi %s1898_s27, %s2326_s27   ;;  %s1839_s26 = sphi %s1896_s26, %s2325_s26   ;;  %s1835_s25 = sphi %s1894_s25, %s2324_s25   ;;  %s1831_s24 = sphi %s1892_s24, %s2323_s24   ;;  %s1827_s23 = sphi %s1890_s23, %s2316_s23   ;;  %s1823_s22 = sphi %s1888_s22, %s2315_s22   ;;  %s1819_s21 = sphi %s1886_s21, %s2322_s21   ;;  %s1815_s20 = sphi %s1884_s20, %s2321_s20   ;;  %s1811_s19 = sphi %s1882_s19, %s2320_s19   ;;  %s1807_s18 = sphi %s1880_s18, %s2319_s18  }
   0x9   : > { %s27_s30 = sadd.s32 1, %s1839_s26  ;;  %s30_s6 = sadd.s32 1, %s1843_s27 }
   0xa   : > { %p28_p0 = scmp.ge.s32.totalorder %s27_s30, 9  ;;  %s43_s7 = sadd.s32 1, %s1827_s23 }
   0xb   : > { %p50_p1 = scmp.ne.s32.totalorder %s1827_s23, %s1823_s22  ;;  %p51_p2 = scmp.eq.s32.totalorder %s1847_s28, 0 }
   0xc   : > { %s2328_s30 = smov (%p28_p0, %s27_s30), 0  ;;  %s2330_s6 = smov (!%p28_p0, %s30_s6), %s1843_s27 }
   0xd   : > { %2307 = sst [smem:[#allocation8_spill]] %s2328_s30  ;;  %s39_s8 = ssub.s32 %s1839_s26, %s2328_s30 }
   0xe   : > { %p32_p3 = scmp.ge.s32.totalorder %s2330_s6, 2  ;;  %p41_p4 = scmp.eq.s32.totalorder %s39_s8, 0 }
   0xf   : > { %p1949_p5 = por %p51_p2, %p50_p1  ;;  %s71_s10 = sadd.s32 1, %s1819_s21 }
  0x10   : > { %s2332_s6 = smov (%p32_p3, %s2330_s6), 0  ;;  %p78_p6 = scmp.ne.s32.totalorder %s1819_s21, %s1815_s20 }
  0x11   : > { %2309 = sst [smem:[#allocation9_spill]] %s2332_s6  ;;  %s67_s12 = ssub.s32 %s1843_s27, %s2332_s6 }
  0x12   : > { %s1957_s11 = scalar_select %p41_p4, %s1827_s23, %s43_s7  }
  0x13   : > { %s68_s13 = sor.u32 %s67_s12, %s39_s8  ;;  %p149_p7 = scmp.eq.s32.totalorder %s67_s12, 0 }
  0x14   : > { %2310 = sst [smem:[#allocation10_spill]] %s1957_s11  ;;  %p69_p8 = scmp.eq.s32.totalorder %s68_s13, 0 }
  0x15   : > { %p1965_p9 = por %p78_p6, %p51_p2  ;;  %s151_s15 = sadd.s32 1, %s1811_s19 }
  0x16   : > { %p158_p10 = scmp.ne.s32.totalorder %s1811_s19, %s1807_s18  ;;  %p190_p12 = scmp.eq.s32.totalorder %s1461_s29, 17 }
  0x17   : > { %s1973_s16 = scalar_select %p69_p8, %s1819_s21, %s71_s10  }
  0x18   : > { %s1976_s17 = scalar_select %p149_p7, %s1811_s19, %s151_s15  }
  0x19   : > { %p1980_p11 = por %p158_p10, %p51_p2  ;;  %p1984_p13 = por %p190_p12, %p158_p10 }
  0x1a   : > { %p1464_p0 = scmp.ge.s32.totalorder %s1847_s28, 18 }
  0x1c   : > { %212 = sbr.rel (%p1464_p0) target bundleno = 93 (0x5d), region = 16 }
  0x23   : > { %215 = sbr.rel (!%p1949_p5) target bundleno = 47 (0x2f), region = 20  ;;  %s217_s10 = sand.u32 (%p1949_p5), 1, %s1827_s23  }
  0x24   : > { %s1560_s12 = sshll.u32 (%p1949_p5), %s1839_s26, 4  ;;  %s1465_s13 = sshll.u32 (%p1949_p5), %s217_s10, 5 }
  0x25   : > { %s2314_s0 = sld [smem:[#allocation11_spill]] (%p1949_p5)  ;;  %s219_s29 = scalar_lea.vmem (%p1949_p5), [#allocation3], %s1465_s13 }
  0x2b   : > { %s225_s30 = scalar_lea.vmem %s2314_s0, %s1560_s12 }
  0x2c   : > { %v238_v0 = vld [vmem:[%s225_s30] sm:$0xff]  ;;  %v240_v1 = vld [vmem:[%s225_s30 + $0x8] sm:$0xff]  ;;  %v242_v2 = vld [vmem:[%s225_s30 + $0x90] sm:$0xff] }
  0x2d   : > { %239 = vst [vmem:[%s219_s29] sm:$0xff] %v238_v0  ;;  %241 = vst [vmem:[%s219_s29 + $0x8] sm:$0xff] %v240_v1  ;;  %v244_v3 = vld [vmem:[%s225_s30 + $0x98] sm:$0xff] }
  0x2e   : > { %243 = vst [vmem:[%s219_s29 + $0x10] sm:$0xff] %v242_v2  ;;  %245 = vst [vmem:[%s219_s29 + $0x18] sm:$0xff] %v244_v3 }
  0x2f PF: > { %251 = sbr.rel (!%p1965_p9) target bundleno = 86 (0x56), region = 43  ;;  %s253_s9 = sand.u32 (%p1965_p9), 1, %s1819_s21  }
  0x30   : > { %s1470_s10 = sshll.u32 (%p1965_p9), %s1843_s27, 1  ;;  %s1468_s6 = sshll.u32 (%p1965_p9), %s253_s9, 9 }
  0x31   : > { %s1561_s12 = sshll.u32 (%p1965_p9), %s1839_s26, 8  ;;  %s2009_s30 = scalar_lea.vmem (%p1965_p9), [#allocation4], %s1468_s6 }
  0x32   : > { %s259_s15 = sadd.s32 (%p1965_p9), %s1561_s12, %s1470_s10 }
  0x33   : > { %s1472_s0 = sshll.u32 (%p1965_p9), %s259_s15, 2 }
  0x34   : > { %s2004_s23 = scalar_lea.vmem (%p1965_p9), %s2297_s1, %s1472_s0 }
  0x35   : > { %v415_v4 = vld [vmem:[%s2004_s23] sm:$0xff] (%p1965_p9)  ;;  %v417_v5 = vld [vmem:[%s2004_s23 + $0x10] sm:$0xff] (%p1965_p9) }
  0x36   : > { %v419_v6 = vld [vmem:[%s2004_s23 + $0x20] sm:$0xff]  ;;  %416 = vst [vmem:[%s2009_s30] sm:$0xff] %v415_v4  ;;  %418 = vst [vmem:[%s2009_s30 + $0x8] sm:$0xff] %v417_v5  ;;  %v421_v7 = vld [vmem:[%s2004_s23 + $0x30] sm:$0xff] }
  0x37   : > { %420 = vst [vmem:[%s2009_s30 + $0x10] sm:$0xff] %v419_v6  ;;  %v423_v8 = vld [vmem:[%s2004_s23 + $0x40] sm:$0xff]  ;;  %v425_v9 = vld [vmem:[%s2004_s23 + $0x50] sm:$0xff]  ;;  %422 = vst [vmem:[%s2009_s30 + $0x18] sm:$0xff] %v421_v7 }
  0x38   : > { %424 = vst [vmem:[%s2009_s30 + $0x20] sm:$0xff] %v423_v8  ;;  %426 = vst [vmem:[%s2009_s30 + $0x28] sm:$0xff] %v425_v9  ;;  %v427_v10 = vld [vmem:[%s2004_s23 + $0x60] sm:$0xff]  ;;  %v429_v11 = vld [vmem:[%s2004_s23 + $0x70] sm:$0xff] }
  0x39   : > { %v431_v12 = vld [vmem:[%s2004_s23 + $0x80] sm:$0xff]  ;;  %428 = vst [vmem:[%s2009_s30 + $0x30] sm:$0xff] %v427_v10  ;;  %430 = vst [vmem:[%s2009_s30 + $0x38] sm:$0xff] %v429_v11  ;;  %v433_v13 = vld [vmem:[%s2004_s23 + $0x90] sm:$0xff] }
  0x3a   : > { %432 = vst [vmem:[%s2009_s30 + $0x40] sm:$0xff] %v431_v12  ;;  %v435_v14 = vld [vmem:[%s2004_s23 + $0xa0] sm:$0xff]  ;;  %v437_v15 = vld [vmem:[%s2004_s23 + $0xb0] sm:$0xff]  ;;  %434 = vst [vmem:[%s2009_s30 + $0x48] sm:$0xff] %v433_v13 }
  0x3b   : > { %436 = vst [vmem:[%s2009_s30 + $0x50] sm:$0xff] %v435_v14  ;;  %438 = vst [vmem:[%s2009_s30 + $0x58] sm:$0xff] %v437_v15  ;;  %v439_v16 = vld [vmem:[%s2004_s23 + $0xc0] sm:$0xff]  ;;  %v441_v17 = vld [vmem:[%s2004_s23 + $0xd0] sm:$0xff] }
  0x3c   : > { %v443_v18 = vld [vmem:[%s2004_s23 + $0xe0] sm:$0xff]  ;;  %440 = vst [vmem:[%s2009_s30 + $0x60] sm:$0xff] %v439_v16  ;;  %442 = vst [vmem:[%s2009_s30 + $0x68] sm:$0xff] %v441_v17  ;;  %v445_v19 = vld [vmem:[%s2004_s23 + $0xf0] sm:$0xff] }
  0x3d   : > { %444 = vst [vmem:[%s2009_s30 + $0x70] sm:$0xff] %v443_v18  ;;  %v447_v20 = vld [vmem:[%s2004_s23 + $0x100] sm:$0xff]  ;;  %v449_v21 = vld [vmem:[%s2004_s23 + $0x110] sm:$0xff]  ;;  %446 = vst [vmem:[%s2009_s30 + $0x78] sm:$0xff] %v445_v19 }
  0x3e   : > { %448 = vst [vmem:[%s2009_s30 + $0x80] sm:$0xff] %v447_v20  ;;  %450 = vst [vmem:[%s2009_s30 + $0x88] sm:$0xff] %v449_v21  ;;  %v451_v22 = vld [vmem:[%s2004_s23 + $0x120] sm:$0xff]  ;;  %v453_v23 = vld [vmem:[%s2004_s23 + $0x130] sm:$0xff] }
  0x3f   : > { %v455_v24 = vld [vmem:[%s2004_s23 + $0x140] sm:$0xff]  ;;  %452 = vst [vmem:[%s2009_s30 + $0x90] sm:$0xff] %v451_v22  ;;  %454 = vst [vmem:[%s2009_s30 + $0x98] sm:$0xff] %v453_v23  ;;  %v457_v25 = vld [vmem:[%s2004_s23 + $0x150] sm:$0xff] }
  0x40   : > { %456 = vst [vmem:[%s2009_s30 + $0xa0] sm:$0xff] %v455_v24  ;;  %v459_v26 = vld [vmem:[%s2004_s23 + $0x160] sm:$0xff]  ;;  %v461_v27 = vld [vmem:[%s2004_s23 + $0x170] sm:$0xff]  ;;  %458 = vst [vmem:[%s2009_s30 + $0xa8] sm:$0xff] %v457_v25 }
  0x41   : > { %460 = vst [vmem:[%s2009_s30 + $0xb0] sm:$0xff] %v459_v26  ;;  %462 = vst [vmem:[%s2009_s30 + $0xb8] sm:$0xff] %v461_v27  ;;  %v463_v28 = vld [vmem:[%s2004_s23 + $0x180] sm:$0xff]  ;;  %v465_v29 = vld [vmem:[%s2004_s23 + $0x190] sm:$0xff] }
  0x42   : > { %v467_v30 = vld [vmem:[%s2004_s23 + $0x1a0] sm:$0xff]  ;;  %464 = vst [vmem:[%s2009_s30 + $0xc0] sm:$0xff] %v463_v28  ;;  %466 = vst [vmem:[%s2009_s30 + $0xc8] sm:$0xff] %v465_v29  ;;  %v469_v31 = vld [vmem:[%s2004_s23 + $0x1b0] sm:$0xff] }
  0x43   : > { %468 = vst [vmem:[%s2009_s30 + $0xd0] sm:$0xff] %v467_v30  ;;  %v471_v32 = vld [vmem:[%s2004_s23 + $0x1c0] sm:$0xff]  ;;  %v473_v33 = vld [vmem:[%s2004_s23 + $0x1d0] sm:$0xff]  ;;  %470 = vst [vmem:[%s2009_s30 + $0xd8] sm:$0xff] %v469_v31 }
  0x44   : > { %472 = vst [vmem:[%s2009_s30 + $0xe0] sm:$0xff] %v471_v32  ;;  %474 = vst [vmem:[%s2009_s30 + $0xe8] sm:$0xff] %v473_v33  ;;  %v475_v34 = vld [vmem:[%s2004_s23 + $0x1e0] sm:$0xff]  ;;  %v477_v35 = vld [vmem:[%s2004_s23 + $0x1f0] sm:$0xff] }
  0x45   : > { %v479_v36 = vld [vmem:[%s2004_s23 + $0x200] sm:$0xff]  ;;  %476 = vst [vmem:[%s2009_s30 + $0xf0] sm:$0xff] %v475_v34  ;;  %478 = vst [vmem:[%s2009_s30 + $0xf8] sm:$0xff] %v477_v35  ;;  %v481_v37 = vld [vmem:[%s2004_s23 + $0x210] sm:$0xff] }
  0x46   : > { %480 = vst [vmem:[%s2009_s30 + $0x100] sm:$0xff] %v479_v36  ;;  %v483_v38 = vld [vmem:[%s2004_s23 + $0x220] sm:$0xff]  ;;  %v485_v39 = vld [vmem:[%s2004_s23 + $0x230] sm:$0xff]  ;;  %482 = vst [vmem:[%s2009_s30 + $0x108] sm:$0xff] %v481_v37 }
  0x47   : > { %484 = vst [vmem:[%s2009_s30 + $0x110] sm:$0xff] %v483_v38  ;;  %486 = vst [vmem:[%s2009_s30 + $0x118] sm:$0xff] %v485_v39  ;;  %v487_v40 = vld [vmem:[%s2004_s23 + $0x240] sm:$0xff]  ;;  %v489_v41 = vld [vmem:[%s2004_s23 + $0x250] sm:$0xff] }
  0x48   : > { %v491_v42 = vld [vmem:[%s2004_s23 + $0x260] sm:$0xff]  ;;  %488 = vst [vmem:[%s2009_s30 + $0x120] sm:$0xff] %v487_v40  ;;  %490 = vst [vmem:[%s2009_s30 + $0x128] sm:$0xff] %v489_v41  ;;  %v493_v43 = vld [vmem:[%s2004_s23 + $0x270] sm:$0xff] }
  0x49   : > { %492 = vst [vmem:[%s2009_s30 + $0x130] sm:$0xff] %v491_v42  ;;  %v495_v44 = vld [vmem:[%s2004_s23 + $0x280] sm:$0xff]  ;;  %v497_v45 = vld [vmem:[%s2004_s23 + $0x290] sm:$0xff]  ;;  %494 = vst [vmem:[%s2009_s30 + $0x138] sm:$0xff] %v493_v43 }
  0x4a   : > { %496 = vst [vmem:[%s2009_s30 + $0x140] sm:$0xff] %v495_v44  ;;  %498 = vst [vmem:[%s2009_s30 + $0x148] sm:$0xff] %v497_v45  ;;  %v499_v46 = vld [vmem:[%s2004_s23 + $0x2a0] sm:$0xff]  ;;  %v501_v47 = vld [vmem:[%s2004_s23 + $0x2b0] sm:$0xff] }
  0x4b   : > { %v503_v48 = vld [vmem:[%s2004_s23 + $0x2c0] sm:$0xff]  ;;  %500 = vst [vmem:[%s2009_s30 + $0x150] sm:$0xff] %v499_v46  ;;  %502 = vst [vmem:[%s2009_s30 + $0x158] sm:$0xff] %v501_v47  ;;  %v505_v49 = vld [vmem:[%s2004_s23 + $0x2d0] sm:$0xff] }
  0x4c   : > { %504 = vst [vmem:[%s2009_s30 + $0x160] sm:$0xff] %v503_v48  ;;  %v507_v50 = vld [vmem:[%s2004_s23 + $0x2e0] sm:$0xff]  ;;  %v509_v51 = vld [vmem:[%s2004_s23 + $0x2f0] sm:$0xff]  ;;  %506 = vst [vmem:[%s2009_s30 + $0x168] sm:$0xff] %v505_v49 }
  0x4d   : > { %508 = vst [vmem:[%s2009_s30 + $0x170] sm:$0xff] %v507_v50  ;;  %510 = vst [vmem:[%s2009_s30 + $0x178] sm:$0xff] %v509_v51  ;;  %v511_v52 = vld [vmem:[%s2004_s23 + $0x300] sm:$0xff]  ;;  %v513_v53 = vld [vmem:[%s2004_s23 + $0x310] sm:$0xff] }
  0x4e   : > { %v515_v54 = vld [vmem:[%s2004_s23 + $0x320] sm:$0xff]  ;;  %512 = vst [vmem:[%s2009_s30 + $0x180] sm:$0xff] %v511_v52  ;;  %514 = vst [vmem:[%s2009_s30 + $0x188] sm:$0xff] %v513_v53  ;;  %v517_v55 = vld [vmem:[%s2004_s23 + $0x330] sm:$0xff] }
  0x4f   : > { %516 = vst [vmem:[%s2009_s30 + $0x190] sm:$0xff] %v515_v54  ;;  %v519_v56 = vld [vmem:[%s2004_s23 + $0x340] sm:$0xff]  ;;  %v521_v57 = vld [vmem:[%s2004_s23 + $0x350] sm:$0xff]  ;;  %518 = vst [vmem:[%s2009_s30 + $0x198] sm:$0xff] %v517_v55 }
  0x50   : > { %520 = vst [vmem:[%s2009_s30 + $0x1a0] sm:$0xff] %v519_v56  ;;  %522 = vst [vmem:[%s2009_s30 + $0x1a8] sm:$0xff] %v521_v57  ;;  %v523_v58 = vld [vmem:[%s2004_s23 + $0x360] sm:$0xff]  ;;  %v525_v59 = vld [vmem:[%s2004_s23 + $0x370] sm:$0xff] }
  0x51   : > { %v527_v60 = vld [vmem:[%s2004_s23 + $0x380] sm:$0xff]  ;;  %524 = vst [vmem:[%s2009_s30 + $0x1b0] sm:$0xff] %v523_v58  ;;  %526 = vst [vmem:[%s2009_s30 + $0x1b8] sm:$0xff] %v525_v59  ;;  %v529_v61 = vld [vmem:[%s2004_s23 + $0x390] sm:$0xff] }
  0x52   : > { %528 = vst [vmem:[%s2009_s30 + $0x1c0] sm:$0xff] %v527_v60  ;;  %v531_v62 = vld [vmem:[%s2004_s23 + $0x3a0] sm:$0xff]  ;;  %v533_v63 = vld [vmem:[%s2004_s23 + $0x3b0] sm:$0xff]  ;;  %530 = vst [vmem:[%s2009_s30 + $0x1c8] sm:$0xff] %v529_v61 }
  0x53   : > { %532 = vst [vmem:[%s2009_s30 + $0x1d0] sm:$0xff] %v531_v62  ;;  %534 = vst [vmem:[%s2009_s30 + $0x1d8] sm:$0xff] %v533_v63  ;;  %v535_v0 = vld [vmem:[%s2004_s23 + $0x3c0] sm:$0xff]  ;;  %v537_v1 = vld [vmem:[%s2004_s23 + $0x3d0] sm:$0xff] }
  0x54   : > { %v539_v2 = vld [vmem:[%s2004_s23 + $0x3e0] sm:$0xff]  ;;  %536 = vst [vmem:[%s2009_s30 + $0x1e0] sm:$0xff] %v535_v0  ;;  %538 = vst [vmem:[%s2009_s30 + $0x1e8] sm:$0xff] %v537_v1  ;;  %v541_v3 = vld [vmem:[%s2004_s23 + $0x3f0] sm:$0xff] }
  0x55   : > { %540 = vst [vmem:[%s2009_s30 + $0x1f0] sm:$0xff] %v539_v2  ;;  %542 = vst [vmem:[%s2009_s30 + $0x1f8] sm:$0xff] %v541_v3 }
  0x56 PF: > { %564 = sbr.rel (!%p1980_p11) target bundleno = 93 (0x5d), region = 89  ;;  %s566_s0 = sand.u32 (%p1980_p11), 1, %s1811_s19  }
  0x57   : > { %s1562_s11 = sshll.u32 (%p1980_p11), %s1843_s27, 3  ;;  %s1473_s14 = sshll.u32 (%p1980_p11), %s566_s0, 4 }
  0x58   : > { %s574_s10 = scalar_lea.vmem (%p1980_p11), %s2300_s4, %s1562_s11  ;;  %s568_s6 = scalar_lea.vmem (%p1980_p11), [#allocation5], %s1473_s14 }
  0x59   : > { %v604_v4 = vld [vmem:[%s574_s10] sm:$0xff] (%p1980_p11)  ;;  %v606_v5 = vld [vmem:[%s574_s10 + $0x10] sm:$0xff] (%p1980_p11) }
  0x5a   : > { %605 = vst [vmem:[%s568_s6] sm:$0xff] (%p1980_p11), %v604_v4  ;;  %607 = vst [vmem:[%s568_s6 + $0x8] sm:$0xff] (%p1980_p11), %v606_v5 }
  0x5d PF: > { %p1476_p1 = scmp.ge.s32.totalorder %s1847_s28, 1  ;;  %p612_p2 = scmp.lt.s32.totalorder %s1847_s28, 19 }
  0x5f   : > { %p613_p3 = pnand %p1476_p1, %p612_p2 }
  0x60   : > { %s619_s23 = sand.u32 (!%p613_p3), 1, %s1823_s22   ;;  %s626_s7 = sand.u32 (!%p613_p3), 1, %s1815_s20  }
  0x61   : > { %616 = sbr.rel (%p613_p3) target bundleno = 423 (0x1a7), region = 127  ;;  %s1477_s12 = sshll.u32 (!%p613_p3), %s619_s23, 5 }
  0x62   : > { %s1478_s15 = sshll.u32 (!%p613_p3), %s626_s7, 9  ;;  %s633_s13 = sand.u32 (!%p613_p3), 1, %s1807_s18  }
  0x63   : > { %s1481_s30 = sshll.u32 (!%p613_p3), %s1835_s25, 1  ;;  %s2149_s0 = sshll.u32 (!%p613_p3), %s633_s13, 4 }
  0x64   : > { %p680_p4 = scmp.lt.s32.totalorder (!%p613_p3), %s1481_s30, 3  ;;  %s2161_s10 = scalar_lea.vmem (!%p613_p3), [#allocation3], %s1477_s12 }
  0x65   : > { %s2163_s18 = scalar_lea.vmem (!%p613_p3), [#allocation4], %s1478_s15  ;;  %s635_s6 = scalar_lea.vmem (!%p613_p3), [#allocation5], %s2149_s0 }
  0x66   : > { %s2167_s23 = scalar_lea.vmem (!%p613_p3), [#allocation6], %s2149_s0  ;;  %p1483_p5 = scmp.ne.s32.totalorder (!%p613_p3), %s1831_s24, 0 }
  0x68   : > { %s2334_s30 = smov (!%p680_p4, %s1481_s30), 3  ;;  %696 = sbr.rel (%p1483_p5) target bundleno = 111 (0x6f), region = 143 }
  0x69   : > { %s682_s29 = scalar_lea.vmem %s2298_s2, %s2334_s30  ;;  %s687_s20 = scalar_lea.vmem %s2299_s3, %s2334_s30  ;;  %v1849_v6 = vmov (!%p1483_p5), 0.0  }
  0x6a   : > { %697 = vst [vmem:[#allocation2] sm:$0xff] (!%p1483_p5), %v1849_v6  ;;  %698 = vst [vmem:[#allocation2 + $0x8] sm:$0xff] (!%p1483_p5), %v1849_v6 }
  0x6b   : > { %699 = vst [vmem:[#allocation2 + $0x10] sm:$0xff] (!%p1483_p5), %v1849_v6  ;;  %700 = vst [vmem:[#allocation2 + $0x18] sm:$0xff] (!%p1483_p5), %v1849_v6 }
  0x6f PF: > { %v1659_v7 = vld [vmem:[%s2163_s18 + $0x4] ss:$8 sps:$4 sm:$0xff]   ;;  %v1663_v9 = vld [vmem:[%s2163_s18] ss:$8 sps:$4 sm:$0xff]   ;;  %v1665_v11 = vld [vmem:[%s2163_s18 + $0x14] ss:$8 sps:$4 sm:$0xff]  }
  0x70   : > { %v1661_v8 = vld [vmem:[%s2163_s18 + $0x104] ss:$8 sps:$4 sm:$0xff]   ;;  %1113 = vmatprep.subr.bf16.mxu1 %v1659_v7  ;;  %v1664_v10 = vld [vmem:[%s2163_s18 + $0x100] ss:$8 sps:$4 sm:$0xff]   ;;  %v1667_v12 = vld [vmem:[%s2163_s18 + $0x114] ss:$8 sps:$4 sm:$0xff]  }
  0x71   : > { %1156 = vmatprep.subr.bf16.mxu0 %v1661_v8  ;;  %1114 = vmatpush1.bf16.msra.mxu1 %v1663_v9  ;;  %v1669_v13 = vld [vmem:[%s2163_s18 + $0x10] ss:$8 sps:$4 sm:$0xff]   ;;  %v1671_v15 = vld [vmem:[%s2163_s18 + $0x24] ss:$8 sps:$4 sm:$0xff]   ;;  %v1675_v17 = vld [vmem:[%s2163_s18 + $0x20] ss:$8 sps:$4 sm:$0xff]  }
  0x72   : > { %1157 = vmatpush1.bf16.msra.mxu0 %v1664_v10  ;;  %1115 = vmatprep.subr.bf16.mxu1 %v1665_v11  ;;  %v1670_v14 = vld [vmem:[%s2163_s18 + $0x110] ss:$8 sps:$4 sm:$0xff]   ;;  %v1673_v16 = vld [vmem:[%s2163_s18 + $0x124] ss:$8 sps:$4 sm:$0xff]   ;;  %v1676_v18 = vld [vmem:[%s2163_s18 + $0x120] ss:$8 sps:$4 sm:$0xff]  }
  0x73   : > { %1158 = vmatprep.subr.bf16.mxu0 %v1667_v12  ;;  %v1677_v19 = vld [vmem:[%s2163_s18 + $0x34] ss:$8 sps:$4 sm:$0xff]   ;;  %v1681_v21 = vld [vmem:[%s2163_s18 + $0x30] ss:$8 sps:$4 sm:$0xff]   ;;  %v1683_v23 = vld [vmem:[%s2163_s18 + $0x44] ss:$8 sps:$4 sm:$0xff]  }
  0x74   : > { %v1679_v20 = vld [vmem:[%s2163_s18 + $0x134] ss:$8 sps:$4 sm:$0xff]   ;;  %v1682_v22 = vld [vmem:[%s2163_s18 + $0x130] ss:$8 sps:$4 sm:$0xff]   ;;  %v1685_v24 = vld [vmem:[%s2163_s18 + $0x144] ss:$8 sps:$4 sm:$0xff]  }
  0x75   : > { %1116 = vmatpush1.bf16.msra.mxu1 %v1669_v13  ;;  %v1687_v25 = vld [vmem:[%s2163_s18 + $0x40] ss:$8 sps:$4 sm:$0xff]   ;;  %v1689_v27 = vld [vmem:[%s2163_s18 + $0x54] ss:$8 sps:$4 sm:$0xff]   ;;  %v1693_v29 = vld [vmem:[%s2163_s18 + $0x50] ss:$8 sps:$4 sm:$0xff]  }
  0x76   : > { %1159 = vmatpush1.bf16.msra.mxu0 %v1670_v14  ;;  %1117 = vmatprep.subr.bf16.mxu1 %v1671_v15  ;;  %v1688_v26 = vld [vmem:[%s2163_s18 + $0x140] ss:$8 sps:$4 sm:$0xff]   ;;  %v1691_v28 = vld [vmem:[%s2163_s18 + $0x154] ss:$8 sps:$4 sm:$0xff]   ;;  %v1694_v30 = vld [vmem:[%s2163_s18 + $0x150] ss:$8 sps:$4 sm:$0xff]  }
  0x77   : > { %1160 = vmatprep.subr.bf16.mxu0 %v1673_v16  ;;  %v1695_v31 = vld [vmem:[%s2163_s18 + $0x64] ss:$8 sps:$4 sm:$0xff]   ;;  %v1699_v33 = vld [vmem:[%s2163_s18 + $0x60] ss:$8 sps:$4 sm:$0xff]   ;;  %v1701_v35 = vld [vmem:[%s2163_s18 + $0x74] ss:$8 sps:$4 sm:$0xff]  }
  0x78   : > { %v1697_v32 = vld [vmem:[%s2163_s18 + $0x164] ss:$8 sps:$4 sm:$0xff]   ;;  %v1700_v34 = vld [vmem:[%s2163_s18 + $0x160] ss:$8 sps:$4 sm:$0xff]   ;;  %v1703_v36 = vld [vmem:[%s2163_s18 + $0x174] ss:$8 sps:$4 sm:$0xff]  }
  0x79   : > { %1118 = vmatpush1.bf16.msra.mxu1 %v1675_v17  ;;  %v1705_v37 = vld [vmem:[%s2163_s18 + $0x70] ss:$8 sps:$4 sm:$0xff]   ;;  %v1707_v39 = vld [vmem:[%s2163_s18 + $0x84] ss:$8 sps:$4 sm:$0xff]   ;;  %v1711_v41 = vld [vmem:[%s2163_s18 + $0x80] ss:$8 sps:$4 sm:$0xff]  }
  0x7a   : > { %1161 = vmatpush1.bf16.msra.mxu0 %v1676_v18  ;;  %1119 = vmatprep.subr.bf16.mxu1 %v1677_v19  ;;  %v1706_v38 = vld [vmem:[%s2163_s18 + $0x170] ss:$8 sps:$4 sm:$0xff]   ;;  %v1709_v40 = vld [vmem:[%s2163_s18 + $0x184] ss:$8 sps:$4 sm:$0xff]   ;;  %v1712_v42 = vld [vmem:[%s2163_s18 + $0x180] ss:$8 sps:$4 sm:$0xff]  }
  0x7b   : > { %1162 = vmatprep.subr.bf16.mxu0 %v1679_v20  ;;  %v1713_v43 = vld [vmem:[%s2163_s18 + $0x94] ss:$8 sps:$4 sm:$0xff]   ;;  %v1717_v45 = vld [vmem:[%s2163_s18 + $0x90] ss:$8 sps:$4 sm:$0xff]   ;;  %v1719_v47 = vld [vmem:[%s2163_s18 + $0xa4] ss:$8 sps:$4 sm:$0xff]  }
  0x7c   : > { %v1715_v44 = vld [vmem:[%s2163_s18 + $0x194] ss:$8 sps:$4 sm:$0xff]   ;;  %v1718_v46 = vld [vmem:[%s2163_s18 + $0x190] ss:$8 sps:$4 sm:$0xff]   ;;  %v1721_v48 = vld [vmem:[%s2163_s18 + $0x1a4] ss:$8 sps:$4 sm:$0xff]  }
  0x7d   : > { %1120 = vmatpush1.bf16.msra.mxu1 %v1681_v21  ;;  %v1723_v49 = vld [vmem:[%s2163_s18 + $0xa0] ss:$8 sps:$4 sm:$0xff]   ;;  %v1725_v51 = vld [vmem:[%s2163_s18 + $0xb4] ss:$8 sps:$4 sm:$0xff]   ;;  %v1729_v53 = vld [vmem:[%s2163_s18 + $0xb0] ss:$8 sps:$4 sm:$0xff]  }
  0x7e   : > { %1163 = vmatpush1.bf16.msra.mxu0 %v1682_v22  ;;  %1121 = vmatprep.subr.bf16.mxu1 %v1683_v23  ;;  %v1724_v50 = vld [vmem:[%s2163_s18 + $0x1a0] ss:$8 sps:$4 sm:$0xff]   ;;  %v1727_v52 = vld [vmem:[%s2163_s18 + $0x1b4] ss:$8 sps:$4 sm:$0xff]   ;;  %v1730_v55 = vld [vmem:[%s2163_s18 + $0x1b0] ss:$8 sps:$4 sm:$0xff]  }
  0x7f   : > { %1164 = vmatprep.subr.bf16.mxu0 %v1685_v24  ;;  %v1757_v54 = vld [vmem:[%s2161_s10 + $0x4] ss:$16 sps:$4 sm:$0xff]   ;;  %v1760_v58 = vld [vmem:[%s2161_s10 + $0xc] ss:$16 sps:$4 sm:$0xff]   ;;  %v1735_v59 = vld [vmem:[%s2163_s18 + $0xc0] ss:$8 sps:$4 sm:$0xff]  }
  0x80   : > { %v1731_v56 = vld [vmem:[%s2163_s18 + $0xc4] ss:$8 sps:$4 sm:$0xff]   ;;  %1145 = vmatprep.mubr.bf16.mxu1 %v1757_v54  ;;  %1188 = vmatprep.mubr.bf16.mxu0 %v1760_v58  ;;  %v1736_v60 = vld [vmem:[%s2163_s18 + $0x1c0] ss:$8 sps:$4 sm:$0xff]   ;;  %v1737_v61 = vld [vmem:[%s2163_s18 + $0xd4] ss:$8 sps:$4 sm:$0xff]  }
  0x81   : > { %1122 = vmatpush1.bf16.msra.mxu1 %v1687_v25  ;;  %v1733_v57 = vld [vmem:[%s2163_s18 + $0x1c4] ss:$8 sps:$4 sm:$0xff]   ;;  %v1739_v62 = vld [vmem:[%s2163_s18 + $0x1d4] ss:$8 sps:$4 sm:$0xff]   ;;  %v1741_v63 = vld [vmem:[%s2163_s18 + $0xd0] ss:$8 sps:$4 sm:$0xff]  }
  0x82   : > { %1165 = vmatpush1.bf16.msra.mxu0 %v1688_v26  ;;  %1123 = vmatprep.subr.bf16.mxu1 %v1689_v27  ;;  %v1742_v0 = vld [vmem:[%s2163_s18 + $0x1d0] ss:$8 sps:$4 sm:$0xff]   ;;  %v1743_v1 = vld [vmem:[%s2163_s18 + $0xe4] ss:$8 sps:$4 sm:$0xff]   ;;  %v1747_v3 = vld [vmem:[%s2163_s18 + $0xe0] ss:$8 sps:$4 sm:$0xff]  }
  0x83   : > { %1166 = vmatprep.subr.bf16.mxu0 %v1691_v28  ;;  %v1745_v2 = vld [vmem:[%s2163_s18 + $0x1e4] ss:$8 sps:$4 sm:$0xff]   ;;  %v1748_v4 = vld [vmem:[%s2163_s18 + $0x1e0] ss:$8 sps:$4 sm:$0xff]   ;;  %v1749_v5 = vld [vmem:[%s2163_s18 + $0xf4] ss:$8 sps:$4 sm:$0xff]  }
  0x84   : > { %v1751_v6 = vld [vmem:[%s2163_s18 + $0x1f4] ss:$8 sps:$4 sm:$0xff]   ;;  %v1753_v7 = vld [vmem:[%s2163_s18 + $0xf0] ss:$8 sps:$4 sm:$0xff]   ;;  %v701_v12 = vld [vmem:[#allocation2] sm:$0xff]  ;;  %p1552_p6 = scmp.ne.s32.totalorder %s1831_s24, 8 }
  0x85   : > { %1124 = vmatpush1.bf16.msra.mxu1 %v1693_v29  ;;  %v1754_v8 = vld [vmem:[%s2163_s18 + $0x1f0] ss:$8 sps:$4 sm:$0xff]   ;;  %v702_v16 = vld [vmem:[#allocation2 + $0x8] sm:$0xff] }
  0x86   : > { %1167 = vmatpush1.bf16.msra.mxu0 %v1694_v30  ;;  %1125 = vmatprep.subr.bf16.mxu1 %v1695_v31  ;;  %v1755_v9 = vld [vmem:[%s2161_s10] ss:$16 sps:$4 sm:$0xff]   ;;  %v1758_v10 = vld [vmem:[%s2161_s10 + $0x8] ss:$16 sps:$4 sm:$0xff]   ;;  %v1217_v31 = vlaneseq (!%p1552_p6) }
  0x87   : > { %1168 = vmatprep.subr.bf16.mxu0 %v1697_v32  ;;  %v703_v20 = vld [vmem:[#allocation2 + $0x10] sm:$0xff]  ;;  %v704_v25 = vld [vmem:[#allocation2 + $0x18] sm:$0xff] }
  0x88   : > { %v1218_v32 = vshrl.u32 (!%p1552_p6), %v1217_v31, 7 }
  0x89   : > { %1126 = vmatpush1.bf16.msra.mxu1 %v1699_v33  ;;  %v1215_v33 = vld [vmem:[%s682_s29] sm:$0x3] (!%p1552_p6) }
  0x8a   : > { %1169 = vmatpush1.bf16.msra.mxu0 %v1700_v34  ;;  %1127 = vmatprep.subr.bf16.mxu1 %v1701_v35  ;;  %v1231_v34 = vld [vmem:[%s687_s20] sm:$0x3] (!%p1552_p6) }
  0x8b   : > { %1170 = vmatprep.subr.bf16.mxu0 %v1703_v36  ;;  %v1219_v36 = vsub.s32 (!%p1552_p6), 0, %v1218_v32 }
  0x8d   : > { %1128 = vmatpush1.bf16.msra.mxu1 %v1705_v37  ;;  %v1223_v37 = vsub.s32 (!%p1552_p6), 1, %v1218_v32 }
  0x8e   : > { %1171 = vmatpush1.bf16.msra.mxu0 %v1706_v38  ;;  %1129 = vmatprep.subr.bf16.mxu1 %v1707_v39  ;;  %v1247_v38 = vld [vmem:[%s635_s6] sm:$0xff] (!%p1552_p6)  ;;  %v1248_v39 = vld [vmem:[%s635_s6 + $0x8] sm:$0xff] (!%p1552_p6) }
  0x8f   : > { %1172 = vmatprep.subr.bf16.mxu0 %v1709_v40 }
  0x91   : > { %1130 = vmatpush1.bf16.msra.mxu1 %v1711_v41 }
  0x92   : > { %1173 = vmatpush1.bf16.msra.mxu0 %v1712_v42  ;;  %1131 = vmatprep.subr.bf16.mxu1 %v1713_v43  ;;  %v1220_v43 = vrot.slane (!%p1552_p6), %v1215_v33, %v1219_v36 }
  0x93   : > { %1174 = vmatprep.subr.bf16.mxu0 %v1715_v44  ;;  %v1224_v44 = vrot.slane (!%p1552_p6), %v1215_v33, %v1223_v37 }
  0x95   : > { %1132 = vmatpush1.bf16.msra.mxu1 %v1717_v45  ;;  %v1236_v45 = vrot.slane (!%p1552_p6), %v1231_v34, %v1219_v36 }
  0x96   : > { %1175 = vmatpush1.bf16.msra.mxu0 %v1718_v46  ;;  %1133 = vmatprep.subr.bf16.mxu1 %v1719_v47  ;;  %v1240_v46 = vrot.slane (!%p1552_p6), %v1231_v34, %v1223_v37  ;;  %v1249_v47 = vunpack.c.l.bf16 (!%p1552_p6), %v1247_v38 }
  0x97   : > { %1176 = vmatprep.subr.bf16.mxu0 %v1721_v48  ;;  %v1250_v48 = vunpack.c.h.bf16 (!%p1552_p6), %v1247_v38 }
  0x99   : > { %1134 = vmatpush1.bf16.msra.mxu1 %v1723_v49  ;;  %v1251_v49 = vunpack.c.l.bf16 (!%p1552_p6), %v1248_v39 }
  0x9a   : > { %1177 = vmatpush1.bf16.msra.mxu0 %v1724_v50  ;;  %1135 = vmatprep.subr.bf16.mxu1 %v1725_v51  ;;  %v1252_v50 = vunpack.c.h.bf16 (!%p1552_p6), %v1248_v39 }
  0x9b   : > { %1178 = vmatprep.subr.bf16.mxu0 %v1727_v52 }
  0x9d   : > { %1136 = vmatpush1.bf16.msra.mxu1 %v1729_v53 }
  0x9e   : > { %1179 = vmatpush1.bf16.msra.mxu0 %v1730_v55  ;;  %1137 = vmatprep.subr.bf16.mxu1 %v1731_v56 }
  0x9f   : > { %1180 = vmatprep.subr.bf16.mxu0 %v1733_v57 }
  0xa1   : > { %1138 = vmatpush1.bf16.msra.mxu1 %v1735_v59 }
  0xa2   : > { %1181 = vmatpush1.bf16.msra.mxu0 %v1736_v60  ;;  %1139 = vmatprep.subr.bf16.mxu1 %v1737_v61 }
  0xa3   : > { %1182 = vmatprep.subr.bf16.mxu0 %v1739_v62 }
  0xa5   : > { %1140 = vmatpush1.bf16.msra.mxu1 %v1741_v63 }
  0xa6   : > { %1183 = vmatpush1.bf16.msra.mxu0 %v1742_v0  ;;  %1141 = vmatprep.subr.bf16.mxu1 %v1743_v1 }
  0xa7   : > { %1184 = vmatprep.subr.bf16.mxu0 %v1745_v2 }
  0xa9   : > { %1142 = vmatpush1.bf16.msra.mxu1 %v1747_v3 }
  0xaa   : > { %1185 = vmatpush1.bf16.msra.mxu0 %v1748_v4  ;;  %1143 = vmatprep.subr.bf16.mxu1 %v1749_v5 }
  0xab   : > { %1186 = vmatprep.subr.bf16.mxu0 %v1751_v6 }
  0xad   : > { %1144 = vmatpush1.bf16.msra.mxu1 %v1753_v7 }
  0xae   : > { %1187 = vmatpush1.bf16.msra.mxu0 %v1754_v8 }
  0xb0   : > { %1146 = vmatmul.mubr.bf16.vlgmr.msra.gmra.mrb[0].mxu1 %v1755_v9 }
  0xb1   : > { %1189 = vmatmul.mubr.bf16.vlgmr.msra.gmra.mrb[0].mxu0 %v1758_v10 }
 0x183   : > { %v1147_v11 = vpop.f32.mrb[0].mxu1 }
 0x184   : > { %v1190_v13 = vpop.f32.mrb[0].mxu0  ;;  %v1149_v15 = vpop.f32.mrb[1].mxu1 }
 0x185   : > { %v1191_v14 = vadd.f32 %v1190_v13, %v1147_v11  ;;  %v1192_v17 = vpop.f32.mrb[1].mxu0  ;;  %v1151_v19 = vpop.f32.mrb[2].mxu1 }
 0x186   : > { %v1193_v18 = vadd.f32 %v1192_v17, %v1149_v15  ;;  %v1194_v21 = vpop.f32.mrb[2].mxu0  ;;  %v1153_v24 = vpop.f32.mrb[3].mxu1  ;;  %1210 = sbr.rel (%p1552_p6) target bundleno = 415 (0x19f), region = 147 }
 0x187   : > { %v1199_v22 = vadd.f32 %v1191_v14, %v701_v12  ;;  %v1195_v23 = vadd.f32 %v1194_v21, %v1151_v19  ;;  %v1196_v26 = vpop.f32.mrb[3].mxu0 }
 0x188   : > { %v1200_v27 = vadd.f32 %v1193_v18, %v702_v16  ;;  %v1197_v28 = vadd.f32 %v1196_v26, %v1153_v24 }
 0x189   : > { %1203 = vst [vmem:[#allocation2] sm:$0xff] %v1199_v22  ;;  %v1201_v29 = vadd.f32 %v1195_v23, %v703_v20 }
 0x18a   : > { %1204 = vst [vmem:[#allocation2 + $0x8] sm:$0xff] %v1200_v27  ;;  %v1202_v30 = vadd.f32 %v1197_v28, %v704_v25 }
 0x18b   : > { %1205 = vst [vmem:[#allocation2 + $0x10] sm:$0xff] %v1201_v29 }
 0x18c   : > { %1206 = vst [vmem:[#allocation2 + $0x18] sm:$0xff] %v1202_v30 }
 0x190   : > { %v1211_v35 = vld [vmem:[#allocation2] sm:$0xff] }
 0x191   : > { %v1212_v40 = vld [vmem:[#allocation2 + $0x8] sm:$0xff]  ;;  %v1227_v51 = vmul.f32 %v1220_v43, %v1211_v35 }
 0x192   : > { %v1213_v41 = vld [vmem:[#allocation2 + $0x10] sm:$0xff]  ;;  %v1228_v52 = vmul.f32 %v1224_v44, %v1212_v40 }
 0x193   : > { %v1214_v42 = vld [vmem:[#allocation2 + $0x18] sm:$0xff]  ;;  %v1229_v53 = vmul.f32 %v1220_v43, %v1213_v41  ;;  %v1243_v55 = vadd.f32 %v1236_v45, %v1227_v51 }
 0x194   : > { %v1230_v54 = vmul.f32 %v1224_v44, %v1214_v42  ;;  %v1244_v56 = vadd.f32 %v1240_v46, %v1228_v52 }
 0x195   : > { %v1245_v57 = vadd.f32 %v1236_v45, %v1229_v53  ;;  %v1253_v59 = vadd.f32 %v1249_v47, %v1243_v55 }
 0x196   : > { %v1246_v58 = vadd.f32 %v1240_v46, %v1230_v54  ;;  %v1254_v60 = vadd.f32 %v1250_v48, %v1244_v56 }
 0x197   : > { %v1255_v61 = vadd.f32 %v1251_v49, %v1245_v57  ;;  %v1257_v63 = vmax.f32 %v1253_v59, 0.0 }
 0x198   : > { %v1256_v62 = vadd.f32 %v1252_v50, %v1246_v58  ;;  %v1258_v0 = vmax.f32 %v1254_v60, 0.0 }
 0x199   : > { %v1259_v1 = vmax.f32 %v1255_v61, 0.0 }
 0x19a   : > { %v1260_v2 = vmax.f32 %v1256_v62, 0.0  ;;  %v1563_v3 = vpack.c.bf16 %v1258_v0, %v1257_v63 }
 0x19c   : > { %v1564_v4 = vpack.c.bf16 %v1260_v2, %v1259_v1  ;;  %1273 = vst [vmem:[%s2167_s23] sm:$0xff] %v1563_v3 }
 0x19e   : > { %1274 = vst [vmem:[%s2167_s23 + $0x8] sm:$0xff] %v1564_v4 }
 0x19f PF: > { %1281 = sbr.rel (!%p1984_p13) target bundleno = 423 (0x1a7), region = 151  ;;  %s1565_s24 = sshll.u32 (%p1984_p13), %s1835_s25, 3 }
 0x1a0   : > { %s1287_s11 = scalar_lea.vmem (%p1984_p13), %s2301_s5, %s1565_s24 }
 0x1a3   : > { %v1317_v5 = vld [vmem:[%s2167_s23] sm:$0xff] (%p1984_p13) }
 0x1a4   : > { %1318 = vst [vmem:[%s1287_s11] sm:$0xff] (%p1984_p13), %v1317_v5 }
 0x1a5   : > { %v1319_v6 = vld [vmem:[%s2167_s23 + $0x8] sm:$0xff] (%p1984_p13) }
 0x1a6   : > { %1320 = vst [vmem:[%s1287_s11 + $0x10] sm:$0xff] %v1319_v6 }
 0x1a7 PF: > { %s15_s28 = sadd.s32 1, %s1847_s28   ;;  %s2315_s22 = sld [smem:[#allocation7_spill]] }
 0x1a8   : > { %p12_p7 = scmp.ge.s32.totalorder %s15_s28, 20   ;;  %s2316_s23 = sld [smem:[#allocation10_spill]] }
 0x1a9   : > { %s2317_s8 = sld [smem:[#allocation8_spill]]  ;;  %s2318_s14 = sld [smem:[#allocation9_spill]] }
 0x1aa   : > { %s2319_s18 = smov %s1811_s19  ;;  %s2320_s19 = smov %s1976_s17 }
 0x1ab   : > { %s2321_s20 = smov %s1819_s21  ;;  %s2322_s21 = smov %s1973_s16 }
 0x1ac   : > { %s2323_s24 = smov %s1839_s26  ;;  %s2324_s25 = smov %s1843_s27 }
 0x1ad   :  { %14 = sbr.rel (!%p12_p7) target bundleno = 8 (0x8), region = 242 }
 0x1af   : > { %s2325_s26 = smov %s2317_s8  ;;  %s2326_s27 = smov %s2318_s14 }

// kernel: resnet18_forward.43
= control target key start
LH: loop header
LB: loop body
LE: loop exit
PB: predicated region body
PF: predicated region fallthrough
CT: control target
= control target key end

     0   :  { %v24_v23 = vlaneseq  ;;  %s740_s0 = inlined_call_operand.vmem [shape: bf16[2,1,512], index: 0, kind: input, shape index: {}]   ;;  %s741_s1 = inlined_call_operand.vmem [shape: bf16[512,128], index: 1, kind: input, shape index: {}]   ;;  %s742_s2 = inlined_call_operand.vmem [shape: f32[1,128], index: 2, kind: input, shape index: {}]   ;;  %s743_s3 = inlined_call_operand.hbm [shape: f32[2,128], index: 3, kind: output, shape index: {}]  }
   0x1   :  { %v545_v0 = vld [vmem:[%s741_s1 + $0x40] sm:$0xff]   ;;  %v549_v4 = vld [vmem:[%s741_s1 + $0x48] sm:$0xff]   ;;  %v553_v8 = vld [vmem:[%s741_s1 + $0x50] sm:$0xff]  }
   0x2   :  { %v546_v1 = vld [vmem:[%s741_s1 + $0xc0] sm:$0xff]   ;;  %500 = vmatprep.subr.bf16.mxu0 %v545_v0  ;;  %v550_v5 = vld [vmem:[%s741_s1 + $0xc8] sm:$0xff]   ;;  %v554_v9 = vld [vmem:[%s741_s1 + $0xd0] sm:$0xff]   ;;  %v25_v28 = vshrl.u32 %v24_v23, 7 }
   0x3   :  { %v547_v2 = vld [vmem:[%s741_s1] sm:$0xff]   ;;  %522 = vmatprep.subr.bf16.mxu1 %v546_v1  ;;  %v551_v6 = vld [vmem:[%s741_s1 + $0x8] sm:$0xff]   ;;  %v555_v10 = vld [vmem:[%s741_s1 + $0x10] sm:$0xff]  }
   0x4   :  { %v548_v3 = vld [vmem:[%s741_s1 + $0x80] sm:$0xff]   ;;  %501 = vmatpush3.bf16.msra.mxu0 %v547_v2  ;;  %v552_v7 = vld [vmem:[%s741_s1 + $0x88] sm:$0xff]   ;;  %v556_v11 = vld [vmem:[%s741_s1 + $0x90] sm:$0xff]   ;;  %v30_v33 = vsub.s32 2, %v25_v28  ;;  %v38_v35 = vsub.s32 6, %v25_v28  ;;  %v26_v37 = vsub.s32 0, %v25_v28 }
   0x5   :  { %523 = vmatpush3.bf16.msra.mxu1 %v548_v3  ;;  %502 = vmatprep.subr.bf16.mxu0 %v549_v4  ;;  %v557_v12 = vld [vmem:[%s741_s1 + $0x58] sm:$0xff]   ;;  %v561_v16 = vld [vmem:[%s741_s1 + $0x60] sm:$0xff]   ;;  %v565_v20 = vld [vmem:[%s741_s1 + $0x68] sm:$0xff]   ;;  %v34_v38 = vsub.s32 4, %v25_v28 }
   0x6   :  { %524 = vmatprep.subr.bf16.mxu1 %v550_v5  ;;  %v558_v13 = vld [vmem:[%s741_s1 + $0xd8] sm:$0xff]   ;;  %v562_v17 = vld [vmem:[%s741_s1 + $0xe0] sm:$0xff]   ;;  %v566_v21 = vld [vmem:[%s741_s1 + $0xe8] sm:$0xff]  }
   0x7   :  { %v559_v14 = vld [vmem:[%s741_s1 + $0x18] sm:$0xff]   ;;  %v563_v18 = vld [vmem:[%s741_s1 + $0x20] sm:$0xff]   ;;  %v567_v22 = vld [vmem:[%s741_s1 + $0x28] sm:$0xff]  }
   0x8   :  { %503 = vmatpush3.bf16.msra.mxu0 %v551_v6  ;;  %v560_v15 = vld [vmem:[%s741_s1 + $0x98] sm:$0xff]   ;;  %v564_v19 = vld [vmem:[%s741_s1 + $0xa0] sm:$0xff]   ;;  %v568_v24 = vld [vmem:[%s741_s1 + $0xa8] sm:$0xff]  }
   0x9   :  { %525 = vmatpush3.bf16.msra.mxu1 %v552_v7  ;;  %504 = vmatprep.subr.bf16.mxu0 %v553_v8  ;;  %v569_v25 = vld [vmem:[%s741_s1 + $0x70] sm:$0xff]   ;;  %v573_v30 = vld [vmem:[%s741_s1 + $0x78] sm:$0xff]   ;;  %v497_v36 = vld [vmem:[%s740_s0] sm:$0xff]  }
   0xa   :  { %526 = vmatprep.subr.bf16.mxu1 %v554_v9  ;;  %v570_v26 = vld [vmem:[%s741_s1 + $0xf0] sm:$0xff]   ;;  %v574_v31 = vld [vmem:[%s741_s1 + $0xf8] sm:$0xff]  }
   0xb   :  { %v571_v27 = vld [vmem:[%s741_s1 + $0x30] sm:$0xff]   ;;  %v575_v32 = vld [vmem:[%s741_s1 + $0x38] sm:$0xff]  }
   0xc   :  { %505 = vmatpush3.bf16.msra.mxu0 %v555_v10  ;;  %v572_v29 = vld [vmem:[%s741_s1 + $0xb0] sm:$0xff]   ;;  %v576_v34 = vld [vmem:[%s741_s1 + $0xb8] sm:$0xff]  }
   0xd   :  { %527 = vmatpush3.bf16.msra.mxu1 %v556_v11  ;;  %506 = vmatprep.subr.bf16.mxu0 %v557_v12 }
   0xe   :  { %528 = vmatprep.subr.bf16.mxu1 %v558_v13 }
  0x10   :  { %507 = vmatpush3.bf16.msra.mxu0 %v559_v14 }
  0x11   :  { %529 = vmatpush3.bf16.msra.mxu1 %v560_v15  ;;  %508 = vmatprep.subr.bf16.mxu0 %v561_v16 }
  0x12   :  { %530 = vmatprep.subr.bf16.mxu1 %v562_v17 }
  0x14   :  { %509 = vmatpush3.bf16.msra.mxu0 %v563_v18 }
  0x15   :  { %531 = vmatpush3.bf16.msra.mxu1 %v564_v19  ;;  %510 = vmatprep.subr.bf16.mxu0 %v565_v20 }
  0x16   :  { %532 = vmatprep.subr.bf16.mxu1 %v566_v21 }
  0x18   :  { %511 = vmatpush3.bf16.msra.mxu0 %v567_v22 }
  0x19   :  { %533 = vmatpush3.bf16.msra.mxu1 %v568_v24  ;;  %512 = vmatprep.subr.bf16.mxu0 %v569_v25 }
  0x1a   :  { %534 = vmatprep.subr.bf16.mxu1 %v570_v26 }
  0x1c   :  { %513 = vmatpush3.bf16.msra.mxu0 %v571_v27 }
  0x1d   :  { %535 = vmatpush3.bf16.msra.mxu1 %v572_v29  ;;  %514 = vmatprep.subr.bf16.mxu0 %v573_v30 }
  0x1e   :  { %536 = vmatprep.subr.bf16.mxu1 %v574_v31 }
  0x20   :  { %515 = vmatpush3.bf16.msra.mxu0 %v575_v32 }
  0x21   :  { %8 = vsyncpa [#allocation3], 0  ;;  %537 = vmatpush3.bf16.msra.mxu1 %v576_v34  ;;  %v498_v39 = vunpack.c.l.bf16 %v497_v36  ;;  %v499_v40 = vunpack.c.h.bf16 %v497_v36  ;;  %vm160_vm0 = vcmask 1041409   ;;  %v463_v15 = vld [vmem:[%s742_s2] ss:$0 sm:$0xff]  ;;  %s601_s24 = smov [#allocation2]  }
  0x22   :  { %s455_s25 = sshll.u32 %s601_s24, 4  ;;  %s456_s25 = int_to_ptr.vmem [resolvable:$true] %s455_s25 }
  0x23   :  { %v31_v41 = vrot.slane %v498_v39, %v30_v33  ;;  %v47_v42 = vrot.slane %v499_v40, %v30_v33  ;;  %v39_v43 = vrot.slane %v498_v39, %v38_v35  ;;  %v55_v44 = vrot.slane %v499_v40, %v38_v35  ;;  %s577_s26 = scalar_lea.vmem %s456_s25, 32  ;;  %p582_p1 = scmp.lt.s32.totalorder %s456_s25, %s456_s25 }
  0x24   :  { %v27_v45 = vrot.slane %v498_v39, %v26_v37  ;;  %v43_v46 = vrot.slane %v499_v40, %v26_v37  ;;  %v35_v47 = vrot.slane %v498_v39, %v34_v38  ;;  %v51_v48 = vrot.slane %v499_v40, %v34_v38  ;;  %p578_p0 = scmp.ne.s32.totalorder %s456_s25, %s577_s26  ;;  %p583_p2 = scmp.lt.s32.totalorder %s577_s26, %s577_s26 }
  0x25   :  { %v65_v49 = vpack.c.bf16 %v31_v41, %v31_v41  ;;  %v69_v50 = vpack.c.bf16 %v47_v42, %v47_v42  ;;  %v67_v51 = vpack.c.bf16 %v39_v43, %v39_v43  ;;  %v71_v52 = vpack.c.bf16 %v55_v44, %v55_v44 }
  0x26   :  { %v64_v53 = vpack.c.bf16 %v27_v45, %v27_v45  ;;  %v68_v54 = vpack.c.bf16 %v43_v46, %v43_v46  ;;  %v66_v55 = vpack.c.bf16 %v35_v47, %v35_v47  ;;  %v70_v56 = vpack.c.bf16 %v51_v48, %v51_v48  ;;  %p584_p3 = por %p583_p2, %p582_p1 }
  0x27   :  { %v152_v57 = vunpack.c.l.b16 %v65_v49  ;;  %v156_v58 = vunpack.c.l.b16 %v69_v50  ;;  %v154_v59 = vunpack.c.l.b16 %v67_v51  ;;  %v158_v60 = vunpack.c.l.b16 %v71_v52 }
  0x28   :  { %v151_v61 = vunpack.c.l.b16 %v64_v53  ;;  %v155_v62 = vunpack.c.l.b16 %v68_v54  ;;  %v153_v63 = vunpack.c.l.b16 %v66_v55  ;;  %v157_v0 = vunpack.c.l.b16 %v70_v56  ;;  %p585_p4 = pnand %p584_p3, %p578_p0 }
  0x29   :  { %v162_v1 = vrot.slane %v156_v58, 7  ;;  %v166_v2 = vrot.slane %v158_v60, 7 }
  0x2a   :  { %v159_v3 = vrot.slane %v155_v62, 7  ;;  %v164_v4 = vrot.slane %v157_v0, 7 }
  0x2b   :  { %v163_v5 = vsel %vm160_vm0, %v162_v1, %v152_v57  ;;  %v167_v6 = vsel %vm160_vm0, %v166_v2, %v154_v59 }
  0x2c   :  { %v169_v7 = vpack.c.b16 %v163_v5, %v163_v5  ;;  %v171_v8 = vpack.c.b16 %v167_v6, %v167_v6  ;;  %v161_v9 = vsel %vm160_vm0, %v159_v3, %v151_v61  ;;  %v165_v10 = vsel %vm160_vm0, %v164_v4, %v153_v63 }
  0x2d   :  { %v168_v11 = vpack.c.b16 %v161_v9, %v161_v9  ;;  %v170_v12 = vpack.c.b16 %v165_v10, %v165_v10 }
  0x2e   :  { %400 = vmatprep.mubr.bf16.mxu0 %v169_v7  ;;  %440 = vmatprep.mubr.bf16.mxu1 %v171_v8 }
  0x2f   :  { %401 = vmatmul.mubr.bf16.vlgmr.msra.gmra.mrb[0].mxu0 %v168_v11  ;;  %441 = vmatmul.mubr.bf16.vlgmr.msra.gmra.mrb[0].mxu1 %v170_v12 }
 0x102   :  { %v516_v13 = vpop.f32.mrb[0].mxu0  ;;  %v538_v14 = vpop.f32.mrb[0].mxu1 }
 0x103   :  { %v517_v16 = vpop.f32.mrb[1].mxu0  ;;  %v539_v17 = vpop.f32.mrb[1].mxu1 }
 0x104   :  { %v518_v18 = vadd.f32 %v517_v16, %v516_v13  ;;  %v540_v19 = vadd.f32 %v539_v17, %v538_v14  ;;  %v519_v20 = vpop.f32.mrb[2].mxu0  ;;  %v541_v21 = vpop.f32.mrb[2].mxu1 }
 0x105   :  { %v520_v22 = vpop.f32.mrb[3].mxu0  ;;  %v542_v23 = vpop.f32.mrb[3].mxu1 }
 0x106   :  { %v403_v24 = vadd.f32 %v518_v18, %v463_v15 }
 0x108   :  { %v443_v25 = vadd.f32 %v540_v19, %v403_v24 }
 0x10a   :  { %448 = vst [vmem:[#allocation2] sm:$0x3] %v443_v25 }
 0x10b   :  { %588 = shalt.err (!%p585_p4)
}
 0x10c   :  { %s589_s28 = scalar_lea.hbm %s743_s3, 32 }
 0x10d   :  { %p590_p5 = scmp.ne.s32.totalorder %s743_s3, %s589_s28  ;;  %p593_p6 = scmp.lt.u32.totalorder %s589_s28, %s743_s3 }
 0x10f   :  { %p595_p7 = pnand %p593_p6, %p590_p5 }
 0x111   :  { %598 = shalt.err (!%p595_p7)
}
 0x112   :  { %458 = dma.vmem_to_hbm [thread:$0]  %s456_s25, 32, %s743_s3, [#allocation3]  }
 0x113   :  { %599 = dma.done.wait [#allocation3], 32  }
 0x114   :  { %600 = vsyncadd [#allocation3], 4294967264 }
 0x115   :  { %462 = vsyncpa [#allocation3], 1 }

</bundles_post_ra>
